<compile_context>
chip_gen: v7x
topology: tpu7x:2x2x1
jax: 0.10.0
libtpu: 0.0.40
codegen_flags: <defaults>
</compile_context>

<pallas_src>
import math

import jax
import jax.numpy as jnp
from jax.experimental import pallas as pl
from jax.experimental.pallas import tpu as pltpu  # noqa: F401  (TPU backend assumed)

# ---------------- configuration (small synthetic CLIP, lane/sublane-aligned dims) ----------------
CLASSES = ["a cat", "a dog", "a car"]      # -> 3 text prompts
NUM_CLASSES = len(CLASSES)
BATCH = 2
CHANNELS = 3
IMG_SIZE = 32
PATCH = 16
NUM_PATCHES = (IMG_SIZE // PATCH) ** 2     # 4
VIS_SEQ = NUM_PATCHES + 1                  # +CLS = 5 real vision tokens
VIS_SEQ_PAD = 8                            # padded to sublane multiple (clean (8,128) tiles)
TXT_SEQ = 8
VOCAB = 64
HIDDEN = 128                               # one full vreg lane group / MXU tile
NUM_HEADS = 2
HEAD_DIM = HIDDEN // NUM_HEADS             # 64
MLP_DIM = 4 * HIDDEN                       # 512
NUM_LAYERS = 2
PROJ_DIM = 128                             # lane-dense projection dim
CPP = CHANNELS * PATCH * PATCH             # 768 (multiple of 128)
LN_EPS = 1e-5
ATTN_SCALE = 1.0 / math.sqrt(HEAD_DIM)
NEG_INF = -1e9


# ---------------- in-kernel helpers (traced inside the fused kernel) ----------------
def _bf16(x):
    return x.astype(jnp.bfloat16)


def _layernorm(x, g, b):
    mu = jnp.mean(x, axis=-1, keepdims=True)
    xc = x - mu
    var = jnp.mean(xc * xc, axis=-1, keepdims=True)
    return xc * jax.lax.rsqrt(var + LN_EPS) * g + b


def _encoder_tower(h, batch, seq, layers, keep):
    """h: [batch*seq, HIDDEN] f32.  `layers` = 12 stacked-weight refs indexed by layer.
    `keep`: None or [1, seq, seq] bool attention mask (True = attend)."""
    (ln1_g, ln1_b, qkv_w, qkv_b, o_w, o_b,
     ln2_g, ln2_b, fc1_w, fc1_b, fc2_w, fc2_b) = layers

    for l in range(NUM_LAYERS):
        # ---- self-attention (pre-LN, fused QKV, lane-sliced heads, per-head O-proj summed) ----
        res = h
        x = _layernorm(h, ln1_g[l], ln1_b[l])
        qkv = jnp.dot(_bf16(x), qkv_w[l], preferred_element_type=jnp.float32) + qkv_b[l]
        q = qkv[:, 0 * HIDDEN:1 * HIDDEN].reshape(batch, seq, HIDDEN)
        k = qkv[:, 1 * HIDDEN:2 * HIDDEN].reshape(batch, seq, HIDDEN)
        v = qkv[:, 2 * HIDDEN:3 * HIDDEN].reshape(batch, seq, HIDDEN)
        o_w_l = o_w[l]                                        # [HIDDEN, HIDDEN]
        attn = None
        for hh in range(NUM_HEADS):
            sl = slice(hh * HEAD_DIM, (hh + 1) * HEAD_DIM)
            qh, kh, vh = q[:, :, sl], k[:, :, sl], v[:, :, sl]
            # contract last dims directly (no explicit k.T / XLU transpose), batched over b
            s = jax.lax.dot_general(
                _bf16(qh), _bf16(kh), (((2,), (2,)), ((0,), (0,))),
                preferred_element_type=jnp.float32) * ATTN_SCALE
            if keep is not None:
                s = jnp.where(keep, s, NEG_INF)
            s = s - jnp.max(s, axis=-1, keepdims=True)
            p = jnp.exp(s)
            p = p * pl.reciprocal(jnp.sum(p, axis=-1, keepdims=True), approx=True)
            oh = jax.lax.dot_general(
                _bf16(p), _bf16(vh), (((2,), (1,)), ((0,), (0,))),
                preferred_element_type=jnp.float32)
            oh = oh.reshape(batch * seq, HEAD_DIM)
            # concat(heads) @ W_o == sum_h head_h @ W_o[h*Dh:(h+1)*Dh]  (no lane concat needed)
            contrib = jnp.dot(_bf16(oh), o_w_l[sl, :], preferred_element_type=jnp.float32)
            attn = contrib if attn is None else attn + contrib
        h = res + attn + o_b[l]

        # ---- MLP (pre-LN, QuickGELU) ----
        res = h
        x = _layernorm(h, ln2_g[l], ln2_b[l])
        y = jnp.dot(_bf16(x), fc1_w[l], preferred_element_type=jnp.float32) + fc1_b[l]
        y = y * jax.nn.sigmoid(1.702 * y)                     # CLIP QuickGELU
        y = jnp.dot(_bf16(y), fc2_w[l], preferred_element_type=jnp.float32) + fc2_b[l]
        h = res + y
    return h


# ---------------- the single fused Pallas kernel ----------------
def _clip_fused_kernel(
    vis_x_ref, patch_w_ref, vis_add_ref, pre_g_ref, pre_b_ref,
    v_ln1_g, v_ln1_b, v_qkv_w, v_qkv_b, v_o_w, v_o_b,
    v_ln2_g, v_ln2_b, v_fc1_w, v_fc1_b, v_fc2_w, v_fc2_b,
    post_g_ref, post_b_ref, vis_proj_ref,
    txt_h_ref,
    t_ln1_g, t_ln1_b, t_qkv_w, t_qkv_b, t_o_w, t_o_b,
    t_ln2_g, t_ln2_b, t_fc1_w, t_fc1_b, t_fc2_w, t_fc2_b,
    fin_g_ref, fin_b_ref, txt_proj_ref, scale_ref,
    o_ref,
):
    # ---------------- vision tower ----------------
    vx = vis_x_ref[...]                                       # [B*VIS_SEQ_PAD, CPP] (CLS/pad rows = 0)
    h = jnp.dot(_bf16(vx), patch_w_ref[...], preferred_element_type=jnp.float32)
    h = (h.reshape(BATCH, VIS_SEQ_PAD, HIDDEN) + vis_add_ref[...][None]
         ).reshape(BATCH * VIS_SEQ_PAD, HIDDEN)
    h = _layernorm(h, pre_g_ref[...], pre_b_ref[...])
    # mask out padded key columns (built from iota in-kernel; hoisted out of the layer loop)
    cols_v = jax.lax.broadcasted_iota(jnp.int32, (VIS_SEQ_PAD, VIS_SEQ_PAD), 1)
    keep_v = (cols_v < VIS_SEQ)[None]                         # [1, S, S]
    h = _encoder_tower(
        h, BATCH, VIS_SEQ_PAD,
        (v_ln1_g, v_ln1_b, v_qkv_w, v_qkv_b, v_o_w, v_o_b,
         v_ln2_g, v_ln2_b, v_fc1_w, v_fc1_b, v_fc2_w, v_fc2_b),
        keep=keep_v)
    pooled = h.reshape(BATCH, VIS_SEQ_PAD, HIDDEN)[:, 0, :]   # CLS token
    pooled = _layernorm(pooled, post_g_ref[...], post_b_ref[...])
    img = jnp.dot(_bf16(pooled), vis_proj_ref[...], preferred_element_type=jnp.float32)

    # ---------------- text tower ----------------
    th = txt_h_ref[...]                                       # [C*TXT_SEQ, HIDDEN]
    rows_t = jax.lax.broadcasted_iota(jnp.int32, (TXT_SEQ, TXT_SEQ), 0)
    cols_t = jax.lax.broadcasted_iota(jnp.int32, (TXT_SEQ, TXT_SEQ), 1)
    keep_t = (cols_t <= rows_t)[None]                         # causal mask [1, S, S]
    th = _encoder_tower(
        th, NUM_CLASSES, TXT_SEQ,
        (t_ln1_g, t_ln1_b, t_qkv_w, t_qkv_b, t_o_w, t_o_b,
         t_ln2_g, t_ln2_b, t_fc1_w, t_fc1_b, t_fc2_w, t_fc2_b),
        keep=keep_t)
    th = _layernorm(th, fin_g_ref[...], fin_b_ref[...])
    # TODO(synk): real CLIP pools at argmax(input_ids == eos); synthetic ids place EOS last,
    # so last-token pooling is equivalent here.
    tpool = th.reshape(NUM_CLASSES, TXT_SEQ, HIDDEN)[:, TXT_SEQ - 1, :]
    txt = jnp.dot(_bf16(tpool), txt_proj_ref[...], preferred_element_type=jnp.float32)

    # ---------------- L2-normalize + logits ----------------
    img = img * jax.lax.rsqrt(jnp.sum(img * img, axis=-1, keepdims=True))
    txt = txt * jax.lax.rsqrt(jnp.sum(txt * txt, axis=-1, keepdims=True))
    logits = jax.lax.dot_general(img, txt, (((1,), (1,)), ((), ())),
                                 preferred_element_type=jnp.float32)
    o_ref[...] = scale_ref[...] * logits                      # (1,1) broadcasts, no scalar extract


def clip_fused(vis_x, vis_add, txt_h, params):
    v, t = params["v_stack"], params["t_stack"]
    args = (
        vis_x, params["patch_w"], vis_add, params["pre_ln_g"], params["pre_ln_b"],
        v["ln1_g"], v["ln1_b"], v["qkv_w"], v["qkv_b"], v["o_w"], v["o_b"],
        v["ln2_g"], v["ln2_b"], v["fc1_w"], v["fc1_b"], v["fc2_w"], v["fc2_b"],
        params["post_ln_g"], params["post_ln_b"], params["vis_proj_w"],
        txt_h,
        t["ln1_g"], t["ln1_b"], t["qkv_w"], t["qkv_b"], t["o_w"], t["o_b"],
        t["ln2_g"], t["ln2_b"], t["fc1_w"], t["fc1_b"], t["fc2_w"], t["fc2_b"],
        params["final_ln_g"], params["final_ln_b"], params["txt_proj_w"],
        params["logit_scale"],
    )
    # No grid / no BlockSpecs: every array (<~2 MiB total) is mapped whole into VMEM and the
    # kernel runs as a single invocation -> one launch for the entire CLIP forward.
    return pl.pallas_call(
        _clip_fused_kernel,
        out_shape=jax.ShapeDtypeStruct((BATCH, NUM_CLASSES), jnp.float32),
    )(*args)


# ---------------- parameter init (matmul weights in bf16, LN/bias in f32) ----------------
def _init(key, shape, scale=0.02, dtype=jnp.float32):
    return (scale * jax.random.normal(key, shape, jnp.float32)).astype(dtype)


def make_tower_stack(key):
    ks = jax.random.split(key, 4)
    d, dm, L = HIDDEN, MLP_DIM, NUM_LAYERS
    return dict(
        ln1_g=jnp.ones((L, 1, d), jnp.float32), ln1_b=jnp.zeros((L, 1, d), jnp.float32),
        qkv_w=_init(ks[0], (L, d, 3 * d), dtype=jnp.bfloat16),   # fused Q/K/V projection
        qkv_b=jnp.zeros((L, 1, 3 * d), jnp.float32),
        o_w=_init(ks[1], (L, d, d), dtype=jnp.bfloat16),
        o_b=jnp.zeros((L, 1, d), jnp.float32),
        ln2_g=jnp.ones((L, 1, d), jnp.float32), ln2_b=jnp.zeros((L, 1, d), jnp.float32),
        fc1_w=_init(ks[2], (L, d, dm), dtype=jnp.bfloat16),
        fc1_b=jnp.zeros((L, 1, dm), jnp.float32),
        fc2_w=_init(ks[3], (L, dm, d), dtype=jnp.bfloat16),
        fc2_b=jnp.zeros((L, 1, d), jnp.float32),
    )


def init_params(key):
    ks = jax.random.split(key, 9)
    return dict(
        patch_w=_init(ks[0], (CPP, HIDDEN), dtype=jnp.bfloat16),   # conv has bias=False
        class_emb=_init(ks[1], (HIDDEN,)),
        pos_emb_v=_init(ks[2], (VIS_SEQ, HIDDEN)),
        pre_ln_g=jnp.ones((1, HIDDEN), jnp.float32), pre_ln_b=jnp.zeros((1, HIDDEN), jnp.float32),
        post_ln_g=jnp.ones((1, HIDDEN), jnp.float32), post_ln_b=jnp.zeros((1, HIDDEN), jnp.float32),
        vis_proj_w=_init(ks[3], (HIDDEN, PROJ_DIM), dtype=jnp.bfloat16),
        tok_emb=_init(ks[4], (VOCAB, HIDDEN)),
        pos_emb_t=_init(ks[5], (TXT_SEQ, HIDDEN)),
        final_ln_g=jnp.ones((1, HIDDEN), jnp.float32), final_ln_b=jnp.zeros((1, HIDDEN), jnp.float32),
        txt_proj_w=_init(ks[6], (HIDDEN, PROJ_DIM), dtype=jnp.bfloat16),
        logit_scale=jnp.full((1, 1), 1.0 / 0.07, jnp.float32),     # exp(log(1/0.07))
        v_stack=make_tower_stack(ks[7]),
        t_stack=make_tower_stack(ks[8]),
    )


# ---------------- forward (tiny JAX-side prep, then the single fused kernel) ----------------
@jax.jit
def clip_forward(params, pixel_values, input_ids):
    B, C, H, W = pixel_values.shape
    p = PATCH
    # im2col: NCHW -> [B, Np, C*p*p]; patch conv (stride=patch, no bias) == matmul.
    x = pixel_values.reshape(B, C, H // p, p, W // p, p)
    x = x.transpose(0, 2, 4, 1, 3, 5).reshape(B, NUM_PATCHES, CPP)
    # Padded vision sequence: row 0 (CLS) and rows VIS_SEQ..VIS_SEQ_PAD-1 (pad) are zero
    # "patches" so (row @ patch_w) == 0; CLS embedding is injected via vis_add below.
    # Padding to 8 tokens keeps every in-kernel reshape on (8,128) tile boundaries.
    vis_x = jnp.zeros((B, VIS_SEQ_PAD, CPP), jnp.float32)
    vis_x = vis_x.at[:, 1:1 + NUM_PATCHES].set(x)
    vis_x = vis_x.reshape(B * VIS_SEQ_PAD, CPP)
    vis_add = jnp.zeros((VIS_SEQ_PAD, HIDDEN), jnp.float32)
    vis_add = vis_add.at[:VIS_SEQ].set(params["pos_emb_v"])
    vis_add = vis_add.at[0].add(params["class_emb"])           # [VIS_SEQ_PAD, HIDDEN]

    # Text embeddings: token gather + positional add stay in plain JAX (tiny, no clean
    # in-kernel gather needed for this vocab size).
    txt_h = jnp.take(params["tok_emb"], input_ids, axis=0) + params["pos_emb_t"][None]
    txt_h = txt_h.reshape(NUM_CLASSES * TXT_SEQ, HIDDEN)

    # logits_per_image = logit_scale * norm(img) @ norm(txt)^T (returned un-softmaxed, as in the module)
    return clip_fused(vis_x, vis_add, txt_h, params)


if __name__ == "__main__":
    key = jax.random.PRNGKey(0)
    k_params, k_img, k_txt = jax.random.split(key, 3)

    params = init_params(k_params)

    # deterministic synthetic inputs (stand-in for CLIPProcessor output)
    pixel_values = jax.random.normal(k_img, (BATCH, CHANNELS, IMG_SIZE, IMG_SIZE), jnp.float32)
    input_ids = jax.random.randint(k_txt, (NUM_CLASSES, TXT_SEQ), 2, VOCAB - 1)
    input_ids = input_ids.at[:, 0].set(0)        # BOS
    input_ids = input_ids.at[:, -1].set(1)       # EOS at last position (pooling site)

    logits_per_image = clip_forward(params, pixel_values, input_ids)
    jax.block_until_ready(logits_per_image)

    assert logits_per_image.shape == (BATCH, NUM_CLASSES)
    assert logits_per_image.dtype == jnp.float32
    assert bool(jnp.all(jnp.isfinite(logits_per_image)))
    print("KERNEL_OK")
</pallas_src>

<mosaic_0001>
module attributes {stable_mosaic.version = 11 : i64} {
  func.func @_clip_fused_kernel(%arg0: memref<16x768xf32, #tpu.memory_space<vmem>>, %arg1: memref<768x128xbf16, #tpu.memory_space<vmem>>, %arg2: memref<8x128xf32, #tpu.memory_space<vmem>>, %arg3: memref<1x128xf32, #tpu.memory_space<vmem>>, %arg4: memref<1x128xf32, #tpu.memory_space<vmem>>, %arg5: memref<2x1x128xf32, #tpu.memory_space<vmem>>, %arg6: memref<2x1x128xf32, #tpu.memory_space<vmem>>, %arg7: memref<2x128x384xbf16, #tpu.memory_space<vmem>>, %arg8: memref<2x1x384xf32, #tpu.memory_space<vmem>>, %arg9: memref<2x128x128xbf16, #tpu.memory_space<vmem>>, %arg10: memref<2x1x128xf32, #tpu.memory_space<vmem>>, %arg11: memref<2x1x128xf32, #tpu.memory_space<vmem>>, %arg12: memref<2x1x128xf32, #tpu.memory_space<vmem>>, %arg13: memref<2x128x512xbf16, #tpu.memory_space<vmem>>, %arg14: memref<2x1x512xf32, #tpu.memory_space<vmem>>, %arg15: memref<2x512x128xbf16, #tpu.memory_space<vmem>>, %arg16: memref<2x1x128xf32, #tpu.memory_space<vmem>>, %arg17: memref<1x128xf32, #tpu.memory_space<vmem>>, %arg18: memref<1x128xf32, #tpu.memory_space<vmem>>, %arg19: memref<128x128xbf16, #tpu.memory_space<vmem>>, %arg20: memref<24x128xf32, #tpu.memory_space<vmem>>, %arg21: memref<2x1x128xf32, #tpu.memory_space<vmem>>, %arg22: memref<2x1x128xf32, #tpu.memory_space<vmem>>, %arg23: memref<2x128x384xbf16, #tpu.memory_space<vmem>>, %arg24: memref<2x1x384xf32, #tpu.memory_space<vmem>>, %arg25: memref<2x128x128xbf16, #tpu.memory_space<vmem>>, %arg26: memref<2x1x128xf32, #tpu.memory_space<vmem>>, %arg27: memref<2x1x128xf32, #tpu.memory_space<vmem>>, %arg28: memref<2x1x128xf32, #tpu.memory_space<vmem>>, %arg29: memref<2x128x512xbf16, #tpu.memory_space<vmem>>, %arg30: memref<2x1x512xf32, #tpu.memory_space<vmem>>, %arg31: memref<2x512x128xbf16, #tpu.memory_space<vmem>>, %arg32: memref<2x1x128xf32, #tpu.memory_space<vmem>>, %arg33: memref<1x128xf32, #tpu.memory_space<vmem>>, %arg34: memref<1x128xf32, #tpu.memory_space<vmem>>, %arg35: memref<128x128xbf16, #tpu.memory_space<vmem>>, %arg36: memref<1x1xf32, #tpu.memory_space<vmem>>, %arg37: memref<2x3xf32, #tpu.memory_space<vmem>>) attributes {dimension_semantics = [], scalar_prefetch = 0 : i64, scratch_operands = 0 : i64, tpu.core_type = #tpu.core_type<tc>} {
    %c0 = arith.constant 0 : index
    %c0_0 = arith.constant 0 : index
    %0 = vector.load %arg0[%c0, %c0_0] : memref<16x768xf32, #tpu.memory_space<vmem>>, vector<16x768xf32>
    %1 = arith.truncf %0 : vector<16x768xf32> to vector<16x768xbf16>
    %c0_1 = arith.constant 0 : index
    %c0_2 = arith.constant 0 : index
    %2 = vector.load %arg1[%c0_1, %c0_2] : memref<768x128xbf16, #tpu.memory_space<vmem>>, vector<768x128xbf16>
    %cst = arith.constant dense<0.000000e+00> : vector<16x128xf32>
    %3 = tpu.matmul %1, %2, %cst {dimension_numbers = #tpu.dot_dimension_numbers<[1], [0], [0], [1], [0, 0, 1, 1], [], []>} : vector<16x768xbf16>, vector<768x128xbf16>, vector<16x128xf32> -> vector<16x128xf32>
    %4 = vector.shape_cast %3 : vector<16x128xf32> to vector<2x8x128xf32>
    %c0_3 = arith.constant 0 : index
    %c0_4 = arith.constant 0 : index
    %5 = vector.load %arg2[%c0_3, %c0_4] : memref<8x128xf32, #tpu.memory_space<vmem>>, vector<8x128xf32>
    %6 = vector.shape_cast %5 : vector<8x128xf32> to vector<1x8x128xf32>
    %7 = vector.broadcast %6 : vector<1x8x128xf32> to vector<2x8x128xf32>
    %8 = arith.addf %4, %7 : vector<2x8x128xf32>
    %9 = vector.shape_cast %8 : vector<2x8x128xf32> to vector<16x128xf32>
    %c0_5 = arith.constant 0 : index
    %c0_6 = arith.constant 0 : index
    %10 = vector.load %arg3[%c0_5, %c0_6] : memref<1x128xf32, #tpu.memory_space<vmem>>, vector<1x128xf32>
    %c0_7 = arith.constant 0 : index
    %c0_8 = arith.constant 0 : index
    %11 = vector.load %arg4[%c0_7, %c0_8] : memref<1x128xf32, #tpu.memory_space<vmem>>, vector<1x128xf32>
    %cst_9 = arith.constant dense<0.000000e+00> : vector<16xf32>
    %12 = vector.multi_reduction <add>, %9, %cst_9 [1] : vector<16x128xf32> to vector<16xf32>
    %13 = vector.shape_cast %12 : vector<16xf32> to vector<16x1xf32>
    %cst_10 = arith.constant 1.280000e+02 : f32
    %14 = vector.broadcast %cst_10 : f32 to vector<16x1xf32>
    %15 = arith.divf %13, %14 : vector<16x1xf32>
    %16 = vector.broadcast %15 : vector<16x1xf32> to vector<16x128xf32>
    %17 = arith.subf %9, %16 : vector<16x128xf32>
    %18 = arith.mulf %17, %17 : vector<16x128xf32>
    %cst_11 = arith.constant dense<0.000000e+00> : vector<16xf32>
    %19 = vector.multi_reduction <add>, %18, %cst_11 [1] : vector<16x128xf32> to vector<16xf32>
    %20 = vector.shape_cast %19 : vector<16xf32> to vector<16x1xf32>
    %cst_12 = arith.constant 1.280000e+02 : f32
    %21 = vector.broadcast %cst_12 : f32 to vector<16x1xf32>
    %22 = arith.divf %20, %21 : vector<16x1xf32>
    %cst_13 = arith.constant 9.99999974E-6 : f32
    %23 = vector.broadcast %cst_13 : f32 to vector<16x1xf32>
    %24 = arith.addf %22, %23 : vector<16x1xf32>
    %25 = math.rsqrt %24 : vector<16x1xf32>
    %26 = vector.broadcast %25 : vector<16x1xf32> to vector<16x128xf32>
    %27 = arith.mulf %17, %26 : vector<16x128xf32>
    %28 = vector.broadcast %10 : vector<1x128xf32> to vector<16x128xf32>
    %29 = arith.mulf %27, %28 : vector<16x128xf32>
    %30 = vector.broadcast %11 : vector<1x128xf32> to vector<16x128xf32>
    %31 = arith.addf %29, %30 : vector<16x128xf32>
    %32 = tpu.iota {dimensions = array<i32: 1>} : vector<8x8xi32>
    %c5_i32 = arith.constant 5 : i32
    %33 = vector.broadcast %c5_i32 : i32 to vector<8x8xi32>
    %34 = arith.cmpi slt, %32, %33 : vector<8x8xi32>
    %35 = vector.shape_cast %34 : vector<8x8xi1> to vector<1x8x8xi1>
    %c0_14 = arith.constant 0 : index
    %c0_15 = arith.constant 0 : index
    %c0_16 = arith.constant 0 : index
    %36 = vector.load %arg5[%c0_14, %c0_15, %c0_16] : memref<2x1x128xf32, #tpu.memory_space<vmem>>, vector<1x1x128xf32>
    %37 = vector.shape_cast %36 : vector<1x1x128xf32> to vector<1x128xf32>
    %c0_17 = arith.constant 0 : index
    %c0_18 = arith.constant 0 : index
    %c0_19 = arith.constant 0 : index
    %38 = vector.load %arg6[%c0_17, %c0_18, %c0_19] : memref<2x1x128xf32, #tpu.memory_space<vmem>>, vector<1x1x128xf32>
    %39 = vector.shape_cast %38 : vector<1x1x128xf32> to vector<1x128xf32>
    %cst_20 = arith.constant dense<0.000000e+00> : vector<16xf32>
    %40 = vector.multi_reduction <add>, %31, %cst_20 [1] : vector<16x128xf32> to vector<16xf32>
    %41 = vector.shape_cast %40 : vector<16xf32> to vector<16x1xf32>
    %cst_21 = arith.constant 1.280000e+02 : f32
    %42 = vector.broadcast %cst_21 : f32 to vector<16x1xf32>
    %43 = arith.divf %41, %42 : vector<16x1xf32>
    %44 = vector.broadcast %43 : vector<16x1xf32> to vector<16x128xf32>
    %45 = arith.subf %31, %44 : vector<16x128xf32>
    %46 = arith.mulf %45, %45 : vector<16x128xf32>
    %cst_22 = arith.constant dense<0.000000e+00> : vector<16xf32>
    %47 = vector.multi_reduction <add>, %46, %cst_22 [1] : vector<16x128xf32> to vector<16xf32>
    %48 = vector.shape_cast %47 : vector<16xf32> to vector<16x1xf32>
    %cst_23 = arith.constant 1.280000e+02 : f32
    %49 = vector.broadcast %cst_23 : f32 to vector<16x1xf32>
    %50 = arith.divf %48, %49 : vector<16x1xf32>
    %cst_24 = arith.constant 9.99999974E-6 : f32
    %51 = vector.broadcast %cst_24 : f32 to vector<16x1xf32>
    %52 = arith.addf %50, %51 : vector<16x1xf32>
    %53 = math.rsqrt %52 : vector<16x1xf32>
    %54 = vector.broadcast %53 : vector<16x1xf32> to vector<16x128xf32>
    %55 = arith.mulf %45, %54 : vector<16x128xf32>
    %56 = vector.broadcast %37 : vector<1x128xf32> to vector<16x128xf32>
    %57 = arith.mulf %55, %56 : vector<16x128xf32>
    %58 = vector.broadcast %39 : vector<1x128xf32> to vector<16x128xf32>
    %59 = arith.addf %57, %58 : vector<16x128xf32>
    %60 = arith.truncf %59 : vector<16x128xf32> to vector<16x128xbf16>
    %c0_25 = arith.constant 0 : index
    %c0_26 = arith.constant 0 : index
    %c0_27 = arith.constant 0 : index
    %61 = vector.load %arg7[%c0_25, %c0_26, %c0_27] : memref<2x128x384xbf16, #tpu.memory_space<vmem>>, vector<1x128x384xbf16>
    %62 = vector.shape_cast %61 : vector<1x128x384xbf16> to vector<128x384xbf16>
    %cst_28 = arith.constant dense<0.000000e+00> : vector<16x384xf32>
    %63 = tpu.matmul %60, %62, %cst_28 {dimension_numbers = #tpu.dot_dimension_numbers<[1], [0], [0], [1], [0, 0, 1, 1], [], []>} : vector<16x128xbf16>, vector<128x384xbf16>, vector<16x384xf32> -> vector<16x384xf32>
    %c0_29 = arith.constant 0 : index
    %c0_30 = arith.constant 0 : index
    %c0_31 = arith.constant 0 : index
    %64 = vector.load %arg8[%c0_29, %c0_30, %c0_31] : memref<2x1x384xf32, #tpu.memory_space<vmem>>, vector<1x1x384xf32>
    %65 = vector.shape_cast %64 : vector<1x1x384xf32> to vector<1x384xf32>
    %66 = vector.broadcast %65 : vector<1x384xf32> to vector<16x384xf32>
    %67 = arith.addf %63, %66 : vector<16x384xf32>
    %68 = vector.extract_strided_slice %67 {offsets = [0, 0], sizes = [16, 128], strides = [1, 1]} : vector<16x384xf32> to vector<16x128xf32>
    %69 = vector.shape_cast %68 : vector<16x128xf32> to vector<2x8x128xf32>
    %70 = vector.extract_strided_slice %67 {offsets = [0, 128], sizes = [16, 128], strides = [1, 1]} : vector<16x384xf32> to vector<16x128xf32>
    %71 = vector.shape_cast %70 : vector<16x128xf32> to vector<2x8x128xf32>
    %72 = vector.extract_strided_slice %67 {offsets = [0, 256], sizes = [16, 128], strides = [1, 1]} : vector<16x384xf32> to vector<16x128xf32>
    %73 = vector.shape_cast %72 : vector<16x128xf32> to vector<2x8x128xf32>
    %c0_32 = arith.constant 0 : index
    %c0_33 = arith.constant 0 : index
    %c0_34 = arith.constant 0 : index
    %74 = vector.load %arg9[%c0_32, %c0_33, %c0_34] : memref<2x128x128xbf16, #tpu.memory_space<vmem>>, vector<1x128x128xbf16>
    %75 = vector.shape_cast %74 : vector<1x128x128xbf16> to vector<128x128xbf16>
    %76 = vector.extract_strided_slice %69 {offsets = [0, 0, 0], sizes = [2, 8, 64], strides = [1, 1, 1]} : vector<2x8x128xf32> to vector<2x8x64xf32>
    %77 = vector.extract_strided_slice %71 {offsets = [0, 0, 0], sizes = [2, 8, 64], strides = [1, 1, 1]} : vector<2x8x128xf32> to vector<2x8x64xf32>
    %78 = vector.extract_strided_slice %73 {offsets = [0, 0, 0], sizes = [2, 8, 64], strides = [1, 1, 1]} : vector<2x8x128xf32> to vector<2x8x64xf32>
    %79 = arith.truncf %76 : vector<2x8x64xf32> to vector<2x8x64xbf16>
    %80 = arith.truncf %77 : vector<2x8x64xf32> to vector<2x8x64xbf16>
    %cst_35 = arith.constant dense<0.000000e+00> : vector<2x8x8xf32>
    %81 = tpu.matmul %79, %80, %cst_35 {dimension_numbers = #tpu.dot_dimension_numbers<[2], [2], [1], [1], [0, 0, 0, 1, 1, 1], [0], [0]>} : vector<2x8x64xbf16>, vector<2x8x64xbf16>, vector<2x8x8xf32> -> vector<2x8x8xf32>
    %cst_36 = arith.constant 1.250000e-01 : f32
    %82 = vector.broadcast %cst_36 : f32 to vector<2x8x8xf32>
    %83 = arith.mulf %81, %82 : vector<2x8x8xf32>
    %cst_37 = arith.constant -1.000000e+09 : f32
    %84 = vector.shape_cast %35 : vector<1x8x8xi1> to vector<1x8x8xi1>
    %85 = vector.broadcast %84 : vector<1x8x8xi1> to vector<2x8x8xi1>
    %86 = vector.broadcast %cst_37 : f32 to vector<2x8x8xf32>
    %87 = arith.select %85, %83, %86 : vector<2x8x8xi1>, vector<2x8x8xf32>
    %cst_38 = arith.constant dense<0xFF800000> : vector<2x8xf32>
    %88 = vector.multi_reduction <maximumf>, %87, %cst_38 [2] : vector<2x8x8xf32> to vector<2x8xf32>
    %89 = vector.shape_cast %88 : vector<2x8xf32> to vector<2x8x1xf32>
    %90 = vector.broadcast %89 : vector<2x8x1xf32> to vector<2x8x8xf32>
    %91 = arith.subf %87, %90 : vector<2x8x8xf32>
    %92 = math.exp %91 : vector<2x8x8xf32>
    %cst_39 = arith.constant dense<0.000000e+00> : vector<2x8xf32>
    %93 = vector.multi_reduction <add>, %92, %cst_39 [2] : vector<2x8x8xf32> to vector<2x8xf32>
    %94 = vector.shape_cast %93 : vector<2x8xf32> to vector<2x8x1xf32>
    %95 = tpu.reciprocal %94 {approx = true} : vector<2x8x1xf32> -> vector<2x8x1xf32>
    %96 = vector.broadcast %95 : vector<2x8x1xf32> to vector<2x8x8xf32>
    %97 = arith.mulf %92, %96 : vector<2x8x8xf32>
    %98 = arith.truncf %97 : vector<2x8x8xf32> to vector<2x8x8xbf16>
    %99 = arith.truncf %78 : vector<2x8x64xf32> to vector<2x8x64xbf16>
    %cst_40 = arith.constant dense<0.000000e+00> : vector<2x8x64xf32>
    %100 = tpu.matmul %98, %99, %cst_40 {dimension_numbers = #tpu.dot_dimension_numbers<[2], [1], [1], [2], [0, 0, 0, 1, 1, 2], [0], [0]>} : vector<2x8x8xbf16>, vector<2x8x64xbf16>, vector<2x8x64xf32> -> vector<2x8x64xf32>
    %101 = vector.shape_cast %100 : vector<2x8x64xf32> to vector<16x64xf32>
    %102 = arith.truncf %101 : vector<16x64xf32> to vector<16x64xbf16>
    %103 = vector.extract_strided_slice %75 {offsets = [0, 0], sizes = [64, 128], strides = [1, 1]} : vector<128x128xbf16> to vector<64x128xbf16>
    %cst_41 = arith.constant dense<0.000000e+00> : vector<16x128xf32>
    %104 = tpu.matmul %102, %103, %cst_41 {dimension_numbers = #tpu.dot_dimension_numbers<[1], [0], [0], [1], [0, 0, 1, 1], [], []>} : vector<16x64xbf16>, vector<64x128xbf16>, vector<16x128xf32> -> vector<16x128xf32>
    %105 = vector.extract_strided_slice %69 {offsets = [0, 0, 64], sizes = [2, 8, 64], strides = [1, 1, 1]} : vector<2x8x128xf32> to vector<2x8x64xf32>
    %106 = vector.extract_strided_slice %71 {offsets = [0, 0, 64], sizes = [2, 8, 64], strides = [1, 1, 1]} : vector<2x8x128xf32> to vector<2x8x64xf32>
    %107 = vector.extract_strided_slice %73 {offsets = [0, 0, 64], sizes = [2, 8, 64], strides = [1, 1, 1]} : vector<2x8x128xf32> to vector<2x8x64xf32>
    %108 = arith.truncf %105 : vector<2x8x64xf32> to vector<2x8x64xbf16>
    %109 = arith.truncf %106 : vector<2x8x64xf32> to vector<2x8x64xbf16>
    %cst_42 = arith.constant dense<0.000000e+00> : vector<2x8x8xf32>
    %110 = tpu.matmul %108, %109, %cst_42 {dimension_numbers = #tpu.dot_dimension_numbers<[2], [2], [1], [1], [0, 0, 0, 1, 1, 1], [0], [0]>} : vector<2x8x64xbf16>, vector<2x8x64xbf16>, vector<2x8x8xf32> -> vector<2x8x8xf32>
    %cst_43 = arith.constant 1.250000e-01 : f32
    %111 = vector.broadcast %cst_43 : f32 to vector<2x8x8xf32>
    %112 = arith.mulf %110, %111 : vector<2x8x8xf32>
    %cst_44 = arith.constant -1.000000e+09 : f32
    %113 = vector.shape_cast %35 : vector<1x8x8xi1> to vector<1x8x8xi1>
    %114 = vector.broadcast %113 : vector<1x8x8xi1> to vector<2x8x8xi1>
    %115 = vector.broadcast %cst_44 : f32 to vector<2x8x8xf32>
    %116 = arith.select %114, %112, %115 : vector<2x8x8xi1>, vector<2x8x8xf32>
    %cst_45 = arith.constant dense<0xFF800000> : vector<2x8xf32>
    %117 = vector.multi_reduction <maximumf>, %116, %cst_45 [2] : vector<2x8x8xf32> to vector<2x8xf32>
    %118 = vector.shape_cast %117 : vector<2x8xf32> to vector<2x8x1xf32>
    %119 = vector.broadcast %118 : vector<2x8x1xf32> to vector<2x8x8xf32>
    %120 = arith.subf %116, %119 : vector<2x8x8xf32>
    %121 = math.exp %120 : vector<2x8x8xf32>
    %cst_46 = arith.constant dense<0.000000e+00> : vector<2x8xf32>
    %122 = vector.multi_reduction <add>, %121, %cst_46 [2] : vector<2x8x8xf32> to vector<2x8xf32>
    %123 = vector.shape_cast %122 : vector<2x8xf32> to vector<2x8x1xf32>
    %124 = tpu.reciprocal %123 {approx = true} : vector<2x8x1xf32> -> vector<2x8x1xf32>
    %125 = vector.broadcast %124 : vector<2x8x1xf32> to vector<2x8x8xf32>
    %126 = arith.mulf %121, %125 : vector<2x8x8xf32>
    %127 = arith.truncf %126 : vector<2x8x8xf32> to vector<2x8x8xbf16>
    %128 = arith.truncf %107 : vector<2x8x64xf32> to vector<2x8x64xbf16>
    %cst_47 = arith.constant dense<0.000000e+00> : vector<2x8x64xf32>
    %129 = tpu.matmul %127, %128, %cst_47 {dimension_numbers = #tpu.dot_dimension_numbers<[2], [1], [1], [2], [0, 0, 0, 1, 1, 2], [0], [0]>} : vector<2x8x8xbf16>, vector<2x8x64xbf16>, vector<2x8x64xf32> -> vector<2x8x64xf32>
    %130 = vector.shape_cast %129 : vector<2x8x64xf32> to vector<16x64xf32>
    %131 = arith.truncf %130 : vector<16x64xf32> to vector<16x64xbf16>
    %132 = vector.extract_strided_slice %75 {offsets = [64, 0], sizes = [64, 128], strides = [1, 1]} : vector<128x128xbf16> to vector<64x128xbf16>
    %cst_48 = arith.constant dense<0.000000e+00> : vector<16x128xf32>
    %133 = tpu.matmul %131, %132, %cst_48 {dimension_numbers = #tpu.dot_dimension_numbers<[1], [0], [0], [1], [0, 0, 1, 1], [], []>} : vector<16x64xbf16>, vector<64x128xbf16>, vector<16x128xf32> -> vector<16x128xf32>
    %134 = arith.addf %104, %133 : vector<16x128xf32>
    %135 = arith.addf %31, %134 : vector<16x128xf32>
    %c0_49 = arith.constant 0 : index
    %c0_50 = arith.constant 0 : index
    %c0_51 = arith.constant 0 : index
    %136 = vector.load %arg10[%c0_49, %c0_50, %c0_51] : memref<2x1x128xf32, #tpu.memory_space<vmem>>, vector<1x1x128xf32>
    %137 = vector.shape_cast %136 : vector<1x1x128xf32> to vector<1x128xf32>
    %138 = vector.broadcast %137 : vector<1x128xf32> to vector<16x128xf32>
    %139 = arith.addf %135, %138 : vector<16x128xf32>
    %c0_52 = arith.constant 0 : index
    %c0_53 = arith.constant 0 : index
    %c0_54 = arith.constant 0 : index
    %140 = vector.load %arg11[%c0_52, %c0_53, %c0_54] : memref<2x1x128xf32, #tpu.memory_space<vmem>>, vector<1x1x128xf32>
    %141 = vector.shape_cast %140 : vector<1x1x128xf32> to vector<1x128xf32>
    %c0_55 = arith.constant 0 : index
    %c0_56 = arith.constant 0 : index
    %c0_57 = arith.constant 0 : index
    %142 = vector.load %arg12[%c0_55, %c0_56, %c0_57] : memref<2x1x128xf32, #tpu.memory_space<vmem>>, vector<1x1x128xf32>
    %143 = vector.shape_cast %142 : vector<1x1x128xf32> to vector<1x128xf32>
    %cst_58 = arith.constant dense<0.000000e+00> : vector<16xf32>
    %144 = vector.multi_reduction <add>, %139, %cst_58 [1] : vector<16x128xf32> to vector<16xf32>
    %145 = vector.shape_cast %144 : vector<16xf32> to vector<16x1xf32>
    %cst_59 = arith.constant 1.280000e+02 : f32
    %146 = vector.broadcast %cst_59 : f32 to vector<16x1xf32>
    %147 = arith.divf %145, %146 : vector<16x1xf32>
    %148 = vector.broadcast %147 : vector<16x1xf32> to vector<16x128xf32>
    %149 = arith.subf %139, %148 : vector<16x128xf32>
    %150 = arith.mulf %149, %149 : vector<16x128xf32>
    %cst_60 = arith.constant dense<0.000000e+00> : vector<16xf32>
    %151 = vector.multi_reduction <add>, %150, %cst_60 [1] : vector<16x128xf32> to vector<16xf32>
    %152 = vector.shape_cast %151 : vector<16xf32> to vector<16x1xf32>
    %cst_61 = arith.constant 1.280000e+02 : f32
    %153 = vector.broadcast %cst_61 : f32 to vector<16x1xf32>
    %154 = arith.divf %152, %153 : vector<16x1xf32>
    %cst_62 = arith.constant 9.99999974E-6 : f32
    %155 = vector.broadcast %cst_62 : f32 to vector<16x1xf32>
    %156 = arith.addf %154, %155 : vector<16x1xf32>
    %157 = math.rsqrt %156 : vector<16x1xf32>
    %158 = vector.broadcast %157 : vector<16x1xf32> to vector<16x128xf32>
    %159 = arith.mulf %149, %158 : vector<16x128xf32>
    %160 = vector.broadcast %141 : vector<1x128xf32> to vector<16x128xf32>
    %161 = arith.mulf %159, %160 : vector<16x128xf32>
    %162 = vector.broadcast %143 : vector<1x128xf32> to vector<16x128xf32>
    %163 = arith.addf %161, %162 : vector<16x128xf32>
    %164 = arith.truncf %163 : vector<16x128xf32> to vector<16x128xbf16>
    %c0_63 = arith.constant 0 : index
    %c0_64 = arith.constant 0 : index
    %c0_65 = arith.constant 0 : index
    %165 = vector.load %arg13[%c0_63, %c0_64, %c0_65] : memref<2x128x512xbf16, #tpu.memory_space<vmem>>, vector<1x128x512xbf16>
    %166 = vector.shape_cast %165 : vector<1x128x512xbf16> to vector<128x512xbf16>
    %cst_66 = arith.constant dense<0.000000e+00> : vector<16x512xf32>
    %167 = tpu.matmul %164, %166, %cst_66 {dimension_numbers = #tpu.dot_dimension_numbers<[1], [0], [0], [1], [0, 0, 1, 1], [], []>} : vector<16x128xbf16>, vector<128x512xbf16>, vector<16x512xf32> -> vector<16x512xf32>
    %c0_67 = arith.constant 0 : index
    %c0_68 = arith.constant 0 : index
    %c0_69 = arith.constant 0 : index
    %168 = vector.load %arg14[%c0_67, %c0_68, %c0_69] : memref<2x1x512xf32, #tpu.memory_space<vmem>>, vector<1x1x512xf32>
    %169 = vector.shape_cast %168 : vector<1x1x512xf32> to vector<1x512xf32>
    %170 = vector.broadcast %169 : vector<1x512xf32> to vector<16x512xf32>
    %171 = arith.addf %167, %170 : vector<16x512xf32>
    %cst_70 = arith.constant 1.702000e+00 : f32
    %172 = vector.broadcast %cst_70 : f32 to vector<16x512xf32>
    %173 = arith.mulf %172, %171 : vector<16x512xf32>
    %174 = arith.negf %173 : vector<16x512xf32>
    %175 = math.exp %174 : vector<16x512xf32>
    %cst_71 = arith.constant 1.000000e+00 : f32
    %176 = vector.broadcast %cst_71 : f32 to vector<16x512xf32>
    %177 = arith.addf %176, %175 : vector<16x512xf32>
    %178 = arith.divf %176, %177 : vector<16x512xf32>
    %179 = arith.mulf %171, %178 : vector<16x512xf32>
    %180 = arith.truncf %179 : vector<16x512xf32> to vector<16x512xbf16>
    %c0_72 = arith.constant 0 : index
    %c0_73 = arith.constant 0 : index
    %c0_74 = arith.constant 0 : index
    %181 = vector.load %arg15[%c0_72, %c0_73, %c0_74] : memref<2x512x128xbf16, #tpu.memory_space<vmem>>, vector<1x512x128xbf16>
    %182 = vector.shape_cast %181 : vector<1x512x128xbf16> to vector<512x128xbf16>
    %cst_75 = arith.constant dense<0.000000e+00> : vector<16x128xf32>
    %183 = tpu.matmul %180, %182, %cst_75 {dimension_numbers = #tpu.dot_dimension_numbers<[1], [0], [0], [1], [0, 0, 1, 1], [], []>} : vector<16x512xbf16>, vector<512x128xbf16>, vector<16x128xf32> -> vector<16x128xf32>
    %c0_76 = arith.constant 0 : index
    %c0_77 = arith.constant 0 : index
    %c0_78 = arith.constant 0 : index
    %184 = vector.load %arg16[%c0_76, %c0_77, %c0_78] : memref<2x1x128xf32, #tpu.memory_space<vmem>>, vector<1x1x128xf32>
    %185 = vector.shape_cast %184 : vector<1x1x128xf32> to vector<1x128xf32>
    %186 = vector.broadcast %185 : vector<1x128xf32> to vector<16x128xf32>
    %187 = arith.addf %183, %186 : vector<16x128xf32>
    %188 = arith.addf %139, %187 : vector<16x128xf32>
    %c1 = arith.constant 1 : index
    %c0_79 = arith.constant 0 : index
    %c0_80 = arith.constant 0 : index
    %189 = vector.load %arg5[%c1, %c0_79, %c0_80] : memref<2x1x128xf32, #tpu.memory_space<vmem>>, vector<1x1x128xf32>
    %190 = vector.shape_cast %189 : vector<1x1x128xf32> to vector<1x128xf32>
    %c1_81 = arith.constant 1 : index
    %c0_82 = arith.constant 0 : index
    %c0_83 = arith.constant 0 : index
    %191 = vector.load %arg6[%c1_81, %c0_82, %c0_83] : memref<2x1x128xf32, #tpu.memory_space<vmem>>, vector<1x1x128xf32>
    %192 = vector.shape_cast %191 : vector<1x1x128xf32> to vector<1x128xf32>
    %cst_84 = arith.constant dense<0.000000e+00> : vector<16xf32>
    %193 = vector.multi_reduction <add>, %188, %cst_84 [1] : vector<16x128xf32> to vector<16xf32>
    %194 = vector.shape_cast %193 : vector<16xf32> to vector<16x1xf32>
    %cst_85 = arith.constant 1.280000e+02 : f32
    %195 = vector.broadcast %cst_85 : f32 to vector<16x1xf32>
    %196 = arith.divf %194, %195 : vector<16x1xf32>
    %197 = vector.broadcast %196 : vector<16x1xf32> to vector<16x128xf32>
    %198 = arith.subf %188, %197 : vector<16x128xf32>
    %199 = arith.mulf %198, %198 : vector<16x128xf32>
    %cst_86 = arith.constant dense<0.000000e+00> : vector<16xf32>
    %200 = vector.multi_reduction <add>, %199, %cst_86 [1] : vector<16x128xf32> to vector<16xf32>
    %201 = vector.shape_cast %200 : vector<16xf32> to vector<16x1xf32>
    %cst_87 = arith.constant 1.280000e+02 : f32
    %202 = vector.broadcast %cst_87 : f32 to vector<16x1xf32>
    %203 = arith.divf %201, %202 : vector<16x1xf32>
    %cst_88 = arith.constant 9.99999974E-6 : f32
    %204 = vector.broadcast %cst_88 : f32 to vector<16x1xf32>
    %205 = arith.addf %203, %204 : vector<16x1xf32>
    %206 = math.rsqrt %205 : vector<16x1xf32>
    %207 = vector.broadcast %206 : vector<16x1xf32> to vector<16x128xf32>
    %208 = arith.mulf %198, %207 : vector<16x128xf32>
    %209 = vector.broadcast %190 : vector<1x128xf32> to vector<16x128xf32>
    %210 = arith.mulf %208, %209 : vector<16x128xf32>
    %211 = vector.broadcast %192 : vector<1x128xf32> to vector<16x128xf32>
    %212 = arith.addf %210, %211 : vector<16x128xf32>
    %213 = arith.truncf %212 : vector<16x128xf32> to vector<16x128xbf16>
    %c1_89 = arith.constant 1 : index
    %c0_90 = arith.constant 0 : index
    %c0_91 = arith.constant 0 : index
    %214 = vector.load %arg7[%c1_89, %c0_90, %c0_91] : memref<2x128x384xbf16, #tpu.memory_space<vmem>>, vector<1x128x384xbf16>
    %215 = vector.shape_cast %214 : vector<1x128x384xbf16> to vector<128x384xbf16>
    %cst_92 = arith.constant dense<0.000000e+00> : vector<16x384xf32>
    %216 = tpu.matmul %213, %215, %cst_92 {dimension_numbers = #tpu.dot_dimension_numbers<[1], [0], [0], [1], [0, 0, 1, 1], [], []>} : vector<16x128xbf16>, vector<128x384xbf16>, vector<16x384xf32> -> vector<16x384xf32>
    %c1_93 = arith.constant 1 : index
    %c0_94 = arith.constant 0 : index
    %c0_95 = arith.constant 0 : index
    %217 = vector.load %arg8[%c1_93, %c0_94, %c0_95] : memref<2x1x384xf32, #tpu.memory_space<vmem>>, vector<1x1x384xf32>
    %218 = vector.shape_cast %217 : vector<1x1x384xf32> to vector<1x384xf32>
    %219 = vector.broadcast %218 : vector<1x384xf32> to vector<16x384xf32>
    %220 = arith.addf %216, %219 : vector<16x384xf32>
    %221 = vector.extract_strided_slice %220 {offsets = [0, 0], sizes = [16, 128], strides = [1, 1]} : vector<16x384xf32> to vector<16x128xf32>
    %222 = vector.shape_cast %221 : vector<16x128xf32> to vector<2x8x128xf32>
    %223 = vector.extract_strided_slice %220 {offsets = [0, 128], sizes = [16, 128], strides = [1, 1]} : vector<16x384xf32> to vector<16x128xf32>
    %224 = vector.shape_cast %223 : vector<16x128xf32> to vector<2x8x128xf32>
    %225 = vector.extract_strided_slice %220 {offsets = [0, 256], sizes = [16, 128], strides = [1, 1]} : vector<16x384xf32> to vector<16x128xf32>
    %226 = vector.shape_cast %225 : vector<16x128xf32> to vector<2x8x128xf32>
    %c1_96 = arith.constant 1 : index
    %c0_97 = arith.constant 0 : index
    %c0_98 = arith.constant 0 : index
    %227 = vector.load %arg9[%c1_96, %c0_97, %c0_98] : memref<2x128x128xbf16, #tpu.memory_space<vmem>>, vector<1x128x128xbf16>
    %228 = vector.shape_cast %227 : vector<1x128x128xbf16> to vector<128x128xbf16>
    %229 = vector.extract_strided_slice %222 {offsets = [0, 0, 0], sizes = [2, 8, 64], strides = [1, 1, 1]} : vector<2x8x128xf32> to vector<2x8x64xf32>
    %230 = vector.extract_strided_slice %224 {offsets = [0, 0, 0], sizes = [2, 8, 64], strides = [1, 1, 1]} : vector<2x8x128xf32> to vector<2x8x64xf32>
    %231 = vector.extract_strided_slice %226 {offsets = [0, 0, 0], sizes = [2, 8, 64], strides = [1, 1, 1]} : vector<2x8x128xf32> to vector<2x8x64xf32>
    %232 = arith.truncf %229 : vector<2x8x64xf32> to vector<2x8x64xbf16>
    %233 = arith.truncf %230 : vector<2x8x64xf32> to vector<2x8x64xbf16>
    %cst_99 = arith.constant dense<0.000000e+00> : vector<2x8x8xf32>
    %234 = tpu.matmul %232, %233, %cst_99 {dimension_numbers = #tpu.dot_dimension_numbers<[2], [2], [1], [1], [0, 0, 0, 1, 1, 1], [0], [0]>} : vector<2x8x64xbf16>, vector<2x8x64xbf16>, vector<2x8x8xf32> -> vector<2x8x8xf32>
    %cst_100 = arith.constant 1.250000e-01 : f32
    %235 = vector.broadcast %cst_100 : f32 to vector<2x8x8xf32>
    %236 = arith.mulf %234, %235 : vector<2x8x8xf32>
    %cst_101 = arith.constant -1.000000e+09 : f32
    %237 = vector.shape_cast %35 : vector<1x8x8xi1> to vector<1x8x8xi1>
    %238 = vector.broadcast %237 : vector<1x8x8xi1> to vector<2x8x8xi1>
    %239 = vector.broadcast %cst_101 : f32 to vector<2x8x8xf32>
    %240 = arith.select %238, %236, %239 : vector<2x8x8xi1>, vector<2x8x8xf32>
    %cst_102 = arith.constant dense<0xFF800000> : vector<2x8xf32>
    %241 = vector.multi_reduction <maximumf>, %240, %cst_102 [2] : vector<2x8x8xf32> to vector<2x8xf32>
    %242 = vector.shape_cast %241 : vector<2x8xf32> to vector<2x8x1xf32>
    %243 = vector.broadcast %242 : vector<2x8x1xf32> to vector<2x8x8xf32>
    %244 = arith.subf %240, %243 : vector<2x8x8xf32>
    %245 = math.exp %244 : vector<2x8x8xf32>
    %cst_103 = arith.constant dense<0.000000e+00> : vector<2x8xf32>
    %246 = vector.multi_reduction <add>, %245, %cst_103 [2] : vector<2x8x8xf32> to vector<2x8xf32>
    %247 = vector.shape_cast %246 : vector<2x8xf32> to vector<2x8x1xf32>
    %248 = tpu.reciprocal %247 {approx = true} : vector<2x8x1xf32> -> vector<2x8x1xf32>
    %249 = vector.broadcast %248 : vector<2x8x1xf32> to vector<2x8x8xf32>
    %250 = arith.mulf %245, %249 : vector<2x8x8xf32>
    %251 = arith.truncf %250 : vector<2x8x8xf32> to vector<2x8x8xbf16>
    %252 = arith.truncf %231 : vector<2x8x64xf32> to vector<2x8x64xbf16>
    %cst_104 = arith.constant dense<0.000000e+00> : vector<2x8x64xf32>
    %253 = tpu.matmul %251, %252, %cst_104 {dimension_numbers = #tpu.dot_dimension_numbers<[2], [1], [1], [2], [0, 0, 0, 1, 1, 2], [0], [0]>} : vector<2x8x8xbf16>, vector<2x8x64xbf16>, vector<2x8x64xf32> -> vector<2x8x64xf32>
    %254 = vector.shape_cast %253 : vector<2x8x64xf32> to vector<16x64xf32>
    %255 = arith.truncf %254 : vector<16x64xf32> to vector<16x64xbf16>
    %256 = vector.extract_strided_slice %228 {offsets = [0, 0], sizes = [64, 128], strides = [1, 1]} : vector<128x128xbf16> to vector<64x128xbf16>
    %cst_105 = arith.constant dense<0.000000e+00> : vector<16x128xf32>
    %257 = tpu.matmul %255, %256, %cst_105 {dimension_numbers = #tpu.dot_dimension_numbers<[1], [0], [0], [1], [0, 0, 1, 1], [], []>} : vector<16x64xbf16>, vector<64x128xbf16>, vector<16x128xf32> -> vector<16x128xf32>
    %258 = vector.extract_strided_slice %222 {offsets = [0, 0, 64], sizes = [2, 8, 64], strides = [1, 1, 1]} : vector<2x8x128xf32> to vector<2x8x64xf32>
    %259 = vector.extract_strided_slice %224 {offsets = [0, 0, 64], sizes = [2, 8, 64], strides = [1, 1, 1]} : vector<2x8x128xf32> to vector<2x8x64xf32>
    %260 = vector.extract_strided_slice %226 {offsets = [0, 0, 64], sizes = [2, 8, 64], strides = [1, 1, 1]} : vector<2x8x128xf32> to vector<2x8x64xf32>
    %261 = arith.truncf %258 : vector<2x8x64xf32> to vector<2x8x64xbf16>
    %262 = arith.truncf %259 : vector<2x8x64xf32> to vector<2x8x64xbf16>
    %cst_106 = arith.constant dense<0.000000e+00> : vector<2x8x8xf32>
    %263 = tpu.matmul %261, %262, %cst_106 {dimension_numbers = #tpu.dot_dimension_numbers<[2], [2], [1], [1], [0, 0, 0, 1, 1, 1], [0], [0]>} : vector<2x8x64xbf16>, vector<2x8x64xbf16>, vector<2x8x8xf32> -> vector<2x8x8xf32>
    %cst_107 = arith.constant 1.250000e-01 : f32
    %264 = vector.broadcast %cst_107 : f32 to vector<2x8x8xf32>
    %265 = arith.mulf %263, %264 : vector<2x8x8xf32>
    %cst_108 = arith.constant -1.000000e+09 : f32
    %266 = vector.shape_cast %35 : vector<1x8x8xi1> to vector<1x8x8xi1>
    %267 = vector.broadcast %266 : vector<1x8x8xi1> to vector<2x8x8xi1>
    %268 = vector.broadcast %cst_108 : f32 to vector<2x8x8xf32>
    %269 = arith.select %267, %265, %268 : vector<2x8x8xi1>, vector<2x8x8xf32>
    %cst_109 = arith.constant dense<0xFF800000> : vector<2x8xf32>
    %270 = vector.multi_reduction <maximumf>, %269, %cst_109 [2] : vector<2x8x8xf32> to vector<2x8xf32>
    %271 = vector.shape_cast %270 : vector<2x8xf32> to vector<2x8x1xf32>
    %272 = vector.broadcast %271 : vector<2x8x1xf32> to vector<2x8x8xf32>
    %273 = arith.subf %269, %272 : vector<2x8x8xf32>
    %274 = math.exp %273 : vector<2x8x8xf32>
    %cst_110 = arith.constant dense<0.000000e+00> : vector<2x8xf32>
    %275 = vector.multi_reduction <add>, %274, %cst_110 [2] : vector<2x8x8xf32> to vector<2x8xf32>
    %276 = vector.shape_cast %275 : vector<2x8xf32> to vector<2x8x1xf32>
    %277 = tpu.reciprocal %276 {approx = true} : vector<2x8x1xf32> -> vector<2x8x1xf32>
    %278 = vector.broadcast %277 : vector<2x8x1xf32> to vector<2x8x8xf32>
    %279 = arith.mulf %274, %278 : vector<2x8x8xf32>
    %280 = arith.truncf %279 : vector<2x8x8xf32> to vector<2x8x8xbf16>
    %281 = arith.truncf %260 : vector<2x8x64xf32> to vector<2x8x64xbf16>
    %cst_111 = arith.constant dense<0.000000e+00> : vector<2x8x64xf32>
    %282 = tpu.matmul %280, %281, %cst_111 {dimension_numbers = #tpu.dot_dimension_numbers<[2], [1], [1], [2], [0, 0, 0, 1, 1, 2], [0], [0]>} : vector<2x8x8xbf16>, vector<2x8x64xbf16>, vector<2x8x64xf32> -> vector<2x8x64xf32>
    %283 = vector.shape_cast %282 : vector<2x8x64xf32> to vector<16x64xf32>
    %284 = arith.truncf %283 : vector<16x64xf32> to vector<16x64xbf16>
    %285 = vector.extract_strided_slice %228 {offsets = [64, 0], sizes = [64, 128], strides = [1, 1]} : vector<128x128xbf16> to vector<64x128xbf16>
    %cst_112 = arith.constant dense<0.000000e+00> : vector<16x128xf32>
    %286 = tpu.matmul %284, %285, %cst_112 {dimension_numbers = #tpu.dot_dimension_numbers<[1], [0], [0], [1], [0, 0, 1, 1], [], []>} : vector<16x64xbf16>, vector<64x128xbf16>, vector<16x128xf32> -> vector<16x128xf32>
    %287 = arith.addf %257, %286 : vector<16x128xf32>
    %288 = arith.addf %188, %287 : vector<16x128xf32>
    %c1_113 = arith.constant 1 : index
    %c0_114 = arith.constant 0 : index
    %c0_115 = arith.constant 0 : index
    %289 = vector.load %arg10[%c1_113, %c0_114, %c0_115] : memref<2x1x128xf32, #tpu.memory_space<vmem>>, vector<1x1x128xf32>
    %290 = vector.shape_cast %289 : vector<1x1x128xf32> to vector<1x128xf32>
    %291 = vector.broadcast %290 : vector<1x128xf32> to vector<16x128xf32>
    %292 = arith.addf %288, %291 : vector<16x128xf32>
    %c1_116 = arith.constant 1 : index
    %c0_117 = arith.constant 0 : index
    %c0_118 = arith.constant 0 : index
    %293 = vector.load %arg11[%c1_116, %c0_117, %c0_118] : memref<2x1x128xf32, #tpu.memory_space<vmem>>, vector<1x1x128xf32>
    %294 = vector.shape_cast %293 : vector<1x1x128xf32> to vector<1x128xf32>
    %c1_119 = arith.constant 1 : index
    %c0_120 = arith.constant 0 : index
    %c0_121 = arith.constant 0 : index
    %295 = vector.load %arg12[%c1_119, %c0_120, %c0_121] : memref<2x1x128xf32, #tpu.memory_space<vmem>>, vector<1x1x128xf32>
    %296 = vector.shape_cast %295 : vector<1x1x128xf32> to vector<1x128xf32>
    %cst_122 = arith.constant dense<0.000000e+00> : vector<16xf32>
    %297 = vector.multi_reduction <add>, %292, %cst_122 [1] : vector<16x128xf32> to vector<16xf32>
    %298 = vector.shape_cast %297 : vector<16xf32> to vector<16x1xf32>
    %cst_123 = arith.constant 1.280000e+02 : f32
    %299 = vector.broadcast %cst_123 : f32 to vector<16x1xf32>
    %300 = arith.divf %298, %299 : vector<16x1xf32>
    %301 = vector.broadcast %300 : vector<16x1xf32> to vector<16x128xf32>
    %302 = arith.subf %292, %301 : vector<16x128xf32>
    %303 = arith.mulf %302, %302 : vector<16x128xf32>
    %cst_124 = arith.constant dense<0.000000e+00> : vector<16xf32>
    %304 = vector.multi_reduction <add>, %303, %cst_124 [1] : vector<16x128xf32> to vector<16xf32>
    %305 = vector.shape_cast %304 : vector<16xf32> to vector<16x1xf32>
    %cst_125 = arith.constant 1.280000e+02 : f32
    %306 = vector.broadcast %cst_125 : f32 to vector<16x1xf32>
    %307 = arith.divf %305, %306 : vector<16x1xf32>
    %cst_126 = arith.constant 9.99999974E-6 : f32
    %308 = vector.broadcast %cst_126 : f32 to vector<16x1xf32>
    %309 = arith.addf %307, %308 : vector<16x1xf32>
    %310 = math.rsqrt %309 : vector<16x1xf32>
    %311 = vector.broadcast %310 : vector<16x1xf32> to vector<16x128xf32>
    %312 = arith.mulf %302, %311 : vector<16x128xf32>
    %313 = vector.broadcast %294 : vector<1x128xf32> to vector<16x128xf32>
    %314 = arith.mulf %312, %313 : vector<16x128xf32>
    %315 = vector.broadcast %296 : vector<1x128xf32> to vector<16x128xf32>
    %316 = arith.addf %314, %315 : vector<16x128xf32>
    %317 = arith.truncf %316 : vector<16x128xf32> to vector<16x128xbf16>
    %c1_127 = arith.constant 1 : index
    %c0_128 = arith.constant 0 : index
    %c0_129 = arith.constant 0 : index
    %318 = vector.load %arg13[%c1_127, %c0_128, %c0_129] : memref<2x128x512xbf16, #tpu.memory_space<vmem>>, vector<1x128x512xbf16>
    %319 = vector.shape_cast %318 : vector<1x128x512xbf16> to vector<128x512xbf16>
    %cst_130 = arith.constant dense<0.000000e+00> : vector<16x512xf32>
    %320 = tpu.matmul %317, %319, %cst_130 {dimension_numbers = #tpu.dot_dimension_numbers<[1], [0], [0], [1], [0, 0, 1, 1], [], []>} : vector<16x128xbf16>, vector<128x512xbf16>, vector<16x512xf32> -> vector<16x512xf32>
    %c1_131 = arith.constant 1 : index
    %c0_132 = arith.constant 0 : index
    %c0_133 = arith.constant 0 : index
    %321 = vector.load %arg14[%c1_131, %c0_132, %c0_133] : memref<2x1x512xf32, #tpu.memory_space<vmem>>, vector<1x1x512xf32>
    %322 = vector.shape_cast %321 : vector<1x1x512xf32> to vector<1x512xf32>
    %323 = vector.broadcast %322 : vector<1x512xf32> to vector<16x512xf32>
    %324 = arith.addf %320, %323 : vector<16x512xf32>
    %cst_134 = arith.constant 1.702000e+00 : f32
    %325 = vector.broadcast %cst_134 : f32 to vector<16x512xf32>
    %326 = arith.mulf %325, %324 : vector<16x512xf32>
    %327 = arith.negf %326 : vector<16x512xf32>
    %328 = math.exp %327 : vector<16x512xf32>
    %cst_135 = arith.constant 1.000000e+00 : f32
    %329 = vector.broadcast %cst_135 : f32 to vector<16x512xf32>
    %330 = arith.addf %329, %328 : vector<16x512xf32>
    %331 = arith.divf %329, %330 : vector<16x512xf32>
    %332 = arith.mulf %324, %331 : vector<16x512xf32>
    %333 = arith.truncf %332 : vector<16x512xf32> to vector<16x512xbf16>
    %c1_136 = arith.constant 1 : index
    %c0_137 = arith.constant 0 : index
    %c0_138 = arith.constant 0 : index
    %334 = vector.load %arg15[%c1_136, %c0_137, %c0_138] : memref<2x512x128xbf16, #tpu.memory_space<vmem>>, vector<1x512x128xbf16>
    %335 = vector.shape_cast %334 : vector<1x512x128xbf16> to vector<512x128xbf16>
    %cst_139 = arith.constant dense<0.000000e+00> : vector<16x128xf32>
    %336 = tpu.matmul %333, %335, %cst_139 {dimension_numbers = #tpu.dot_dimension_numbers<[1], [0], [0], [1], [0, 0, 1, 1], [], []>} : vector<16x512xbf16>, vector<512x128xbf16>, vector<16x128xf32> -> vector<16x128xf32>
    %c1_140 = arith.constant 1 : index
    %c0_141 = arith.constant 0 : index
    %c0_142 = arith.constant 0 : index
    %337 = vector.load %arg16[%c1_140, %c0_141, %c0_142] : memref<2x1x128xf32, #tpu.memory_space<vmem>>, vector<1x1x128xf32>
    %338 = vector.shape_cast %337 : vector<1x1x128xf32> to vector<1x128xf32>
    %339 = vector.broadcast %338 : vector<1x128xf32> to vector<16x128xf32>
    %340 = arith.addf %336, %339 : vector<16x128xf32>
    %341 = arith.addf %292, %340 : vector<16x128xf32>
    %342 = vector.shape_cast %341 : vector<16x128xf32> to vector<2x8x128xf32>
    %343 = vector.extract_strided_slice %342 {offsets = [0, 0, 0], sizes = [2, 1, 128], strides = [1, 1, 1]} : vector<2x8x128xf32> to vector<2x1x128xf32>
    %344 = vector.shape_cast %343 : vector<2x1x128xf32> to vector<2x128xf32>
    %c0_143 = arith.constant 0 : index
    %c0_144 = arith.constant 0 : index
    %345 = vector.load %arg17[%c0_143, %c0_144] : memref<1x128xf32, #tpu.memory_space<vmem>>, vector<1x128xf32>
    %c0_145 = arith.constant 0 : index
    %c0_146 = arith.constant 0 : index
    %346 = vector.load %arg18[%c0_145, %c0_146] : memref<1x128xf32, #tpu.memory_space<vmem>>, vector<1x128xf32>
    %cst_147 = arith.constant dense<0.000000e+00> : vector<2xf32>
    %347 = vector.multi_reduction <add>, %344, %cst_147 [1] : vector<2x128xf32> to vector<2xf32>
    %348 = vector.shape_cast %347 : vector<2xf32> to vector<2x1xf32>
    %cst_148 = arith.constant 1.280000e+02 : f32
    %349 = vector.broadcast %cst_148 : f32 to vector<2x1xf32>
    %350 = arith.divf %348, %349 : vector<2x1xf32>
    %351 = vector.broadcast %350 : vector<2x1xf32> to vector<2x128xf32>
    %352 = arith.subf %344, %351 : vector<2x128xf32>
    %353 = arith.mulf %352, %352 : vector<2x128xf32>
    %cst_149 = arith.constant dense<0.000000e+00> : vector<2xf32>
    %354 = vector.multi_reduction <add>, %353, %cst_149 [1] : vector<2x128xf32> to vector<2xf32>
    %355 = vector.shape_cast %354 : vector<2xf32> to vector<2x1xf32>
    %cst_150 = arith.constant 1.280000e+02 : f32
    %356 = vector.broadcast %cst_150 : f32 to vector<2x1xf32>
    %357 = arith.divf %355, %356 : vector<2x1xf32>
    %cst_151 = arith.constant 9.99999974E-6 : f32
    %358 = vector.broadcast %cst_151 : f32 to vector<2x1xf32>
    %359 = arith.addf %357, %358 : vector<2x1xf32>
    %360 = math.rsqrt %359 : vector<2x1xf32>
    %361 = vector.broadcast %360 : vector<2x1xf32> to vector<2x128xf32>
    %362 = arith.mulf %352, %361 : vector<2x128xf32>
    %363 = vector.broadcast %345 : vector<1x128xf32> to vector<2x128xf32>
    %364 = arith.mulf %362, %363 : vector<2x128xf32>
    %365 = vector.broadcast %346 : vector<1x128xf32> to vector<2x128xf32>
    %366 = arith.addf %364, %365 : vector<2x128xf32>
    %367 = arith.truncf %366 : vector<2x128xf32> to vector<2x128xbf16>
    %c0_152 = arith.constant 0 : index
    %c0_153 = arith.constant 0 : index
    %368 = vector.load %arg19[%c0_152, %c0_153] : memref<128x128xbf16, #tpu.memory_space<vmem>>, vector<128x128xbf16>
    %cst_154 = arith.constant dense<0.000000e+00> : vector<2x128xf32>
    %369 = tpu.matmul %367, %368, %cst_154 {dimension_numbers = #tpu.dot_dimension_numbers<[1], [0], [0], [1], [0, 0, 1, 1], [], []>} : vector<2x128xbf16>, vector<128x128xbf16>, vector<2x128xf32> -> vector<2x128xf32>
    %c0_155 = arith.constant 0 : index
    %c0_156 = arith.constant 0 : index
    %370 = vector.load %arg20[%c0_155, %c0_156] : memref<24x128xf32, #tpu.memory_space<vmem>>, vector<24x128xf32>
    %371 = tpu.iota {dimensions = array<i32: 0>} : vector<8x8xi32>
    %372 = tpu.iota {dimensions = array<i32: 1>} : vector<8x8xi32>
    %373 = arith.cmpi sle, %372, %371 : vector<8x8xi32>
    %374 = vector.shape_cast %373 : vector<8x8xi1> to vector<1x8x8xi1>
    %c0_157 = arith.constant 0 : index
    %c0_158 = arith.constant 0 : index
    %c0_159 = arith.constant 0 : index
    %375 = vector.load %arg21[%c0_157, %c0_158, %c0_159] : memref<2x1x128xf32, #tpu.memory_space<vmem>>, vector<1x1x128xf32>
    %376 = vector.shape_cast %375 : vector<1x1x128xf32> to vector<1x128xf32>
    %c0_160 = arith.constant 0 : index
    %c0_161 = arith.constant 0 : index
    %c0_162 = arith.constant 0 : index
    %377 = vector.load %arg22[%c0_160, %c0_161, %c0_162] : memref<2x1x128xf32, #tpu.memory_space<vmem>>, vector<1x1x128xf32>
    %378 = vector.shape_cast %377 : vector<1x1x128xf32> to vector<1x128xf32>
    %cst_163 = arith.constant dense<0.000000e+00> : vector<24xf32>
    %379 = vector.multi_reduction <add>, %370, %cst_163 [1] : vector<24x128xf32> to vector<24xf32>
    %380 = vector.shape_cast %379 : vector<24xf32> to vector<24x1xf32>
    %cst_164 = arith.constant 1.280000e+02 : f32
    %381 = vector.broadcast %cst_164 : f32 to vector<24x1xf32>
    %382 = arith.divf %380, %381 : vector<24x1xf32>
    %383 = vector.broadcast %382 : vector<24x1xf32> to vector<24x128xf32>
    %384 = arith.subf %370, %383 : vector<24x128xf32>
    %385 = arith.mulf %384, %384 : vector<24x128xf32>
    %cst_165 = arith.constant dense<0.000000e+00> : vector<24xf32>
    %386 = vector.multi_reduction <add>, %385, %cst_165 [1] : vector<24x128xf32> to vector<24xf32>
    %387 = vector.shape_cast %386 : vector<24xf32> to vector<24x1xf32>
    %cst_166 = arith.constant 1.280000e+02 : f32
    %388 = vector.broadcast %cst_166 : f32 to vector<24x1xf32>
    %389 = arith.divf %387, %388 : vector<24x1xf32>
    %cst_167 = arith.constant 9.99999974E-6 : f32
    %390 = vector.broadcast %cst_167 : f32 to vector<24x1xf32>
    %391 = arith.addf %389, %390 : vector<24x1xf32>
    %392 = math.rsqrt %391 : vector<24x1xf32>
    %393 = vector.broadcast %392 : vector<24x1xf32> to vector<24x128xf32>
    %394 = arith.mulf %384, %393 : vector<24x128xf32>
    %395 = vector.broadcast %376 : vector<1x128xf32> to vector<24x128xf32>
    %396 = arith.mulf %394, %395 : vector<24x128xf32>
    %397 = vector.broadcast %378 : vector<1x128xf32> to vector<24x128xf32>
    %398 = arith.addf %396, %397 : vector<24x128xf32>
    %399 = arith.truncf %398 : vector<24x128xf32> to vector<24x128xbf16>
    %c0_168 = arith.constant 0 : index
    %c0_169 = arith.constant 0 : index
    %c0_170 = arith.constant 0 : index
    %400 = vector.load %arg23[%c0_168, %c0_169, %c0_170] : memref<2x128x384xbf16, #tpu.memory_space<vmem>>, vector<1x128x384xbf16>
    %401 = vector.shape_cast %400 : vector<1x128x384xbf16> to vector<128x384xbf16>
    %cst_171 = arith.constant dense<0.000000e+00> : vector<24x384xf32>
    %402 = tpu.matmul %399, %401, %cst_171 {dimension_numbers = #tpu.dot_dimension_numbers<[1], [0], [0], [1], [0, 0, 1, 1], [], []>} : vector<24x128xbf16>, vector<128x384xbf16>, vector<24x384xf32> -> vector<24x384xf32>
    %c0_172 = arith.constant 0 : index
    %c0_173 = arith.constant 0 : index
    %c0_174 = arith.constant 0 : index
    %403 = vector.load %arg24[%c0_172, %c0_173, %c0_174] : memref<2x1x384xf32, #tpu.memory_space<vmem>>, vector<1x1x384xf32>
    %404 = vector.shape_cast %403 : vector<1x1x384xf32> to vector<1x384xf32>
    %405 = vector.broadcast %404 : vector<1x384xf32> to vector<24x384xf32>
    %406 = arith.addf %402, %405 : vector<24x384xf32>
    %407 = vector.extract_strided_slice %406 {offsets = [0, 0], sizes = [24, 128], strides = [1, 1]} : vector<24x384xf32> to vector<24x128xf32>
    %408 = vector.shape_cast %407 : vector<24x128xf32> to vector<3x8x128xf32>
    %409 = vector.extract_strided_slice %406 {offsets = [0, 128], sizes = [24, 128], strides = [1, 1]} : vector<24x384xf32> to vector<24x128xf32>
    %410 = vector.shape_cast %409 : vector<24x128xf32> to vector<3x8x128xf32>
    %411 = vector.extract_strided_slice %406 {offsets = [0, 256], sizes = [24, 128], strides = [1, 1]} : vector<24x384xf32> to vector<24x128xf32>
    %412 = vector.shape_cast %411 : vector<24x128xf32> to vector<3x8x128xf32>
    %c0_175 = arith.constant 0 : index
    %c0_176 = arith.constant 0 : index
    %c0_177 = arith.constant 0 : index
    %413 = vector.load %arg25[%c0_175, %c0_176, %c0_177] : memref<2x128x128xbf16, #tpu.memory_space<vmem>>, vector<1x128x128xbf16>
    %414 = vector.shape_cast %413 : vector<1x128x128xbf16> to vector<128x128xbf16>
    %415 = vector.extract_strided_slice %408 {offsets = [0, 0, 0], sizes = [3, 8, 64], strides = [1, 1, 1]} : vector<3x8x128xf32> to vector<3x8x64xf32>
    %416 = vector.extract_strided_slice %410 {offsets = [0, 0, 0], sizes = [3, 8, 64], strides = [1, 1, 1]} : vector<3x8x128xf32> to vector<3x8x64xf32>
    %417 = vector.extract_strided_slice %412 {offsets = [0, 0, 0], sizes = [3, 8, 64], strides = [1, 1, 1]} : vector<3x8x128xf32> to vector<3x8x64xf32>
    %418 = arith.truncf %415 : vector<3x8x64xf32> to vector<3x8x64xbf16>
    %419 = arith.truncf %416 : vector<3x8x64xf32> to vector<3x8x64xbf16>
    %cst_178 = arith.constant dense<0.000000e+00> : vector<3x8x8xf32>
    %420 = tpu.matmul %418, %419, %cst_178 {dimension_numbers = #tpu.dot_dimension_numbers<[2], [2], [1], [1], [0, 0, 0, 1, 1, 1], [0], [0]>} : vector<3x8x64xbf16>, vector<3x8x64xbf16>, vector<3x8x8xf32> -> vector<3x8x8xf32>
    %cst_179 = arith.constant 1.250000e-01 : f32
    %421 = vector.broadcast %cst_179 : f32 to vector<3x8x8xf32>
    %422 = arith.mulf %420, %421 : vector<3x8x8xf32>
    %cst_180 = arith.constant -1.000000e+09 : f32
    %423 = vector.shape_cast %374 : vector<1x8x8xi1> to vector<1x8x8xi1>
    %424 = vector.broadcast %423 : vector<1x8x8xi1> to vector<3x8x8xi1>
    %425 = vector.broadcast %cst_180 : f32 to vector<3x8x8xf32>
    %426 = arith.select %424, %422, %425 : vector<3x8x8xi1>, vector<3x8x8xf32>
    %cst_181 = arith.constant dense<0xFF800000> : vector<3x8xf32>
    %427 = vector.multi_reduction <maximumf>, %426, %cst_181 [2] : vector<3x8x8xf32> to vector<3x8xf32>
    %428 = vector.shape_cast %427 : vector<3x8xf32> to vector<3x8x1xf32>
    %429 = vector.broadcast %428 : vector<3x8x1xf32> to vector<3x8x8xf32>
    %430 = arith.subf %426, %429 : vector<3x8x8xf32>
    %431 = math.exp %430 : vector<3x8x8xf32>
    %cst_182 = arith.constant dense<0.000000e+00> : vector<3x8xf32>
    %432 = vector.multi_reduction <add>, %431, %cst_182 [2] : vector<3x8x8xf32> to vector<3x8xf32>
    %433 = vector.shape_cast %432 : vector<3x8xf32> to vector<3x8x1xf32>
    %434 = tpu.reciprocal %433 {approx = true} : vector<3x8x1xf32> -> vector<3x8x1xf32>
    %435 = vector.broadcast %434 : vector<3x8x1xf32> to vector<3x8x8xf32>
    %436 = arith.mulf %431, %435 : vector<3x8x8xf32>
    %437 = arith.truncf %436 : vector<3x8x8xf32> to vector<3x8x8xbf16>
    %438 = arith.truncf %417 : vector<3x8x64xf32> to vector<3x8x64xbf16>
    %cst_183 = arith.constant dense<0.000000e+00> : vector<3x8x64xf32>
    %439 = tpu.matmul %437, %438, %cst_183 {dimension_numbers = #tpu.dot_dimension_numbers<[2], [1], [1], [2], [0, 0, 0, 1, 1, 2], [0], [0]>} : vector<3x8x8xbf16>, vector<3x8x64xbf16>, vector<3x8x64xf32> -> vector<3x8x64xf32>
    %440 = vector.shape_cast %439 : vector<3x8x64xf32> to vector<24x64xf32>
    %441 = arith.truncf %440 : vector<24x64xf32> to vector<24x64xbf16>
    %442 = vector.extract_strided_slice %414 {offsets = [0, 0], sizes = [64, 128], strides = [1, 1]} : vector<128x128xbf16> to vector<64x128xbf16>
    %cst_184 = arith.constant dense<0.000000e+00> : vector<24x128xf32>
    %443 = tpu.matmul %441, %442, %cst_184 {dimension_numbers = #tpu.dot_dimension_numbers<[1], [0], [0], [1], [0, 0, 1, 1], [], []>} : vector<24x64xbf16>, vector<64x128xbf16>, vector<24x128xf32> -> vector<24x128xf32>
    %444 = vector.extract_strided_slice %408 {offsets = [0, 0, 64], sizes = [3, 8, 64], strides = [1, 1, 1]} : vector<3x8x128xf32> to vector<3x8x64xf32>
    %445 = vector.extract_strided_slice %410 {offsets = [0, 0, 64], sizes = [3, 8, 64], strides = [1, 1, 1]} : vector<3x8x128xf32> to vector<3x8x64xf32>
    %446 = vector.extract_strided_slice %412 {offsets = [0, 0, 64], sizes = [3, 8, 64], strides = [1, 1, 1]} : vector<3x8x128xf32> to vector<3x8x64xf32>
    %447 = arith.truncf %444 : vector<3x8x64xf32> to vector<3x8x64xbf16>
    %448 = arith.truncf %445 : vector<3x8x64xf32> to vector<3x8x64xbf16>
    %cst_185 = arith.constant dense<0.000000e+00> : vector<3x8x8xf32>
    %449 = tpu.matmul %447, %448, %cst_185 {dimension_numbers = #tpu.dot_dimension_numbers<[2], [2], [1], [1], [0, 0, 0, 1, 1, 1], [0], [0]>} : vector<3x8x64xbf16>, vector<3x8x64xbf16>, vector<3x8x8xf32> -> vector<3x8x8xf32>
    %cst_186 = arith.constant 1.250000e-01 : f32
    %450 = vector.broadcast %cst_186 : f32 to vector<3x8x8xf32>
    %451 = arith.mulf %449, %450 : vector<3x8x8xf32>
    %cst_187 = arith.constant -1.000000e+09 : f32
    %452 = vector.shape_cast %374 : vector<1x8x8xi1> to vector<1x8x8xi1>
    %453 = vector.broadcast %452 : vector<1x8x8xi1> to vector<3x8x8xi1>
    %454 = vector.broadcast %cst_187 : f32 to vector<3x8x8xf32>
    %455 = arith.select %453, %451, %454 : vector<3x8x8xi1>, vector<3x8x8xf32>
    %cst_188 = arith.constant dense<0xFF800000> : vector<3x8xf32>
    %456 = vector.multi_reduction <maximumf>, %455, %cst_188 [2] : vector<3x8x8xf32> to vector<3x8xf32>
    %457 = vector.shape_cast %456 : vector<3x8xf32> to vector<3x8x1xf32>
    %458 = vector.broadcast %457 : vector<3x8x1xf32> to vector<3x8x8xf32>
    %459 = arith.subf %455, %458 : vector<3x8x8xf32>
    %460 = math.exp %459 : vector<3x8x8xf32>
    %cst_189 = arith.constant dense<0.000000e+00> : vector<3x8xf32>
    %461 = vector.multi_reduction <add>, %460, %cst_189 [2] : vector<3x8x8xf32> to vector<3x8xf32>
    %462 = vector.shape_cast %461 : vector<3x8xf32> to vector<3x8x1xf32>
    %463 = tpu.reciprocal %462 {approx = true} : vector<3x8x1xf32> -> vector<3x8x1xf32>
    %464 = vector.broadcast %463 : vector<3x8x1xf32> to vector<3x8x8xf32>
    %465 = arith.mulf %460, %464 : vector<3x8x8xf32>
    %466 = arith.truncf %465 : vector<3x8x8xf32> to vector<3x8x8xbf16>
    %467 = arith.truncf %446 : vector<3x8x64xf32> to vector<3x8x64xbf16>
    %cst_190 = arith.constant dense<0.000000e+00> : vector<3x8x64xf32>
    %468 = tpu.matmul %466, %467, %cst_190 {dimension_numbers = #tpu.dot_dimension_numbers<[2], [1], [1], [2], [0, 0, 0, 1, 1, 2], [0], [0]>} : vector<3x8x8xbf16>, vector<3x8x64xbf16>, vector<3x8x64xf32> -> vector<3x8x64xf32>
    %469 = vector.shape_cast %468 : vector<3x8x64xf32> to vector<24x64xf32>
    %470 = arith.truncf %469 : vector<24x64xf32> to vector<24x64xbf16>
    %471 = vector.extract_strided_slice %414 {offsets = [64, 0], sizes = [64, 128], strides = [1, 1]} : vector<128x128xbf16> to vector<64x128xbf16>
    %cst_191 = arith.constant dense<0.000000e+00> : vector<24x128xf32>
    %472 = tpu.matmul %470, %471, %cst_191 {dimension_numbers = #tpu.dot_dimension_numbers<[1], [0], [0], [1], [0, 0, 1, 1], [], []>} : vector<24x64xbf16>, vector<64x128xbf16>, vector<24x128xf32> -> vector<24x128xf32>
    %473 = arith.addf %443, %472 : vector<24x128xf32>
    %474 = arith.addf %370, %473 : vector<24x128xf32>
    %c0_192 = arith.constant 0 : index
    %c0_193 = arith.constant 0 : index
    %c0_194 = arith.constant 0 : index
    %475 = vector.load %arg26[%c0_192, %c0_193, %c0_194] : memref<2x1x128xf32, #tpu.memory_space<vmem>>, vector<1x1x128xf32>
    %476 = vector.shape_cast %475 : vector<1x1x128xf32> to vector<1x128xf32>
    %477 = vector.broadcast %476 : vector<1x128xf32> to vector<24x128xf32>
    %478 = arith.addf %474, %477 : vector<24x128xf32>
    %c0_195 = arith.constant 0 : index
    %c0_196 = arith.constant 0 : index
    %c0_197 = arith.constant 0 : index
    %479 = vector.load %arg27[%c0_195, %c0_196, %c0_197] : memref<2x1x128xf32, #tpu.memory_space<vmem>>, vector<1x1x128xf32>
    %480 = vector.shape_cast %479 : vector<1x1x128xf32> to vector<1x128xf32>
    %c0_198 = arith.constant 0 : index
    %c0_199 = arith.constant 0 : index
    %c0_200 = arith.constant 0 : index
    %481 = vector.load %arg28[%c0_198, %c0_199, %c0_200] : memref<2x1x128xf32, #tpu.memory_space<vmem>>, vector<1x1x128xf32>
    %482 = vector.shape_cast %481 : vector<1x1x128xf32> to vector<1x128xf32>
    %cst_201 = arith.constant dense<0.000000e+00> : vector<24xf32>
    %483 = vector.multi_reduction <add>, %478, %cst_201 [1] : vector<24x128xf32> to vector<24xf32>
    %484 = vector.shape_cast %483 : vector<24xf32> to vector<24x1xf32>
    %cst_202 = arith.constant 1.280000e+02 : f32
    %485 = vector.broadcast %cst_202 : f32 to vector<24x1xf32>
    %486 = arith.divf %484, %485 : vector<24x1xf32>
    %487 = vector.broadcast %486 : vector<24x1xf32> to vector<24x128xf32>
    %488 = arith.subf %478, %487 : vector<24x128xf32>
    %489 = arith.mulf %488, %488 : vector<24x128xf32>
    %cst_203 = arith.constant dense<0.000000e+00> : vector<24xf32>
    %490 = vector.multi_reduction <add>, %489, %cst_203 [1] : vector<24x128xf32> to vector<24xf32>
    %491 = vector.shape_cast %490 : vector<24xf32> to vector<24x1xf32>
    %cst_204 = arith.constant 1.280000e+02 : f32
    %492 = vector.broadcast %cst_204 : f32 to vector<24x1xf32>
    %493 = arith.divf %491, %492 : vector<24x1xf32>
    %cst_205 = arith.constant 9.99999974E-6 : f32
    %494 = vector.broadcast %cst_205 : f32 to vector<24x1xf32>
    %495 = arith.addf %493, %494 : vector<24x1xf32>
    %496 = math.rsqrt %495 : vector<24x1xf32>
    %497 = vector.broadcast %496 : vector<24x1xf32> to vector<24x128xf32>
    %498 = arith.mulf %488, %497 : vector<24x128xf32>
    %499 = vector.broadcast %480 : vector<1x128xf32> to vector<24x128xf32>
    %500 = arith.mulf %498, %499 : vector<24x128xf32>
    %501 = vector.broadcast %482 : vector<1x128xf32> to vector<24x128xf32>
    %502 = arith.addf %500, %501 : vector<24x128xf32>
    %503 = arith.truncf %502 : vector<24x128xf32> to vector<24x128xbf16>
    %c0_206 = arith.constant 0 : index
    %c0_207 = arith.constant 0 : index
    %c0_208 = arith.constant 0 : index
    %504 = vector.load %arg29[%c0_206, %c0_207, %c0_208] : memref<2x128x512xbf16, #tpu.memory_space<vmem>>, vector<1x128x512xbf16>
    %505 = vector.shape_cast %504 : vector<1x128x512xbf16> to vector<128x512xbf16>
    %cst_209 = arith.constant dense<0.000000e+00> : vector<24x512xf32>
    %506 = tpu.matmul %503, %505, %cst_209 {dimension_numbers = #tpu.dot_dimension_numbers<[1], [0], [0], [1], [0, 0, 1, 1], [], []>} : vector<24x128xbf16>, vector<128x512xbf16>, vector<24x512xf32> -> vector<24x512xf32>
    %c0_210 = arith.constant 0 : index
    %c0_211 = arith.constant 0 : index
    %c0_212 = arith.constant 0 : index
    %507 = vector.load %arg30[%c0_210, %c0_211, %c0_212] : memref<2x1x512xf32, #tpu.memory_space<vmem>>, vector<1x1x512xf32>
    %508 = vector.shape_cast %507 : vector<1x1x512xf32> to vector<1x512xf32>
    %509 = vector.broadcast %508 : vector<1x512xf32> to vector<24x512xf32>
    %510 = arith.addf %506, %509 : vector<24x512xf32>
    %cst_213 = arith.constant 1.702000e+00 : f32
    %511 = vector.broadcast %cst_213 : f32 to vector<24x512xf32>
    %512 = arith.mulf %511, %510 : vector<24x512xf32>
    %513 = arith.negf %512 : vector<24x512xf32>
    %514 = math.exp %513 : vector<24x512xf32>
    %cst_214 = arith.constant 1.000000e+00 : f32
    %515 = vector.broadcast %cst_214 : f32 to vector<24x512xf32>
    %516 = arith.addf %515, %514 : vector<24x512xf32>
    %517 = arith.divf %515, %516 : vector<24x512xf32>
    %518 = arith.mulf %510, %517 : vector<24x512xf32>
    %519 = arith.truncf %518 : vector<24x512xf32> to vector<24x512xbf16>
    %c0_215 = arith.constant 0 : index
    %c0_216 = arith.constant 0 : index
    %c0_217 = arith.constant 0 : index
    %520 = vector.load %arg31[%c0_215, %c0_216, %c0_217] : memref<2x512x128xbf16, #tpu.memory_space<vmem>>, vector<1x512x128xbf16>
    %521 = vector.shape_cast %520 : vector<1x512x128xbf16> to vector<512x128xbf16>
    %cst_218 = arith.constant dense<0.000000e+00> : vector<24x128xf32>
    %522 = tpu.matmul %519, %521, %cst_218 {dimension_numbers = #tpu.dot_dimension_numbers<[1], [0], [0], [1], [0, 0, 1, 1], [], []>} : vector<24x512xbf16>, vector<512x128xbf16>, vector<24x128xf32> -> vector<24x128xf32>
    %c0_219 = arith.constant 0 : index
    %c0_220 = arith.constant 0 : index
    %c0_221 = arith.constant 0 : index
    %523 = vector.load %arg32[%c0_219, %c0_220, %c0_221] : memref<2x1x128xf32, #tpu.memory_space<vmem>>, vector<1x1x128xf32>
    %524 = vector.shape_cast %523 : vector<1x1x128xf32> to vector<1x128xf32>
    %525 = vector.broadcast %524 : vector<1x128xf32> to vector<24x128xf32>
    %526 = arith.addf %522, %525 : vector<24x128xf32>
    %527 = arith.addf %478, %526 : vector<24x128xf32>
    %c1_222 = arith.constant 1 : index
    %c0_223 = arith.constant 0 : index
    %c0_224 = arith.constant 0 : index
    %528 = vector.load %arg21[%c1_222, %c0_223, %c0_224] : memref<2x1x128xf32, #tpu.memory_space<vmem>>, vector<1x1x128xf32>
    %529 = vector.shape_cast %528 : vector<1x1x128xf32> to vector<1x128xf32>
    %c1_225 = arith.constant 1 : index
    %c0_226 = arith.constant 0 : index
    %c0_227 = arith.constant 0 : index
    %530 = vector.load %arg22[%c1_225, %c0_226, %c0_227] : memref<2x1x128xf32, #tpu.memory_space<vmem>>, vector<1x1x128xf32>
    %531 = vector.shape_cast %530 : vector<1x1x128xf32> to vector<1x128xf32>
    %cst_228 = arith.constant dense<0.000000e+00> : vector<24xf32>
    %532 = vector.multi_reduction <add>, %527, %cst_228 [1] : vector<24x128xf32> to vector<24xf32>
    %533 = vector.shape_cast %532 : vector<24xf32> to vector<24x1xf32>
    %cst_229 = arith.constant 1.280000e+02 : f32
    %534 = vector.broadcast %cst_229 : f32 to vector<24x1xf32>
    %535 = arith.divf %533, %534 : vector<24x1xf32>
    %536 = vector.broadcast %535 : vector<24x1xf32> to vector<24x128xf32>
    %537 = arith.subf %527, %536 : vector<24x128xf32>
    %538 = arith.mulf %537, %537 : vector<24x128xf32>
    %cst_230 = arith.constant dense<0.000000e+00> : vector<24xf32>
    %539 = vector.multi_reduction <add>, %538, %cst_230 [1] : vector<24x128xf32> to vector<24xf32>
    %540 = vector.shape_cast %539 : vector<24xf32> to vector<24x1xf32>
    %cst_231 = arith.constant 1.280000e+02 : f32
    %541 = vector.broadcast %cst_231 : f32 to vector<24x1xf32>
    %542 = arith.divf %540, %541 : vector<24x1xf32>
    %cst_232 = arith.constant 9.99999974E-6 : f32
    %543 = vector.broadcast %cst_232 : f32 to vector<24x1xf32>
    %544 = arith.addf %542, %543 : vector<24x1xf32>
    %545 = math.rsqrt %544 : vector<24x1xf32>
    %546 = vector.broadcast %545 : vector<24x1xf32> to vector<24x128xf32>
    %547 = arith.mulf %537, %546 : vector<24x128xf32>
    %548 = vector.broadcast %529 : vector<1x128xf32> to vector<24x128xf32>
    %549 = arith.mulf %547, %548 : vector<24x128xf32>
    %550 = vector.broadcast %531 : vector<1x128xf32> to vector<24x128xf32>
    %551 = arith.addf %549, %550 : vector<24x128xf32>
    %552 = arith.truncf %551 : vector<24x128xf32> to vector<24x128xbf16>
    %c1_233 = arith.constant 1 : index
    %c0_234 = arith.constant 0 : index
    %c0_235 = arith.constant 0 : index
    %553 = vector.load %arg23[%c1_233, %c0_234, %c0_235] : memref<2x128x384xbf16, #tpu.memory_space<vmem>>, vector<1x128x384xbf16>
    %554 = vector.shape_cast %553 : vector<1x128x384xbf16> to vector<128x384xbf16>
    %cst_236 = arith.constant dense<0.000000e+00> : vector<24x384xf32>
    %555 = tpu.matmul %552, %554, %cst_236 {dimension_numbers = #tpu.dot_dimension_numbers<[1], [0], [0], [1], [0, 0, 1, 1], [], []>} : vector<24x128xbf16>, vector<128x384xbf16>, vector<24x384xf32> -> vector<24x384xf32>
    %c1_237 = arith.constant 1 : index
    %c0_238 = arith.constant 0 : index
    %c0_239 = arith.constant 0 : index
    %556 = vector.load %arg24[%c1_237, %c0_238, %c0_239] : memref<2x1x384xf32, #tpu.memory_space<vmem>>, vector<1x1x384xf32>
    %557 = vector.shape_cast %556 : vector<1x1x384xf32> to vector<1x384xf32>
    %558 = vector.broadcast %557 : vector<1x384xf32> to vector<24x384xf32>
    %559 = arith.addf %555, %558 : vector<24x384xf32>
    %560 = vector.extract_strided_slice %559 {offsets = [0, 0], sizes = [24, 128], strides = [1, 1]} : vector<24x384xf32> to vector<24x128xf32>
    %561 = vector.shape_cast %560 : vector<24x128xf32> to vector<3x8x128xf32>
    %562 = vector.extract_strided_slice %559 {offsets = [0, 128], sizes = [24, 128], strides = [1, 1]} : vector<24x384xf32> to vector<24x128xf32>
    %563 = vector.shape_cast %562 : vector<24x128xf32> to vector<3x8x128xf32>
    %564 = vector.extract_strided_slice %559 {offsets = [0, 256], sizes = [24, 128], strides = [1, 1]} : vector<24x384xf32> to vector<24x128xf32>
    %565 = vector.shape_cast %564 : vector<24x128xf32> to vector<3x8x128xf32>
    %c1_240 = arith.constant 1 : index
    %c0_241 = arith.constant 0 : index
    %c0_242 = arith.constant 0 : index
    %566 = vector.load %arg25[%c1_240, %c0_241, %c0_242] : memref<2x128x128xbf16, #tpu.memory_space<vmem>>, vector<1x128x128xbf16>
    %567 = vector.shape_cast %566 : vector<1x128x128xbf16> to vector<128x128xbf16>
    %568 = vector.extract_strided_slice %561 {offsets = [0, 0, 0], sizes = [3, 8, 64], strides = [1, 1, 1]} : vector<3x8x128xf32> to vector<3x8x64xf32>
    %569 = vector.extract_strided_slice %563 {offsets = [0, 0, 0], sizes = [3, 8, 64], strides = [1, 1, 1]} : vector<3x8x128xf32> to vector<3x8x64xf32>
    %570 = vector.extract_strided_slice %565 {offsets = [0, 0, 0], sizes = [3, 8, 64], strides = [1, 1, 1]} : vector<3x8x128xf32> to vector<3x8x64xf32>
    %571 = arith.truncf %568 : vector<3x8x64xf32> to vector<3x8x64xbf16>
    %572 = arith.truncf %569 : vector<3x8x64xf32> to vector<3x8x64xbf16>
    %cst_243 = arith.constant dense<0.000000e+00> : vector<3x8x8xf32>
    %573 = tpu.matmul %571, %572, %cst_243 {dimension_numbers = #tpu.dot_dimension_numbers<[2], [2], [1], [1], [0, 0, 0, 1, 1, 1], [0], [0]>} : vector<3x8x64xbf16>, vector<3x8x64xbf16>, vector<3x8x8xf32> -> vector<3x8x8xf32>
    %cst_244 = arith.constant 1.250000e-01 : f32
    %574 = vector.broadcast %cst_244 : f32 to vector<3x8x8xf32>
    %575 = arith.mulf %573, %574 : vector<3x8x8xf32>
    %cst_245 = arith.constant -1.000000e+09 : f32
    %576 = vector.shape_cast %374 : vector<1x8x8xi1> to vector<1x8x8xi1>
    %577 = vector.broadcast %576 : vector<1x8x8xi1> to vector<3x8x8xi1>
    %578 = vector.broadcast %cst_245 : f32 to vector<3x8x8xf32>
    %579 = arith.select %577, %575, %578 : vector<3x8x8xi1>, vector<3x8x8xf32>
    %cst_246 = arith.constant dense<0xFF800000> : vector<3x8xf32>
    %580 = vector.multi_reduction <maximumf>, %579, %cst_246 [2] : vector<3x8x8xf32> to vector<3x8xf32>
    %581 = vector.shape_cast %580 : vector<3x8xf32> to vector<3x8x1xf32>
    %582 = vector.broadcast %581 : vector<3x8x1xf32> to vector<3x8x8xf32>
    %583 = arith.subf %579, %582 : vector<3x8x8xf32>
    %584 = math.exp %583 : vector<3x8x8xf32>
    %cst_247 = arith.constant dense<0.000000e+00> : vector<3x8xf32>
    %585 = vector.multi_reduction <add>, %584, %cst_247 [2] : vector<3x8x8xf32> to vector<3x8xf32>
    %586 = vector.shape_cast %585 : vector<3x8xf32> to vector<3x8x1xf32>
    %587 = tpu.reciprocal %586 {approx = true} : vector<3x8x1xf32> -> vector<3x8x1xf32>
    %588 = vector.broadcast %587 : vector<3x8x1xf32> to vector<3x8x8xf32>
    %589 = arith.mulf %584, %588 : vector<3x8x8xf32>
    %590 = arith.truncf %589 : vector<3x8x8xf32> to vector<3x8x8xbf16>
    %591 = arith.truncf %570 : vector<3x8x64xf32> to vector<3x8x64xbf16>
    %cst_248 = arith.constant dense<0.000000e+00> : vector<3x8x64xf32>
    %592 = tpu.matmul %590, %591, %cst_248 {dimension_numbers = #tpu.dot_dimension_numbers<[2], [1], [1], [2], [0, 0, 0, 1, 1, 2], [0], [0]>} : vector<3x8x8xbf16>, vector<3x8x64xbf16>, vector<3x8x64xf32> -> vector<3x8x64xf32>
    %593 = vector.shape_cast %592 : vector<3x8x64xf32> to vector<24x64xf32>
    %594 = arith.truncf %593 : vector<24x64xf32> to vector<24x64xbf16>
    %595 = vector.extract_strided_slice %567 {offsets = [0, 0], sizes = [64, 128], strides = [1, 1]} : vector<128x128xbf16> to vector<64x128xbf16>
    %cst_249 = arith.constant dense<0.000000e+00> : vector<24x128xf32>
    %596 = tpu.matmul %594, %595, %cst_249 {dimension_numbers = #tpu.dot_dimension_numbers<[1], [0], [0], [1], [0, 0, 1, 1], [], []>} : vector<24x64xbf16>, vector<64x128xbf16>, vector<24x128xf32> -> vector<24x128xf32>
    %597 = vector.extract_strided_slice %561 {offsets = [0, 0, 64], sizes = [3, 8, 64], strides = [1, 1, 1]} : vector<3x8x128xf32> to vector<3x8x64xf32>
    %598 = vector.extract_strided_slice %563 {offsets = [0, 0, 64], sizes = [3, 8, 64], strides = [1, 1, 1]} : vector<3x8x128xf32> to vector<3x8x64xf32>
    %599 = vector.extract_strided_slice %565 {offsets = [0, 0, 64], sizes = [3, 8, 64], strides = [1, 1, 1]} : vector<3x8x128xf32> to vector<3x8x64xf32>
    %600 = arith.truncf %597 : vector<3x8x64xf32> to vector<3x8x64xbf16>
    %601 = arith.truncf %598 : vector<3x8x64xf32> to vector<3x8x64xbf16>
    %cst_250 = arith.constant dense<0.000000e+00> : vector<3x8x8xf32>
    %602 = tpu.matmul %600, %601, %cst_250 {dimension_numbers = #tpu.dot_dimension_numbers<[2], [2], [1], [1], [0, 0, 0, 1, 1, 1], [0], [0]>} : vector<3x8x64xbf16>, vector<3x8x64xbf16>, vector<3x8x8xf32> -> vector<3x8x8xf32>
    %cst_251 = arith.constant 1.250000e-01 : f32
    %603 = vector.broadcast %cst_251 : f32 to vector<3x8x8xf32>
    %604 = arith.mulf %602, %603 : vector<3x8x8xf32>
    %cst_252 = arith.constant -1.000000e+09 : f32
    %605 = vector.shape_cast %374 : vector<1x8x8xi1> to vector<1x8x8xi1>
    %606 = vector.broadcast %605 : vector<1x8x8xi1> to vector<3x8x8xi1>
    %607 = vector.broadcast %cst_252 : f32 to vector<3x8x8xf32>
    %608 = arith.select %606, %604, %607 : vector<3x8x8xi1>, vector<3x8x8xf32>
    %cst_253 = arith.constant dense<0xFF800000> : vector<3x8xf32>
    %609 = vector.multi_reduction <maximumf>, %608, %cst_253 [2] : vector<3x8x8xf32> to vector<3x8xf32>
    %610 = vector.shape_cast %609 : vector<3x8xf32> to vector<3x8x1xf32>
    %611 = vector.broadcast %610 : vector<3x8x1xf32> to vector<3x8x8xf32>
    %612 = arith.subf %608, %611 : vector<3x8x8xf32>
    %613 = math.exp %612 : vector<3x8x8xf32>
    %cst_254 = arith.constant dense<0.000000e+00> : vector<3x8xf32>
    %614 = vector.multi_reduction <add>, %613, %cst_254 [2] : vector<3x8x8xf32> to vector<3x8xf32>
    %615 = vector.shape_cast %614 : vector<3x8xf32> to vector<3x8x1xf32>
    %616 = tpu.reciprocal %615 {approx = true} : vector<3x8x1xf32> -> vector<3x8x1xf32>
    %617 = vector.broadcast %616 : vector<3x8x1xf32> to vector<3x8x8xf32>
    %618 = arith.mulf %613, %617 : vector<3x8x8xf32>
    %619 = arith.truncf %618 : vector<3x8x8xf32> to vector<3x8x8xbf16>
    %620 = arith.truncf %599 : vector<3x8x64xf32> to vector<3x8x64xbf16>
    %cst_255 = arith.constant dense<0.000000e+00> : vector<3x8x64xf32>
    %621 = tpu.matmul %619, %620, %cst_255 {dimension_numbers = #tpu.dot_dimension_numbers<[2], [1], [1], [2], [0, 0, 0, 1, 1, 2], [0], [0]>} : vector<3x8x8xbf16>, vector<3x8x64xbf16>, vector<3x8x64xf32> -> vector<3x8x64xf32>
    %622 = vector.shape_cast %621 : vector<3x8x64xf32> to vector<24x64xf32>
    %623 = arith.truncf %622 : vector<24x64xf32> to vector<24x64xbf16>
    %624 = vector.extract_strided_slice %567 {offsets = [64, 0], sizes = [64, 128], strides = [1, 1]} : vector<128x128xbf16> to vector<64x128xbf16>
    %cst_256 = arith.constant dense<0.000000e+00> : vector<24x128xf32>
    %625 = tpu.matmul %623, %624, %cst_256 {dimension_numbers = #tpu.dot_dimension_numbers<[1], [0], [0], [1], [0, 0, 1, 1], [], []>} : vector<24x64xbf16>, vector<64x128xbf16>, vector<24x128xf32> -> vector<24x128xf32>
    %626 = arith.addf %596, %625 : vector<24x128xf32>
    %627 = arith.addf %527, %626 : vector<24x128xf32>
    %c1_257 = arith.constant 1 : index
    %c0_258 = arith.constant 0 : index
    %c0_259 = arith.constant 0 : index
    %628 = vector.load %arg26[%c1_257, %c0_258, %c0_259] : memref<2x1x128xf32, #tpu.memory_space<vmem>>, vector<1x1x128xf32>
    %629 = vector.shape_cast %628 : vector<1x1x128xf32> to vector<1x128xf32>
    %630 = vector.broadcast %629 : vector<1x128xf32> to vector<24x128xf32>
    %631 = arith.addf %627, %630 : vector<24x128xf32>
    %c1_260 = arith.constant 1 : index
    %c0_261 = arith.constant 0 : index
    %c0_262 = arith.constant 0 : index
    %632 = vector.load %arg27[%c1_260, %c0_261, %c0_262] : memref<2x1x128xf32, #tpu.memory_space<vmem>>, vector<1x1x128xf32>
    %633 = vector.shape_cast %632 : vector<1x1x128xf32> to vector<1x128xf32>
    %c1_263 = arith.constant 1 : index
    %c0_264 = arith.constant 0 : index
    %c0_265 = arith.constant 0 : index
    %634 = vector.load %arg28[%c1_263, %c0_264, %c0_265] : memref<2x1x128xf32, #tpu.memory_space<vmem>>, vector<1x1x128xf32>
    %635 = vector.shape_cast %634 : vector<1x1x128xf32> to vector<1x128xf32>
    %cst_266 = arith.constant dense<0.000000e+00> : vector<24xf32>
    %636 = vector.multi_reduction <add>, %631, %cst_266 [1] : vector<24x128xf32> to vector<24xf32>
    %637 = vector.shape_cast %636 : vector<24xf32> to vector<24x1xf32>
    %cst_267 = arith.constant 1.280000e+02 : f32
    %638 = vector.broadcast %cst_267 : f32 to vector<24x1xf32>
    %639 = arith.divf %637, %638 : vector<24x1xf32>
    %640 = vector.broadcast %639 : vector<24x1xf32> to vector<24x128xf32>
    %641 = arith.subf %631, %640 : vector<24x128xf32>
    %642 = arith.mulf %641, %641 : vector<24x128xf32>
    %cst_268 = arith.constant dense<0.000000e+00> : vector<24xf32>
    %643 = vector.multi_reduction <add>, %642, %cst_268 [1] : vector<24x128xf32> to vector<24xf32>
    %644 = vector.shape_cast %643 : vector<24xf32> to vector<24x1xf32>
    %cst_269 = arith.constant 1.280000e+02 : f32
    %645 = vector.broadcast %cst_269 : f32 to vector<24x1xf32>
    %646 = arith.divf %644, %645 : vector<24x1xf32>
    %cst_270 = arith.constant 9.99999974E-6 : f32
    %647 = vector.broadcast %cst_270 : f32 to vector<24x1xf32>
    %648 = arith.addf %646, %647 : vector<24x1xf32>
    %649 = math.rsqrt %648 : vector<24x1xf32>
    %650 = vector.broadcast %649 : vector<24x1xf32> to vector<24x128xf32>
    %651 = arith.mulf %641, %650 : vector<24x128xf32>
    %652 = vector.broadcast %633 : vector<1x128xf32> to vector<24x128xf32>
    %653 = arith.mulf %651, %652 : vector<24x128xf32>
    %654 = vector.broadcast %635 : vector<1x128xf32> to vector<24x128xf32>
    %655 = arith.addf %653, %654 : vector<24x128xf32>
    %656 = arith.truncf %655 : vector<24x128xf32> to vector<24x128xbf16>
    %c1_271 = arith.constant 1 : index
    %c0_272 = arith.constant 0 : index
    %c0_273 = arith.constant 0 : index
    %657 = vector.load %arg29[%c1_271, %c0_272, %c0_273] : memref<2x128x512xbf16, #tpu.memory_space<vmem>>, vector<1x128x512xbf16>
    %658 = vector.shape_cast %657 : vector<1x128x512xbf16> to vector<128x512xbf16>
    %cst_274 = arith.constant dense<0.000000e+00> : vector<24x512xf32>
    %659 = tpu.matmul %656, %658, %cst_274 {dimension_numbers = #tpu.dot_dimension_numbers<[1], [0], [0], [1], [0, 0, 1, 1], [], []>} : vector<24x128xbf16>, vector<128x512xbf16>, vector<24x512xf32> -> vector<24x512xf32>
    %c1_275 = arith.constant 1 : index
    %c0_276 = arith.constant 0 : index
    %c0_277 = arith.constant 0 : index
    %660 = vector.load %arg30[%c1_275, %c0_276, %c0_277] : memref<2x1x512xf32, #tpu.memory_space<vmem>>, vector<1x1x512xf32>
    %661 = vector.shape_cast %660 : vector<1x1x512xf32> to vector<1x512xf32>
    %662 = vector.broadcast %661 : vector<1x512xf32> to vector<24x512xf32>
    %663 = arith.addf %659, %662 : vector<24x512xf32>
    %cst_278 = arith.constant 1.702000e+00 : f32
    %664 = vector.broadcast %cst_278 : f32 to vector<24x512xf32>
    %665 = arith.mulf %664, %663 : vector<24x512xf32>
    %666 = arith.negf %665 : vector<24x512xf32>
    %667 = math.exp %666 : vector<24x512xf32>
    %cst_279 = arith.constant 1.000000e+00 : f32
    %668 = vector.broadcast %cst_279 : f32 to vector<24x512xf32>
    %669 = arith.addf %668, %667 : vector<24x512xf32>
    %670 = arith.divf %668, %669 : vector<24x512xf32>
    %671 = arith.mulf %663, %670 : vector<24x512xf32>
    %672 = arith.truncf %671 : vector<24x512xf32> to vector<24x512xbf16>
    %c1_280 = arith.constant 1 : index
    %c0_281 = arith.constant 0 : index
    %c0_282 = arith.constant 0 : index
    %673 = vector.load %arg31[%c1_280, %c0_281, %c0_282] : memref<2x512x128xbf16, #tpu.memory_space<vmem>>, vector<1x512x128xbf16>
    %674 = vector.shape_cast %673 : vector<1x512x128xbf16> to vector<512x128xbf16>
    %cst_283 = arith.constant dense<0.000000e+00> : vector<24x128xf32>
    %675 = tpu.matmul %672, %674, %cst_283 {dimension_numbers = #tpu.dot_dimension_numbers<[1], [0], [0], [1], [0, 0, 1, 1], [], []>} : vector<24x512xbf16>, vector<512x128xbf16>, vector<24x128xf32> -> vector<24x128xf32>
    %c1_284 = arith.constant 1 : index
    %c0_285 = arith.constant 0 : index
    %c0_286 = arith.constant 0 : index
    %676 = vector.load %arg32[%c1_284, %c0_285, %c0_286] : memref<2x1x128xf32, #tpu.memory_space<vmem>>, vector<1x1x128xf32>
    %677 = vector.shape_cast %676 : vector<1x1x128xf32> to vector<1x128xf32>
    %678 = vector.broadcast %677 : vector<1x128xf32> to vector<24x128xf32>
    %679 = arith.addf %675, %678 : vector<24x128xf32>
    %680 = arith.addf %631, %679 : vector<24x128xf32>
    %c0_287 = arith.constant 0 : index
    %c0_288 = arith.constant 0 : index
    %681 = vector.load %arg33[%c0_287, %c0_288] : memref<1x128xf32, #tpu.memory_space<vmem>>, vector<1x128xf32>
    %c0_289 = arith.constant 0 : index
    %c0_290 = arith.constant 0 : index
    %682 = vector.load %arg34[%c0_289, %c0_290] : memref<1x128xf32, #tpu.memory_space<vmem>>, vector<1x128xf32>
    %cst_291 = arith.constant dense<0.000000e+00> : vector<24xf32>
    %683 = vector.multi_reduction <add>, %680, %cst_291 [1] : vector<24x128xf32> to vector<24xf32>
    %684 = vector.shape_cast %683 : vector<24xf32> to vector<24x1xf32>
    %cst_292 = arith.constant 1.280000e+02 : f32
    %685 = vector.broadcast %cst_292 : f32 to vector<24x1xf32>
    %686 = arith.divf %684, %685 : vector<24x1xf32>
    %687 = vector.broadcast %686 : vector<24x1xf32> to vector<24x128xf32>
    %688 = arith.subf %680, %687 : vector<24x128xf32>
    %689 = arith.mulf %688, %688 : vector<24x128xf32>
    %cst_293 = arith.constant dense<0.000000e+00> : vector<24xf32>
    %690 = vector.multi_reduction <add>, %689, %cst_293 [1] : vector<24x128xf32> to vector<24xf32>
    %691 = vector.shape_cast %690 : vector<24xf32> to vector<24x1xf32>
    %cst_294 = arith.constant 1.280000e+02 : f32
    %692 = vector.broadcast %cst_294 : f32 to vector<24x1xf32>
    %693 = arith.divf %691, %692 : vector<24x1xf32>
    %cst_295 = arith.constant 9.99999974E-6 : f32
    %694 = vector.broadcast %cst_295 : f32 to vector<24x1xf32>
    %695 = arith.addf %693, %694 : vector<24x1xf32>
    %696 = math.rsqrt %695 : vector<24x1xf32>
    %697 = vector.broadcast %696 : vector<24x1xf32> to vector<24x128xf32>
    %698 = arith.mulf %688, %697 : vector<24x128xf32>
    %699 = vector.broadcast %681 : vector<1x128xf32> to vector<24x128xf32>
    %700 = arith.mulf %698, %699 : vector<24x128xf32>
    %701 = vector.broadcast %682 : vector<1x128xf32> to vector<24x128xf32>
    %702 = arith.addf %700, %701 : vector<24x128xf32>
    %703 = vector.shape_cast %702 : vector<24x128xf32> to vector<3x8x128xf32>
    %704 = vector.extract_strided_slice %703 {offsets = [0, 7, 0], sizes = [3, 1, 128], strides = [1, 1, 1]} : vector<3x8x128xf32> to vector<3x1x128xf32>
    %705 = vector.shape_cast %704 : vector<3x1x128xf32> to vector<3x128xf32>
    %706 = arith.truncf %705 : vector<3x128xf32> to vector<3x128xbf16>
    %c0_296 = arith.constant 0 : index
    %c0_297 = arith.constant 0 : index
    %707 = vector.load %arg35[%c0_296, %c0_297] : memref<128x128xbf16, #tpu.memory_space<vmem>>, vector<128x128xbf16>
    %cst_298 = arith.constant dense<0.000000e+00> : vector<3x128xf32>
    %708 = tpu.matmul %706, %707, %cst_298 {dimension_numbers = #tpu.dot_dimension_numbers<[1], [0], [0], [1], [0, 0, 1, 1], [], []>} : vector<3x128xbf16>, vector<128x128xbf16>, vector<3x128xf32> -> vector<3x128xf32>
    %709 = arith.mulf %369, %369 : vector<2x128xf32>
    %cst_299 = arith.constant dense<0.000000e+00> : vector<2xf32>
    %710 = vector.multi_reduction <add>, %709, %cst_299 [1] : vector<2x128xf32> to vector<2xf32>
    %711 = vector.shape_cast %710 : vector<2xf32> to vector<2x1xf32>
    %712 = math.rsqrt %711 : vector<2x1xf32>
    %713 = vector.broadcast %712 : vector<2x1xf32> to vector<2x128xf32>
    %714 = arith.mulf %369, %713 : vector<2x128xf32>
    %715 = arith.mulf %708, %708 : vector<3x128xf32>
    %cst_300 = arith.constant dense<0.000000e+00> : vector<3xf32>
    %716 = vector.multi_reduction <add>, %715, %cst_300 [1] : vector<3x128xf32> to vector<3xf32>
    %717 = vector.shape_cast %716 : vector<3xf32> to vector<3x1xf32>
    %718 = math.rsqrt %717 : vector<3x1xf32>
    %719 = vector.broadcast %718 : vector<3x1xf32> to vector<3x128xf32>
    %720 = arith.mulf %708, %719 : vector<3x128xf32>
    %cst_301 = arith.constant dense<0.000000e+00> : vector<2x3xf32>
    %721 = tpu.matmul %714, %720, %cst_301 {dimension_numbers = #tpu.dot_dimension_numbers<[1], [1], [0], [0], [0, 0, 1, 0], [], []>} : vector<2x128xf32>, vector<3x128xf32>, vector<2x3xf32> -> vector<2x3xf32>
    %c0_302 = arith.constant 0 : index
    %c0_303 = arith.constant 0 : index
    %722 = vector.load %arg36[%c0_302, %c0_303] : memref<1x1xf32, #tpu.memory_space<vmem>>, vector<1x1xf32>
    %723 = vector.broadcast %722 : vector<1x1xf32> to vector<2x3xf32>
    %724 = arith.mulf %723, %721 : vector<2x3xf32>
    %c0_304 = arith.constant 0 : index
    %c0_305 = arith.constant 0 : index
    %725 = vector.load %arg37[%c0_304, %c0_305] : memref<2x3xf32, #tpu.memory_space<vmem>>, vector<2x3xf32>
    tpu.vector_store %arg37[%c0_304, %c0_305], %724 {strides = array<i32>} : memref<2x3xf32, #tpu.memory_space<vmem>>, vector<2x3xf32>,
    return
  }
}

</mosaic_0001>

<bundles_post_ra>
// kernel: clip_forward.1
= control target key start
LH: loop header
LB: loop body
LE: loop exit
PB: predicated region body
PF: predicated region fallthrough
CT: control target
= control target key end

     0   :  { %s11967_s6 = smov 1   ;;  %s11968_s10 = smov 2   ;;  %s13638_s0 = inlined_call_operand.smem [shape: u32[38], index: -1, kind: input, shape index: {}] }
   0x1   :  { %s12042_s5 = sld [smem:[%s13638_s0]]   ;;  %s11969_s14 = smov 3  }
   0x2   :  { %s12047_s9 = sld [smem:[%s13638_s0 + %s11967_s6]]   ;;  %s11970_s18 = smov 4  }
   0x3   :  { %s12052_s13 = sld [smem:[%s13638_s0 + %s11968_s10]]   ;;  %s11971_s22 = smov 5  }
   0x4   :  { %s12057_s17 = sld [smem:[%s13638_s0 + %s11969_s14]]   ;;  %s11972_s26 = smov 6  }
   0x5   :  { %s12062_s21 = sld [smem:[%s13638_s0 + %s11970_s18]]   ;;  %s11973_s30 = smov 7  }
   0x6   :  { %s12067_s25 = sld [smem:[%s13638_s0 + %s11971_s22]]   ;;  %s11974_s4 = smov 8  }
   0x7   :  { %13654 = sst [smem:[#allocation44_spill]] %s12042_s5  ;;  %s11975_s10 = smov 9  }
   0x8   :  { %s12072_s29 = sld [smem:[%s13638_s0 + %s11972_s26]]   ;;  %s11976_s15 = smov 10  }
   0x9   :  { %13655 = sst [smem:[#allocation45_spill]] %s12052_s13  ;;  %s11977_s20 = smov 11  }
   0xa   :  { %13656 = sst [smem:[#allocation46_spill]] %s12057_s17  ;;  %s11978_s26 = smov 12  }
   0xb   :  { %s12077_s3 = sld [smem:[%s13638_s0 + %s11973_s30]]   ;;  %s11979_s1 = smov 13  }
   0xc   :  { %13657 = sst [smem:[#allocation47_spill]] %s12067_s25  ;;  %s11980_s7 = smov 14  }
   0xd   :  { %s12082_s8 = sld [smem:[%s13638_s0 + %s11974_s4]]   ;;  %s11982_s22 = smov 16  }
   0xe   :  { %13658 = sst [smem:[#allocation48_spill]] %s12072_s29  ;;  %s11983_s28 = smov 17  }
   0xf   :  { %s12087_s14 = sld [smem:[%s13638_s0 + %s11975_s10]]  }
  0x10   :  { %s12092_s19 = sld [smem:[%s13638_s0 + %s11976_s15]]   ;;  %s11981_s15 = smov 15  }
  0x11   :  { %s12097_s24 = sld [smem:[%s13638_s0 + %s11977_s20]]  }
  0x12   :  { %s12102_s30 = sld [smem:[%s13638_s0 + %s11978_s26]]  }
  0x13   :  { %s12107_s6 = sld [smem:[%s13638_s0 + %s11979_s1]]   ;;  %s12003_s1 = smov 37  }
  0x14   :  { %s12112_s12 = sld [smem:[%s13638_s0 + %s11980_s7]]   ;;  %s11984_s7 = smov 18  }
  0x15   :  { %13659 = sst [smem:[#allocation49_spill]] %s12087_s14 }
  0x16   :  { %s12117_s20 = sld [smem:[%s13638_s0 + %s11981_s15]]   ;;  %s11985_s15 = smov 19  }
  0x17   :  { %s12122_s27 = sld [smem:[%s13638_s0 + %s11982_s22]]   ;;  %s11986_s22 = smov 20  }
  0x18   :  { %s12127_s4 = sld [smem:[%s13638_s0 + %s11983_s28]]   ;;  %s11987_s28 = smov 21  }
  0x19   :  { %13660 = sst [smem:[#allocation50_spill]] %s12107_s6 }
  0x1a   :  { %s12132_s6 = sld [smem:[%s13638_s0 + %s11984_s7]]   ;;  %s11988_s7 = smov 22  }
  0x1b   :  { %s12142_s14 = sld [smem:[%s13638_s0 + %s11986_s22]]   ;;  %s11990_s22 = smov 24  }
  0x1c   :  { %13661 = sst [smem:[#allocation51_spill]] %s12117_s20 }
  0x1d   :  { %s12137_s20 = sld [smem:[%s13638_s0 + %s11985_s15]]   ;;  %s11989_s15 = smov 23  }
  0x1e   :  { %13662 = sst [smem:[#allocation52_spill]] %s12127_s4 }
  0x1f   :  { %s12147_s4 = sld [smem:[%s13638_s0 + %s11987_s28]]   ;;  %s11991_s28 = smov 25  }
  0x20   :  { %13663 = sst [smem:[#allocation53_spill]] %s12132_s6 }
  0x21   :  { %13664 = sst [smem:[#allocation54_spill]] %s12142_s14 }
  0x22   :  { %s12152_s6 = sld [smem:[%s13638_s0 + %s11988_s7]]   ;;  %s11992_s7 = smov 26  }
  0x23   :  { %s12157_s29 = sld [smem:[%s13638_s0 + %s11989_s15]]   ;;  %s11993_s15 = smov 27  }
  0x24   :  { %s12162_s14 = sld [smem:[%s13638_s0 + %s11990_s22]]   ;;  %s11994_s22 = smov 28  }
  0x25   :  { %s12167_s25 = sld [smem:[%s13638_s0 + %s11991_s28]]   ;;  %s11995_s28 = smov 29  }
  0x26   :  { %s12177_s17 = sld [smem:[%s13638_s0 + %s11993_s15]]   ;;  %s11997_s15 = smov 31  }
  0x27   :  { %s12182_s13 = sld [smem:[%s13638_s0 + %s11994_s22]]   ;;  %s11998_s22 = smov 32  }
  0x28   :  { %13665 = sst [smem:[#allocation55_spill]] %s12152_s6 }
  0x29   :  { %s12172_s6 = sld [smem:[%s13638_s0 + %s11992_s7]]   ;;  %s11996_s7 = smov 30  }
  0x2a   :  { %13666 = sst [smem:[#allocation56_spill]] %s12162_s14 }
  0x2b   :  { %13667 = sst [smem:[#allocation57_spill]] %s12167_s25 }
  0x2c   :  { %13668 = sst [smem:[#allocation58_spill]] %s12177_s17 }
  0x2d   :  { %s12187_s25 = sld [smem:[%s13638_s0 + %s11995_s28]]   ;;  %s11999_s28 = smov 33  }
  0x2e   :  { %s12192_s5 = sld [smem:[%s13638_s0 + %s11996_s7]]   ;;  %s12000_s7 = smov 34  }
  0x2f   :  { %s12197_s17 = sld [smem:[%s13638_s0 + %s11997_s15]]   ;;  %s12001_s15 = smov 35  }
  0x30   :  { %s12202_s14 = sld [smem:[%s13638_s0 + %s11998_s22]]   ;;  %s12002_s22 = smov 36  }
  0x33   :  { %13669 = sst [smem:[#allocation59_spill]] %s12187_s25 }
  0x34   :  { %13670 = sst [smem:[#allocation60_spill]] %s12192_s5 }
  0x35   :  { %13671 = sst [smem:[#allocation61_spill]] %s12197_s17 }
  0x36   :  { %13672 = sst [smem:[#allocation62_spill]] %s12202_s14 }
  0x37   :  { %s12207_s25 = sld [smem:[%s13638_s0 + %s11999_s28]]  }
  0x38   :  { %s12212_s5 = sld [smem:[%s13638_s0 + %s12000_s7]]  }
  0x39   :  { %s12217_s17 = sld [smem:[%s13638_s0 + %s12001_s15]]  }
  0x3a   :  { %s8906_s14 = sld [smem:[%s13638_s0 + %s12002_s22]]  }
  0x3d   :  { %13673 = sst [smem:[#allocation63_spill]] %s12207_s25 }
  0x3e   :  { %s12225_s25 = sld [smem:[%s13638_s0 + %s12003_s1]]  }
  0x40   :  { %v80_v0 = vstv %s8906_s14 }
  0x41   :  { %81 = vst [vmem:[#allocation2] sm:$0x1] %v80_v0 }
  0x42   :  { %82 = vsyncpa [#allocation4], 0 }
  0x43   :  { %83 = vsyncpa [#allocation7], 0 }
  0x44   :  { %84 = vsyncpa [#allocation10], 0 }
  0x45   :  { %85 = vsyncpa [#allocation13], 0 }
  0x46   :  { %86 = vsyncpa [#allocation16], 0 }
  0x47   :  { %87 = vsyncpa [#allocation19], 0 }
  0x48   :  { %88 = vsyncpa [#allocation22], 0 }
  0x49   :  { %89 = vsyncpa [#allocation25], 0 }
  0x4a   :  { %90 = vsyncpa [#allocation28], 0 }
  0x4b   :  { %91 = vsyncpa [#allocation31], 0 }
  0x4c   :  { %92 = vsyncpa [#allocation5], 0  ;;  %s12004_s7 = smov [#allocation6]   ;;  %s12005_s0 = smov [#allocation9]  }
  0x4d   :  { %s117_s10 = sshll.u32 %s12004_s7, 4  ;;  %s142_s11 = sshll.u32 %s12005_s0, 4  ;;  %s118_s10 = int_to_ptr.vmem [resolvable:$true] %s117_s10  ;;  %s12227_s11 = int_to_ptr.vmem [resolvable:$true] %s142_s11 }
  0x4e   :  { %s11527_s14 = scalar_lea.hbm %s12062_s21, 16 }
  0x4f   :  { %p11528_p0 = scmp.ne.s32.totalorder %s12062_s21, %s11527_s14  ;;  %p11531_p1 = scmp.lt.u32.totalorder %s11527_s14, %s12062_s21 }
  0x51   :  { %p11533_p2 = pnand %p11531_p1, %p11528_p0 }
  0x53   :  { %11536 = shalt.err (!%p11533_p2)
}
  0x54   :  { %s11537_s15 = scalar_lea.vmem %s118_s10, 16  ;;  %s11541_s16 = scalar_lea.vmem %s118_s10, 32 }
  0x55   :  { %p11538_p3 = scmp.ne.s32.totalorder %s118_s10, %s11537_s15  ;;  %p11542_p4 = scmp.lt.s32.totalorder %s118_s10, %s118_s10 }
  0x56   :  { %p11543_p5 = scmp.lt.s32.totalorder %s11541_s16, %s11537_s15 }
  0x58   :  { %p11544_p6 = por %p11543_p5, %p11542_p4 }
  0x5a   :  { %p11545_p7 = pnand %p11544_p6, %p11538_p3 }
  0x5c   :  { %11548 = shalt.err (!%p11545_p7)
}
  0x5d   :  { %120 = dma.hbm_to_vmem [thread:$0]  %s12062_s21, 16, %s118_s10, [#allocation7]  }
  0x5e   :  { %s11549_s18 = scalar_lea.hbm %s12082_s8, 96 }
  0x5f   :  { %p11550_p8 = scmp.ne.s32.totalorder %s12082_s8, %s11549_s18  ;;  %p11553_p9 = scmp.lt.u32.totalorder %s11549_s18, %s12082_s8 }
  0x61   :  { %p11555_p10 = pnand %p11553_p9, %p11550_p8 }
  0x63   :  { %11558 = shalt.err (!%p11555_p10)
}
  0x64   :  { %s11559_s22 = scalar_lea.vmem %s12227_s11, 96  ;;  %p11564_p12 = scmp.lt.s32.totalorder %s12227_s11, %s12227_s11 }
  0x65   :  { %p11560_p11 = scmp.ne.s32.totalorder %s12227_s11, %s11559_s22  ;;  %p11565_p13 = scmp.lt.s32.totalorder %s11559_s22, %s11559_s22 }
  0x67   :  { %p11566_p0 = por %p11565_p13, %p11564_p12 }
  0x69   :  { %p11567_p1 = pnand %p11566_p0, %p11560_p11 }
  0x6b   :  { %11570 = shalt.err (!%p11567_p1)
}
  0x6c   :  { %s12006_s23 = smov 48   ;;  %s12007_s21 = smov 3  }
  0x6d   :  { %148 = dma.hbm_to_vmem [thread:$0]  %s12082_s8, 96, %s12227_s11, [#allocation10], %s12006_s23, %s12006_s23, %s12007_s21  }
  0x6e   :  { %s12008_s26 = smov [#allocation12]   ;;  %s11571_s28 = scalar_lea.hbm %s12097_s24, 32 }
  0x6f   :  { %s168_s1 = sshll.u32 %s12008_s26, 4  ;;  %p11572_p2 = scmp.ne.s32.totalorder %s12097_s24, %s11571_s28  ;;  %s169_s1 = int_to_ptr.vmem [resolvable:$true] %s168_s1 }
  0x70   :  { %p11575_p3 = scmp.lt.u32.totalorder %s11571_s28, %s12097_s24 }
  0x72   :  { %p11577_p4 = pnand %p11575_p3, %p11572_p2 }
  0x74   :  { %11580 = shalt.err (!%p11577_p4)
}
  0x75   :  { %s11581_s2 = scalar_lea.vmem %s169_s1, 32  ;;  %p11586_p6 = scmp.lt.s32.totalorder %s169_s1, %s169_s1 }
  0x76   :  { %p11582_p5 = scmp.ne.s32.totalorder %s169_s1, %s11581_s2  ;;  %p11587_p7 = scmp.lt.s32.totalorder %s11581_s2, %s11581_s2 }
  0x78   :  { %p11588_p8 = por %p11587_p7, %p11586_p6 }
  0x7a   :  { %p11589_p9 = pnand %p11588_p8, %p11582_p5 }
  0x7c   :  { %11592 = shalt.err (!%p11589_p9)
}
  0x7d   :  { %s12009_s7 = smov 16   ;;  %s12010_s8 = smov 1  }
  0x7e   :  { %174 = dma.hbm_to_vmem [thread:$0]  %s12097_s24, 32, %s169_s1, [#allocation13], %s12009_s7, %s12009_s7, %s12010_s8  }
  0x7f   :  { %s12011_s10 = smov [#allocation15]   ;;  %s12012_s11 = smov [#allocation18]  }
  0x80   :  { %s194_s0 = sshll.u32 %s12011_s10, 4  ;;  %s224_s14 = sshll.u32 %s12012_s11, 4  ;;  %s195_s0 = int_to_ptr.vmem [resolvable:$true] %s194_s0  ;;  %s225_s14 = int_to_ptr.vmem [resolvable:$true] %s224_s14 }
  0x81   :  { %s11593_s15 = scalar_lea.hbm %s12112_s12, 128 }
  0x82   :  { %p11594_p10 = scmp.ne.s32.totalorder %s12112_s12, %s11593_s15  ;;  %p11597_p11 = scmp.lt.u32.totalorder %s11593_s15, %s12112_s12 }
  0x84   :  { %p11599_p12 = pnand %p11597_p11, %p11594_p10 }
  0x86   :  { %11602 = shalt.err (!%p11599_p12)
}
  0x87   :  { %s11603_s16 = scalar_lea.vmem %s195_s0, 128  ;;  %p11608_p0 = scmp.lt.s32.totalorder %s195_s0, %s195_s0 }
  0x88   :  { %p11604_p13 = scmp.ne.s32.totalorder %s195_s0, %s11603_s16  ;;  %p11609_p1 = scmp.lt.s32.totalorder %s11603_s16, %s11603_s16 }
  0x8a   :  { %p11610_p2 = por %p11609_p1, %p11608_p0 }
  0x8c   :  { %p11611_p3 = pnand %p11610_p2, %p11604_p13 }
  0x8e   :  { %11614 = shalt.err (!%p11611_p3)
}
  0x8f   :  { %s12013_s18 = smov 64   ;;  %s12014_s24 = smov 4  }
  0x90   :  { %200 = dma.hbm_to_vmem [thread:$0]  %s12112_s12, 128, %s195_s0, [#allocation16], %s12013_s18, %s12013_s18, %s12014_s24  }
  0x91   :  { %s11615_s22 = scalar_lea.hbm %s12137_s20, 1024 }
  0x92   :  { %p11616_p4 = scmp.ne.s32.totalorder %s12137_s20, %s11615_s22  ;;  %p11619_p5 = scmp.lt.u32.totalorder %s11615_s22, %s12137_s20 }
  0x94   :  { %p11621_p6 = pnand %p11619_p5, %p11616_p4 }
  0x96   :  { %11624 = shalt.err (!%p11621_p6)
}
  0x97   :  { %s11625_s26 = scalar_lea.vmem %s225_s14, 1024  ;;  %p11630_p8 = scmp.lt.s32.totalorder %s225_s14, %s225_s14 }
  0x98   :  { %p11626_p7 = scmp.ne.s32.totalorder %s225_s14, %s11625_s26  ;;  %p11631_p9 = scmp.lt.s32.totalorder %s11625_s26, %s11625_s26 }
  0x9a   :  { %p11632_p10 = por %p11631_p9, %p11630_p8 }
  0x9c   :  { %p11633_p11 = pnand %p11632_p10, %p11626_p7 }
  0x9e   :  { %11636 = shalt.err (!%p11633_p11)
}
  0x9f   :  { %230 = dma.hbm_to_vmem [thread:$0]  %s12137_s20, 1024, %s225_s14, [#allocation19], %s12013_s18, %s12013_s18, %s12014_s24  }
  0xa0   :  { %s12015_s12 = smov [#allocation21]   ;;  %s12016_s28 = smov [#allocation24]  }
  0xa1   :  { %s252_s1 = sshll.u32 %s12015_s12, 4  ;;  %s278_s2 = sshll.u32 %s12016_s28, 4  ;;  %s253_s1 = int_to_ptr.vmem [resolvable:$true] %s252_s1  ;;  %s279_s2 = int_to_ptr.vmem [resolvable:$true] %s278_s2 }
  0xa2   :  { %s11637_s10 = scalar_lea.hbm %s12157_s29, 6144 }
  0xa3   :  { %p11638_p12 = scmp.ne.s32.totalorder %s12157_s29, %s11637_s10  ;;  %p11641_p13 = scmp.lt.u32.totalorder %s11637_s10, %s12157_s29 }
  0xa5   :  { %p11643_p0 = pnand %p11641_p13, %p11638_p12 }
  0xa7   :  { %11646 = shalt.err (!%p11643_p0)
}
  0xa8   :  { %s11647_s0 = scalar_lea.vmem %s253_s1, 6144  ;;  %p11652_p2 = scmp.lt.s32.totalorder %s253_s1, %s253_s1 }
  0xa9   :  { %p11648_p1 = scmp.ne.s32.totalorder %s253_s1, %s11647_s0  ;;  %p11653_p3 = scmp.lt.s32.totalorder %s11647_s0, %s11647_s0 }
  0xab   :  { %p11654_p4 = por %p11653_p3, %p11652_p2 }
  0xad   :  { %p11655_p5 = pnand %p11654_p4, %p11648_p1 }
  0xaf   :  { %11658 = shalt.err (!%p11655_p5)
}
  0xb0   :  { %s12017_s11 = smov 192   ;;  %s12018_s20 = smov 12  }
  0xb1   :  { %258 = dma.hbm_to_vmem [thread:$0]  %s12157_s29, 6144, %s253_s1, [#allocation22], %s12017_s11, %s12017_s11, %s12018_s20  }
  0xb2   :  { %s11659_s14 = scalar_lea.hbm %s12172_s6, 32 }
  0xb3   :  { %p11660_p6 = scmp.ne.s32.totalorder %s12172_s6, %s11659_s14  ;;  %p11663_p7 = scmp.lt.u32.totalorder %s11659_s14, %s12172_s6 }
  0xb5   :  { %p11665_p8 = pnand %p11663_p7, %p11660_p6 }
  0xb7   :  { %11668 = shalt.err (!%p11665_p8)
}
  0xb8   :  { %s11669_s15 = scalar_lea.vmem %s279_s2, 32  ;;  %p11674_p10 = scmp.lt.s32.totalorder %s279_s2, %s279_s2 }
  0xb9   :  { %p11670_p9 = scmp.ne.s32.totalorder %s279_s2, %s11669_s15  ;;  %p11675_p11 = scmp.lt.s32.totalorder %s11669_s15, %s11669_s15 }
  0xbb   :  { %p11676_p12 = por %p11675_p11, %p11674_p10 }
  0xbd   :  { %p11677_p13 = pnand %p11676_p12, %p11670_p9 }
  0xbf   :  { %11680 = shalt.err (!%p11677_p13)
}
  0xc0   :  { %284 = dma.hbm_to_vmem [thread:$0]  %s12172_s6, 32, %s279_s2, [#allocation25], %s12009_s7, %s12009_s7, %s12010_s8  }
  0xc1   :  { %s12019_s29 = smov [#allocation27]   ;;  %s12020_s22 = smov [#allocation3]  }
  0xc2   :  { %s302_s16 = sshll.u32 %s12019_s29, 4  ;;  %s100_s26 = sshll.u32 %s12020_s22, 4  ;;  %s303_s16 = int_to_ptr.vmem [resolvable:$true] %s302_s16  ;;  %s101_s26 = int_to_ptr.vmem [resolvable:$true] %s100_s26 }
  0xc3   :  { %s11681_s12 = scalar_lea.hbm %s12182_s13, 32 }
  0xc4   :  { %p11682_p0 = scmp.ne.s32.totalorder %s12182_s13, %s11681_s12  ;;  %p11685_p1 = scmp.lt.u32.totalorder %s11681_s12, %s12182_s13 }
  0xc6   :  { %p11687_p2 = pnand %p11685_p1, %p11682_p0 }
  0xc8   :  { %11690 = shalt.err (!%p11687_p2)
}
  0xc9   :  { %s11691_s1 = scalar_lea.vmem %s303_s16, 32  ;;  %p11696_p4 = scmp.lt.s32.totalorder %s303_s16, %s303_s16 }
  0xca   :  { %p11692_p3 = scmp.ne.s32.totalorder %s303_s16, %s11691_s1  ;;  %p11697_p5 = scmp.lt.s32.totalorder %s11691_s1, %s11691_s1 }
  0xcc   :  { %p11698_p6 = por %p11697_p5, %p11696_p4 }
  0xce   :  { %p11699_p7 = pnand %p11698_p6, %p11692_p3 }
  0xd0   :  { %11702 = shalt.err (!%p11699_p7)
}
  0xd1   :  { %308 = dma.hbm_to_vmem [thread:$0]  %s12182_s13, 32, %s303_s16, [#allocation28], %s12009_s7, %s12009_s7, %s12010_s8  }
  0xd2   :  { %s11703_s6 = scalar_lea.hbm %s12047_s9, 6144 }
  0xd3   :  { %p11704_p8 = scmp.ne.s32.totalorder %s12047_s9, %s11703_s6  ;;  %p11707_p9 = scmp.lt.u32.totalorder %s11703_s6, %s12047_s9 }
  0xd5   :  { %p11709_p10 = pnand %p11707_p9, %p11704_p8 }
  0xd7   :  { %11712 = shalt.err (!%p11709_p10)
}
  0xd8   :  { %s11713_s28 = scalar_lea.vmem %s101_s26, 6144  ;;  %p11718_p12 = scmp.lt.s32.totalorder %s101_s26, %s101_s26 }
  0xd9   :  { %p11714_p11 = scmp.ne.s32.totalorder %s101_s26, %s11713_s28  ;;  %p11719_p13 = scmp.lt.s32.totalorder %s11713_s28, %s11713_s28 }
  0xdb   :  { %p11720_p0 = por %p11719_p13, %p11718_p12 }
  0xdd   :  { %p11721_p1 = pnand %p11720_p0, %p11714_p11 }
  0xdf   :  { %11724 = shalt.err (!%p11721_p1)
}
  0xe0   :  { %106 = dma.hbm_to_vmem [thread:$0]  %s12047_s9, 6144, %s101_s26, [#allocation4], %s12013_s18, %s12013_s18, %s12014_s24  }
  0xe1   :  { %s12021_s13 = smov [#allocation8]   ;;  %s12022_s10 = smov [#allocation11]  }
  0xe2   :  { %s130_s2 = sshll.u32 %s12021_s13, 4  ;;  %s156_s0 = sshll.u32 %s12022_s10, 4  ;;  %s131_s2 = int_to_ptr.vmem [resolvable:$true] %s130_s2  ;;  %s157_s0 = int_to_ptr.vmem [resolvable:$true] %s156_s0 }
  0xe3   :  { %s11725_s14 = scalar_lea.hbm %s12077_s3, 6144 }
  0xe4   :  { %p11726_p2 = scmp.ne.s32.totalorder %s12077_s3, %s11725_s14  ;;  %p11729_p3 = scmp.lt.u32.totalorder %s11725_s14, %s12077_s3 }
  0xe6   :  { %p11731_p4 = pnand %p11729_p3, %p11726_p2 }
  0xe8   :  { %11734 = shalt.err (!%p11731_p4)
}
  0xe9   :  { %s11735_s15 = scalar_lea.vmem %s131_s2, 6144  ;;  %p11740_p6 = scmp.lt.s32.totalorder %s131_s2, %s131_s2 }
  0xea   :  { %p11736_p5 = scmp.ne.s32.totalorder %s131_s2, %s11735_s15  ;;  %p11741_p7 = scmp.lt.s32.totalorder %s11735_s15, %s11735_s15 }
  0xec   :  { %p11742_p8 = por %p11741_p7, %p11740_p6 }
  0xee   :  { %p11743_p9 = pnand %p11742_p8, %p11736_p5 }
  0xf0   :  { %11746 = shalt.err (!%p11743_p9)
}
  0xf1   :  { %136 = dma.hbm_to_vmem [thread:$0]  %s12077_s3, 6144, %s131_s2, [#allocation7], %s12017_s11, %s12017_s11, %s12018_s20  }
  0xf2   :  { %s11747_s9 = scalar_lea.hbm %s12092_s19, 32 }
  0xf3   :  { %p11748_p10 = scmp.ne.s32.totalorder %s12092_s19, %s11747_s9  ;;  %p11751_p11 = scmp.lt.u32.totalorder %s11747_s9, %s12092_s19 }
  0xf5   :  { %p11753_p12 = pnand %p11751_p11, %p11748_p10 }
  0xf7   :  { %11756 = shalt.err (!%p11753_p12)
}
  0xf8   :  { %s11757_s29 = scalar_lea.vmem %s157_s0, 32  ;;  %p11762_p0 = scmp.lt.s32.totalorder %s157_s0, %s157_s0 }
  0xf9   :  { %p11758_p13 = scmp.ne.s32.totalorder %s157_s0, %s11757_s29  ;;  %p11763_p1 = scmp.lt.s32.totalorder %s11757_s29, %s11757_s29 }
  0xfb   :  { %p11764_p2 = por %p11763_p1, %p11762_p0 }
  0xfd   :  { %p11765_p3 = pnand %p11764_p2, %p11758_p13 }
  0xff   :  { %11768 = shalt.err (!%p11765_p3)
}
 0x100   :  { %162 = dma.hbm_to_vmem [thread:$0]  %s12092_s19, 32, %s157_s0, [#allocation10], %s12009_s7, %s12009_s7, %s12010_s8  }
 0x101   :  { %s12023_s3 = smov [#allocation14]   ;;  %s12024_s20 = smov [#allocation17]  }
 0x102   :  { %s180_s11 = sshll.u32 %s12023_s3, 4  ;;  %s208_s16 = sshll.u32 %s12024_s20, 4  ;;  %s181_s11 = int_to_ptr.vmem [resolvable:$true] %s180_s11  ;;  %s209_s16 = int_to_ptr.vmem [resolvable:$true] %s208_s16 }
 0x103   :  { %s11769_s22 = scalar_lea.hbm %s12102_s30, 32 }
 0x104   :  { %p11770_p4 = scmp.ne.s32.totalorder %s12102_s30, %s11769_s22  ;;  %p11773_p5 = scmp.lt.u32.totalorder %s11769_s22, %s12102_s30 }
 0x106   :  { %p11775_p6 = pnand %p11773_p5, %p11770_p4 }
 0x108   :  { %11778 = shalt.err (!%p11775_p6)
}
 0x109   :  { %s11779_s26 = scalar_lea.vmem %s181_s11, 32  ;;  %p11784_p8 = scmp.lt.s32.totalorder %s181_s11, %s181_s11 }
 0x10a   :  { %p11780_p7 = scmp.ne.s32.totalorder %s181_s11, %s11779_s26  ;;  %p11785_p9 = scmp.lt.s32.totalorder %s11779_s26, %s11779_s26 }
 0x10c   :  { %p11786_p10 = por %p11785_p9, %p11784_p8 }
 0x10e   :  { %p11787_p11 = pnand %p11786_p10, %p11780_p7 }
 0x110   :  { %11790 = shalt.err (!%p11787_p11)
}
 0x111   :  { %186 = dma.hbm_to_vmem [thread:$0]  %s12102_s30, 32, %s181_s11, [#allocation13], %s12009_s7, %s12009_s7, %s12010_s8  }
 0x112   :  { %s11791_s19 = scalar_lea.hbm %s12122_s27, 32 }
 0x113   :  { %p11792_p12 = scmp.ne.s32.totalorder %s12122_s27, %s11791_s19  ;;  %p11795_p13 = scmp.lt.u32.totalorder %s11791_s19, %s12122_s27 }
 0x115   :  { %p11797_p0 = pnand %p11795_p13, %p11792_p12 }
 0x117   :  { %11800 = shalt.err (!%p11797_p0)
}
 0x118   :  { %s11801_s12 = scalar_lea.vmem %s209_s16, 32  ;;  %p11806_p2 = scmp.lt.s32.totalorder %s209_s16, %s209_s16 }
 0x119   :  { %p11802_p1 = scmp.ne.s32.totalorder %s209_s16, %s11801_s12  ;;  %p11807_p3 = scmp.lt.s32.totalorder %s11801_s12, %s11801_s12 }
 0x11b   :  { %p11808_p4 = por %p11807_p3, %p11806_p2 }
 0x11d   :  { %p11809_p5 = pnand %p11808_p4, %p11802_p1 }
 0x11f   :  { %11812 = shalt.err (!%p11809_p5)
}
 0x120   :  { %214 = dma.hbm_to_vmem [thread:$0]  %s12122_s27, 32, %s209_s16, [#allocation16], %s12009_s7, %s12009_s7, %s12010_s8  }
 0x121   :  { %s12025_s30 = smov [#allocation20]   ;;  %s12026_s6 = smov [#allocation23]  }
 0x122   :  { %s238_s1 = sshll.u32 %s12025_s30, 4  ;;  %s264_s28 = sshll.u32 %s12026_s6, 4  ;;  %s239_s1 = int_to_ptr.vmem [resolvable:$true] %s238_s1  ;;  %s265_s28 = int_to_ptr.vmem [resolvable:$true] %s264_s28 }
 0x123   :  { %s11813_s13 = scalar_lea.hbm %s12147_s4, 32 }
 0x124   :  { %p11814_p6 = scmp.ne.s32.totalorder %s12147_s4, %s11813_s13  ;;  %p11817_p7 = scmp.lt.u32.totalorder %s11813_s13, %s12147_s4 }
 0x126   :  { %p11819_p8 = pnand %p11817_p7, %p11814_p6 }
 0x128   :  { %11822 = shalt.err (!%p11819_p8)
}
 0x129   :  { %s11823_s2 = scalar_lea.vmem %s239_s1, 32  ;;  %p11828_p10 = scmp.lt.s32.totalorder %s239_s1, %s239_s1 }
 0x12a   :  { %p11824_p9 = scmp.ne.s32.totalorder %s239_s1, %s11823_s2  ;;  %p11829_p11 = scmp.lt.s32.totalorder %s11823_s2, %s11823_s2 }
 0x12c   :  { %p11830_p12 = por %p11829_p11, %p11828_p10 }
 0x12e   :  { %p11831_p13 = pnand %p11830_p12, %p11824_p9 }
 0x130   :  { %11834 = shalt.err (!%p11831_p13)
}
 0x131   :  { %s13674_s27 = sld [smem:[#allocation56_spill]] }
 0x132   :  { %244 = dma.hbm_to_vmem [thread:$0]  %s12147_s4, 32, %s239_s1, [#allocation19], %s12009_s7, %s12009_s7, %s12010_s8  }
 0x137   :  { %s11835_s10 = scalar_lea.hbm %s13674_s27, 96 }
 0x138   :  { %p11836_p0 = scmp.ne.s32.totalorder %s13674_s27, %s11835_s10  ;;  %p11839_p1 = scmp.lt.u32.totalorder %s11835_s10, %s13674_s27 }
 0x13a   :  { %p11841_p2 = pnand %p11839_p1, %p11836_p0 }
 0x13c   :  { %11844 = shalt.err (!%p11841_p2)
}
 0x13d   :  { %s11845_s0 = scalar_lea.vmem %s265_s28, 96  ;;  %p11850_p4 = scmp.lt.s32.totalorder %s265_s28, %s265_s28 }
 0x13e   :  { %p11846_p3 = scmp.ne.s32.totalorder %s265_s28, %s11845_s0  ;;  %p11851_p5 = scmp.lt.s32.totalorder %s11845_s0, %s11845_s0 }
 0x140   :  { %p11852_p6 = por %p11851_p5, %p11850_p4 }
 0x142   :  { %p11853_p7 = pnand %p11852_p6, %p11846_p3 }
 0x144   :  { %11856 = shalt.err (!%p11853_p7)
}
 0x145   :  { %s13675_s14 = sld [smem:[#allocation58_spill]]  ;;  %s12027_s4 = smov [#allocation26]  }
 0x146   :  { %270 = dma.hbm_to_vmem [thread:$0]  %s13674_s27, 96, %s265_s28, [#allocation22], %s12006_s23, %s12006_s23, %s12007_s21  }
 0x147   :  { %s290_s15 = sshll.u32 %s12027_s4, 4  ;;  %s12028_s9 = smov [#allocation29]   ;;  %s291_s15 = int_to_ptr.vmem [resolvable:$true] %s290_s15 }
 0x148   :  { %s320_s29 = sshll.u32 %s12028_s9, 4  ;;  %s321_s29 = int_to_ptr.vmem [resolvable:$true] %s320_s29 }
 0x14b   :  { %s11857_s3 = scalar_lea.hbm %s13675_s14, 32 }
 0x14c   :  { %p11858_p8 = scmp.ne.s32.totalorder %s13675_s14, %s11857_s3  ;;  %p11861_p9 = scmp.lt.u32.totalorder %s11857_s3, %s13675_s14 }
 0x14e   :  { %p11863_p10 = pnand %p11861_p9, %p11858_p8 }
 0x150   :  { %11866 = shalt.err (!%p11863_p10)
}
 0x151   :  { %s11867_s11 = scalar_lea.vmem %s291_s15, 32  ;;  %p11872_p12 = scmp.lt.s32.totalorder %s291_s15, %s291_s15 }
 0x152   :  { %p11868_p11 = scmp.ne.s32.totalorder %s291_s15, %s11867_s11  ;;  %p11873_p13 = scmp.lt.s32.totalorder %s11867_s11, %s11867_s11 }
 0x154   :  { %p11874_p0 = por %p11873_p13, %p11872_p12 }
 0x156   :  { %p11875_p1 = pnand %p11874_p0, %p11868_p11 }
 0x158   :  { %11878 = shalt.err (!%p11875_p1)
}
 0x159   :  { %s13676_s23 = sld [smem:[#allocation62_spill]] }
 0x15a   :  { %296 = dma.hbm_to_vmem [thread:$0]  %s13675_s14, 32, %s291_s15, [#allocation25], %s12009_s7, %s12009_s7, %s12010_s8  }
 0x15f   :  { %s11879_s21 = scalar_lea.hbm %s13676_s23, 32 }
 0x160   :  { %p11880_p2 = scmp.ne.s32.totalorder %s13676_s23, %s11879_s21  ;;  %p11883_p3 = scmp.lt.u32.totalorder %s11879_s21, %s13676_s23 }
 0x162   :  { %p11885_p4 = pnand %p11883_p3, %p11880_p2 }
 0x164   :  { %11888 = shalt.err (!%p11885_p4)
}
 0x165   :  { %s11889_s20 = scalar_lea.vmem %s321_s29, 32  ;;  %p11894_p6 = scmp.lt.s32.totalorder %s321_s29, %s321_s29 }
 0x166   :  { %p11890_p5 = scmp.ne.s32.totalorder %s321_s29, %s11889_s20  ;;  %p11895_p7 = scmp.lt.s32.totalorder %s11889_s20, %s11889_s20 }
 0x168   :  { %p11896_p8 = por %p11895_p7, %p11894_p6 }
 0x16a   :  { %p11897_p9 = pnand %p11896_p8, %p11890_p5 }
 0x16c   :  { %11900 = shalt.err (!%p11897_p9)
}
 0x16d   :  { %326 = dma.hbm_to_vmem [thread:$0]  %s13676_s23, 32, %s321_s29, [#allocation28], %s12009_s7, %s12009_s7, %s12010_s8  }
 0x16e   :  { %s12029_s16 = smov [#allocation30]   ;;  %s11901_s26 = scalar_lea.hbm %s12217_s17, 1024 }
 0x16f   :  { %s336_s22 = sshll.u32 %s12029_s16, 4  ;;  %p11902_p10 = scmp.ne.s32.totalorder %s12217_s17, %s11901_s26  ;;  %s337_s22 = int_to_ptr.vmem [resolvable:$true] %s336_s22 }
 0x170   :  { %p11905_p11 = scmp.lt.u32.totalorder %s11901_s26, %s12217_s17 }
 0x172   :  { %p11907_p12 = pnand %p11905_p11, %p11902_p10 }
 0x174   :  { %11910 = shalt.err (!%p11907_p12)
}
 0x175   :  { %s11911_s19 = scalar_lea.vmem %s337_s22, 1024  ;;  %p11916_p0 = scmp.lt.s32.totalorder %s337_s22, %s337_s22 }
 0x176   :  { %p11912_p13 = scmp.ne.s32.totalorder %s337_s22, %s11911_s19  ;;  %p11917_p1 = scmp.lt.s32.totalorder %s11911_s19, %s11911_s19 }
 0x178   :  { %p11918_p2 = por %p11917_p1, %p11916_p0 }
 0x17a   :  { %p11919_p3 = pnand %p11918_p2, %p11912_p13 }
 0x17c   :  { %11922 = shalt.err (!%p11919_p3)
}
 0x17d   :  { %342 = dma.hbm_to_vmem [thread:$0]  %s12217_s17, 1024, %s337_s22, [#allocation31], %s12013_s18, %s12013_s18, %s12014_s24  }
 0x17e   :  { %11945 = dma.done.wait [#allocation4], 6144  }
 0x17f   :  { %11946 = vsyncadd [#allocation4], 4294961152 }
 0x180   :  { %11947 = dma.done.wait [#allocation7], 6160  }
 0x181   :  { %11948 = vsyncadd [#allocation7], 4294961136 }
 0x182   :  { %11949 = dma.done.wait [#allocation10], 128  }
 0x183   :  { %11950 = vsyncadd [#allocation10], 4294967168 }
 0x184   :  { %11951 = dma.done.wait [#allocation13], 64  }
 0x185   :  { %11952 = vsyncadd [#allocation13], 4294967232 }
 0x186   :  { %11953 = dma.done.wait [#allocation16], 160  }
 0x187   :  { %11954 = vsyncadd [#allocation16], 4294967136 }
 0x188   :  { %11955 = dma.done.wait [#allocation19], 1056  }
 0x189   :  { %11956 = vsyncadd [#allocation19], 4294966240 }
 0x18a   :  { %11957 = dma.done.wait [#allocation22], 6240  }
 0x18b   :  { %11958 = vsyncadd [#allocation22], 4294961056 }
 0x18c   :  { %11959 = dma.done.wait [#allocation25], 64  }
 0x18d   :  { %11960 = vsyncadd [#allocation25], 4294967232 }
 0x18e   :  { %11961 = dma.done.wait [#allocation28], 64  }
 0x18f   :  { %11962 = vsyncadd [#allocation28], 4294967232 }
 0x190   :  { %11963 = dma.done.wait [#allocation31], 1024  }
 0x191   :  { %11964 = vsyncadd [#allocation31], 4294966272  ;;  %v10684_v1 = vld [vmem:[#allocation3 + $0x40] sm:$0xff]   ;;  %v10688_v5 = vld [vmem:[#allocation3 + $0x48] sm:$0xff]   ;;  %s13677_s17 = sld [smem:[#allocation44_spill]]  ;;  %s13678_s7 = sld [smem:[#allocation45_spill]] }
 0x192   :  { %v10685_v2 = vld [vmem:[#allocation3 + $0xc0] sm:$0xff]   ;;  %9707 = vmatprep.subr.bf16.mxu0 %v10684_v1  ;;  %v10689_v6 = vld [vmem:[#allocation3 + $0xc8] sm:$0xff]   ;;  %v10692_v9 = vld [vmem:[#allocation3 + $0x50] sm:$0xff]   ;;  %s13679_s8 = sld [smem:[#allocation46_spill]]  ;;  %vm12032_vm0 = vmmov 0   ;;  %s13680_s24 = sld [smem:[#allocation47_spill]] }
 0x193   :  { %v10686_v3 = vld [vmem:[#allocation3] sm:$0xff]   ;;  %9729 = vmatprep.subr.bf16.mxu1 %v10685_v2  ;;  %v10690_v7 = vld [vmem:[#allocation3 + $0x8] sm:$0xff]   ;;  %v10693_v10 = vld [vmem:[#allocation3 + $0xd0] sm:$0xff]   ;;  %s13681_s12 = sld [smem:[#allocation48_spill]]  ;;  %vm1294_vm1 = vcmask 523264   ;;  %vm1423_vm2 = vcmask 1043456  }
 0x194   :  { %v10687_v4 = vld [vmem:[#allocation3 + $0x80] sm:$0xff]   ;;  %9708 = vmatpush3.bf16.msra.mxu0 %v10686_v3  ;;  %v10691_v8 = vld [vmem:[#allocation3 + $0x88] sm:$0xff]   ;;  %v10694_v11 = vld [vmem:[#allocation3 + $0x10] sm:$0xff]   ;;  %vm1393_vm4 = vcmask 64512   ;;  %s13682_s30 = sld [smem:[#allocation49_spill]]  ;;  %s13683_s1 = sld [smem:[#allocation50_spill]] }
 0x195   :  { %9730 = vmatpush3.bf16.msra.mxu1 %v10687_v4  ;;  %9709 = vmatprep.subr.bf16.mxu0 %v10688_v5  ;;  %v10695_v12 = vld [vmem:[#allocation3 + $0x90] sm:$0xff]   ;;  %v10696_v13 = vld [vmem:[#allocation3 + $0x58] sm:$0xff]   ;;  %v10700_v17 = vld [vmem:[#allocation3 + $0x60] sm:$0xff]   ;;  %s13684_s6 = sld [smem:[#allocation51_spill]]  ;;  %s13685_s28 = sld [smem:[#allocation54_spill]]  ;;  %vm4336_vm5 = vcmask 1041409  }
 0x196   :  { %9731 = vmatprep.subr.bf16.mxu1 %v10689_v6  ;;  %v10697_v14 = vld [vmem:[#allocation3 + $0xd8] sm:$0xff]   ;;  %v10701_v18 = vld [vmem:[#allocation3 + $0xe0] sm:$0xff]   ;;  %v10704_v21 = vld [vmem:[#allocation3 + $0x68] sm:$0xff]   ;;  %s13686_s13 = sld [smem:[#allocation55_spill]]  ;;  %vm4339_vm6 = vcmask 1041408   ;;  %s13689_s2 = sld [smem:[#allocation52_spill]] }
 0x197   :  { %v10698_v15 = vld [vmem:[#allocation3 + $0x18] sm:$0xff]   ;;  %v10702_v19 = vld [vmem:[#allocation3 + $0x20] sm:$0xff]   ;;  %v10705_v22 = vld [vmem:[#allocation3 + $0xe8] sm:$0xff]   ;;  %s13690_s27 = sld [smem:[#allocation53_spill]]  ;;  %s13691_s10 = sld [smem:[#allocation57_spill]]  ;;  %vm8659_vm8 = vcmask 1042434  }
 0x198   :  { %9710 = vmatpush3.bf16.msra.mxu0 %v10690_v7  ;;  %v10699_v16 = vld [vmem:[#allocation3 + $0x98] sm:$0xff]   ;;  %v10703_v20 = vld [vmem:[#allocation3 + $0xa0] sm:$0xff]   ;;  %v10706_v23 = vld [vmem:[#allocation3 + $0x28] sm:$0xff]   ;;  %s13692_s0 = sld [smem:[#allocation59_spill]]  ;;  %s13693_s14 = sld [smem:[#allocation61_spill]]  ;;  %vm8758_vm9 = vcmask 1042432  }
 0x199   :  { %9732 = vmatpush3.bf16.msra.mxu1 %v10691_v8  ;;  %9711 = vmatprep.subr.bf16.mxu0 %v10692_v9  ;;  %v10707_v24 = vld [vmem:[#allocation3 + $0xa8] sm:$0xff]   ;;  %v10708_v25 = vld [vmem:[#allocation3 + $0x70] sm:$0xff]   ;;  %v10712_v29 = vld [vmem:[#allocation3 + $0x78] sm:$0xff]   ;;  %s13694_s4 = sld [smem:[#allocation60_spill]]  ;;  %vm8845_vm10 = vcmask 17408  }
 0x19a   :  { %9733 = vmatprep.subr.bf16.mxu1 %v10693_v10  ;;  %v10709_v26 = vld [vmem:[#allocation3 + $0xf0] sm:$0xff]   ;;  %v10713_v30 = vld [vmem:[#allocation3 + $0xf8] sm:$0xff]   ;;  %v401_v33 = vld [vmem:[%s13677_s17 + $0x8] sm:$0xff] }
 0x19b   :  { %v10710_v27 = vld [vmem:[#allocation3 + $0x30] sm:$0xff]   ;;  %v10714_v31 = vld [vmem:[#allocation3 + $0x38] sm:$0xff]   ;;  %v409_v37 = vld [vmem:[%s13677_s17 + $0x48] sm:$0xff] }
 0x19c   :  { %9712 = vmatpush3.bf16.msra.mxu0 %v10694_v11  ;;  %v10711_v28 = vld [vmem:[#allocation3 + $0xb0] sm:$0xff]   ;;  %v10715_v32 = vld [vmem:[#allocation3 + $0xb8] sm:$0xff]   ;;  %v10716_v45 = vld [vmem:[#allocation3 + $0x140] sm:$0xff]  }
 0x19d   :  { %9734 = vmatpush3.bf16.msra.mxu1 %v10695_v12  ;;  %9713 = vmatprep.subr.bf16.mxu0 %v10696_v13  ;;  %v407_v34 = vld [vmem:[%s13677_s17 + $0x38] sm:$0xff]  ;;  %v400_v38 = vld [vmem:[%s13677_s17] sm:$0xff]  ;;  %v406_v39 = vld [vmem:[%s13677_s17 + $0x30] sm:$0xff] }
 0x19e   :  { %9735 = vmatprep.subr.bf16.mxu1 %v10697_v14  ;;  %v403_v35 = vld [vmem:[%s13677_s17 + $0x18] sm:$0xff]  ;;  %v413_v36 = vpack.c.bf16 %v407_v34, %v401_v33  ;;  %v412_v41 = vpack.c.bf16 %v406_v39, %v400_v38  ;;  %v402_v42 = vld [vmem:[%s13677_s17 + $0x10] sm:$0xff]  ;;  %v408_v43 = vld [vmem:[%s13677_s17 + $0x40] sm:$0xff] }
 0x19f   :  { %v415_v40 = vpack.c.bf16 %v409_v37, %v403_v35  ;;  %v414_v44 = vpack.c.bf16 %v408_v43, %v402_v42  ;;  %v10717_v46 = vld [vmem:[#allocation3 + $0x100] sm:$0xff]   ;;  %v10718_v47 = vld [vmem:[#allocation3 + $0x148] sm:$0xff]   ;;  %v10720_v49 = vld [vmem:[#allocation3 + $0x150] sm:$0xff]  }
 0x1a0   :  { %9714 = vmatpush3.bf16.msra.mxu0 %v10698_v15  ;;  %834 = vmatprep.mubr.bf16.mxu0 %v413_v36  ;;  %v10719_v48 = vld [vmem:[#allocation3 + $0x108] sm:$0xff]   ;;  %v10721_v50 = vld [vmem:[#allocation3 + $0x110] sm:$0xff]   ;;  %v10722_v51 = vld [vmem:[#allocation3 + $0x158] sm:$0xff]  }
 0x1a1   :  { %9736 = vmatpush3.bf16.msra.mxu1 %v10699_v16  ;;  %9715 = vmatprep.subr.bf16.mxu0 %v10700_v17  ;;  %v10723_v52 = vld [vmem:[#allocation3 + $0x118] sm:$0xff]   ;;  %v10724_v53 = vld [vmem:[#allocation3 + $0x160] sm:$0xff]   ;;  %v10726_v56 = vld [vmem:[#allocation3 + $0x168] sm:$0xff]  }
 0x1a2   :  { %9737 = vmatprep.subr.bf16.mxu1 %v10701_v18  ;;  %875 = vmatprep.mubr.bf16.mxu1 %v415_v40  ;;  %v10725_v54 = vld [vmem:[#allocation3 + $0x120] sm:$0xff]   ;;  %v411_v57 = vld [vmem:[%s13677_s17 + $0x58] sm:$0xff]  ;;  %v10727_v58 = vld [vmem:[#allocation3 + $0x128] sm:$0xff]  }
 0x1a3   :  { %v405_v55 = vld [vmem:[%s13677_s17 + $0x28] sm:$0xff]  ;;  %v10728_v60 = vld [vmem:[#allocation3 + $0x170] sm:$0xff]   ;;  %v10730_v62 = vld [vmem:[#allocation3 + $0x178] sm:$0xff]  }
 0x1a4   :  { %9716 = vmatpush3.bf16.msra.mxu0 %v10702_v19  ;;  %v417_v59 = vpack.c.bf16 %v411_v57, %v405_v55  ;;  %v10729_v61 = vld [vmem:[#allocation3 + $0x130] sm:$0xff]   ;;  %v10731_v63 = vld [vmem:[#allocation3 + $0x138] sm:$0xff]  }
 0x1a5   :  { %9738 = vmatpush3.bf16.msra.mxu1 %v10703_v20  ;;  %9717 = vmatprep.subr.bf16.mxu0 %v10704_v21  ;;  %v404_v0 = vld [vmem:[%s13677_s17 + $0x20] sm:$0xff]  ;;  %v410_v1 = vld [vmem:[%s13677_s17 + $0x50] sm:$0xff] }
 0x1a6   :  { %9739 = vmatprep.subr.bf16.mxu1 %v10705_v22  ;;  %v416_v2 = vpack.c.bf16 %v410_v1, %v404_v0  ;;  %v925_v22 = vld [vmem:[%s13678_s7] sm:$0xff]  ;;  %v10735_v55 = vld [vmem:[#allocation8 + $0x8] ss:$12 sps:$4 sm:$0xff]  }
 0x1a7   :  { %v8956_v43 = vld [vmem:[%s13679_s8] ss:$0 sm:$0xff]  ;;  %v10736_v57 = vld [vmem:[#allocation8 + $0x18] ss:$12 sps:$4 sm:$0xff]  }
 0x1a8   :  { %9718 = vmatpush3.bf16.msra.mxu0 %v10706_v23 }
 0x1a9   :  { %9740 = vmatpush3.bf16.msra.mxu1 %v10707_v24  ;;  %9719 = vmatprep.subr.bf16.mxu0 %v10708_v25 }
 0x1aa   :  { %9741 = vmatprep.subr.bf16.mxu1 %v10709_v26 }
 0x1ac   :  { %9720 = vmatpush3.bf16.msra.mxu0 %v10710_v27 }
 0x1ad   :  { %9742 = vmatpush3.bf16.msra.mxu1 %v10711_v28  ;;  %9721 = vmatprep.subr.bf16.mxu0 %v10712_v29 }
 0x1ae   :  { %9743 = vmatprep.subr.bf16.mxu1 %v10713_v30 }
 0x1b0   :  { %9722 = vmatpush3.bf16.msra.mxu0 %v10714_v31 }
 0x1b1   :  { %9744 = vmatpush3.bf16.msra.mxu1 %v10715_v32  ;;  %9751 = vmatprep.subr.bf16.mxu0 %v10716_v45  ;;  %v8957_v45 = vld [vmem:[#allocation6] ss:$0 sm:$0xff] }
 0x1b3   :  { %835 = vmatmul.mubr.bf16.vlgmr.msra.gmra.mrb[0].mxu0 %v412_v41 }
 0x1b4   :  { %876 = vmatmul.mubr.bf16.vlgmr.msra.gmra.mrb[0].mxu1 %v414_v44  ;;  %9752 = vmatpush3.bf16.msra.mxu0 %v10717_v46 }
 0x1b5   :  { %9753 = vmatprep.subr.bf16.mxu0 %v10718_v47  ;;  %916 = vmatprep.mubr.bf16.mxu0 %v417_v59 }
 0x1b8   :  { %9754 = vmatpush3.bf16.msra.mxu0 %v10719_v48 }
 0x1b9   :  { %9755 = vmatprep.subr.bf16.mxu0 %v10720_v49 }
 0x1bc   :  { %9756 = vmatpush3.bf16.msra.mxu0 %v10721_v50 }
 0x1bd   :  { %9757 = vmatprep.subr.bf16.mxu0 %v10722_v51 }
 0x1c0   :  { %9758 = vmatpush3.bf16.msra.mxu0 %v10723_v52  ;;  %v10732_v52 = vld [vmem:[#allocation8] ss:$12 sps:$4 sm:$0xff]  }
 0x1c1   :  { %9759 = vmatprep.subr.bf16.mxu0 %v10724_v53  ;;  %v10734_v53 = vld [vmem:[#allocation8 + $0x4] ss:$12 sps:$4 sm:$0xff]  }
 0x1c2   :  { %1190 = vmatprep.subr.bf16.mxu1 %v10734_v53 }
 0x1c3   :  { %1191 = vmatpush1.bf16.msra.mxu1 %v10732_v52 }
 0x1c4   :  { %9760 = vmatpush3.bf16.msra.mxu0 %v10725_v54  ;;  %v12030_v54 = vmov 0.0  }
 0x1c5   :  { %9761 = vmatprep.subr.bf16.mxu0 %v10726_v56  ;;  %v10738_v56 = vld [vmem:[#allocation8 + $0x1c] ss:$12 sps:$4 sm:$0xff]  }
 0x1c6   :  { %1192 = vmatprep.subr.bf16.mxu1 %v10738_v56 }
 0x1c7   :  { %1193 = vmatpush1.bf16.msra.mxu1 %v10736_v57 }
 0x1c8   :  { %9762 = vmatpush3.bf16.msra.mxu0 %v10727_v58 }
 0x1c9   :  { %9763 = vmatprep.subr.bf16.mxu0 %v10728_v60 }
 0x1cc   :  { %9764 = vmatpush3.bf16.msra.mxu0 %v10729_v61 }
 0x1cd   :  { %9765 = vmatprep.subr.bf16.mxu0 %v10730_v62 }
 0x1d0   :  { %9766 = vmatpush3.bf16.msra.mxu0 %v10731_v63 }
 0x1d1   :  { %10155 = vmatprep.subr.bf16.mxu0 %v12030_v54 }
 0x1d3   :  { %917 = vmatmul.mubr.bf16.vlgmr.msra.gmra.mrb[4].mxu0 %v416_v2  ;;  %v10739_v2 = vld [vmem:[#allocation8 + $0x20] ss:$12 sps:$4 sm:$0xff]  }
 0x1d4   :  { %10156 = vmatpush3.bf16.msra.mxu0 %v10735_v55  ;;  %10171 = vmatprep.mubr.msk.bf16.mxu0 %vm12032_vm0, %v12030_v54 }
 0x1d5   :  { %10157 = vmatprep.subr.bf16.mxu0 %v12030_v54 }
 0x1d8   :  { %10158 = vmatpush3.bf16.msra.mxu0 %v10739_v2 }
 0x1d9   :  { %10159 = vmatprep.subr.bf16.mxu0 %v12030_v54 }
 0x286   :  { %v9723_v3 = vpop.f32.mrb[0].mxu0 }
 0x287   :  { %v9745_v4 = vpop.f32.mrb[0].mxu1  ;;  %v9724_v5 = vpop.f32.mrb[1].mxu0 }
 0x288   :  { %v9725_v6 = vadd.f32 %v9724_v5, %v9723_v3  ;;  %v9746_v7 = vpop.f32.mrb[1].mxu1  ;;  %v9726_v8 = vpop.f32.mrb[2].mxu0  ;;  %v10742_v3 = vld [vmem:[#allocation8 + $0x34] ss:$12 sps:$4 sm:$0xff]   ;;  %v10743_v5 = vld [vmem:[#allocation8 + $0x38] ss:$12 sps:$4 sm:$0xff]  }
 0x289   :  { %v9747_v9 = vadd.f32 %v9746_v7, %v9745_v4  ;;  %v9748_v10 = vpop.f32.mrb[2].mxu1  ;;  %v9727_v11 = vpop.f32.mrb[3].mxu0  ;;  %v10740_v4 = vld [vmem:[#allocation8 + $0x30] ss:$12 sps:$4 sm:$0xff]   ;;  %1194 = vmatprep.subr.bf16.mxu1 %v10742_v3  ;;  %10160 = vmatpush3.bf16.msra.mxu0 %v10743_v5  ;;  %v10744_v7 = vld [vmem:[#allocation8 + $0x48] ss:$12 sps:$4 sm:$0xff]  }
 0x28a   :  { %v9728_v12 = vadd.f32 %v9727_v11, %v9726_v8  ;;  %v9749_v13 = vpop.f32.mrb[3].mxu1  ;;  %1195 = vmatpush1.bf16.msra.mxu1 %v10740_v4  ;;  %10161 = vmatprep.subr.bf16.mxu0 %v12030_v54  ;;  %v10747_v8 = vld [vmem:[#allocation8 + $0x50] ss:$12 sps:$4 sm:$0xff]   ;;  %v10751_v11 = vld [vmem:[#allocation8 + $0x68] ss:$12 sps:$4 sm:$0xff]  }
 0x28b   :  { %v878_v14 = vadd.f32 %v9747_v9, %v9725_v6  ;;  %v9750_v15 = vadd.f32 %v9749_v13, %v9748_v10  ;;  %v10746_v6 = vld [vmem:[#allocation8 + $0x4c] ss:$12 sps:$4 sm:$0xff]   ;;  %v10750_v10 = vld [vmem:[#allocation8 + $0x64] ss:$12 sps:$4 sm:$0xff]  }
 0x28c   :  { %1196 = vmatprep.subr.bf16.mxu1 %v10746_v6  ;;  %v10748_v9 = vld [vmem:[#allocation8 + $0x60] ss:$12 sps:$4 sm:$0xff]   ;;  %v10752_v13 = vld [vmem:[#allocation8 + $0x78] ss:$12 sps:$4 sm:$0xff]  }
 0x28d   :  { %v881_v16 = vadd.f32 %v9750_v15, %v9728_v12  ;;  %10162 = vmatpush3.bf16.msra.mxu0 %v10747_v8  ;;  %v10754_v12 = vld [vmem:[#allocation8 + $0x7c] ss:$12 sps:$4 sm:$0xff]   ;;  %v10758_v15 = vld [vmem:[#allocation8 + $0x94] ss:$12 sps:$4 sm:$0xff]  }
 0x28e   :  { %1197 = vmatpush1.bf16.msra.mxu1 %v10744_v7  ;;  %10163 = vmatprep.subr.bf16.mxu0 %v12030_v54 }
 0x28f   :  { %1198 = vmatprep.subr.bf16.mxu1 %v10750_v10 }
 0x291   :  { %10164 = vmatpush3.bf16.msra.mxu0 %v10751_v11 }
 0x292   :  { %1199 = vmatpush1.bf16.msra.mxu1 %v10748_v9  ;;  %10165 = vmatprep.subr.bf16.mxu0 %v12030_v54 }
 0x293   :  { %1200 = vmatprep.subr.bf16.mxu1 %v10754_v12 }
 0x296   :  { %1201 = vmatpush1.bf16.msra.mxu1 %v10752_v13 }
 0x297   :  { %1202 = vmatprep.subr.bf16.mxu1 %v10758_v15 }
 0x2a6   :  { %v9767_v17 = vpop.f32.mrb[4].mxu0 }
 0x2a7   :  { %v9768_v18 = vpop.f32.mrb[5].mxu0 }
 0x2a8   :  { %v9769_v19 = vadd.f32 %v9768_v18, %v9767_v17  ;;  %v9770_v20 = vpop.f32.mrb[6].mxu0  ;;  %v10756_v17 = vld [vmem:[#allocation8 + $0x90] ss:$12 sps:$4 sm:$0xff]   ;;  %v10759_v18 = vld [vmem:[#allocation8 + $0x98] ss:$12 sps:$4 sm:$0xff]  }
 0x2a9   :  { %v9771_v21 = vpop.f32.mrb[7].mxu0  ;;  %1203 = vmatpush1.bf16.msra.mxu1 %v10756_v17 }
 0x2aa   :  { %v919_v23 = vadd.f32 %v9769_v19, %v878_v14  ;;  %v9772_v24 = vadd.f32 %v9771_v21, %v9770_v20  ;;  %v10755_v14 = vld [vmem:[#allocation8 + $0x80] ss:$12 sps:$4 sm:$0xff]   ;;  %v10760_v20 = vld [vmem:[#allocation8 + $0xa8] ss:$12 sps:$4 sm:$0xff]   ;;  %v10763_v21 = vld [vmem:[#allocation8 + $0xb0] ss:$12 sps:$4 sm:$0xff]  }
 0x2ab   :  { %10166 = vmatpush3.bf16.msra.mxu0 %v10755_v14  ;;  %v10762_v19 = vld [vmem:[#allocation8 + $0xac] ss:$12 sps:$4 sm:$0xff]  }
 0x2ac   :  { %v922_v25 = vadd.f32 %v9772_v24, %v881_v16  ;;  %v926_v26 = vadd.f32 %v925_v22, %v919_v23  ;;  %v12031_v16 = vmov 0   ;;  %10167 = vmatprep.subr.bf16.mxu0 %v12030_v54  ;;  %1204 = vmatprep.subr.bf16.mxu1 %v10762_v19 }
 0x2ad   :  { %1222 = vmatprep.mubr.bf16.mxu1 %v12031_v16  ;;  %10683 = vset.pattern.permute.xlu0 %v12031_v16 }
 0x2ae   :  { %930 = vadd.xlane.f32.xlu0 %v926_v26  ;;  %v927_v27 = vadd.f32 %v925_v22, %v922_v25  ;;  %1205 = vmatpush1.bf16.msra.mxu1 %v10760_v20 }
 0x2af   :  { %10168 = vmatpush3.bf16.msra.mxu0 %v10759_v18  ;;  %10175 = vmatprep.subr.bf16.mxu1 %v12030_v54 }
 0x2b0   :  { %10169 = vmatprep.subr.bf16.mxu0 %v12030_v54 }
 0x2b2   :  { %932 = vadd.xlane.f32.xlu0 %v927_v27 }
 0x2b3   :  { %10170 = vmatpush3.bf16.msra.mxu0 %v10763_v21 }
 0x2b4   :  { %10211 = vmatprep.subr.bf16.mxu0 %v12030_v54 }
 0x33b   :  { %v931_v28 = vpop.xlane.xlu0 %930 }
 0x33c   :  { %v935_v29 = vmul.f32 0.0078125, %v931_v28 }
 0x33e   :  { %v937_v30 = vsub.f32 %v926_v26, %v935_v29 }
 0x33f   :  { %v933_v31 = vpop.xlane.xlu0 %932 }
 0x340   :  { %v936_v32 = vmul.f32 0.0078125, %v933_v31  ;;  %v939_v33 = vmul.f32 %v937_v30, %v937_v30 }
 0x342   :  { %941 = vadd.xlane.f32.xlu1 %v939_v33  ;;  %v938_v34 = vsub.f32 %v927_v27, %v936_v32 }
 0x344   :  { %v940_v35 = vmul.f32 %v938_v34, %v938_v34 }
 0x346   :  { %943 = vadd.xlane.f32.xlu1 %v940_v35 }
 0x3cf   :  { %v942_v36 = vpop.xlane.xlu1 %941 }
 0x3d0   :  { %v945_v37 = vmul.f32 0.0078125, %v942_v36 }
 0x3d2   :  { %v947_v38 = vadd.f32 1e-05, %v945_v37 }
 0x3d3   :  { %v944_v39 = vpop.xlane.xlu1 %943 }
 0x3d4   :  { %11228 = vrsqrt.f32 %v947_v38  ;;  %v946_v40 = vmul.f32 0.0078125, %v944_v39  ;;  %v969_v39 = vlaneseq }
 0x3d6   :  { %v948_v41 = vadd.f32 1e-05, %v946_v40  ;;  %v12409_v40 = vshrl.u32 %v969_v39, 7  ;;  %v12440_v9 = vand.u32 127, %v969_v39 }
 0x3d8   :  { %11230 = vrsqrt.f32 %v948_v41  ;;  %v12412_v41 = vsub.s32 1, %v12409_v40  ;;  %vm971_vm3 = vcmp.lt.s32.totalorder %v12440_v9, 5  ;;  %vm12974_vm7 = vcmp.le.s32.totalorder %v12440_v9, %v12409_v40 }
 0x3de   :  { %v11229_v42 = vpop.eup %11228 }
 0x3df   :  { %v951_v44 = vmul.f32 %v11229_v42, %v937_v30  ;;  %v8958_v30 = vld [vmem:[%s13680_s24] ss:$0 sm:$0xff]  ;;  %v1045_v42 = vld [vmem:[#allocation9] sm:$0x7] }
 0x3e1   :  { %v959_v46 = vmul.f32 %v8956_v43, %v951_v44  ;;  %v1054_v44 = vrot.slane %v1045_v42, %v12412_v41 }
 0x3e2   :  { %v11231_v47 = vpop.eup %11230 }
 0x3e3   :  { %v12371_v48 = vadd.f32 %v8957_v45, %v959_v46  ;;  %v952_v49 = vmul.f32 %v11231_v47, %v938_v34  ;;  %v8959_v34 = vld [vmem:[%s13681_s12] ss:$0 sm:$0xff] }
 0x3e5   :  { %974 = vadd.xlane.f32.xlu0 %v12371_v48  ;;  %v960_v50 = vmul.f32 %v8956_v43, %v952_v49  ;;  %v12415_v43 = vsub.s32 2, %v12409_v40 }
 0x3e7   :  { %v12374_v51 = vadd.f32 %v8957_v45, %v960_v50  ;;  %v12419_v45 = vsub.s32 0, %v12409_v40  ;;  %v1058_v49 = vrot.slane %v1045_v42, %v12415_v43 }
 0x3e9   :  { %976 = vadd.xlane.f32.xlu1 %v12374_v51 }
 0x472   :  { %v975_v58 = vpop.xlane.xlu0 %974 }
 0x473   :  { %v978_v59 = vmul.f32 0.0078125, %v975_v58 }
 0x475   :  { %v12380_v60 = vsub.f32 %v12371_v48, %v978_v59 }
 0x476   :  { %v977_v61 = vpop.xlane.xlu1 %976 }
 0x477   :  { %v979_v62 = vmul.f32 0.0078125, %v977_v61  ;;  %v982_v63 = vmul.f32 %v12380_v60, %v12380_v60 }
 0x479   :  { %984 = vadd.xlane.f32.xlu0 %v982_v63  ;;  %v12385_v0 = vsub.f32 %v12374_v51, %v979_v62 }
 0x47b   :  { %v983_v1 = vmul.f32 %v12385_v0, %v12385_v0 }
 0x47d   :  { %986 = vadd.xlane.f32.xlu1 %v983_v1 }
 0x506   :  { %v985_v22 = vpop.xlane.xlu0 %984 }
 0x507   :  { %v988_v23 = vmul.f32 0.0078125, %v985_v22 }
 0x509   :  { %v990_v24 = vadd.f32 1e-05, %v988_v23 }
 0x50a   :  { %v987_v25 = vpop.xlane.xlu1 %986 }
 0x50b   :  { %11232 = vrsqrt.f32 %v990_v24  ;;  %v989_v26 = vmul.f32 0.0078125, %v987_v25 }
 0x50d   :  { %v991_v27 = vadd.f32 1e-05, %v989_v26 }
 0x50f   :  { %11234 = vrsqrt.f32 %v991_v27 }
 0x515   :  { %v11233_v28 = vpop.eup %11232 }
 0x516   :  { %v994_v29 = vmul.f32 %v11233_v28, %v12380_v60  ;;  %v1050_v60 = vrot.slane %v1045_v42, %v12419_v45 }
 0x518   :  { %v1002_v33 = vmul.f32 %v8958_v30, %v994_v29 }
 0x519   :  { %v11235_v31 = vpop.eup %11234 }
 0x51a   :  { %v995_v32 = vmul.f32 %v11235_v31, %v12385_v0  ;;  %v1010_v36 = vadd.f32 %v8959_v34, %v1002_v33 }
 0x51c   :  { %v1003_v35 = vmul.f32 %v8958_v30, %v995_v32 }
 0x51e   :  { %v1011_v37 = vadd.f32 %v8959_v34, %v1003_v35 }
 0x520   :  { %v1012_v38 = vpack.c.bf16 %v1011_v37, %v1010_v36 }
 0x522   :  { %1223 = vmatmul.mubr.bf16.vlgmr.msra.gmra.mrb[4].mxu1 %v1012_v38  ;;  %10172 = vmatmul.mubr.bf16.vlgmr.msra.gmra.mrb[8].mxu0 %v1012_v38 }
 0x523   :  { %10177 = vmatprep.mubr.msk.bf16.mxu1 %vm12032_vm0, %v12030_v54  ;;  %10213 = vmatprep.mubr.msk.bf16.mxu0 %vm12032_vm0, %v12030_v54 }
 0x5f5   :  { %v1224_v46 = vpop.f32.mrb[4].mxu1  ;;  %v1267_v47 = vpop.f32.mrb[8].mxu0 }
 0x5f6   :  { %v1226_v50 = vpop.f32.mrb[5].mxu1  ;;  %v10173_v52 = vpop.f32.mrb[9].mxu0  ;;  %v1225_v0 = vadd.f32 %v1224_v46, %v1050_v60  ;;  %v1268_v3 = vadd.f32 %v1267_v47, %v1058_v49 }
 0x5f7   :  { %v1227_v53 = vadd.f32 %v1226_v50, %v1054_v44  ;;  %v1228_v55 = vpop.f32.mrb[6].mxu1  ;;  %v1270_v56 = vpop.f32.mrb[10].mxu0 }
 0x5f8   :  { %v12422_v57 = vadd.f32 %v1270_v56, %v1058_v49  ;;  %v1230_v58 = vpop.f32.mrb[7].mxu1  ;;  %v10174_v59 = vpop.f32.mrb[11].mxu0  ;;  %v1290_v2 = vpack.c.bf16 %v1225_v0, %v1225_v0  ;;  %v1229_v5 = vadd.f32 %v1228_v55, %v1050_v60  ;;  %v12432_v6 = vpack.c.bf16 %v1268_v3, %v1268_v3 }
 0x5f9   :  { %v1292_v61 = vpack.c.bf16 %v1227_v53, %v1227_v53  ;;  %v1231_v63 = vadd.f32 %v1230_v58, %v1054_v44 }
 0x5fa   :  { %v1291_v7 = vpack.c.bf16 %v1229_v5, %v1229_v5  ;;  %v1425_v8 = vsel %vm1423_vm2, %v12432_v6, 0  ;;  %v1419_v38 = vpack.c.bf16 %v12422_v57, %v12422_v57 }
 0x5fb   :  { %v1299_v62 = vsel %vm1294_vm1, %v1292_v61, 0  ;;  %v1293_v1 = vpack.c.bf16 %v1231_v63, %v1231_v63 }
 0x5fc   :  { %10176 = vmatpush3.bf16.xpose.msra.mxu1 %v1299_v62  ;;  %v1471_v44 = vsel %vm1423_vm2, %v1419_v38, 0 }
 0x5fd   :  { %10181 = vmatprep.subr.bf16.mxu1 %v12030_v54  ;;  %v1345_v4 = vsel %vm1294_vm1, %v1293_v1, 0 }
 0x603   :  { %10178 = vmatmul.mubr.msk.bf16.vlgmr.msra.gmra.mrb[8].mxu1 %vm1294_vm1, %v1290_v2 }
 0x604   :  { %10182 = vmatpush3.bf16.xpose.msra.mxu1 %v1345_v4  ;;  %10183 = vmatprep.mubr.msk.bf16.mxu1 %vm12032_vm0, %v12030_v54 }
 0x605   :  { %10187 = vmatprep.subr.bf16.mxu1 %v12030_v54 }
 0x60b   :  { %10184 = vmatmul.mubr.msk.bf16.vlgmr.msra.gmra.mrb[12].mxu1 %vm1294_vm1, %v1291_v7 }
 0x60c   :  { %10188 = vmatpush3.bf16.msra.mxu1 %v1425_v8  ;;  %10189 = vmatprep.mubr.msk.bf16.mxu1 %vm12032_vm0, %v12030_v54 }
 0x60d   :  { %10193 = vmatprep.subr.bf16.mxu1 %v12030_v54 }
 0x6d6   :  { %v1335_v10 = vpop.f32.mrb[8].mxu1 }
 0x6d7   :  { %v1387_v11 = vmul.f32 0.125, %v1335_v10  ;;  %v10179_v12 = vpop.f32.mrb[9].mxu1 }
 0x6d8   :  { %v1338_v13 = vpop.f32.mrb[10].mxu1 }
 0x6d9   :  { %v10180_v14 = vpop.f32.mrb[11].mxu1  ;;  %v1391_v15 = vsel %vm971_vm3, %v1387_v11, -1e+09 }
 0x6da   :  { %v1394_v17 = vsel %vm1393_vm4, %v1391_v15, -inf }
 0x6db   :  { %1395 = vmax.xlane.f32.xlu0 %v1394_v17 }
 0x6de   :  { %v1381_v18 = vpop.f32.mrb[12].mxu1 }
 0x6df   :  { %v1388_v19 = vmul.f32 0.125, %v1381_v18  ;;  %v10185_v20 = vpop.f32.mrb[13].mxu1 }
 0x6e0   :  { %v1384_v21 = vpop.f32.mrb[14].mxu1 }
 0x6e1   :  { %v10186_v22 = vpop.f32.mrb[15].mxu1  ;;  %v1392_v23 = vsel %vm971_vm3, %v1388_v19, -1e+09 }
 0x6e2   :  { %v1397_v24 = vsel %vm1393_vm4, %v1392_v23, -inf }
 0x6e3   :  { %1398 = vmax.xlane.f32.xlu1 %v1397_v24 }
 0x768   :  { %v1396_v25 = vpop.xlane.xlu0 %1395 }
 0x769   :  { %v1400_v26 = vsub.f32 %v1391_v15, %v1396_v25 }
 0x76b   :  { %v1402_v27 = vmul.f32 1.442695, %v1400_v26 }
 0x76d   :  { %11236 = vpow2.f32 %v1402_v27 }
 0x770   :  { %v1399_v28 = vpop.xlane.xlu1 %1398 }
 0x771   :  { %v1401_v29 = vsub.f32 %v1392_v23, %v1399_v28 }
 0x773   :  { %v1404_v30 = vmul.f32 1.442695, %v1401_v29 }
 0x775   :  { %11238 = vpow2.f32 %v1404_v30 }
 0x777   :  { %v11237_v31 = vpop.eup %11236 }
 0x778   :  { %v1406_v32 = vsel %vm1393_vm4, %v11237_v31, 0.0 }
 0x779   :  { %1407 = vadd.xlane.f32.xlu0 %v1406_v32 }
 0x77f   :  { %v11239_v33 = vpop.eup %11238 }
 0x780   :  { %v1409_v34 = vsel %vm1393_vm4, %v11239_v33, 0.0 }
 0x781   :  { %1410 = vadd.xlane.f32.xlu1 %v1409_v34 }
 0x78f   :  { %1518 = vrot.lane.b32.xlu0 %v1292_v61, %s12013_s18 }
 0x792   :  { %1515 = vrot.lane.b32.xlu1 %v1290_v2, %s12013_s18 }
 0x796   :  { %1570 = vrot.lane.b32.xlu1 %v1293_v1, %s12013_s18 }
 0x79a   :  { %1567 = vrot.lane.b32.xlu1 %v1291_v7, %s12013_s18 }
 0x806   :  { %v1408_v35 = vpop.xlane.xlu0 %1407 }
 0x807   :  { %11240 = vrcp.f32 %v1408_v35 }
 0x80a   :  { %v1519_v49 = vpop.permute.xlu0 %1518 }
 0x80b   :  { %v1524_v53 = vsel %vm1294_vm1, %v1519_v49, 0  ;;  %v10765_v49 = vld [vmem:[%s13682_s30 + $0x8] sm:$0xff]  }
 0x80e   :  { %v1411_v36 = vpop.xlane.xlu1 %1410 }
 0x80f   :  { %11242 = vrcp.f32 %v1411_v36 }
 0x811   :  { %v11241_v37 = vpop.eup %11240 }
 0x812   :  { %v1414_v39 = vmul.f32 %v11241_v37, %v11237_v31  ;;  %v1516_v52 = vpop.permute.xlu1 %1515 }
 0x814   :  { %v1416_v42 = vpack.c.bf16 %v1414_v39, %v1414_v39  ;;  %v10768_v39 = vld [vmem:[%s13682_s30 + $0x20] sm:$0xff]  }
 0x816   :  { %10190 = vmatmul.mubr.msk.bf16.vlgmr.msra.gmra.mrb[16].mxu1 %vm1393_vm4, %v1416_v42  ;;  %v1571_v55 = vpop.permute.xlu1 %1570 }
 0x817   :  { %10194 = vmatpush3.bf16.msra.mxu1 %v1471_v44  ;;  %10195 = vmatprep.mubr.msk.bf16.mxu1 %vm12032_vm0, %v12030_v54  ;;  %v1576_v56 = vsel %vm1294_vm1, %v1571_v55, 0  ;;  %v10771_v55 = vld [vmem:[%s13682_s30 + $0x38] sm:$0xff]  }
 0x818   :  { %10199 = vmatprep.subr.bf16.mxu1 %v12030_v54 }
 0x819   :  { %v11243_v46 = vpop.eup %11242 }
 0x81a   :  { %v1415_v47 = vmul.f32 %v11243_v46, %v11239_v33  ;;  %v1568_v57 = vpop.permute.xlu1 %1567  ;;  %v10764_v46 = vld [vmem:[%s13682_s30] sm:$0xff]  }
 0x81c   :  { %v1417_v50 = vpack.c.bf16 %v1415_v47, %v1415_v47 }
 0x81e   :  { %10196 = vmatmul.mubr.msk.bf16.vlgmr.msra.gmra.mrb[20].mxu1 %vm1393_vm4, %v1417_v50  ;;  %v10766_v50 = vld [vmem:[%s13682_s30 + $0x10] sm:$0xff]  }
 0x81f   :  { %10201 = vmatprep.mubr.msk.bf16.mxu1 %vm12032_vm0, %v12030_v54 }
 0x820   :  { %10200 = vmatpush3.bf16.xpose.msra.mxu1 %v1524_v53  ;;  %v10770_v53 = vld [vmem:[%s13682_s30 + $0x30] sm:$0xff]  }
 0x821   :  { %10205 = vmatprep.subr.bf16.mxu1 %v12030_v54 }
 0x827   :  { %10202 = vmatmul.mubr.msk.bf16.vlgmr.msra.gmra.mrb[24].mxu1 %vm1294_vm1, %v1516_v52  ;;  %v10767_v52 = vld [vmem:[%s13682_s30 + $0x18] sm:$0xff]  }
 0x828   :  { %10206 = vmatpush3.bf16.xpose.msra.mxu1 %v1576_v56  ;;  %10207 = vmatprep.mubr.msk.bf16.mxu1 %vm12032_vm0, %v12030_v54 }
 0x829   :  { %10217 = vmatprep.subr.bf16.mxu1 %v12030_v54 }
 0x82f   :  { %10208 = vmatmul.mubr.msk.bf16.vlgmr.msra.gmra.mrb[28].mxu1 %vm1294_vm1, %v1568_v57 }
 0x830   :  { %10219 = vmatprep.mubr.msk.bf16.mxu1 %vm12032_vm0, %v12030_v54 }
 0x8e9   :  { %v12475_v58 = vpop.f32.mrb[16].mxu1 }
 0x8ea   :  { %v10191_v59 = vpop.f32.mrb[17].mxu1 }
 0x8eb   :  { %v1464_v60 = vpop.f32.mrb[18].mxu1 }
 0x8ec   :  { %v10192_v61 = vpop.f32.mrb[19].mxu1 }
 0x8f1   :  { %v12477_v62 = vpop.f32.mrb[20].mxu1 }
 0x8f2   :  { %v1513_v63 = vpack.c.bf16 %v12477_v62, %v12475_v58  ;;  %v10197_v0 = vpop.f32.mrb[21].mxu1 }
 0x8f3   :  { %v1510_v1 = vpop.f32.mrb[22].mxu1 }
 0x8f4   :  { %v10198_v2 = vpop.f32.mrb[23].mxu1 }
 0x8fa   :  { %v1560_v3 = vpop.f32.mrb[24].mxu1 }
 0x8fb   :  { %v1618_v4 = vmul.f32 0.125, %v1560_v3  ;;  %v10203_v5 = vpop.f32.mrb[25].mxu1 }
 0x8fc   :  { %v1563_v7 = vpop.f32.mrb[26].mxu1 }
 0x8fd   :  { %v10204_v8 = vpop.f32.mrb[27].mxu1  ;;  %v1620_v10 = vsel %vm971_vm3, %v1618_v4, -1e+09 }
 0x8fe   :  { %v1622_v11 = vsel %vm1393_vm4, %v1620_v10, -inf }
 0x8ff   :  { %1623 = vmax.xlane.f32.xlu0 %v1622_v11  ;;  %v9002_v11 = vld [vmem:[#allocation11] ss:$0 sm:$0xff] }
 0x902   :  { %v1612_v12 = vpop.f32.mrb[28].mxu1 }
 0x903   :  { %v1619_v13 = vmul.f32 0.125, %v1612_v12  ;;  %v10209_v14 = vpop.f32.mrb[29].mxu1 }
 0x904   :  { %v1615_v15 = vpop.f32.mrb[30].mxu1 }
 0x905   :  { %v10210_v17 = vpop.f32.mrb[31].mxu1  ;;  %v1621_v18 = vsel %vm971_vm3, %v1619_v13, -1e+09 }
 0x906   :  { %v1625_v19 = vsel %vm1393_vm4, %v1621_v18, -inf }
 0x907   :  { %1626 = vmax.xlane.f32.xlu1 %v1625_v19  ;;  %v10772_v19 = vld [vmem:[%s13683_s1] ss:$16 sps:$4 sm:$0xff]  }
 0x918   :  { %1696 = vrot.lane.b32.xlu1 %v1419_v38, %s12013_s18 }
 0x98c   :  { %v1624_v20 = vpop.xlane.xlu0 %1623 }
 0x98d   :  { %v1628_v21 = vsub.f32 %v1620_v10, %v1624_v20  ;;  %v10774_v20 = vld [vmem:[%s13683_s1 + $0x4] ss:$16 sps:$4 sm:$0xff]  }
 0x98f   :  { %v1630_v22 = vmul.f32 1.442695, %v1628_v21  ;;  %v10775_v21 = vld [vmem:[%s13683_s1 + $0x8] ss:$16 sps:$4 sm:$0xff]  }
 0x991   :  { %11244 = vpow2.f32 %v1630_v22  ;;  %v10777_v22 = vld [vmem:[%s13683_s1 + $0xc] ss:$16 sps:$4 sm:$0xff]  }
 0x994   :  { %v1627_v23 = vpop.xlane.xlu1 %1626 }
 0x995   :  { %v1629_v24 = vsub.f32 %v1621_v18, %v1627_v23  ;;  %v10780_v23 = vld [vmem:[%s13683_s1 + $0x24] ss:$16 sps:$4 sm:$0xff]  }
 0x997   :  { %v1632_v25 = vmul.f32 1.442695, %v1629_v24  ;;  %v10778_v24 = vld [vmem:[%s13683_s1 + $0x20] ss:$16 sps:$4 sm:$0xff]  }
 0x998   :  { %v1697_v26 = vpop.permute.xlu1 %1696 }
 0x999   :  { %11246 = vpow2.f32 %v1632_v25  ;;  %v1702_v27 = vsel %vm1423_vm2, %v1697_v26, 0 }
 0x99a   :  { %10218 = vmatpush3.bf16.msra.mxu1 %v1702_v27 }
 0x99b   :  { %v11245_v28 = vpop.eup %11244  ;;  %10235 = vmatprep.subr.bf16.mxu1 %v12030_v54 }
 0x99c   :  { %v1634_v29 = vsel %vm1393_vm4, %v11245_v28, 0.0 }
 0x99d   :  { %1635 = vadd.xlane.f32.xlu0 %v1634_v29 }
 0x9a3   :  { %v11247_v30 = vpop.eup %11246 }
 0x9a4   :  { %v1637_v31 = vsel %vm1393_vm4, %v11247_v30, 0.0 }
 0x9a5   :  { %1638 = vadd.xlane.f32.xlu0 %v1637_v31 }
 0x9bb   :  { %1647 = vrot.lane.b32.xlu0 %v12432_v6, %s12013_s18  ;;  %v10769_v6 = vld [vmem:[%s13682_s30 + $0x28] sm:$0xff]  }
 0xa2a   :  { %v1636_v32 = vpop.xlane.xlu0 %1635 }
 0xa2b   :  { %11248 = vrcp.f32 %v1636_v32 }
 0xa32   :  { %v1639_v33 = vpop.xlane.xlu0 %1638 }
 0xa33   :  { %11250 = vrcp.f32 %v1639_v33  ;;  %v10786_v33 = vld [vmem:[%s13683_s1 + $0x44] ss:$16 sps:$4 sm:$0xff]  }
 0xa35   :  { %v11249_v34 = vpop.eup %11248 }
 0xa36   :  { %v1648_v35 = vpop.permute.xlu0 %1647  ;;  %v1642_v36 = vmul.f32 %v11249_v34, %v11245_v28  ;;  %v10789_v34 = vld [vmem:[%s13683_s1 + $0x4c] ss:$16 sps:$4 sm:$0xff]  }
 0xa37   :  { %v1653_v37 = vsel %vm1423_vm2, %v1648_v35, 0  ;;  %v10784_v35 = vld [vmem:[%s13683_s1 + $0x40] ss:$16 sps:$4 sm:$0xff]  }
 0xa38   :  { %10212 = vmatpush3.bf16.msra.mxu0 %v1653_v37  ;;  %v1644_v38 = vpack.c.bf16 %v1642_v36, %v1642_v36  ;;  %v10787_v36 = vld [vmem:[%s13683_s1 + $0x48] ss:$16 sps:$4 sm:$0xff]   ;;  %v10792_v37 = vld [vmem:[%s13683_s1 + $0x64] ss:$16 sps:$4 sm:$0xff]  }
 0xa39   :  { %10223 = vmatprep.subr.bf16.mxu0 %v12030_v54 }
 0xa3b   :  { %10214 = vmatmul.mubr.msk.bf16.vlgmr.msra.gmra.mrb[12].mxu0 %vm1393_vm4, %v1644_v38  ;;  %v10795_v38 = vld [vmem:[%s13683_s1 + $0x6c] ss:$16 sps:$4 sm:$0xff]  }
 0xa3c   :  { %10224 = vmatpush3.bf16.msra.mxu0 %v10768_v39  ;;  %10231 = vmatprep.mubr.msk.bf16.mxu0 %vm12032_vm0, %v12030_v54  ;;  %v10790_v39 = vld [vmem:[%s13683_s1 + $0x60] ss:$16 sps:$4 sm:$0xff]  }
 0xa3d   :  { %v11251_v42 = vpop.eup %11250  ;;  %10225 = vmatprep.subr.bf16.mxu0 %v12030_v54 }
 0xa3e   :  { %v1643_v44 = vmul.f32 %v11251_v42, %v11247_v30  ;;  %v10798_v42 = vld [vmem:[%s13683_s1 + $0x84] ss:$16 sps:$4 sm:$0xff]  }
 0xa40   :  { %v1645_v47 = vpack.c.bf16 %v1643_v44, %v1643_v44  ;;  %10226 = vmatpush3.bf16.msra.mxu0 %v10769_v6  ;;  %v10793_v6 = vld [vmem:[%s13683_s1 + $0x68] ss:$16 sps:$4 sm:$0xff]   ;;  %v10796_v44 = vld [vmem:[%s13683_s1 + $0x80] ss:$16 sps:$4 sm:$0xff]  }
 0xa41   :  { %10227 = vmatprep.subr.bf16.mxu0 %v12030_v54 }
 0xa42   :  { %10220 = vmatmul.mubr.msk.bf16.vlgmr.msra.gmra.mrb[32].mxu1 %vm1393_vm4, %v1645_v47  ;;  %v10801_v47 = vld [vmem:[%s13683_s1 + $0x8c] ss:$16 sps:$4 sm:$0xff]  }
 0xa43   :  { %10236 = vmatpush3.bf16.msra.mxu1 %v10764_v46  ;;  %10243 = vmatprep.mubr.msk.bf16.mxu1 %vm12032_vm0, %v12030_v54  ;;  %v10799_v46 = vld [vmem:[%s13683_s1 + $0x88] ss:$16 sps:$4 sm:$0xff]  }
 0xa44   :  { %10237 = vmatprep.subr.bf16.mxu1 %v12030_v54  ;;  %10228 = vmatpush3.bf16.msra.mxu0 %v10770_v53  ;;  %v10805_v53 = vld [vmem:[%s13683_s1 + $0xa8] ss:$16 sps:$4 sm:$0xff]  }
 0xa45   :  { %10229 = vmatprep.subr.bf16.mxu0 %v12030_v54 }
 0xa47   :  { %10238 = vmatpush3.bf16.msra.mxu1 %v10765_v49  ;;  %v10804_v49 = vld [vmem:[%s13683_s1 + $0xa4] ss:$16 sps:$4 sm:$0xff]  }
 0xa48   :  { %10239 = vmatprep.subr.bf16.mxu1 %v12030_v54  ;;  %10230 = vmatpush3.bf16.msra.mxu0 %v10771_v55  ;;  %v10810_v55 = vld [vmem:[%s13683_s1 + $0xc4] ss:$16 sps:$4 sm:$0xff]  }
 0xa49   :  { %2147 = vmatprep.subr.bf16.mxu0 %v10774_v20 }
 0xa4b   :  { %10240 = vmatpush3.bf16.msra.mxu1 %v10766_v50  ;;  %v10807_v50 = vld [vmem:[%s13683_s1 + $0xac] ss:$16 sps:$4 sm:$0xff]  }
 0xa4c   :  { %10241 = vmatprep.subr.bf16.mxu1 %v12030_v54 }
 0xa4f   :  { %10242 = vmatpush3.bf16.msra.mxu1 %v10767_v52  ;;  %v10802_v52 = vld [vmem:[%s13683_s1 + $0xa0] ss:$16 sps:$4 sm:$0xff]  }
 0xa50   :  { %2190 = vmatprep.subr.bf16.mxu1 %v10777_v22  ;;  %v10821_v22 = vld [vmem:[%s13684_s6 + $0xc0] sm:$0xff]  }
 0xa52   :  { %10244 = vmatmul.mubr.msk.bf16.vlgmr.msra.gmra.mrb[36].mxu1 %vm1294_vm1, %v1513_v63 }
 0xa53   :  { %2222 = vmatprep.mubr.bf16.mxu1 %v12031_v16  ;;  %2191 = vmatpush1.bf16.msra.mxu1 %v10775_v21  ;;  %v10820_v21 = vld [vmem:[%s13684_s6 + $0x40] sm:$0xff]  }
 0xb0e   :  { %v1689_v56 = vpop.f32.mrb[12].mxu0 }
 0xb0f   :  { %v10215_v57 = vpop.f32.mrb[13].mxu0 }
 0xb10   :  { %v1692_v59 = vpop.f32.mrb[14].mxu0  ;;  %v10808_v57 = vld [vmem:[%s13683_s1 + $0xc0] ss:$16 sps:$4 sm:$0xff]  }
 0xb11   :  { %v10216_v60 = vpop.f32.mrb[15].mxu0  ;;  %v10811_v59 = vld [vmem:[%s13683_s1 + $0xc8] ss:$16 sps:$4 sm:$0xff]  }
 0xb12   :  { %v10816_v60 = vld [vmem:[%s13683_s1 + $0xe4] ss:$16 sps:$4 sm:$0xff]  }
 0xb15   :  { %v1738_v61 = vpop.f32.mrb[32].mxu1 }
 0xb16   :  { %v1744_v0 = vpack.c.bf16 %v1738_v61, %v1689_v56  ;;  %v10221_v1 = vpop.f32.mrb[33].mxu1  ;;  %v10813_v56 = vld [vmem:[%s13683_s1 + $0xcc] ss:$16 sps:$4 sm:$0xff]  }
 0xb17   :  { %v1741_v2 = vpop.f32.mrb[34].mxu1  ;;  %v10819_v61 = vld [vmem:[%s13683_s1 + $0xec] ss:$16 sps:$4 sm:$0xff]   ;;  %v10817_v1 = vld [vmem:[%s13683_s1 + $0xe8] ss:$16 sps:$4 sm:$0xff]  }
 0xb18   :  { %v10222_v3 = vpop.f32.mrb[35].mxu1  ;;  %10232 = vmatmul.mubr.msk.bf16.vlgmr.msra.gmra.mrb[16].mxu0 %vm1294_vm1, %v1744_v0  ;;  %v10814_v0 = vld [vmem:[%s13683_s1 + $0xe0] ss:$16 sps:$4 sm:$0xff]  }
 0xb19   :  { %2179 = vmatprep.mubr.bf16.mxu0 %v12031_v16  ;;  %2148 = vmatpush1.bf16.msra.mxu0 %v10772_v19 }
 0xb1a   :  { %2149 = vmatprep.subr.bf16.mxu0 %v10780_v23  ;;  %v10822_v23 = vld [vmem:[%s13684_s6] sm:$0xff]  }
 0xb1d   :  { %2150 = vmatpush1.bf16.msra.mxu0 %v10778_v24  ;;  %v10824_v24 = vld [vmem:[%s13684_s6 + $0x48] sm:$0xff]  }
 0xb1e   :  { %2151 = vmatprep.subr.bf16.mxu0 %v10786_v33  ;;  %v10834_v33 = vld [vmem:[%s13684_s6 + $0x18] sm:$0xff]  }
 0xb21   :  { %2152 = vmatpush1.bf16.msra.mxu0 %v10784_v35  ;;  %v10836_v35 = vld [vmem:[%s13684_s6 + $0x60] sm:$0xff]  }
 0xb22   :  { %2153 = vmatprep.subr.bf16.mxu0 %v10792_v37  ;;  %v10838_v37 = vld [vmem:[%s13684_s6 + $0x20] sm:$0xff]  }
 0xb25   :  { %v1874_v58 = vpop.f32.mrb[36].mxu1  ;;  %2154 = vmatpush1.bf16.msra.mxu0 %v10790_v39  ;;  %v10840_v39 = vld [vmem:[%s13684_s6 + $0x68] sm:$0xff]  }
 0xb26   :  { %v10245_v62 = vpop.f32.mrb[37].mxu1  ;;  %2155 = vmatprep.subr.bf16.mxu0 %v10798_v42  ;;  %v10842_v42 = vld [vmem:[%s13684_s6 + $0x28] sm:$0xff]  }
 0xb27   :  { %v1877_v63 = vpop.f32.mrb[38].mxu1 }
 0xb28   :  { %v10246_v4 = vpop.f32.mrb[39].mxu1 }
 0xb29   :  { %2156 = vmatpush1.bf16.msra.mxu0 %v10796_v44  ;;  %v10843_v44 = vld [vmem:[%s13684_s6 + $0xa8] sm:$0xff]  }
 0xb2a   :  { %2157 = vmatprep.subr.bf16.mxu0 %v10804_v49  ;;  %v10846_v49 = vld [vmem:[%s13684_s6 + $0x30] sm:$0xff]  }
 0xb2d   :  { %2158 = vmatpush1.bf16.msra.mxu0 %v10802_v52  ;;  %v10848_v52 = vld [vmem:[%s13684_s6 + $0x78] sm:$0xff]  }
 0xb2e   :  { %2159 = vmatprep.subr.bf16.mxu0 %v10810_v55  ;;  %v10850_v55 = vld [vmem:[%s13684_s6 + $0x38] sm:$0xff]  }
 0xb31   :  { %2160 = vmatpush1.bf16.msra.mxu0 %v10808_v57  ;;  %v1965_v57 = vld [vmem:[#allocation15] sm:$0xf] }
 0xb32   :  { %2161 = vmatprep.subr.bf16.mxu0 %v10816_v60  ;;  %v1970_v60 = vrot.slane %v1965_v57, %v12419_v45 }
 0xb35   :  { %2162 = vmatpush1.bf16.msra.mxu0 %v10814_v0  ;;  %v1974_v0 = vrot.slane %v1965_v57, %v12412_v41 }
 0xb36   :  { %9808 = vmatprep.subr.bf16.mxu0 %v10820_v21 }
 0xbeb   :  { %v1806_v5 = vpop.f32.mrb[16].mxu0 }
 0xbec   :  { %v1875_v7 = vadd.f32 %v1874_v58, %v1806_v5  ;;  %v10233_v8 = vpop.f32.mrb[17].mxu0 }
 0xbed   :  { %v1809_v10 = vpop.f32.mrb[18].mxu0 }
 0xbee   :  { %v1881_v12 = vadd.f32 %v1875_v7, %v12371_v48  ;;  %v1878_v13 = vadd.f32 %v1877_v63, %v1809_v10  ;;  %v10234_v14 = vpop.f32.mrb[19].mxu0  ;;  %v10783_v48 = vld [vmem:[%s13683_s1 + $0x2c] ss:$16 sps:$4 sm:$0xff]   ;;  %v9003_v7 = vld [vmem:[#allocation12] ss:$0 sm:$0xff] }
 0xbef   :  { %2192 = vmatprep.subr.bf16.mxu1 %v10783_v48  ;;  %v10823_v48 = vld [vmem:[%s13684_s6 + $0x80] sm:$0xff]  }
 0xbf0   :  { %v1882_v15 = vadd.f32 %v1878_v13, %v12374_v51  ;;  %v12525_v17 = vadd.f32 %v9002_v11, %v1881_v12  ;;  %v10781_v51 = vld [vmem:[%s13683_s1 + $0x28] ss:$16 sps:$4 sm:$0xff]   ;;  %v9004_v13 = vld [vmem:[#allocation14] ss:$0 sm:$0xff] }
 0xbf1   :  { %2193 = vmatpush1.bf16.msra.mxu1 %v10781_v51  ;;  %v10825_v51 = vld [vmem:[%s13684_s6 + $0xc8] sm:$0xff]  }
 0xbf2   :  { %1894 = vadd.xlane.f32.xlu1 %v12525_v17  ;;  %v12528_v18 = vadd.f32 %v9002_v11, %v1882_v15  ;;  %2194 = vmatprep.subr.bf16.mxu1 %v10789_v34  ;;  %v10835_v34 = vld [vmem:[%s13684_s6 + $0x98] sm:$0xff]  }
 0xbf4   :  { %1896 = vadd.xlane.f32.xlu0 %v12528_v18 }
 0xbf5   :  { %2195 = vmatpush1.bf16.msra.mxu1 %v10787_v36  ;;  %v10837_v36 = vld [vmem:[%s13684_s6 + $0xe0] sm:$0xff]  }
 0xbf6   :  { %2196 = vmatprep.subr.bf16.mxu1 %v10795_v38  ;;  %v10839_v38 = vld [vmem:[%s13684_s6 + $0xa0] sm:$0xff]  }
 0xbf9   :  { %2197 = vmatpush1.bf16.msra.mxu1 %v10793_v6  ;;  %v10841_v6 = vld [vmem:[%s13684_s6 + $0xe8] sm:$0xff]  }
 0xbfa   :  { %2198 = vmatprep.subr.bf16.mxu1 %v10801_v47  ;;  %v10845_v47 = vld [vmem:[%s13684_s6 + $0xf0] sm:$0xff]  }
 0xbfd   :  { %2199 = vmatpush1.bf16.msra.mxu1 %v10799_v46  ;;  %v10844_v46 = vld [vmem:[%s13684_s6 + $0x70] sm:$0xff]  }
 0xbfe   :  { %2200 = vmatprep.subr.bf16.mxu1 %v10807_v50  ;;  %v10847_v50 = vld [vmem:[%s13684_s6 + $0xb0] sm:$0xff]  }
 0xc01   :  { %2201 = vmatpush1.bf16.msra.mxu1 %v10805_v53  ;;  %v10849_v53 = vld [vmem:[%s13684_s6 + $0xf8] sm:$0xff]  }
 0xc02   :  { %2202 = vmatprep.subr.bf16.mxu1 %v10813_v56  ;;  %v10851_v56 = vld [vmem:[%s13684_s6 + $0xb8] sm:$0xff]  }
 0xc05   :  { %2203 = vmatpush1.bf16.msra.mxu1 %v10811_v59  ;;  %v12609_v59 = vsub.s32 3, %v12409_v40 }
 0xc06   :  { %2204 = vmatprep.subr.bf16.mxu1 %v10819_v61  ;;  %v1978_v61 = vrot.slane %v1965_v57, %v12415_v43 }
 0xc09   :  { %2205 = vmatpush1.bf16.msra.mxu1 %v10817_v1  ;;  %v1982_v1 = vrot.slane %v1965_v57, %v12609_v59 }
 0xc0a   :  { %9830 = vmatprep.subr.bf16.mxu1 %v10821_v22 }
 0xc7f   :  { %v1895_v25 = vpop.xlane.xlu1 %1894 }
 0xc80   :  { %v1898_v26 = vmul.f32 0.0078125, %v1895_v25  ;;  %v10826_v25 = vld [vmem:[%s13684_s6 + $0x8] sm:$0xff]  }
 0xc81   :  { %v1897_v27 = vpop.xlane.xlu0 %1896 }
 0xc82   :  { %v1899_v28 = vmul.f32 0.0078125, %v1897_v27  ;;  %v12540_v29 = vsub.f32 %v12525_v17, %v1898_v26  ;;  %v10827_v26 = vld [vmem:[%s13684_s6 + $0x88] sm:$0xff]   ;;  %v10828_v27 = vld [vmem:[%s13684_s6 + $0x50] sm:$0xff]  }
 0xc84   :  { %v1902_v30 = vmul.f32 %v12540_v29, %v12540_v29  ;;  %v12545_v31 = vsub.f32 %v12528_v18, %v1899_v28  ;;  %v10829_v28 = vld [vmem:[%s13684_s6 + $0xd0] sm:$0xff]  }
 0xc86   :  { %1904 = vadd.xlane.f32.xlu0 %v1902_v30  ;;  %v1903_v32 = vmul.f32 %v12545_v31, %v12545_v31  ;;  %v10831_v30 = vld [vmem:[%s13684_s6 + $0x90] sm:$0xff]  }
 0xc88   :  { %1906 = vadd.xlane.f32.xlu1 %v1903_v32  ;;  %v10833_v32 = vld [vmem:[%s13684_s6 + $0xd8] sm:$0xff]  }
 0xd13   :  { %v1905_v2 = vpop.xlane.xlu0 %1904 }
 0xd14   :  { %v1908_v3 = vmul.f32 0.0078125, %v1905_v2 }
 0xd15   :  { %v1907_v58 = vpop.xlane.xlu1 %1906 }
 0xd16   :  { %v1910_v62 = vadd.f32 1e-05, %v1908_v3  ;;  %v1909_v63 = vmul.f32 0.0078125, %v1907_v58 }
 0xd18   :  { %11252 = vrsqrt.f32 %v1910_v62  ;;  %v1911_v4 = vadd.f32 1e-05, %v1909_v63 }
 0xd1a   :  { %11254 = vrsqrt.f32 %v1911_v4 }
 0xd22   :  { %v11253_v5 = vpop.eup %11252 }
 0xd23   :  { %v1914_v8 = vmul.f32 %v11253_v5, %v12540_v29  ;;  %v10830_v29 = vld [vmem:[%s13684_s6 + $0x10] sm:$0xff]  }
 0xd24   :  { %v11255_v10 = vpop.eup %11254 }
 0xd25   :  { %v1915_v11 = vmul.f32 %v11255_v10, %v12545_v31  ;;  %v1922_v12 = vmul.f32 %v9003_v7, %v1914_v8  ;;  %v10832_v31 = vld [vmem:[%s13684_s6 + $0x58] sm:$0xff]  }
 0xd27   :  { %v1923_v14 = vmul.f32 %v9003_v7, %v1915_v11  ;;  %v1930_v15 = vadd.f32 %v9004_v13, %v1922_v12 }
 0xd29   :  { %v1931_v19 = vadd.f32 %v9004_v13, %v1923_v14 }
 0xd2b   :  { %v1932_v20 = vpack.c.bf16 %v1931_v19, %v1930_v15 }
 0xd2d   :  { %2180 = vmatmul.mubr.bf16.vlgmr.msra.gmra.mrb[20].mxu0 %v1932_v20  ;;  %2223 = vmatmul.mubr.bf16.vlgmr.msra.gmra.mrb[40].mxu1 %v1932_v20 }
 0xd2e   :  { %9809 = vmatpush3.bf16.msra.mxu0 %v10822_v23  ;;  %9831 = vmatpush3.bf16.msra.mxu1 %v10823_v48 }
 0xd2f   :  { %9810 = vmatprep.subr.bf16.mxu0 %v10824_v24  ;;  %9832 = vmatprep.subr.bf16.mxu1 %v10825_v51 }
 0xd32   :  { %9811 = vmatpush3.bf16.msra.mxu0 %v10826_v25  ;;  %9833 = vmatpush3.bf16.msra.mxu1 %v10827_v26 }
 0xd33   :  { %9812 = vmatprep.subr.bf16.mxu0 %v10828_v27  ;;  %9834 = vmatprep.subr.bf16.mxu1 %v10829_v28 }
 0xd36   :  { %9813 = vmatpush3.bf16.msra.mxu0 %v10830_v29  ;;  %9835 = vmatpush3.bf16.msra.mxu1 %v10831_v30 }
 0xd37   :  { %9814 = vmatprep.subr.bf16.mxu0 %v10832_v31  ;;  %9836 = vmatprep.subr.bf16.mxu1 %v10833_v32 }
 0xd3a   :  { %9815 = vmatpush3.bf16.msra.mxu0 %v10834_v33  ;;  %9837 = vmatpush3.bf16.msra.mxu1 %v10835_v34 }
 0xd3b   :  { %9816 = vmatprep.subr.bf16.mxu0 %v10836_v35  ;;  %9838 = vmatprep.subr.bf16.mxu1 %v10837_v36 }
 0xd3e   :  { %9817 = vmatpush3.bf16.msra.mxu0 %v10838_v37  ;;  %9839 = vmatpush3.bf16.msra.mxu1 %v10839_v38 }
 0xd3f   :  { %9818 = vmatprep.subr.bf16.mxu0 %v10840_v39  ;;  %9840 = vmatprep.subr.bf16.mxu1 %v10841_v6 }
 0xd42   :  { %9819 = vmatpush3.bf16.msra.mxu0 %v10842_v42  ;;  %9841 = vmatpush3.bf16.msra.mxu1 %v10843_v44 }
 0xd43   :  { %9820 = vmatprep.subr.bf16.mxu0 %v10844_v46  ;;  %9842 = vmatprep.subr.bf16.mxu1 %v10845_v47 }
 0xd46   :  { %9821 = vmatpush3.bf16.msra.mxu0 %v10846_v49  ;;  %9843 = vmatpush3.bf16.msra.mxu1 %v10847_v50 }
 0xd47   :  { %9822 = vmatprep.subr.bf16.mxu0 %v10848_v52  ;;  %9844 = vmatprep.subr.bf16.mxu1 %v10849_v53 }
 0xd4a   :  { %9823 = vmatpush3.bf16.msra.mxu0 %v10850_v55  ;;  %9845 = vmatpush3.bf16.msra.mxu1 %v10851_v56 }
 0xd4b   :  { %10247 = vmatprep.subr.bf16.mxu1 %v12030_v54 }
 0xe00   :  { %v2181_v2 = vpop.f32.mrb[20].mxu0  ;;  %v2224_v3 = vpop.f32.mrb[40].mxu1 }
 0xe01   :  { %v12615_v58 = vadd.f32 %v2181_v2, %v1970_v60  ;;  %v12617_v62 = vadd.f32 %v2224_v3, %v1978_v61  ;;  %v2183_v63 = vpop.f32.mrb[21].mxu0  ;;  %v2226_v4 = vpop.f32.mrb[41].mxu1 }
 0xe02   :  { %v12619_v5 = vadd.f32 %v2183_v63, %v1974_v0  ;;  %v12621_v7 = vadd.f32 %v2226_v4, %v1982_v1  ;;  %v2185_v8 = vpop.f32.mrb[22].mxu0  ;;  %v2228_v10 = vpop.f32.mrb[42].mxu1 }
 0xe03   :  { %v9037_v11 = vmul.f32 -1.702, %v12615_v58  ;;  %v9039_v12 = vmul.f32 -1.702, %v12617_v62  ;;  %v2186_v13 = vadd.f32 %v2185_v8, %v1970_v60  ;;  %v2229_v14 = vadd.f32 %v2228_v10, %v1978_v61  ;;  %v2187_v15 = vpop.f32.mrb[23].mxu0  ;;  %v2230_v19 = vpop.f32.mrb[43].mxu1 }
 0xe04   :  { %v9038_v20 = vmul.f32 -1.702, %v12619_v5  ;;  %v9040_v21 = vmul.f32 -1.702, %v12621_v7  ;;  %v2188_v22 = vadd.f32 %v2187_v15, %v1974_v0  ;;  %v2231_v23 = vadd.f32 %v2230_v19, %v1982_v1 }
 0xe05   :  { %v2249_v48 = vmul.f32 1.442695, %v9037_v11  ;;  %v2253_v24 = vmul.f32 1.442695, %v9039_v12  ;;  %v9041_v51 = vmul.f32 -1.702, %v2186_v13 }
 0xe06   :  { %v2251_v25 = vmul.f32 1.442695, %v9038_v20  ;;  %v2255_v26 = vmul.f32 1.442695, %v9040_v21  ;;  %v9043_v27 = vmul.f32 -1.702, %v2229_v14 }
 0xe07   :  { %11256 = vpow2.f32 %v2249_v48  ;;  %v2257_v28 = vmul.f32 1.442695, %v9041_v51  ;;  %v9042_v29 = vmul.f32 -1.702, %v2188_v22  ;;  %v9044_v30 = vmul.f32 -1.702, %v2231_v23 }
 0xe08   :  { %11258 = vpow2.f32 %v2253_v24  ;;  %v2261_v31 = vmul.f32 1.442695, %v9043_v27 }
 0xe09   :  { %11260 = vpow2.f32 %v2251_v25  ;;  %v2259_v32 = vmul.f32 1.442695, %v9042_v29  ;;  %v2263_v33 = vmul.f32 1.442695, %v9044_v30 }
 0xe0a   :  { %11262 = vpow2.f32 %v2255_v26 }
 0xe0b   :  { %11264 = vpow2.f32 %v2257_v28 }
 0xe0c   :  { %11266 = vpow2.f32 %v2261_v31 }
 0xe0d   :  { %11268 = vpow2.f32 %v2259_v32 }
 0xe0e   :  { %11270 = vpow2.f32 %v2263_v33 }
 0xe11   :  { %v11257_v34 = vpop.eup %11256 }
 0xe12   :  { %v11259_v35 = vpop.eup %11258  ;;  %v2265_v36 = vadd.f32 1.0, %v11257_v34 }
 0xe13   :  { %v11261_v37 = vpop.eup %11260  ;;  %v2267_v38 = vadd.f32 1.0, %v11259_v35  ;;  %v10852_v35 = vld [vmem:[#allocation8 + $0xc0] ss:$12 sps:$4 sm:$0xff]  }
 0xe14   :  { %v11263_v39 = vpop.eup %11262  ;;  %11272 = vrcp.f32 %v2265_v36  ;;  %v2266_v6 = vadd.f32 1.0, %v11261_v37  ;;  %v10854_v36 = vld [vmem:[#allocation8 + $0xc4] ss:$12 sps:$4 sm:$0xff]   ;;  %v10855_v37 = vld [vmem:[#allocation8 + $0xc8] ss:$12 sps:$4 sm:$0xff]  }
 0xe15   :  { %v11265_v42 = vpop.eup %11264  ;;  %11274 = vrcp.f32 %v2267_v38  ;;  %v2268_v44 = vadd.f32 1.0, %v11263_v39  ;;  %v10858_v38 = vld [vmem:[#allocation8 + $0xdc] ss:$12 sps:$4 sm:$0xff]   ;;  %2870 = vmatprep.subr.bf16.mxu0 %v10854_v36  ;;  %v10859_v39 = vld [vmem:[#allocation8 + $0xe0] ss:$12 sps:$4 sm:$0xff]  }
 0xe16   :  { %v11267_v46 = vpop.eup %11266  ;;  %11276 = vrcp.f32 %v2266_v6  ;;  %v2269_v47 = vadd.f32 1.0, %v11265_v42  ;;  %v10856_v6 = vld [vmem:[#allocation8 + $0xd8] ss:$12 sps:$4 sm:$0xff]  }
 0xe17   :  { %v11269_v49 = vpop.eup %11268  ;;  %11278 = vrcp.f32 %v2268_v44  ;;  %v2271_v50 = vadd.f32 1.0, %v11267_v46 }
 0xe18   :  { %v11271_v52 = vpop.eup %11270  ;;  %11280 = vrcp.f32 %v2269_v47  ;;  %v2270_v53 = vadd.f32 1.0, %v11269_v49 }
 0xe19   :  { %11282 = vrcp.f32 %v2271_v50  ;;  %v2272_v55 = vadd.f32 1.0, %v11271_v52  ;;  %v10862_v52 = vld [vmem:[#allocation8 + $0xf4] ss:$12 sps:$4 sm:$0xff]  }
 0xe1a   :  { %11284 = vrcp.f32 %v2270_v53  ;;  %v10860_v53 = vld [vmem:[#allocation8 + $0xf0] ss:$12 sps:$4 sm:$0xff]  }
 0xe1b   :  { %11286 = vrcp.f32 %v2272_v55  ;;  %v10863_v55 = vld [vmem:[#allocation8 + $0xf8] ss:$12 sps:$4 sm:$0xff]  }
 0xe1e   :  { %v11273_v56 = vpop.eup %11272 }
 0xe1f   :  { %v11275_v57 = vpop.eup %11274  ;;  %v2289_v2 = vmul.f32 %v11273_v56, %v12615_v58  ;;  %v10866_v56 = vld [vmem:[#allocation8 + $0x10c] ss:$12 sps:$4 sm:$0xff]  }
 0xe20   :  { %v11277_v60 = vpop.eup %11276  ;;  %v2291_v4 = vmul.f32 %v11275_v57, %v12617_v62  ;;  %v10864_v57 = vld [vmem:[#allocation8 + $0x108] ss:$12 sps:$4 sm:$0xff]  }
 0xe21   :  { %v11279_v61 = vpop.eup %11278  ;;  %v2290_v11 = vmul.f32 %v11277_v60, %v12619_v5  ;;  %v9045_v5 = vld [vmem:[#allocation17] ss:$0 sm:$0xff]  ;;  %v10867_v60 = vld [vmem:[#allocation8 + $0x110] ss:$12 sps:$4 sm:$0xff]  }
 0xe22   :  { %v11281_v0 = vpop.eup %11280  ;;  %v2292_v19 = vmul.f32 %v11279_v61, %v12621_v7  ;;  %v10870_v61 = vld [vmem:[#allocation8 + $0x124] ss:$12 sps:$4 sm:$0xff]  }
 0xe23   :  { %v11283_v1 = vpop.eup %11282  ;;  %v2293_v3 = vmul.f32 %v11281_v0, %v2186_v13  ;;  %v10868_v0 = vld [vmem:[#allocation8 + $0x120] ss:$12 sps:$4 sm:$0xff]  }
 0xe24   :  { %v11285_v63 = vpop.eup %11284  ;;  %v2295_v8 = vmul.f32 %v11283_v1, %v2229_v14  ;;  %v10871_v1 = vld [vmem:[#allocation8 + $0x128] ss:$12 sps:$4 sm:$0xff]  }
 0xe25   :  { %v11287_v10 = vpop.eup %11286  ;;  %v2297_v12 = vpack.c.bf16 %v2293_v3, %v2289_v2  ;;  %v2294_v15 = vmul.f32 %v11285_v63, %v2188_v22  ;;  %v10874_v2 = vld [vmem:[#allocation8 + $0x13c] ss:$12 sps:$4 sm:$0xff]   ;;  %v10872_v3 = vld [vmem:[#allocation8 + $0x138] ss:$12 sps:$4 sm:$0xff]   ;;  %v10875_v63 = vld [vmem:[#allocation8 + $0x140] ss:$12 sps:$4 sm:$0xff]  }
 0xe26   :  { %v2299_v20 = vpack.c.bf16 %v2295_v8, %v2291_v4  ;;  %v2296_v21 = vmul.f32 %v11287_v10, %v2231_v23  ;;  %v10878_v4 = vld [vmem:[#allocation8 + $0x154] ss:$12 sps:$4 sm:$0xff]   ;;  %v10876_v8 = vld [vmem:[#allocation8 + $0x150] ss:$12 sps:$4 sm:$0xff]   ;;  %v10879_v10 = vld [vmem:[#allocation8 + $0x158] ss:$12 sps:$4 sm:$0xff]  }
 0xe27   :  { %v2298_v48 = vpack.c.bf16 %v2294_v15, %v2290_v11  ;;  %v10882_v11 = vld [vmem:[#allocation8 + $0x16c] ss:$12 sps:$4 sm:$0xff]   ;;  %v10883_v15 = vld [vmem:[#allocation8 + $0x170] ss:$12 sps:$4 sm:$0xff]  }
 0xe28   :  { %v2300_v24 = vpack.c.bf16 %v2296_v21, %v2292_v19 }
 0xe29   :  { %2596 = vmatprep.mubr.bf16.mxu0 %v2298_v48 }
 0xe2a   :  { %2637 = vmatprep.mubr.bf16.mxu1 %v2300_v24  ;;  %2597 = vmatmul.mubr.bf16.vlgmr.msra.gmra.mrb[24].mxu0 %v2297_v12  ;;  %v10880_v12 = vld [vmem:[#allocation8 + $0x168] ss:$12 sps:$4 sm:$0xff]  }
 0xe2b   :  { %2638 = vmatmul.mubr.bf16.vlgmr.msra.gmra.mrb[44].mxu1 %v2299_v20  ;;  %2902 = vmatprep.mubr.bf16.mxu0 %v12031_v16 }
 0xe2c   :  { %10263 = vmatprep.mubr.msk.bf16.mxu1 %vm12032_vm0, %v12030_v54  ;;  %10248 = vmatpush3.bf16.msra.mxu1 %v10855_v37 }
 0xe2d   :  { %2871 = vmatpush1.bf16.msra.mxu0 %v10852_v35  ;;  %10249 = vmatprep.subr.bf16.mxu1 %v12030_v54 }
 0xe2e   :  { %2872 = vmatprep.subr.bf16.mxu0 %v10858_v38 }
 0xe30   :  { %10250 = vmatpush3.bf16.msra.mxu1 %v10859_v39 }
 0xe31   :  { %2873 = vmatpush1.bf16.msra.mxu0 %v10856_v6  ;;  %10251 = vmatprep.subr.bf16.mxu1 %v12030_v54 }
 0xe32   :  { %2874 = vmatprep.subr.bf16.mxu0 %v10862_v52 }
 0xe34   :  { %10252 = vmatpush3.bf16.msra.mxu1 %v10863_v55 }
 0xe35   :  { %2875 = vmatpush1.bf16.msra.mxu0 %v10860_v53  ;;  %10253 = vmatprep.subr.bf16.mxu1 %v12030_v54 }
 0xe36   :  { %2876 = vmatprep.subr.bf16.mxu0 %v10866_v56 }
 0xe38   :  { %10254 = vmatpush3.bf16.msra.mxu1 %v10867_v60 }
 0xe39   :  { %2877 = vmatpush1.bf16.msra.mxu0 %v10864_v57  ;;  %10255 = vmatprep.subr.bf16.mxu1 %v12030_v54 }
 0xe3a   :  { %2878 = vmatprep.subr.bf16.mxu0 %v10870_v61 }
 0xe3c   :  { %10256 = vmatpush3.bf16.msra.mxu1 %v10871_v1 }
 0xe3d   :  { %2879 = vmatpush1.bf16.msra.mxu0 %v10868_v0  ;;  %10257 = vmatprep.subr.bf16.mxu1 %v12030_v54 }
 0xe3e   :  { %2880 = vmatprep.subr.bf16.mxu0 %v10874_v2 }
 0xe40   :  { %10258 = vmatpush3.bf16.msra.mxu1 %v10875_v63 }
 0xe41   :  { %2881 = vmatpush1.bf16.msra.mxu0 %v10872_v3  ;;  %10259 = vmatprep.subr.bf16.mxu1 %v12030_v54 }
 0xe42   :  { %2882 = vmatprep.subr.bf16.mxu0 %v10878_v4 }
 0xe44   :  { %10260 = vmatpush3.bf16.msra.mxu1 %v10879_v10 }
 0xe45   :  { %2883 = vmatpush1.bf16.msra.mxu0 %v10876_v8  ;;  %10261 = vmatprep.subr.bf16.mxu1 %v12030_v54 }
 0xe46   :  { %2884 = vmatprep.subr.bf16.mxu0 %v10882_v11 }
 0xe48   :  { %10262 = vmatpush3.bf16.msra.mxu1 %v10883_v15 }
 0xe49   :  { %2885 = vmatpush1.bf16.msra.mxu0 %v10880_v12  ;;  %10273 = vmatprep.subr.bf16.mxu1 %v12030_v54 }
 0xe4a   :  { %10267 = vmatprep.subr.bf16.mxu0 %v12030_v54 }
 0xefd   :  { %v9824_v58 = vpop.f32.mrb[24].mxu0 }
 0xefe   :  { %v9846_v62 = vpop.f32.mrb[44].mxu1  ;;  %v9825_v13 = vpop.f32.mrb[25].mxu0 }
 0xeff   :  { %v9826_v14 = vadd.f32 %v9825_v13, %v9824_v58  ;;  %v9847_v22 = vpop.f32.mrb[45].mxu1  ;;  %v9827_v7 = vpop.f32.mrb[26].mxu0 }
 0xf00   :  { %v9848_v51 = vadd.f32 %v9847_v22, %v9846_v62  ;;  %v9849_v23 = vpop.f32.mrb[46].mxu1  ;;  %v9828_v25 = vpop.f32.mrb[27].mxu0 }
 0xf01   :  { %v2599_v26 = vadd.f32 %v9826_v14, %v9045_v5  ;;  %v9829_v27 = vadd.f32 %v9828_v25, %v9827_v7  ;;  %v9850_v28 = vpop.f32.mrb[47].mxu1 }
 0xf02   :  { %v9851_v29 = vadd.f32 %v9850_v28, %v9849_v23  ;;  %v2725_v28 = vld [vmem:[#allocation9 + $0x3] sm:$0x7] }
 0xf03   :  { %v2640_v30 = vadd.f32 %v9848_v51, %v2599_v26  ;;  %v2602_v31 = vadd.f32 %v9829_v27, %v9045_v5  ;;  %v9080_v5 = vld [vmem:[%s13680_s24 + $0x1] ss:$0 sm:$0xff]  ;;  %v2738_v36 = vrot.slane %v2725_v28, %v12415_v43 }
 0xf04   :  { %v9081_v51 = vld [vmem:[%s13681_s12 + $0x1] ss:$0 sm:$0xff] }
 0xf05   :  { %v2643_v32 = vadd.f32 %v9851_v29, %v2602_v31  ;;  %v12635_v33 = vadd.f32 %v2640_v30, %v12525_v17  ;;  %v2734_v29 = vrot.slane %v2725_v28, %v12412_v41 }
 0xf07   :  { %2652 = vadd.xlane.f32.xlu0 %v12635_v33  ;;  %v12639_v34 = vadd.f32 %v2643_v32, %v12528_v18 }
 0xf09   :  { %2654 = vadd.xlane.f32.xlu1 %v12639_v34 }
 0xf94   :  { %v2653_v17 = vpop.xlane.xlu0 %2652 }
 0xf95   :  { %v2656_v18 = vmul.f32 0.0078125, %v2653_v17 }
 0xf96   :  { %v2655_v42 = vpop.xlane.xlu1 %2654 }
 0xf97   :  { %v2657_v44 = vmul.f32 0.0078125, %v2655_v42  ;;  %v2658_v46 = vsub.f32 %v12635_v33, %v2656_v18  ;;  %v2730_v18 = vrot.slane %v2725_v28, %v12419_v45 }
 0xf99   :  { %v2659_v47 = vsub.f32 %v12639_v34, %v2657_v44  ;;  %v2660_v49 = vmul.f32 %v2658_v46, %v2658_v46 }
 0xf9b   :  { %2662 = vadd.xlane.f32.xlu0 %v2660_v49  ;;  %v2661_v50 = vmul.f32 %v2659_v47, %v2659_v47 }
 0xf9d   :  { %2664 = vadd.xlane.f32.xlu1 %v2661_v50 }
0x1028   :  { %v2663_v19 = vpop.xlane.xlu0 %2662 }
0x1029   :  { %v2666_v20 = vmul.f32 0.0078125, %v2663_v19 }
0x102a   :  { %v2665_v21 = vpop.xlane.xlu1 %2664 }
0x102b   :  { %v2668_v48 = vadd.f32 1e-05, %v2666_v20  ;;  %v2667_v24 = vmul.f32 0.0078125, %v2665_v21 }
0x102d   :  { %11288 = vrsqrt.f32 %v2668_v48  ;;  %v2669_v58 = vadd.f32 1e-05, %v2667_v24 }
0x102f   :  { %11290 = vrsqrt.f32 %v2669_v58 }
0x1037   :  { %v11289_v62 = vpop.eup %11288 }
0x1038   :  { %v2672_v13 = vmul.f32 %v11289_v62, %v2658_v46 }
0x1039   :  { %v11291_v14 = vpop.eup %11290 }
0x103a   :  { %v2673_v22 = vmul.f32 %v11291_v14, %v2659_v47  ;;  %v2680_v7 = vmul.f32 %v9080_v5, %v2672_v13 }
0x103c   :  { %v2681_v23 = vmul.f32 %v9080_v5, %v2673_v22  ;;  %v2688_v25 = vadd.f32 %v9081_v51, %v2680_v7 }
0x103e   :  { %v2689_v26 = vadd.f32 %v9081_v51, %v2681_v23 }
0x1040   :  { %v2690_v27 = vpack.c.bf16 %v2689_v26, %v2688_v25 }
0x1042   :  { %2903 = vmatmul.mubr.bf16.vlgmr.msra.gmra.mrb[28].mxu0 %v2690_v27  ;;  %10264 = vmatmul.mubr.bf16.vlgmr.msra.gmra.mrb[48].mxu1 %v2690_v27 }
0x1043   :  { %10269 = vmatprep.mubr.msk.bf16.mxu0 %vm12032_vm0, %v12030_v54  ;;  %10275 = vmatprep.mubr.msk.bf16.mxu1 %vm12032_vm0, %v12030_v54 }
0x1115   :  { %v2904_v30 = vpop.f32.mrb[28].mxu0  ;;  %v2947_v31 = vpop.f32.mrb[48].mxu1 }
0x1116   :  { %v2906_v32 = vpop.f32.mrb[29].mxu0  ;;  %v10265_v35 = vpop.f32.mrb[49].mxu1  ;;  %v2948_v46 = vadd.f32 %v2947_v31, %v2738_v36  ;;  %v2905_v50 = vadd.f32 %v2904_v30, %v2730_v18 }
0x1117   :  { %v2907_v37 = vadd.f32 %v2906_v32, %v2734_v29  ;;  %v2908_v38 = vpop.f32.mrb[30].mxu0  ;;  %v2950_v39 = vpop.f32.mrb[50].mxu1 }
0x1118   :  { %v2910_v6 = vpop.f32.mrb[31].mxu0  ;;  %v10266_v17 = vpop.f32.mrb[51].mxu1  ;;  %v2951_v52 = vadd.f32 %v2950_v39, %v2738_v36  ;;  %v12665_v55 = vpack.c.bf16 %v2948_v46, %v2948_v46  ;;  %v2909_v56 = vadd.f32 %v2908_v38, %v2730_v18  ;;  %v2971_v57 = vpack.c.bf16 %v2905_v50, %v2905_v50 }
0x1119   :  { %v2973_v42 = vpack.c.bf16 %v2907_v37, %v2907_v37  ;;  %v2911_v44 = vadd.f32 %v2910_v6, %v2734_v29 }
0x111a   :  { %v12668_v60 = vpack.c.bf16 %v2951_v52, %v2951_v52  ;;  %v3101_v61 = vsel %vm1423_vm2, %v12665_v55, 0  ;;  %v2972_v0 = vpack.c.bf16 %v2909_v56, %v2909_v56 }
0x111b   :  { %v2979_v47 = vsel %vm1294_vm1, %v2973_v42, 0  ;;  %v2974_v49 = vpack.c.bf16 %v2911_v44, %v2911_v44 }
0x111c   :  { %10268 = vmatpush3.bf16.xpose.msra.mxu0 %v2979_v47  ;;  %v3147_v1 = vsel %vm1423_vm2, %v12668_v60, 0 }
0x111d   :  { %v3025_v53 = vsel %vm1294_vm1, %v2974_v49, 0  ;;  %10279 = vmatprep.subr.bf16.mxu0 %v12030_v54 }
0x111e   :  { %10274 = vmatpush3.bf16.xpose.msra.mxu1 %v3025_v53 }
0x111f   :  { %10285 = vmatprep.subr.bf16.mxu1 %v12030_v54 }
0x1123   :  { %10270 = vmatmul.mubr.msk.bf16.vlgmr.msra.gmra.mrb[32].mxu0 %vm1294_vm1, %v2971_v57 }
0x1124   :  { %10280 = vmatpush3.bf16.msra.mxu0 %v3101_v61  ;;  %10281 = vmatprep.mubr.msk.bf16.mxu0 %vm12032_vm0, %v12030_v54 }
0x1125   :  { %10276 = vmatmul.mubr.msk.bf16.vlgmr.msra.gmra.mrb[52].mxu1 %vm1294_vm1, %v2972_v0  ;;  %10291 = vmatprep.subr.bf16.mxu0 %v12030_v54 }
0x1126   :  { %10286 = vmatpush3.bf16.msra.mxu1 %v3147_v1  ;;  %10287 = vmatprep.mubr.msk.bf16.mxu1 %vm12032_vm0, %v12030_v54 }
0x1127   :  { %10297 = vmatprep.subr.bf16.mxu1 %v12030_v54 }
0x11f6   :  { %v3015_v2 = vpop.f32.mrb[32].mxu0 }
0x11f7   :  { %v3067_v3 = vmul.f32 0.125, %v3015_v2  ;;  %v10271_v63 = vpop.f32.mrb[33].mxu0 }
0x11f8   :  { %v3018_v4 = vpop.f32.mrb[34].mxu0  ;;  %v3061_v8 = vpop.f32.mrb[52].mxu1 }
0x11f9   :  { %v3068_v10 = vmul.f32 0.125, %v3061_v8  ;;  %v10272_v11 = vpop.f32.mrb[35].mxu0  ;;  %v10277_v12 = vpop.f32.mrb[53].mxu1  ;;  %v3069_v15 = vsel %vm971_vm3, %v3067_v3, -1e+09 }
0x11fa   :  { %v3064_v19 = vpop.f32.mrb[54].mxu1  ;;  %v3071_v20 = vsel %vm1393_vm4, %v3069_v15, -inf }
0x11fb   :  { %v10278_v21 = vpop.f32.mrb[55].mxu1  ;;  %3072 = vmax.xlane.f32.xlu0 %v3071_v20  ;;  %v3070_v48 = vsel %vm971_vm3, %v3068_v10, -1e+09 }
0x11fc   :  { %v3074_v24 = vsel %vm1393_vm4, %v3070_v48, -inf }
0x11fd   :  { %3075 = vmax.xlane.f32.xlu1 %v3074_v24 }
0x120e   :  { %3246 = vrot.lane.b32.xlu1 %v2974_v49, %s12013_s18 }
0x1288   :  { %v3073_v58 = vpop.xlane.xlu0 %3072 }
0x1289   :  { %v3077_v62 = vsub.f32 %v3069_v15, %v3073_v58 }
0x128a   :  { %v3076_v5 = vpop.xlane.xlu1 %3075 }
0x128b   :  { %v3079_v13 = vmul.f32 1.442695, %v3077_v62  ;;  %v3078_v14 = vsub.f32 %v3070_v48, %v3076_v5 }
0x128d   :  { %11292 = vpow2.f32 %v3079_v13  ;;  %v3081_v22 = vmul.f32 1.442695, %v3078_v14 }
0x128e   :  { %v3247_v26 = vpop.permute.xlu1 %3246 }
0x128f   :  { %11294 = vpow2.f32 %v3081_v22  ;;  %v3252_v39 = vsel %vm1294_vm1, %v3247_v26, 0 }
0x1297   :  { %v11293_v7 = vpop.eup %11292 }
0x1298   :  { %v3083_v51 = vsel %vm1393_vm4, %v11293_v7, 0.0 }
0x1299   :  { %v11295_v23 = vpop.eup %11294  ;;  %3084 = vadd.xlane.f32.xlu0 %v3083_v51 }
0x129a   :  { %v3086_v25 = vsel %vm1393_vm4, %v11295_v23, 0.0 }
0x129b   :  { %3087 = vadd.xlane.f32.xlu1 %v3086_v25 }
0x12ac   :  { %3191 = vrot.lane.b32.xlu1 %v2971_v57, %s12013_s18 }
0x12af   :  { %3194 = vrot.lane.b32.xlu0 %v2973_v42, %s12013_s18 }
0x12b0   :  { %3243 = vrot.lane.b32.xlu1 %v2972_v0, %s12013_s18 }
0x1326   :  { %v3085_v27 = vpop.xlane.xlu0 %3084 }
0x1327   :  { %11296 = vrcp.f32 %v3085_v27 }
0x1328   :  { %v3088_v28 = vpop.xlane.xlu1 %3087 }
0x1329   :  { %11298 = vrcp.f32 %v3088_v28  ;;  %v10888_v28 = vld [vmem:[%s13682_s30 + $0x60] sm:$0xff]  }
0x132a   :  { %v3195_v32 = vpop.permute.xlu0 %3194 }
0x132b   :  { %v3200_v37 = vsel %vm1294_vm1, %v3195_v32, 0 }
0x132c   :  { %v3192_v6 = vpop.permute.xlu1 %3191 }
0x1330   :  { %v3244_v17 = vpop.permute.xlu1 %3243 }
0x1331   :  { %v11297_v29 = vpop.eup %11296 }
0x1332   :  { %v3091_v30 = vmul.f32 %v11297_v29, %v11293_v7 }
0x1333   :  { %v11299_v31 = vpop.eup %11298 }
0x1334   :  { %v3092_v35 = vmul.f32 %v11299_v31, %v11295_v23  ;;  %v3093_v36 = vpack.c.bf16 %v3091_v30, %v3091_v30 }
0x1336   :  { %10282 = vmatmul.mubr.msk.bf16.vlgmr.msra.gmra.mrb[36].mxu0 %vm1393_vm4, %v3093_v36  ;;  %v3094_v38 = vpack.c.bf16 %v3092_v35, %v3092_v35  ;;  %v10889_v35 = vld [vmem:[%s13682_s30 + $0x68] sm:$0xff]  }
0x1337   :  { %10292 = vmatpush3.bf16.xpose.msra.mxu0 %v3200_v37  ;;  %10293 = vmatprep.mubr.msk.bf16.mxu0 %vm12032_vm0, %v12030_v54  ;;  %v10885_v36 = vld [vmem:[%s13682_s30 + $0x48] sm:$0xff]   ;;  %v10886_v37 = vld [vmem:[%s13682_s30 + $0x50] sm:$0xff]  }
0x1338   :  { %10288 = vmatmul.mubr.msk.bf16.vlgmr.msra.gmra.mrb[56].mxu1 %vm1393_vm4, %v3094_v38  ;;  %10303 = vmatprep.subr.bf16.mxu0 %v12030_v54  ;;  %v10887_v38 = vld [vmem:[%s13682_s30 + $0x58] sm:$0xff]  }
0x1339   :  { %10298 = vmatpush3.bf16.xpose.msra.mxu1 %v3252_v39  ;;  %10299 = vmatprep.mubr.msk.bf16.mxu1 %vm12032_vm0, %v12030_v54  ;;  %v10890_v39 = vld [vmem:[%s13682_s30 + $0x70] sm:$0xff]  }
0x133a   :  { %10309 = vmatprep.subr.bf16.mxu1 %v12030_v54 }
0x133e   :  { %10294 = vmatmul.mubr.msk.bf16.vlgmr.msra.gmra.mrb[40].mxu0 %vm1294_vm1, %v3192_v6  ;;  %v10891_v6 = vld [vmem:[%s13682_s30 + $0x78] sm:$0xff]  }
0x133f   :  { %10305 = vmatprep.mubr.msk.bf16.mxu0 %vm12032_vm0, %v12030_v54 }
0x1340   :  { %10300 = vmatmul.mubr.msk.bf16.vlgmr.msra.gmra.mrb[60].mxu1 %vm1294_vm1, %v3244_v17 }
0x1341   :  { %10311 = vmatprep.mubr.msk.bf16.mxu1 %vm12032_vm0, %v12030_v54 }
0x1409   :  { %v12710_v18 = vpop.f32.mrb[36].mxu0 }
0x140a   :  { %v10283_v42 = vpop.f32.mrb[37].mxu0 }
0x140b   :  { %v3140_v44 = vpop.f32.mrb[38].mxu0  ;;  %v12712_v46 = vpop.f32.mrb[56].mxu1 }
0x140c   :  { %v3189_v47 = vpack.c.bf16 %v12712_v46, %v12710_v18  ;;  %v10284_v49 = vpop.f32.mrb[39].mxu0  ;;  %v10289_v50 = vpop.f32.mrb[57].mxu1 }
0x140d   :  { %v3186_v52 = vpop.f32.mrb[58].mxu1 }
0x140e   :  { %v10290_v53 = vpop.f32.mrb[59].mxu1 }
0x1411   :  { %v3236_v56 = vpop.f32.mrb[40].mxu0 }
0x1412   :  { %v3294_v57 = vmul.f32 0.125, %v3236_v56  ;;  %v10295_v61 = vpop.f32.mrb[41].mxu0 }
0x1413   :  { %v3239_v0 = vpop.f32.mrb[42].mxu0  ;;  %v3288_v1 = vpop.f32.mrb[60].mxu1 }
0x1414   :  { %v3295_v2 = vmul.f32 0.125, %v3288_v1  ;;  %v10296_v3 = vpop.f32.mrb[43].mxu0  ;;  %v10301_v63 = vpop.f32.mrb[61].mxu1  ;;  %v3296_v4 = vsel %vm971_vm3, %v3294_v57, -1e+09 }
0x1415   :  { %v3291_v8 = vpop.f32.mrb[62].mxu1  ;;  %v3298_v10 = vsel %vm1393_vm4, %v3296_v4, -inf  ;;  %v9140_v63 = vld [vmem:[#allocation11 + $0x1] ss:$0 sm:$0xff] }
0x1416   :  { %v10302_v11 = vpop.f32.mrb[63].mxu1  ;;  %3299 = vmax.xlane.f32.xlu0 %v3298_v10  ;;  %v3297_v12 = vsel %vm971_vm3, %v3295_v2, -1e+09 }
0x1417   :  { %v3301_v15 = vsel %vm1393_vm4, %v3297_v12, -inf }
0x1418   :  { %3302 = vmax.xlane.f32.xlu1 %v3301_v15 }
0x1429   :  { %3372 = vrot.lane.b32.xlu1 %v12668_v60, %s12013_s18 }
0x14a3   :  { %v3300_v19 = vpop.xlane.xlu0 %3299 }
0x14a4   :  { %v3304_v20 = vsub.f32 %v3296_v4, %v3300_v19  ;;  %v10892_v19 = vld [vmem:[%s13683_s1 + $0x100] ss:$16 sps:$4 sm:$0xff]  }
0x14a5   :  { %v3303_v21 = vpop.xlane.xlu1 %3302 }
0x14a6   :  { %v3306_v48 = vmul.f32 1.442695, %v3304_v20  ;;  %v3305_v24 = vsub.f32 %v3297_v12, %v3303_v21  ;;  %v10894_v20 = vld [vmem:[%s13683_s1 + $0x104] ss:$16 sps:$4 sm:$0xff]   ;;  %v10895_v21 = vld [vmem:[%s13683_s1 + $0x108] ss:$16 sps:$4 sm:$0xff]  }
0x14a8   :  { %11300 = vpow2.f32 %v3306_v48  ;;  %v3308_v58 = vmul.f32 1.442695, %v3305_v24  ;;  %v10897_v48 = vld [vmem:[%s13683_s1 + $0x10c] ss:$16 sps:$4 sm:$0xff]   ;;  %v10900_v24 = vld [vmem:[%s13683_s1 + $0x124] ss:$16 sps:$4 sm:$0xff]  }
0x14a9   :  { %v3373_v62 = vpop.permute.xlu1 %3372 }
0x14aa   :  { %11302 = vpow2.f32 %v3308_v58  ;;  %v3378_v5 = vsel %vm1423_vm2, %v3373_v62, 0  ;;  %v10898_v58 = vld [vmem:[%s13683_s1 + $0x120] ss:$16 sps:$4 sm:$0xff]  }
0x14ab   :  { %10310 = vmatpush3.bf16.msra.mxu1 %v3378_v5 }
0x14ac   :  { %10327 = vmatprep.subr.bf16.mxu1 %v12030_v54 }
0x14b2   :  { %v11301_v13 = vpop.eup %11300 }
0x14b3   :  { %v3310_v14 = vsel %vm1393_vm4, %v11301_v13, 0.0 }
0x14b4   :  { %v11303_v22 = vpop.eup %11302  ;;  %3311 = vadd.xlane.f32.xlu0 %v3310_v14 }
0x14b5   :  { %v3313_v60 = vsel %vm1393_vm4, %v11303_v22, 0.0 }
0x14b8   :  { %3314 = vadd.xlane.f32.xlu0 %v3313_v60 }
0x14ce   :  { %3323 = vrot.lane.b32.xlu0 %v12665_v55, %s12013_s18  ;;  %v10884_v55 = vld [vmem:[%s13682_s30 + $0x40] sm:$0xff]  }
0x1541   :  { %v3312_v7 = vpop.xlane.xlu0 %3311 }
0x1542   :  { %11304 = vrcp.f32 %v3312_v7 }
0x1545   :  { %v3315_v51 = vpop.xlane.xlu0 %3314 }
0x1546   :  { %11306 = vrcp.f32 %v3315_v51 }
0x1549   :  { %v3324_v23 = vpop.permute.xlu0 %3323 }
0x154a   :  { %v3329_v25 = vsel %vm1423_vm2, %v3324_v23, 0  ;;  %v12786_v23 = vld [vmem:[%s13685_s28] sm:$0xff] }
0x154b   :  { %10304 = vmatpush3.bf16.msra.mxu0 %v3329_v25  ;;  %v12789_v25 = vld [vmem:[%s13685_s28 + $0x8] sm:$0xff] }
0x154c   :  { %v11305_v26 = vpop.eup %11304  ;;  %10315 = vmatprep.subr.bf16.mxu0 %v12030_v54 }
0x154d   :  { %v3318_v27 = vmul.f32 %v11305_v26, %v11301_v13  ;;  %v12793_v26 = vld [vmem:[%s13685_s28 + $0x10] sm:$0xff] }
0x154f   :  { %v3320_v29 = vpack.c.bf16 %v3318_v27, %v3318_v27  ;;  %v10906_v27 = vld [vmem:[%s13683_s1 + $0x144] ss:$16 sps:$4 sm:$0xff]  }
0x1550   :  { %v11307_v30 = vpop.eup %11306 }
0x1551   :  { %v3319_v31 = vmul.f32 %v11307_v30, %v11303_v22  ;;  %10306 = vmatmul.mubr.msk.bf16.vlgmr.msra.gmra.mrb[44].mxu0 %vm1393_vm4, %v3320_v29  ;;  %v10904_v29 = vld [vmem:[%s13683_s1 + $0x140] ss:$16 sps:$4 sm:$0xff]   ;;  %v10907_v30 = vld [vmem:[%s13683_s1 + $0x148] ss:$16 sps:$4 sm:$0xff]  }
0x1552   :  { %10316 = vmatpush3.bf16.msra.mxu0 %v10888_v28  ;;  %10323 = vmatprep.mubr.msk.bf16.mxu0 %vm12032_vm0, %v12030_v54  ;;  %v10909_v28 = vld [vmem:[%s13683_s1 + $0x14c] ss:$16 sps:$4 sm:$0xff]  }
0x1553   :  { %v3321_v32 = vpack.c.bf16 %v3319_v31, %v3319_v31  ;;  %10317 = vmatprep.subr.bf16.mxu0 %v12030_v54  ;;  %v10912_v31 = vld [vmem:[%s13683_s1 + $0x164] ss:$16 sps:$4 sm:$0xff]  }
0x1555   :  { %10312 = vmatmul.mubr.msk.bf16.vlgmr.msra.gmra.mrb[64].mxu1 %vm1393_vm4, %v3321_v32  ;;  %v10910_v32 = vld [vmem:[%s13683_s1 + $0x160] ss:$16 sps:$4 sm:$0xff]  }
0x1556   :  { %10328 = vmatpush3.bf16.msra.mxu1 %v10884_v55  ;;  %10335 = vmatprep.mubr.msk.bf16.mxu1 %vm12032_vm0, %v12030_v54  ;;  %v10915_v55 = vld [vmem:[%s13683_s1 + $0x16c] ss:$16 sps:$4 sm:$0xff]  }
0x1557   :  { %10329 = vmatprep.subr.bf16.mxu1 %v12030_v54  ;;  %10318 = vmatpush3.bf16.msra.mxu0 %v10889_v35  ;;  %v10913_v35 = vld [vmem:[%s13683_s1 + $0x168] ss:$16 sps:$4 sm:$0xff]  }
0x1558   :  { %10319 = vmatprep.subr.bf16.mxu0 %v12030_v54 }
0x155a   :  { %10330 = vmatpush3.bf16.msra.mxu1 %v10885_v36  ;;  %v10918_v36 = vld [vmem:[%s13683_s1 + $0x184] ss:$16 sps:$4 sm:$0xff]  }
0x155b   :  { %10331 = vmatprep.subr.bf16.mxu1 %v12030_v54  ;;  %10320 = vmatpush3.bf16.msra.mxu0 %v10890_v39  ;;  %v10919_v39 = vld [vmem:[%s13683_s1 + $0x188] ss:$16 sps:$4 sm:$0xff]  }
0x155c   :  { %10321 = vmatprep.subr.bf16.mxu0 %v12030_v54 }
0x155e   :  { %10332 = vmatpush3.bf16.msra.mxu1 %v10886_v37  ;;  %v10921_v37 = vld [vmem:[%s13683_s1 + $0x18c] ss:$16 sps:$4 sm:$0xff]  }
0x155f   :  { %10333 = vmatprep.subr.bf16.mxu1 %v12030_v54  ;;  %10322 = vmatpush3.bf16.msra.mxu0 %v10891_v6  ;;  %v10924_v6 = vld [vmem:[%s13683_s1 + $0x1a4] ss:$16 sps:$4 sm:$0xff]  }
0x1560   :  { %3828 = vmatprep.subr.bf16.mxu0 %v10894_v20 }
0x1562   :  { %10334 = vmatpush3.bf16.msra.mxu1 %v10887_v38  ;;  %v10916_v38 = vld [vmem:[%s13683_s1 + $0x180] ss:$16 sps:$4 sm:$0xff]  }
0x1563   :  { %3871 = vmatprep.subr.bf16.mxu1 %v10897_v48 }
0x1565   :  { %10336 = vmatmul.mubr.msk.bf16.vlgmr.msra.gmra.mrb[68].mxu1 %vm1294_vm1, %v3189_v47 }
0x1566   :  { %3903 = vmatprep.mubr.bf16.mxu1 %v12031_v16  ;;  %3872 = vmatpush1.bf16.msra.mxu1 %v10895_v21 }
0x1624   :  { %v3365_v17 = vpop.f32.mrb[44].mxu0 }
0x1625   :  { %v10307_v42 = vpop.f32.mrb[45].mxu0 }
0x1626   :  { %v3368_v44 = vpop.f32.mrb[46].mxu0  ;;  %v10922_v42 = vld [vmem:[%s13683_s1 + $0x1a0] ss:$16 sps:$4 sm:$0xff]  }
0x1627   :  { %v10308_v49 = vpop.f32.mrb[47].mxu0  ;;  %v10925_v44 = vld [vmem:[%s13683_s1 + $0x1a8] ss:$16 sps:$4 sm:$0xff]  }
0x1628   :  { %v3414_v50 = vpop.f32.mrb[64].mxu1  ;;  %v10930_v49 = vld [vmem:[%s13683_s1 + $0x1c4] ss:$16 sps:$4 sm:$0xff]  }
0x1629   :  { %v3420_v52 = vpack.c.bf16 %v3414_v50, %v3365_v17  ;;  %v10313_v53 = vpop.f32.mrb[65].mxu1  ;;  %v10927_v17 = vld [vmem:[%s13683_s1 + $0x1ac] ss:$16 sps:$4 sm:$0xff]  }
0x162a   :  { %v3417_v56 = vpop.f32.mrb[66].mxu1  ;;  %v10933_v50 = vld [vmem:[%s13683_s1 + $0x1cc] ss:$16 sps:$4 sm:$0xff]   ;;  %v10931_v53 = vld [vmem:[%s13683_s1 + $0x1c8] ss:$16 sps:$4 sm:$0xff]  }
0x162b   :  { %v10314_v57 = vpop.f32.mrb[67].mxu1  ;;  %10324 = vmatmul.mubr.msk.bf16.vlgmr.msra.gmra.mrb[48].mxu0 %vm1294_vm1, %v3420_v52  ;;  %v10928_v52 = vld [vmem:[%s13683_s1 + $0x1c0] ss:$16 sps:$4 sm:$0xff]   ;;  %v10936_v56 = vld [vmem:[%s13683_s1 + $0x1e4] ss:$16 sps:$4 sm:$0xff]  }
0x162c   :  { %3860 = vmatprep.mubr.bf16.mxu0 %v12031_v16  ;;  %3829 = vmatpush1.bf16.msra.mxu0 %v10892_v19  ;;  %v10939_v57 = vld [vmem:[%s13683_s1 + $0x1ec] ss:$16 sps:$4 sm:$0xff]  }
0x162d   :  { %3830 = vmatprep.subr.bf16.mxu0 %v10900_v24 }
0x1630   :  { %3831 = vmatpush1.bf16.msra.mxu0 %v10898_v58 }
0x1631   :  { %3832 = vmatprep.subr.bf16.mxu0 %v10906_v27 }
0x1634   :  { %3833 = vmatpush1.bf16.msra.mxu0 %v10904_v29  ;;  %v10941_v29 = vld [vmem:[%s13684_s6 + $0x140] sm:$0xff]  }
0x1635   :  { %3834 = vmatprep.subr.bf16.mxu0 %v10912_v31  ;;  %v10945_v31 = vld [vmem:[%s13684_s6 + $0x148] sm:$0xff]  }
0x1638   :  { %v3550_v18 = vpop.f32.mrb[68].mxu1  ;;  %3835 = vmatpush1.bf16.msra.mxu0 %v10910_v32  ;;  %v10947_v32 = vld [vmem:[%s13684_s6 + $0x108] sm:$0xff]  }
0x1639   :  { %v10337_v46 = vpop.f32.mrb[69].mxu1  ;;  %3836 = vmatprep.subr.bf16.mxu0 %v10918_v36  ;;  %v10949_v36 = vld [vmem:[%s13684_s6 + $0x150] sm:$0xff]  }
0x163a   :  { %v3553_v47 = vpop.f32.mrb[70].mxu1  ;;  %v10937_v46 = vld [vmem:[%s13683_s1 + $0x1e8] ss:$16 sps:$4 sm:$0xff]  }
0x163b   :  { %v10338_v61 = vpop.f32.mrb[71].mxu1 }
0x163c   :  { %3837 = vmatpush1.bf16.msra.mxu0 %v10916_v38  ;;  %v10951_v38 = vld [vmem:[%s13684_s6 + $0x110] sm:$0xff]  }
0x163d   :  { %3838 = vmatprep.subr.bf16.mxu0 %v10924_v6  ;;  %v10953_v6 = vld [vmem:[%s13684_s6 + $0x158] sm:$0xff]  }
0x1640   :  { %3839 = vmatpush1.bf16.msra.mxu0 %v10922_v42  ;;  %v10955_v42 = vld [vmem:[%s13684_s6 + $0x118] sm:$0xff]  }
0x1641   :  { %3840 = vmatprep.subr.bf16.mxu0 %v10930_v49  ;;  %v10957_v49 = vld [vmem:[%s13684_s6 + $0x160] sm:$0xff]  }
0x1644   :  { %3841 = vmatpush1.bf16.msra.mxu0 %v10928_v52  ;;  %v10959_v52 = vld [vmem:[%s13684_s6 + $0x120] sm:$0xff]  }
0x1645   :  { %3842 = vmatprep.subr.bf16.mxu0 %v10936_v56  ;;  %v10961_v56 = vld [vmem:[%s13684_s6 + $0x168] sm:$0xff]  }
0x16fe   :  { %v3482_v0 = vpop.f32.mrb[48].mxu0 }
0x16ff   :  { %v3551_v1 = vadd.f32 %v3550_v18, %v3482_v0  ;;  %v10325_v2 = vpop.f32.mrb[49].mxu0  ;;  %v10934_v18 = vld [vmem:[%s13683_s1 + $0x1e0] ss:$16 sps:$4 sm:$0xff]  }
0x1700   :  { %v3485_v3 = vpop.f32.mrb[50].mxu0  ;;  %3843 = vmatpush1.bf16.msra.mxu0 %v10934_v18  ;;  %v10963_v18 = vld [vmem:[%s13684_s6 + $0x128] sm:$0xff]  }
0x1701   :  { %v3557_v4 = vadd.f32 %v3551_v1, %v12635_v33  ;;  %v3554_v8 = vadd.f32 %v3553_v47, %v3485_v3  ;;  %v10326_v10 = vpop.f32.mrb[51].mxu0  ;;  %v10903_v33 = vld [vmem:[%s13683_s1 + $0x12c] ss:$16 sps:$4 sm:$0xff]   ;;  %9887 = vmatprep.subr.bf16.mxu0 %v10941_v29 }
0x1702   :  { %3873 = vmatprep.subr.bf16.mxu1 %v10903_v33 }
0x1703   :  { %v3558_v11 = vadd.f32 %v3554_v8, %v12639_v34  ;;  %v12761_v12 = vadd.f32 %v9140_v63, %v3557_v4  ;;  %v10901_v34 = vld [vmem:[%s13683_s1 + $0x128] ss:$16 sps:$4 sm:$0xff]  }
0x1704   :  { %3874 = vmatpush1.bf16.msra.mxu1 %v10901_v34 }
0x1705   :  { %3573 = vadd.xlane.f32.xlu1 %v12761_v12  ;;  %v12764_v15 = vadd.f32 %v9140_v63, %v3558_v11  ;;  %3875 = vmatprep.subr.bf16.mxu1 %v10909_v28  ;;  %v10940_v28 = vld [vmem:[%s13684_s6 + $0x1c0] sm:$0xff]  }
0x1707   :  { %3575 = vadd.xlane.f32.xlu0 %v12764_v15 }
0x1708   :  { %3876 = vmatpush1.bf16.msra.mxu1 %v10907_v30  ;;  %v10944_v30 = vld [vmem:[%s13684_s6 + $0x1c8] sm:$0xff]  }
0x1709   :  { %3877 = vmatprep.subr.bf16.mxu1 %v10915_v55  ;;  %v10946_v55 = vld [vmem:[%s13684_s6 + $0x188] sm:$0xff]  }
0x170c   :  { %3878 = vmatpush1.bf16.msra.mxu1 %v10913_v35  ;;  %v10948_v35 = vld [vmem:[%s13684_s6 + $0x1d0] sm:$0xff]  }
0x170d   :  { %3879 = vmatprep.subr.bf16.mxu1 %v10921_v37  ;;  %v10950_v37 = vld [vmem:[%s13684_s6 + $0x190] sm:$0xff]  }
0x1710   :  { %3880 = vmatpush1.bf16.msra.mxu1 %v10919_v39  ;;  %v10952_v39 = vld [vmem:[%s13684_s6 + $0x1d8] sm:$0xff]  }
0x1711   :  { %3881 = vmatprep.subr.bf16.mxu1 %v10927_v17  ;;  %v10954_v17 = vld [vmem:[%s13684_s6 + $0x198] sm:$0xff]  }
0x1714   :  { %3882 = vmatpush1.bf16.msra.mxu1 %v10925_v44  ;;  %v10956_v44 = vld [vmem:[%s13684_s6 + $0x1e0] sm:$0xff]  }
0x1715   :  { %3883 = vmatprep.subr.bf16.mxu1 %v10933_v50  ;;  %v10958_v50 = vld [vmem:[%s13684_s6 + $0x1a0] sm:$0xff]  }
0x1718   :  { %3884 = vmatpush1.bf16.msra.mxu1 %v10931_v53  ;;  %v10960_v53 = vld [vmem:[%s13684_s6 + $0x1e8] sm:$0xff]  }
0x1719   :  { %3885 = vmatprep.subr.bf16.mxu1 %v10939_v57  ;;  %v10962_v57 = vld [vmem:[%s13684_s6 + $0x1a8] sm:$0xff]  }
0x171c   :  { %3886 = vmatpush1.bf16.msra.mxu1 %v10937_v46  ;;  %v10964_v46 = vld [vmem:[%s13684_s6 + $0x1f0] sm:$0xff]  }
0x171d   :  { %9909 = vmatprep.subr.bf16.mxu1 %v10940_v28 }
0x1792   :  { %v3574_v62 = vpop.xlane.xlu1 %3573 }
0x1793   :  { %v3577_v5 = vmul.f32 0.0078125, %v3574_v62  ;;  %v9141_v62 = vld [vmem:[#allocation12 + $0x1] ss:$0 sm:$0xff] }
0x1794   :  { %v3576_v13 = vpop.xlane.xlu0 %3575 }
0x1795   :  { %v12776_v14 = vsub.f32 %v12761_v12, %v3577_v5  ;;  %v3578_v22 = vmul.f32 0.0078125, %v3576_v13 }
0x1797   :  { %v12779_v60 = vsub.f32 %v12764_v15, %v3578_v22  ;;  %v3581_v7 = vmul.f32 %v12776_v14, %v12776_v14 }
0x1799   :  { %3583 = vadd.xlane.f32.xlu0 %v3581_v7  ;;  %v3582_v51 = vmul.f32 %v12779_v60, %v12779_v60 }
0x179b   :  { %3585 = vadd.xlane.f32.xlu1 %v3582_v51  ;;  %v9142_v51 = vld [vmem:[#allocation14 + $0x1] ss:$0 sm:$0xff] }
0x179d   :  { %4507 = vadd.xlane.f32.xlu0 %v12786_v23 }
0x179f   :  { %4509 = vadd.xlane.f32.xlu1 %v12789_v25 }
0x17a1   :  { %4511 = vadd.xlane.f32.xlu0 %v12793_v26 }
0x1826   :  { %v3584_v47 = vpop.xlane.xlu0 %3583 }
0x1827   :  { %v3587_v61 = vmul.f32 0.0078125, %v3584_v47  ;;  %v10965_v47 = vld [vmem:[%s13684_s6 + $0x170] sm:$0xff]  }
0x1828   :  { %v3586_v0 = vpop.xlane.xlu1 %3585 }
0x1829   :  { %v3589_v1 = vadd.f32 1e-05, %v3587_v61  ;;  %v3588_v2 = vmul.f32 0.0078125, %v3586_v0  ;;  %v10966_v61 = vld [vmem:[%s13684_s6 + $0x1b0] sm:$0xff]  }
0x182a   :  { %v4508_v3 = vpop.xlane.xlu0 %4507  ;;  %v10967_v0 = vld [vmem:[%s13684_s6 + $0x130] sm:$0xff]  }
0x182b   :  { %11308 = vrsqrt.f32 %v3589_v1  ;;  %v3590_v63 = vadd.f32 1e-05, %v3588_v2  ;;  %v4513_v4 = vmul.f32 0.0078125, %v4508_v3  ;;  %v10968_v1 = vld [vmem:[%s13684_s6 + $0x1f8] sm:$0xff]  }
0x182c   :  { %v4510_v8 = vpop.xlane.xlu1 %4509  ;;  %v10969_v2 = vld [vmem:[%s13684_s6 + $0x178] sm:$0xff]  }
0x182d   :  { %11310 = vrsqrt.f32 %v3590_v63  ;;  %v12822_v10 = vsub.f32 %v12786_v23, %v4513_v4  ;;  %v4514_v11 = vmul.f32 0.0078125, %v4510_v8  ;;  %v10970_v3 = vld [vmem:[%s13684_s6 + $0x1b8] sm:$0xff]   ;;  %v3646_v8 = vld [vmem:[#allocation15 + $0x4] sm:$0xf] }
0x182e   :  { %v4512_v19 = vpop.xlane.xlu0 %4511  ;;  %v10971_v63 = vld [vmem:[%s13684_s6 + $0x138] sm:$0xff]  }
0x182f   :  { %v12825_v20 = vsub.f32 %v12789_v25, %v4514_v11  ;;  %v4519_v21 = vmul.f32 %v12822_v10, %v12822_v10  ;;  %v4515_v48 = vmul.f32 0.0078125, %v4512_v19  ;;  %v10974_v4 = vld [vmem:[#allocation21 + $0x4] ss:$12 sps:$4 sm:$0xff]   ;;  %v3651_v11 = vrot.slane %v3646_v8, %v12419_v45 }
0x1830   :  { %v3659_v19 = vrot.slane %v3646_v8, %v12415_v43 }
0x1831   :  { %4522 = vadd.xlane.f32.xlu1 %v4519_v21  ;;  %v4520_v24 = vmul.f32 %v12825_v20, %v12825_v20  ;;  %v12832_v33 = vsub.f32 %v12793_v26, %v4515_v48  ;;  %v3655_v21 = vrot.slane %v3646_v8, %v12412_v41  ;;  %v3663_v48 = vrot.slane %v3646_v8, %v12609_v59 }
0x1833   :  { %4524 = vadd.xlane.f32.xlu0 %v4520_v24  ;;  %v4521_v58 = vmul.f32 %v12832_v33, %v12832_v33 }
0x1835   :  { %v11309_v34 = vpop.eup %11308  ;;  %4526 = vadd.xlane.f32.xlu1 %v4521_v58 }
0x1836   :  { %v3593_v5 = vmul.f32 %v11309_v34, %v12776_v14  ;;  %v10942_v14 = vld [vmem:[%s13684_s6 + $0x180] sm:$0xff]  }
0x1837   :  { %v11311_v13 = vpop.eup %11310 }
0x1838   :  { %v3594_v22 = vmul.f32 %v11311_v13, %v12779_v60  ;;  %v3601_v7 = vmul.f32 %v9141_v62, %v3593_v5  ;;  %v10943_v60 = vld [vmem:[%s13684_s6 + $0x100] sm:$0xff]  }
0x183a   :  { %v3602_v23 = vmul.f32 %v9141_v62, %v3594_v22  ;;  %v3609_v25 = vadd.f32 %v9142_v51, %v3601_v7 }
0x183c   :  { %v3610_v26 = vadd.f32 %v9142_v51, %v3602_v23 }
0x183e   :  { %v3611_v27 = vpack.c.bf16 %v3610_v26, %v3609_v25 }
0x1840   :  { %3861 = vmatmul.mubr.bf16.vlgmr.msra.gmra.mrb[52].mxu0 %v3611_v27  ;;  %3904 = vmatmul.mubr.bf16.vlgmr.msra.gmra.mrb[72].mxu1 %v3611_v27 }
0x1841   :  { %9910 = vmatpush3.bf16.msra.mxu1 %v10942_v14  ;;  %9888 = vmatpush3.bf16.msra.mxu0 %v10943_v60 }
0x1842   :  { %9911 = vmatprep.subr.bf16.mxu1 %v10944_v30  ;;  %9889 = vmatprep.subr.bf16.mxu0 %v10945_v31 }
0x1845   :  { %9912 = vmatpush3.bf16.msra.mxu1 %v10946_v55  ;;  %9890 = vmatpush3.bf16.msra.mxu0 %v10947_v32 }
0x1846   :  { %9913 = vmatprep.subr.bf16.mxu1 %v10948_v35  ;;  %9891 = vmatprep.subr.bf16.mxu0 %v10949_v36 }
0x1849   :  { %9914 = vmatpush3.bf16.msra.mxu1 %v10950_v37  ;;  %9892 = vmatpush3.bf16.msra.mxu0 %v10951_v38 }
0x184a   :  { %9915 = vmatprep.subr.bf16.mxu1 %v10952_v39  ;;  %9893 = vmatprep.subr.bf16.mxu0 %v10953_v6 }
0x184d   :  { %9916 = vmatpush3.bf16.msra.mxu1 %v10954_v17  ;;  %9894 = vmatpush3.bf16.msra.mxu0 %v10955_v42 }
0x184e   :  { %9917 = vmatprep.subr.bf16.mxu1 %v10956_v44  ;;  %9895 = vmatprep.subr.bf16.mxu0 %v10957_v49 }
0x1851   :  { %9918 = vmatpush3.bf16.msra.mxu1 %v10958_v50  ;;  %9896 = vmatpush3.bf16.msra.mxu0 %v10959_v52 }
0x1852   :  { %9919 = vmatprep.subr.bf16.mxu1 %v10960_v53  ;;  %9897 = vmatprep.subr.bf16.mxu0 %v10961_v56 }
0x1855   :  { %9920 = vmatpush3.bf16.msra.mxu1 %v10962_v57  ;;  %9898 = vmatpush3.bf16.msra.mxu0 %v10963_v18 }
0x1856   :  { %9921 = vmatprep.subr.bf16.mxu1 %v10964_v46  ;;  %9899 = vmatprep.subr.bf16.mxu0 %v10965_v47 }
0x1859   :  { %9922 = vmatpush3.bf16.msra.mxu1 %v10966_v61  ;;  %9900 = vmatpush3.bf16.msra.mxu0 %v10967_v0 }
0x185a   :  { %9923 = vmatprep.subr.bf16.mxu1 %v10968_v1  ;;  %9901 = vmatprep.subr.bf16.mxu0 %v10969_v2 }
0x185d   :  { %9924 = vmatpush3.bf16.msra.mxu1 %v10970_v3  ;;  %9902 = vmatpush3.bf16.msra.mxu0 %v10971_v63 }
0x185e   :  { %10339 = vmatprep.subr.bf16.mxu0 %v12030_v54  ;;  %4737 = vmatprep.subr.bf16.mxu1 %v10974_v4 }
0x1913   :  { %v3862_v24 = vpop.f32.mrb[52].mxu0  ;;  %v3905_v58 = vpop.f32.mrb[72].mxu1 }
0x1914   :  { %v12875_v34 = vadd.f32 %v3862_v24, %v3651_v11  ;;  %v12877_v62 = vadd.f32 %v3905_v58, %v3659_v19  ;;  %v3864_v5 = vpop.f32.mrb[53].mxu0  ;;  %v3907_v13 = vpop.f32.mrb[73].mxu1 }
0x1915   :  { %v12879_v22 = vadd.f32 %v3864_v5, %v3655_v21  ;;  %v12881_v7 = vadd.f32 %v3907_v13, %v3663_v48  ;;  %v3866_v51 = vpop.f32.mrb[54].mxu0  ;;  %v3909_v23 = vpop.f32.mrb[74].mxu1 }
0x1916   :  { %v9207_v25 = vmul.f32 -1.702, %v12875_v34  ;;  %v9209_v26 = vmul.f32 -1.702, %v12877_v62  ;;  %v3867_v27 = vadd.f32 %v3866_v51, %v3651_v11  ;;  %v3910_v28 = vadd.f32 %v3909_v23, %v3659_v19  ;;  %v3868_v29 = vpop.f32.mrb[55].mxu0  ;;  %v3911_v14 = vpop.f32.mrb[75].mxu1 }
0x1917   :  { %v9208_v60 = vmul.f32 -1.702, %v12879_v22  ;;  %v9210_v30 = vmul.f32 -1.702, %v12881_v7  ;;  %v3869_v31 = vadd.f32 %v3868_v29, %v3655_v21  ;;  %v12887_v55 = vadd.f32 %v3911_v14, %v3663_v48  ;;  %v4525_v14 = vpop.xlane.xlu0 %4524 }
0x1918   :  { %v3930_v32 = vmul.f32 1.442695, %v9207_v25  ;;  %v3934_v35 = vmul.f32 1.442695, %v9209_v26  ;;  %v9211_v36 = vmul.f32 -1.702, %v3867_v27 }
0x1919   :  { %v3932_v37 = vmul.f32 1.442695, %v9208_v60  ;;  %v3936_v38 = vmul.f32 1.442695, %v9210_v30  ;;  %v9213_v39 = vmul.f32 -1.702, %v3910_v28 }
0x191a   :  { %11312 = vpow2.f32 %v3930_v32  ;;  %v3938_v6 = vmul.f32 1.442695, %v9211_v36  ;;  %v9212_v17 = vmul.f32 -1.702, %v3869_v31  ;;  %v9214_v42 = vmul.f32 -1.702, %v12887_v55 }
0x191b   :  { %11314 = vpow2.f32 %v3934_v35  ;;  %v3942_v44 = vmul.f32 1.442695, %v9213_v39 }
0x191c   :  { %11316 = vpow2.f32 %v3932_v37  ;;  %v3940_v49 = vmul.f32 1.442695, %v9212_v17  ;;  %v3944_v50 = vmul.f32 1.442695, %v9214_v42  ;;  %v10977_v17 = vld [vmem:[#allocation21 + $0x1c] ss:$12 sps:$4 sm:$0xff]  }
0x191d   :  { %11318 = vpow2.f32 %v3936_v38  ;;  %v4523_v38 = vpop.xlane.xlu1 %4522 }
0x191e   :  { %11320 = vpow2.f32 %v3938_v6  ;;  %v4529_v6 = vmul.f32 0.0078125, %v4525_v14 }
0x191f   :  { %11322 = vpow2.f32 %v3942_v44  ;;  %v10978_v44 = vld [vmem:[#allocation21 + $0x30] ss:$12 sps:$4 sm:$0xff]  }
0x1920   :  { %11324 = vpow2.f32 %v3940_v49  ;;  %v10983_v49 = vld [vmem:[#allocation21 + $0x4c] ss:$12 sps:$4 sm:$0xff]  }
0x1921   :  { %11326 = vpow2.f32 %v3944_v50 }
0x1924   :  { %v11313_v52 = vpop.eup %11312 }
0x1925   :  { %v11315_v53 = vpop.eup %11314  ;;  %v3946_v56 = vadd.f32 1.0, %v11313_v52  ;;  %v10981_v52 = vld [vmem:[#allocation21 + $0x48] ss:$12 sps:$4 sm:$0xff]  }
0x1926   :  { %v11317_v57 = vpop.eup %11316  ;;  %v3948_v18 = vadd.f32 1.0, %v11315_v53  ;;  %v10986_v53 = vld [vmem:[#allocation21 + $0x64] ss:$12 sps:$4 sm:$0xff]  }
0x1927   :  { %v11319_v46 = vpop.eup %11318  ;;  %11328 = vrcp.f32 %v3946_v56  ;;  %v3947_v47 = vadd.f32 1.0, %v11317_v57  ;;  %v10984_v56 = vld [vmem:[#allocation21 + $0x60] ss:$12 sps:$4 sm:$0xff]   ;;  %v10989_v57 = vld [vmem:[#allocation21 + $0x7c] ss:$12 sps:$4 sm:$0xff]  }
0x1928   :  { %v11321_v61 = vpop.eup %11320  ;;  %11330 = vrcp.f32 %v3948_v18  ;;  %v3949_v0 = vadd.f32 1.0, %v11319_v46 }
0x1929   :  { %v11323_v1 = vpop.eup %11322  ;;  %11332 = vrcp.f32 %v3947_v47  ;;  %v3950_v2 = vadd.f32 1.0, %v11321_v61  ;;  %v10987_v47 = vld [vmem:[#allocation21 + $0x78] ss:$12 sps:$4 sm:$0xff]  }
0x192a   :  { %v11325_v3 = vpop.eup %11324  ;;  %11334 = vrcp.f32 %v3949_v0  ;;  %v3952_v63 = vadd.f32 1.0, %v11323_v1  ;;  %v10992_v0 = vld [vmem:[#allocation21 + $0x94] ss:$12 sps:$4 sm:$0xff]  }
0x192b   :  { %v11327_v4 = vpop.eup %11326  ;;  %11336 = vrcp.f32 %v3950_v2  ;;  %v3951_v8 = vadd.f32 1.0, %v11325_v3  ;;  %v10990_v2 = vld [vmem:[#allocation21 + $0x90] ss:$12 sps:$4 sm:$0xff]  }
0x192c   :  { %11338 = vrcp.f32 %v3952_v63  ;;  %v3953_v11 = vadd.f32 1.0, %v11327_v4  ;;  %v9322_v3 = vld [vmem:[#allocation20] ss:$0 sm:$0xff]  ;;  %v10995_v63 = vld [vmem:[#allocation21 + $0xac] ss:$12 sps:$4 sm:$0xff]  }
0x192d   :  { %11340 = vrcp.f32 %v3951_v8 }
0x192e   :  { %11342 = vrcp.f32 %v3953_v11 }
0x1931   :  { %v11329_v19 = vpop.eup %11328 }
0x1932   :  { %v11331_v21 = vpop.eup %11330  ;;  %v3970_v13 = vmul.f32 %v11329_v19, %v12875_v34  ;;  %v10993_v19 = vld [vmem:[#allocation21 + $0xa8] ss:$12 sps:$4 sm:$0xff]  }
0x1933   :  { %v11333_v48 = vpop.eup %11332  ;;  %v3972_v25 = vmul.f32 %v11331_v21, %v12877_v62  ;;  %v4528_v62 = vmul.f32 0.0078125, %v4523_v38  ;;  %v9323_v21 = vld [vmem:[%s13686_s13] ss:$0 sm:$0xff] }
0x1934   :  { %v11335_v24 = vpop.eup %11334  ;;  %v3971_v60 = vmul.f32 %v11333_v48, %v12879_v22  ;;  %v4532_v22 = vadd.f32 1e-05, %v4529_v6 }
0x1935   :  { %v11337_v58 = vpop.eup %11336  ;;  %v3973_v35 = vmul.f32 %v11335_v24, %v12881_v7  ;;  %v10975_v7 = vld [vmem:[#allocation21 + $0x18] ss:$12 sps:$4 sm:$0xff]  }
0x1936   :  { %v11339_v5 = vpop.eup %11338  ;;  %v3974_v51 = vmul.f32 %v11337_v58, %v3867_v27  ;;  %v10972_v27 = vld [vmem:[#allocation21] ss:$12 sps:$4 sm:$0xff]   ;;  %11344 = vrsqrt.f32 %v4532_v22 }
0x1937   :  { %v11341_v23 = vpop.eup %11340  ;;  %v3976_v26 = vmul.f32 %v11339_v5, %v3910_v28  ;;  %v4527_v28 = vpop.xlane.xlu1 %4526 }
0x1938   :  { %v11343_v29 = vpop.eup %11342  ;;  %v3978_v30 = vpack.c.bf16 %v3974_v51, %v3970_v13  ;;  %v3975_v32 = vmul.f32 %v11341_v23, %v3869_v31  ;;  %v10980_v31 = vld [vmem:[#allocation21 + $0x34] ss:$12 sps:$4 sm:$0xff]   ;;  %v4530_v42 = vmul.f32 0.0078125, %v4527_v28  ;;  %v9279_v23 = vld [vmem:[#allocation17 + $0x1] ss:$0 sm:$0xff] }
0x1939   :  { %v3980_v36 = vpack.c.bf16 %v3976_v26, %v3972_v25  ;;  %v3977_v37 = vmul.f32 %v11343_v29, %v12887_v55  ;;  %v4531_v55 = vadd.f32 1e-05, %v4528_v62  ;;  %v12916_v28 = vld [vmem:[#allocation23] sm:$0x7] }
0x193a   :  { %v3979_v39 = vpack.c.bf16 %v3975_v32, %v3971_v60  ;;  %v4533_v50 = vadd.f32 1e-05, %v4530_v42 }
0x193b   :  { %v3981_v34 = vpack.c.bf16 %v3977_v37, %v3973_v35  ;;  %11346 = vrsqrt.f32 %v4531_v55 }
0x193c   :  { %4279 = vmatprep.mubr.bf16.mxu0 %v3979_v39  ;;  %11348 = vrsqrt.f32 %v4533_v50 }
0x193d   :  { %4320 = vmatprep.mubr.bf16.mxu1 %v3981_v34  ;;  %4280 = vmatmul.mubr.bf16.vlgmr.msra.gmra.mrb[56].mxu0 %v3978_v30 }
0x193e   :  { %4321 = vmatmul.mubr.bf16.vlgmr.msra.gmra.mrb[76].mxu1 %v3980_v36  ;;  %10355 = vmatprep.mubr.msk.bf16.mxu0 %vm12032_vm0, %v12030_v54 }
0x193f   :  { %4738 = vmatpush1.bf16.msra.mxu1 %v10972_v27  ;;  %4769 = vmatprep.mubr.bf16.mxu1 %v12031_v16 }
0x1940   :  { %4739 = vmatprep.subr.bf16.mxu1 %v10977_v17  ;;  %v11345_v18 = vpop.eup %11344 }
0x1941   :  { %v4538_v61 = vmul.f32 %v11345_v18, %v12825_v20 }
0x1943   :  { %4740 = vmatpush1.bf16.msra.mxu1 %v10975_v7  ;;  %v4547_v4 = vmul.f32 %v9322_v3, %v4538_v61 }
0x1944   :  { %4741 = vmatprep.subr.bf16.mxu1 %v10980_v31  ;;  %v4601_v31 = vrot.slane %v12916_v28, %v12412_v41 }
0x1945   :  { %v11347_v46 = vpop.eup %11346  ;;  %v4556_v48 = vadd.f32 %v9323_v21, %v4547_v4 }
0x1946   :  { %v4537_v1 = vmul.f32 %v11347_v46, %v12822_v10  ;;  %v11349_v8 = vpop.eup %11348 }
0x1947   :  { %4742 = vmatpush1.bf16.msra.mxu1 %v10978_v44  ;;  %v4539_v24 = vmul.f32 %v11349_v8, %v12832_v33 }
0x1948   :  { %4743 = vmatprep.subr.bf16.mxu1 %v10983_v49  ;;  %v4546_v11 = vmul.f32 %v9322_v3, %v4537_v1 }
0x1949   :  { %v4548_v10 = vmul.f32 %v9322_v3, %v4539_v24 }
0x194a   :  { %v4555_v20 = vadd.f32 %v9323_v21, %v4546_v11 }
0x194b   :  { %4744 = vmatpush1.bf16.msra.mxu1 %v10981_v52  ;;  %v4557_v5 = vadd.f32 %v9323_v21, %v4548_v10 }
0x194c   :  { %4745 = vmatprep.subr.bf16.mxu1 %v10986_v53  ;;  %v12902_v58 = vpack.c.bf16 %v4556_v48, %v4555_v20 }
0x194d   :  { %v12907_v13 = vpack.c.bf16 %v4557_v5, %v4557_v5 }
0x194f   :  { %4746 = vmatpush1.bf16.msra.mxu1 %v10984_v56 }
0x1950   :  { %4747 = vmatprep.subr.bf16.mxu1 %v10989_v57 }
0x1953   :  { %4748 = vmatpush1.bf16.msra.mxu1 %v10987_v47 }
0x1954   :  { %4749 = vmatprep.subr.bf16.mxu1 %v10992_v0 }
0x1957   :  { %4750 = vmatpush1.bf16.msra.mxu1 %v10990_v2 }
0x1958   :  { %4751 = vmatprep.subr.bf16.mxu1 %v10995_v63 }
0x195b   :  { %4752 = vmatpush1.bf16.msra.mxu1 %v10993_v19 }
0x195c   :  { %10379 = vmatprep.subr.bf16.mxu1 %v12030_v54 }
0x195e   :  { %4770 = vmatmul.mubr.bf16.vlgmr.msra.gmra.mrb[80].mxu1 %v12902_v58 }
0x195f   :  { %4779 = vmatprep.mubr.bf16.mxu1 %v12031_v16 }
0x1966   :  { %4780 = vmatmul.mubr.bf16.gmra.mrb[84].mxu1 %v12907_v13 }
0x1967   :  { %10381 = vmatprep.mubr.msk.bf16.mxu1 %vm12032_vm0, %v12030_v54 }
0x1a10   :  { %v9903_v33 = vpop.f32.mrb[56].mxu0 }
0x1a11   :  { %v9925_v51 = vpop.f32.mrb[76].mxu1  ;;  %v9904_v25 = vpop.f32.mrb[57].mxu0 }
0x1a12   :  { %v9905_v26 = vadd.f32 %v9904_v25, %v9903_v33  ;;  %v9926_v29 = vpop.f32.mrb[77].mxu1  ;;  %v9906_v14 = vpop.f32.mrb[58].mxu0 }
0x1a13   :  { %v9927_v60 = vadd.f32 %v9926_v29, %v9925_v51  ;;  %v9928_v30 = vpop.f32.mrb[78].mxu1  ;;  %v9907_v32 = vpop.f32.mrb[59].mxu0  ;;  %v10997_v29 = vld [vmem:[#allocation18 + $0x8] sm:$0xff]  }
0x1a14   :  { %v4282_v35 = vadd.f32 %v9905_v26, %v9279_v23  ;;  %v9908_v36 = vadd.f32 %v9907_v32, %v9906_v14  ;;  %v9929_v37 = vpop.f32.mrb[79].mxu1  ;;  %v10996_v26 = vld [vmem:[#allocation18] sm:$0xff]   ;;  %v10998_v14 = vld [vmem:[#allocation18 + $0x10] sm:$0xff]   ;;  %v11001_v32 = vld [vmem:[#allocation18 + $0x28] sm:$0xff]  }
0x1a15   :  { %v9930_v38 = vadd.f32 %v9929_v37, %v9928_v30  ;;  %10340 = vmatpush3.bf16.msra.mxu0 %v10996_v26  ;;  %v11000_v30 = vld [vmem:[#allocation18 + $0x20] sm:$0xff]   ;;  %v11004_v37 = vld [vmem:[#allocation21 + $0x8] ss:$12 sps:$4 sm:$0xff]  }
0x1a16   :  { %v4323_v39 = vadd.f32 %v9927_v60, %v4282_v35  ;;  %v4285_v6 = vadd.f32 %v9908_v36, %v9279_v23  ;;  %10341 = vmatprep.subr.bf16.mxu0 %v12030_v54  ;;  %v10999_v60 = vld [vmem:[#allocation18 + $0x18] sm:$0xff]   ;;  %v11002_v35 = vld [vmem:[#allocation18 + $0x30] sm:$0xff]  }
0x1a17   :  { %v11003_v36 = vld [vmem:[#allocation18 + $0x38] sm:$0xff]  }
0x1a18   :  { %v4326_v34 = vadd.f32 %v9930_v38, %v4285_v6  ;;  %v4329_v17 = vadd.f32 %v4323_v39, %v12761_v12  ;;  %v4597_v12 = vrot.slane %v12916_v28, %v12419_v45 }
0x1a19   :  { %10342 = vmatpush3.bf16.msra.mxu0 %v10997_v29 }
0x1a1a   :  { %v4330_v27 = vadd.f32 %v4326_v34, %v12764_v15  ;;  %10343 = vmatprep.subr.bf16.mxu0 %v12030_v54 }
0x1a1c   :  { %v4335_v62 = vrot.slane %v4330_v27, 7 }
0x1a1d   :  { %10344 = vmatpush3.bf16.msra.mxu0 %v10998_v14 }
0x1a1e   :  { %v4337_v22 = vsel %vm4336_vm5, %v4335_v62, %v4329_v17  ;;  %10345 = vmatprep.subr.bf16.mxu0 %v12030_v54 }
0x1a1f   :  { %v4340_v7 = vsel %vm4339_vm6, %v4337_v22, 0.0 }
0x1a20   :  { %4341 = vadd.xlane.f32.xlu0 %v4340_v7 }
0x1a21   :  { %10346 = vmatpush3.bf16.msra.mxu0 %v10999_v60 }
0x1a22   :  { %10347 = vmatprep.subr.bf16.mxu0 %v12030_v54 }
0x1a25   :  { %10348 = vmatpush3.bf16.msra.mxu0 %v11000_v30  ;;  %v11005_v30 = vld [vmem:[#allocation21 + $0x20] ss:$12 sps:$4 sm:$0xff]  }
0x1a26   :  { %10349 = vmatprep.subr.bf16.mxu0 %v12030_v54 }
0x1a29   :  { %10350 = vmatpush3.bf16.msra.mxu0 %v11001_v32  ;;  %v11008_v32 = vld [vmem:[#allocation21 + $0x68] ss:$12 sps:$4 sm:$0xff]  }
0x1a2a   :  { %10351 = vmatprep.subr.bf16.mxu0 %v12030_v54 }
0x1a2d   :  { %10352 = vmatpush3.bf16.msra.mxu0 %v11002_v35  ;;  %v11009_v35 = vld [vmem:[#allocation21 + $0x80] ss:$12 sps:$4 sm:$0xff]  }
0x1a2e   :  { %10353 = vmatprep.subr.bf16.mxu0 %v12030_v54 }
0x1a31   :  { %v4771_v55 = vpop.f32.mrb[80].mxu1  ;;  %10354 = vmatpush3.bf16.msra.mxu0 %v11003_v36  ;;  %v11010_v36 = vld [vmem:[#allocation21 + $0x98] ss:$12 sps:$4 sm:$0xff]  }
0x1a32   :  { %v4773_v42 = vpop.f32.mrb[81].mxu1  ;;  %v4772_v56 = vadd.f32 %v4771_v55, %v4597_v12  ;;  %10359 = vmatprep.subr.bf16.mxu0 %v11004_v37 }
0x1a33   :  { %v4774_v44 = vadd.f32 %v4773_v42, %v4601_v31  ;;  %v4775_v49 = vpop.f32.mrb[82].mxu1 }
0x1a34   :  { %v4777_v15 = vpop.f32.mrb[83].mxu1  ;;  %v12929_v0 = vpack.c.bf16 %v4772_v56, %v4772_v56  ;;  %v4776_v3 = vadd.f32 %v4775_v49, %v4597_v12 }
0x1a35   :  { %v12922_v50 = vpack.c.bf16 %v4774_v44, %v4774_v44  ;;  %v4778_v53 = vadd.f32 %v4777_v15, %v4601_v31 }
0x1a36   :  { %v12940_v4 = vpack.c.bf16 %v4776_v3, %v4776_v3 }
0x1a37   :  { %v4862_v52 = vsel %vm1294_vm1, %v12922_v50, 0  ;;  %v12927_v46 = vpack.c.bf16 %v4778_v53, %v4778_v53 }
0x1a38   :  { %10380 = vmatpush3.bf16.xpose.msra.mxu1 %v4862_v52 }
0x1a39   :  { %v4781_v57 = vpop.f32.mrb[84].mxu1  ;;  %10385 = vmatprep.subr.bf16.mxu1 %v12030_v54  ;;  %v4908_v1 = vsel %vm1294_vm1, %v12927_v46, 0 }
0x1a3a   :  { %v4783_v18 = vpop.f32.mrb[85].mxu1  ;;  %v4782_v11 = vadd.f32 %v4781_v57, %v4597_v12 }
0x1a3b   :  { %v4785_v47 = vpop.f32.mrb[86].mxu1  ;;  %v4784_v2 = vadd.f32 %v4783_v18, %v4601_v31 }
0x1a3c   :  { %v4786_v61 = vpop.f32.mrb[87].mxu1  ;;  %v12949_v19 = vpack.c.bf16 %v4782_v11, %v4782_v11  ;;  %v9313_v11 = vld [vmem:[%s13690_s27] ss:$0 sm:$0xff] }
0x1a3d   :  { %v12938_v63 = vpack.c.bf16 %v4784_v2, %v4784_v2  ;;  %v9312_v2 = vld [vmem:[%s13689_s2] ss:$0 sm:$0xff] }
0x1a3f   :  { %10382 = vmatmul.mubr.msk.bf16.vlgmr.msra.gmra.mrb[88].mxu1 %vm1294_vm1, %v12929_v0  ;;  %v4954_v8 = vsel %vm1294_vm1, %v12938_v63, 0 }
0x1a40   :  { %10386 = vmatpush3.bf16.xpose.msra.mxu1 %v4908_v1  ;;  %10387 = vmatprep.mubr.msk.bf16.mxu1 %vm12032_vm0, %v12030_v54 }
0x1a41   :  { %10391 = vmatprep.subr.bf16.mxu1 %v12030_v54 }
0x1a47   :  { %10388 = vmatmul.mubr.msk.bf16.vlgmr.msra.gmra.mrb[92].mxu1 %vm1294_vm1, %v12940_v4 }
0x1a48   :  { %10392 = vmatpush3.bf16.xpose.msra.mxu1 %v4954_v8  ;;  %10393 = vmatprep.mubr.msk.bf16.mxu1 %vm12032_vm0, %v12030_v54 }
0x1a49   :  { %10403 = vmatprep.subr.bf16.mxu1 %v12030_v54 }
0x1a4f   :  { %10394 = vmatmul.mubr.msk.bf16.vlgmr.msra.gmra.mrb[96].mxu1 %vm1294_vm1, %v12949_v19 }
0x1a50   :  { %10405 = vmatprep.mubr.msk.bf16.mxu1 %vm12032_vm0, %v12030_v54 }
0x1aad   :  { %v4342_v21 = vpop.xlane.xlu0 %4341 }
0x1aae   :  { %v4343_v48 = vmul.f32 0.0078125, %v4342_v21 }
0x1ab0   :  { %v4345_v24 = vrot.slane %v4343_v48, 1  ;;  %v12955_v20 = vsub.f32 %v4329_v17, %v4343_v48 }
0x1ab2   :  { %v12957_v10 = vsub.f32 %v4330_v27, %v4345_v24  ;;  %v4350_v33 = vmul.f32 %v12955_v20, %v12955_v20 }
0x1ab4   :  { %v4351_v5 = vmul.f32 %v12957_v10, %v12957_v10 }
0x1ab6   :  { %v4354_v51 = vrot.slane %v4351_v5, 7 }
0x1ab8   :  { %v4355_v23 = vsel %vm4336_vm5, %v4354_v51, %v4350_v33 }
0x1ab9   :  { %v4357_v25 = vsel %vm4339_vm6, %v4355_v23, 0.0 }
0x1aba   :  { %4358 = vadd.xlane.f32.xlu1 %v4357_v25 }
0x1b12   :  { %v4898_v39 = vpop.f32.mrb[88].mxu1 }
0x1b13   :  { %v4996_v6 = vmul.f32 0.125, %v4898_v39  ;;  %v10383_v34 = vpop.f32.mrb[89].mxu1  ;;  %v11011_v39 = vld [vmem:[#allocation21 + $0xb0] ss:$12 sps:$4 sm:$0xff]  }
0x1b14   :  { %v4901_v27 = vpop.f32.mrb[90].mxu1 }
0x1b15   :  { %v10384_v17 = vpop.f32.mrb[91].mxu1  ;;  %v12980_v62 = vsel %vm12974_vm7, %v4996_v6, -1e+09 }
0x1b16   :  { %v5004_v22 = vsel %vm1393_vm4, %v12980_v62, -inf }
0x1b17   :  { %5005 = vmax.xlane.f32.xlu0 %v5004_v22 }
0x1b1a   :  { %v4944_v7 = vpop.f32.mrb[92].mxu1 }
0x1b1b   :  { %v4997_v31 = vmul.f32 0.125, %v4944_v7  ;;  %v10389_v55 = vpop.f32.mrb[93].mxu1 }
0x1b1c   :  { %v4947_v40 = vpop.f32.mrb[94].mxu1 }
0x1b1d   :  { %v10390_v9 = vpop.f32.mrb[95].mxu1  ;;  %v12986_v42 = vsel %vm12974_vm7, %v4997_v31, -1e+09 }
0x1b1e   :  { %v5007_v44 = vsel %vm1393_vm4, %v12986_v42, -inf }
0x1b1f   :  { %5008 = vmax.xlane.f32.xlu1 %v5007_v44 }
0x1b22   :  { %v4990_v49 = vpop.f32.mrb[96].mxu1 }
0x1b23   :  { %v4998_v15 = vmul.f32 0.125, %v4990_v49  ;;  %v10395_v12 = vpop.f32.mrb[97].mxu1 }
0x1b24   :  { %v4993_v52 = vpop.f32.mrb[98].mxu1 }
0x1b25   :  { %v10396_v53 = vpop.f32.mrb[99].mxu1  ;;  %v12992_v56 = vsel %vm12974_vm7, %v4998_v15, -1e+09  ;;  %v4605_v15 = vrot.slane %v12916_v28, %v12415_v43 }
0x1b26   :  { %v5010_v57 = vsel %vm1393_vm4, %v12992_v56, -inf }
0x1b27   :  { %5011 = vmax.xlane.f32.xlu0 %v5010_v57 }
0x1b47   :  { %v4359_v18 = vpop.xlane.xlu1 %4358 }
0x1b48   :  { %v4360_v47 = vmul.f32 0.0078125, %v4359_v18 }
0x1b4a   :  { %v4361_v61 = vadd.f32 1e-05, %v4360_v47 }
0x1b4c   :  { %11350 = vrsqrt.f32 %v4361_v61 }
0x1b56   :  { %v11351_v1 = vpop.eup %11350 }
0x1b57   :  { %v4364_v3 = vrot.slane %v11351_v1, 1  ;;  %v4367_v8 = vmul.f32 %v11351_v1, %v12955_v20  ;;  %v11006_v20 = vld [vmem:[#allocation21 + $0x38] ss:$12 sps:$4 sm:$0xff]  }
0x1b59   :  { %v4368_v21 = vmul.f32 %v4364_v3, %v12957_v10  ;;  %v4375_v48 = vmul.f32 %v9312_v2, %v4367_v8  ;;  %v11007_v10 = vld [vmem:[#allocation21 + $0x50] ss:$12 sps:$4 sm:$0xff]  }
0x1b5b   :  { %v4376_v24 = vmul.f32 %v9312_v2, %v4368_v21  ;;  %v4383_v5 = vadd.f32 %v9313_v11, %v4375_v48 }
0x1b5d   :  { %v4384_v33 = vadd.f32 %v9313_v11, %v4376_v24  ;;  %v4385_v51 = vpack.c.bf16 %v4383_v5, %v4383_v5 }
0x1b5f   :  { %v4386_v23 = vpack.c.bf16 %v4384_v33, %v4384_v33  ;;  %v4405_v26 = vunpack.c.l.b16 %v4385_v51 }
0x1b61   :  { %v4406_v25 = vunpack.c.l.b16 %v4386_v23 }
0x1b63   :  { %v4407_v29 = vrot.slane %v4406_v25, 7 }
0x1b65   :  { %v4408_v14 = vsel %vm4336_vm5, %v4407_v29, %v4405_v26 }
0x1b66   :  { %v4409_v60 = vpack.c.b16 %v4408_v14, %v4408_v14 }
0x1b68   :  { %10356 = vmatmul.mubr.bf16.vlgmr.msra.gmra.mrb[60].mxu0 %v4409_v60 }
0x1b69   :  { %10360 = vmatpush3.bf16.msra.mxu0 %v11004_v37  ;;  %10375 = vmatprep.mubr.bf16.mxu0 %v12902_v58 }
0x1b6a   :  { %10361 = vmatprep.subr.bf16.mxu0 %v11005_v30 }
0x1b6d   :  { %10362 = vmatpush3.bf16.msra.mxu0 %v11005_v30 }
0x1b6e   :  { %10363 = vmatprep.subr.bf16.mxu0 %v11006_v20 }
0x1b71   :  { %10364 = vmatpush3.bf16.msra.mxu0 %v11006_v20 }
0x1b72   :  { %10365 = vmatprep.subr.bf16.mxu0 %v11007_v10 }
0x1b75   :  { %10366 = vmatpush3.bf16.msra.mxu0 %v11007_v10 }
0x1b76   :  { %10367 = vmatprep.subr.bf16.mxu0 %v11008_v32 }
0x1b79   :  { %10368 = vmatpush3.bf16.msra.mxu0 %v11008_v32 }
0x1b7a   :  { %10369 = vmatprep.subr.bf16.mxu0 %v11009_v35 }
0x1b7d   :  { %10370 = vmatpush3.bf16.msra.mxu0 %v11009_v35 }
0x1b7e   :  { %10371 = vmatprep.subr.bf16.mxu0 %v11010_v36 }
0x1b81   :  { %10372 = vmatpush3.bf16.msra.mxu0 %v11010_v36 }
0x1b82   :  { %10373 = vmatprep.subr.bf16.mxu0 %v11011_v39 }
0x1b85   :  { %10374 = vmatpush3.bf16.msra.mxu0 %v11011_v39 }
0x1b86   :  { %10397 = vmatprep.subr.bf16.mxu0 %v12030_v54 }
0x1b88   :  { %10376 = vmatmul.mubr.bf16.vlgmr.msra.gmra.mrb[64].mxu0 %v12907_v13 }
0x1b89   :  { %10399 = vmatprep.mubr.msk.bf16.mxu0 %vm12032_vm0, %v12030_v54 }
0x1ba4   :  { %v5006_v58 = vpop.xlane.xlu0 %5005 }
0x1ba5   :  { %v5013_v37 = vsub.f32 %v12980_v62, %v5006_v58 }
0x1ba7   :  { %v5016_v6 = vmul.f32 1.442695, %v5013_v37 }
0x1ba9   :  { %11352 = vpow2.f32 %v5016_v6 }
0x1bac   :  { %v5009_v34 = vpop.xlane.xlu1 %5008 }
0x1bad   :  { %v5014_v27 = vsub.f32 %v12986_v42, %v5009_v34 }
0x1baf   :  { %v5018_v17 = vmul.f32 1.442695, %v5014_v27 }
0x1bb1   :  { %11354 = vpow2.f32 %v5018_v17 }
0x1bb3   :  { %v11353_v22 = vpop.eup %11352 }
0x1bb4   :  { %v5022_v7 = vsel %vm1393_vm4, %v11353_v22, 0.0  ;;  %v5012_v62 = vpop.xlane.xlu0 %5011 }
0x1bb5   :  { %5023 = vadd.xlane.f32.xlu1 %v5022_v7  ;;  %v5015_v55 = vsub.f32 %v12992_v56, %v5012_v62 }
0x1bb7   :  { %v5020_v40 = vmul.f32 1.442695, %v5015_v55 }
0x1bb9   :  { %11356 = vpow2.f32 %v5020_v40 }
0x1bbb   :  { %v11355_v31 = vpop.eup %11354 }
0x1bbc   :  { %v5025_v13 = vsel %vm1393_vm4, %v11355_v31, 0.0 }
0x1bbd   :  { %5026 = vadd.xlane.f32.xlu0 %v5025_v13 }
0x1bc3   :  { %v11357_v9 = vpop.eup %11356 }
0x1bc4   :  { %v5028_v42 = vsel %vm1393_vm4, %v11357_v9, 0.0 }
0x1bc6   :  { %5239 = vrot.lane.b32.xlu1 %v12927_v46, %s12013_s18 }
0x1bca   :  { %5184 = vrot.lane.b32.xlu1 %v12929_v0, %s12013_s18 }
0x1bd3   :  { %5187 = vrot.lane.b32.xlu0 %v12922_v50, %s12013_s18 }
0x1bd7   :  { %5236 = vrot.lane.b32.xlu0 %v12940_v4, %s12013_s18 }
0x1bee   :  { %5029 = vadd.xlane.f32.xlu1 %v5028_v42 }
0x1bff   :  { %5291 = vrot.lane.b32.xlu1 %v12938_v63, %s12013_s18 }
0x1c03   :  { %5288 = vrot.lane.b32.xlu1 %v12949_v19, %s12013_s18 }
0x1c3b   :  { %v13024_v46 = vpop.f32.mrb[60].mxu0 }
0x1c3c   :  { %v10357_v50 = vpop.f32.mrb[61].mxu0 }
0x1c3d   :  { %v4496_v0 = vpop.f32.mrb[62].mxu0 }
0x1c3e   :  { %v10358_v44 = vpop.f32.mrb[63].mxu0 }
0x1c42   :  { %v5024_v4 = vpop.xlane.xlu1 %5023 }
0x1c43   :  { %11358 = vrcp.f32 %v5024_v4 }
0x1c46   :  { %v5240_v51 = vpop.permute.xlu1 %5239 }
0x1c47   :  { %v5245_v10 = vsel %vm1294_vm1, %v5240_v51, 0 }
0x1c4a   :  { %v5027_v49 = vpop.xlane.xlu0 %5026  ;;  %v5185_v23 = vpop.permute.xlu1 %5184 }
0x1c4b   :  { %11360 = vrcp.f32 %v5027_v49 }
0x1c4d   :  { %v11359_v52 = vpop.eup %11358 }
0x1c4e   :  { %v5034_v47 = vmul.f32 %v11359_v52, %v11353_v22  ;;  %v5188_v5 = vpop.permute.xlu0 %5187 }
0x1c4f   :  { %v5193_v33 = vsel %vm1294_vm1, %v5188_v5, 0 }
0x1c50   :  { %v5037_v21 = vpack.c.bf16 %v5034_v47, %v5034_v47 }
0x1c52   :  { %v5237_v32 = vpop.permute.xlu0 %5236 }
0x1c55   :  { %v11361_v18 = vpop.eup %11360 }
0x1c56   :  { %v5035_v2 = vmul.f32 %v11361_v18, %v11355_v31 }
0x1c58   :  { %v5038_v24 = vpack.c.bf16 %v5035_v2, %v5035_v2 }
0x1c5b   :  { %v10377_v12 = vpop.f32.mrb[64].mxu0 }
0x1c5c   :  { %v4822_v53 = vpop.f32.mrb[65].mxu0  ;;  %v4831_v56 = vadd.f32 %v10377_v12, %v4605_v15 }
0x1c5d   :  { %v4823_v63 = vadd.f32 %v4822_v53, %v4605_v15  ;;  %v10378_v57 = vpop.f32.mrb[66].mxu0 }
0x1c5e   :  { %v4825_v19 = vpop.f32.mrb[67].mxu0  ;;  %v13030_v3 = vpack.c.bf16 %v4831_v56, %v4831_v56 }
0x1c5f   :  { %v13028_v61 = vpack.c.bf16 %v4823_v63, %v4823_v63  ;;  %v4826_v1 = vadd.f32 %v4825_v19, %v4605_v15 }
0x1c60   :  { %v5139_v48 = vsel %vm1423_vm2, %v13030_v3, 0 }
0x1c61   :  { %v5047_v8 = vsel %vm1423_vm2, %v13028_v61, 0  ;;  %v13034_v11 = vpack.c.bf16 %v4826_v1, %v4826_v1 }
0x1c62   :  { %10398 = vmatpush3.bf16.msra.mxu0 %v5047_v8 }
0x1c63   :  { %v5093_v28 = vsel %vm1423_vm2, %v13034_v11, 0  ;;  %10409 = vmatprep.subr.bf16.mxu0 %v12030_v54 }
0x1c64   :  { %10404 = vmatpush3.bf16.msra.mxu1 %v5093_v28 }
0x1c65   :  { %10400 = vmatmul.mubr.msk.bf16.vlgmr.msra.gmra.mrb[68].mxu0 %vm1393_vm4, %v5037_v21  ;;  %10415 = vmatprep.subr.bf16.mxu1 %v12030_v54 }
0x1c66   :  { %10410 = vmatpush3.bf16.msra.mxu0 %v5139_v48  ;;  %10411 = vmatprep.mubr.msk.bf16.mxu0 %vm12032_vm0, %v12030_v54 }
0x1c67   :  { %10406 = vmatmul.mubr.msk.bf16.vlgmr.msra.gmra.mrb[100].mxu1 %vm1393_vm4, %v5038_v24  ;;  %10421 = vmatprep.subr.bf16.mxu0 %v12030_v54 }
0x1c68   :  { %10417 = vmatprep.mubr.msk.bf16.mxu1 %vm12032_vm0, %v12030_v54 }
0x1c6d   :  { %10416 = vmatpush3.bf16.xpose.msra.mxu1 %v5193_v33 }
0x1c6e   :  { %10427 = vmatprep.subr.bf16.mxu1 %v12030_v54 }
0x1c74   :  { %10418 = vmatmul.mubr.msk.bf16.vlgmr.msra.gmra.mrb[104].mxu1 %vm1294_vm1, %v5185_v23 }
0x1c75   :  { %10429 = vmatprep.mubr.msk.bf16.mxu1 %vm12032_vm0, %v12030_v54 }
0x1c7b   :  { %v5030_v25 = vpop.xlane.xlu1 %5029 }
0x1c7c   :  { %11362 = vrcp.f32 %v5030_v25 }
0x1c7f   :  { %v5292_v26 = vpop.permute.xlu1 %5291 }
0x1c80   :  { %v5297_v29 = vsel %vm1294_vm1, %v5292_v26, 0 }
0x1c81   :  { %10428 = vmatpush3.bf16.xpose.msra.mxu1 %v5297_v29 }
0x1c82   :  { %10439 = vmatprep.subr.bf16.mxu1 %v12030_v54 }
0x1c83   :  { %v5289_v30 = vpop.permute.xlu1 %5288 }
0x1c86   :  { %v11363_v14 = vpop.eup %11362 }
0x1c87   :  { %v5036_v60 = vmul.f32 %v11363_v14, %v11357_v9 }
0x1c88   :  { %10430 = vmatmul.mubr.msk.bf16.vlgmr.msra.gmra.mrb[108].mxu1 %vm1294_vm1, %v5289_v30 }
0x1c89   :  { %v5039_v20 = vpack.c.bf16 %v5036_v60, %v5036_v60  ;;  %10441 = vmatprep.mubr.msk.bf16.mxu1 %vm12032_vm0, %v12030_v54 }
0x1c8b   :  { %10412 = vmatmul.mubr.msk.bf16.vlgmr.msra.gmra.mrb[72].mxu0 %vm1393_vm4, %v5039_v20  ;;  %v11016_v20 = vld [vmem:[%s13691_s10 + $0x20] sm:$0xff]  }
0x1c8c   :  { %10422 = vmatpush3.bf16.xpose.msra.mxu0 %v5245_v10  ;;  %10423 = vmatprep.mubr.msk.bf16.mxu0 %vm12032_vm0, %v12030_v54 }
0x1c8d   :  { %10433 = vmatprep.subr.bf16.mxu0 %v12030_v54 }
0x1c93   :  { %10424 = vmatmul.mubr.msk.bf16.vlgmr.msra.gmra.mrb[76].mxu0 %vm1294_vm1, %v5237_v32 }
0x1c94   :  { %10435 = vmatprep.mubr.msk.bf16.mxu0 %vm12032_vm0, %v12030_v54 }
0x1d38   :  { %v13067_v35 = vpop.f32.mrb[68].mxu0 }
0x1d39   :  { %v10401_v36 = vpop.f32.mrb[69].mxu0 }
0x1d3a   :  { %v5086_v39 = vpop.f32.mrb[70].mxu0  ;;  %v13069_v58 = vpop.f32.mrb[100].mxu1 }
0x1d3b   :  { %v5181_v37 = vpack.c.bf16 %v13069_v58, %v13067_v35  ;;  %v10402_v6 = vpop.f32.mrb[71].mxu0  ;;  %v10407_v34 = vpop.f32.mrb[101].mxu1  ;;  %v11018_v35 = vld [vmem:[%s13691_s10 + $0x30] sm:$0xff]   ;;  %v11019_v58 = vld [vmem:[%s13691_s10 + $0x38] sm:$0xff]  }
0x1d3c   :  { %v5132_v27 = vpop.f32.mrb[102].mxu1 }
0x1d3d   :  { %v10408_v17 = vpop.f32.mrb[103].mxu1 }
0x1d47   :  { %v5229_v22 = vpop.f32.mrb[104].mxu1 }
0x1d48   :  { %v5339_v7 = vmul.f32 0.125, %v5229_v22  ;;  %v10419_v31 = vpop.f32.mrb[105].mxu1 }
0x1d49   :  { %v5232_v13 = vpop.f32.mrb[106].mxu1 }
0x1d4a   :  { %v10420_v62 = vpop.f32.mrb[107].mxu1  ;;  %v5342_v55 = vsel %vm12974_vm7, %v5339_v7, -1e+09 }
0x1d4b   :  { %v5345_v40 = vsel %vm1393_vm4, %v5342_v55, -inf }
0x1d4c   :  { %5346 = vmax.xlane.f32.xlu0 %v5345_v40 }
0x1d5b   :  { %v5333_v9 = vpop.f32.mrb[108].mxu1 }
0x1d5c   :  { %v5341_v42 = vmul.f32 0.125, %v5333_v9  ;;  %v10431_v50 = vpop.f32.mrb[109].mxu1  ;;  %v11013_v9 = vld [vmem:[%s13691_s10 + $0x8] sm:$0xff]  }
0x1d5d   :  { %v5336_v0 = vpop.f32.mrb[110].mxu1  ;;  %v11014_v50 = vld [vmem:[%s13691_s10 + $0x10] sm:$0xff]  }
0x1d5e   :  { %v13076_v44 = vpop.f32.mrb[72].mxu0  ;;  %v10432_v4 = vpop.f32.mrb[111].mxu1  ;;  %v5344_v49 = vsel %vm12974_vm7, %v5341_v42, -1e+09  ;;  %v11017_v42 = vld [vmem:[%s13691_s10 + $0x28] sm:$0xff]   ;;  %v11015_v0 = vld [vmem:[%s13691_s10 + $0x18] sm:$0xff]  }
0x1d5f   :  { %v10413_v15 = vpop.f32.mrb[73].mxu0  ;;  %v5351_v12 = vsel %vm1393_vm4, %v5344_v49, -inf  ;;  %v5182_v4 = vpack.c.bf16 %v13076_v44, %v13076_v44 }
0x1d60   :  { %v5178_v52 = vpop.f32.mrb[74].mxu0  ;;  %5352 = vmax.xlane.f32.xlu0 %v5351_v12 }
0x1d61   :  { %v10414_v53 = vpop.f32.mrb[75].mxu0 }
0x1d66   :  { %v5281_v56 = vpop.f32.mrb[76].mxu0 }
0x1d67   :  { %v5340_v63 = vmul.f32 0.125, %v5281_v56  ;;  %v10425_v57 = vpop.f32.mrb[77].mxu0 }
0x1d68   :  { %v5284_v18 = vpop.f32.mrb[78].mxu0 }
0x1d69   :  { %v10426_v19 = vpop.f32.mrb[79].mxu0  ;;  %v5343_v47 = vsel %vm12974_vm7, %v5340_v63, -1e+09 }
0x1d6a   :  { %v5348_v1 = vsel %vm1393_vm4, %v5343_v47, -inf }
0x1d6b   :  { %5349 = vmax.xlane.f32.xlu1 %v5348_v1 }
0x1d7c   :  { %5431 = vrot.lane.b32.xlu1 %v13034_v11, %s12013_s18 }
0x1dd9   :  { %v5347_v2 = vpop.xlane.xlu0 %5346 }
0x1dda   :  { %v5354_v8 = vsub.f32 %v5342_v55, %v5347_v2 }
0x1ddc   :  { %v5357_v28 = vmul.f32 1.442695, %v5354_v8 }
0x1dde   :  { %11364 = vpow2.f32 %v5357_v28 }
0x1de8   :  { %v11365_v21 = vpop.eup %11364 }
0x1de9   :  { %v5363_v48 = vsel %vm1393_vm4, %v11365_v21, 0.0 }
0x1dea   :  { %5364 = vadd.xlane.f32.xlu0 %v5363_v48 }
0x1ded   :  { %v5353_v24 = vpop.xlane.xlu0 %5352 }
0x1dee   :  { %v5356_v5 = vsub.f32 %v5344_v49, %v5353_v24 }
0x1df0   :  { %v5361_v33 = vmul.f32 1.442695, %v5356_v5 }
0x1df2   :  { %11366 = vpow2.f32 %v5361_v33 }
0x1df8   :  { %v5350_v51 = vpop.xlane.xlu1 %5349 }
0x1df9   :  { %v5355_v23 = vsub.f32 %v5343_v47, %v5350_v51 }
0x1dfb   :  { %v5359_v25 = vmul.f32 1.442695, %v5355_v23 }
0x1dfc   :  { %v11367_v26 = vpop.eup %11366  ;;  %v5432_v29 = vpop.permute.xlu1 %5431 }
0x1dfd   :  { %11368 = vpow2.f32 %v5359_v25  ;;  %v5437_v11 = vsel %vm1423_vm2, %v5432_v29, 0  ;;  %v5369_v14 = vsel %vm1393_vm4, %v11367_v26, 0.0  ;;  %v9372_v25 = vld [vmem:[#allocation24] ss:$0 sm:$0xff] }
0x1dfe   :  { %10440 = vmatpush3.bf16.msra.mxu1 %v5437_v11  ;;  %5370 = vadd.xlane.f32.xlu1 %v5369_v14  ;;  %v11525_v14 = vld [vmem:[%s13685_s28 + $0x8] sm:$0xff] }
0x1dff   :  { %10451 = vmatprep.subr.bf16.mxu1 %v11016_v20 }
0x1e07   :  { %v11369_v60 = vpop.eup %11368 }
0x1e08   :  { %v5366_v30 = vsel %vm1393_vm4, %v11369_v60, 0.0 }
0x1e09   :  { %5367 = vadd.xlane.f32.xlu0 %v5366_v30 }
0x1e0f   :  { %5480 = vrot.lane.b32.xlu1 %v13030_v3, %s12013_s18 }
0x1e1f   :  { %5382 = vrot.lane.b32.xlu0 %v13028_v61, %s12013_s18  ;;  %v11012_v61 = vld [vmem:[%s13691_s10] sm:$0xff]  }
0x1e77   :  { %v5365_v10 = vpop.xlane.xlu0 %5364 }
0x1e78   :  { %11370 = vrcp.f32 %v5365_v10 }
0x1e82   :  { %v11371_v36 = vpop.eup %11370 }
0x1e83   :  { %v5375_v6 = vmul.f32 %v11371_v36, %v11365_v21 }
0x1e85   :  { %v5378_v3 = vpack.c.bf16 %v5375_v6, %v5375_v6  ;;  %v11022_v6 = vld [vmem:[%s13692_s0 + $0x4] ss:$16 sps:$4 sm:$0xff]  }
0x1e8b   :  { %v5371_v32 = vpop.xlane.xlu1 %5370 }
0x1e8c   :  { %11372 = vrcp.f32 %v5371_v32 }
0x1e8f   :  { %v5481_v17 = vpop.permute.xlu1 %5480 }
0x1e90   :  { %v5486_v7 = vsel %vm1423_vm2, %v5481_v17, 0  ;;  %v11028_v17 = vld [vmem:[%s13692_s0 + $0x24] ss:$16 sps:$4 sm:$0xff]  }
0x1e96   :  { %v5368_v39 = vpop.xlane.xlu0 %5367  ;;  %v11373_v22 = vpop.eup %11372 }
0x1e97   :  { %11374 = vrcp.f32 %v5368_v39  ;;  %v5377_v13 = vmul.f32 %v11373_v22, %v11367_v26  ;;  %v11524_v26 = vld [vmem:[%s13685_s28] sm:$0xff]  ;;  %v11029_v22 = vld [vmem:[%s13692_s0 + $0x28] ss:$16 sps:$4 sm:$0xff]  }
0x1e98   :  { %v11020_v39 = vld [vmem:[%s13692_s0] ss:$16 sps:$4 sm:$0xff]  }
0x1e99   :  { %v5380_v40 = vpack.c.bf16 %v5377_v13, %v5377_v13 }
0x1e9a   :  { %v5383_v34 = vpop.permute.xlu0 %5382 }
0x1e9b   :  { %v5388_v27 = vsel %vm1423_vm2, %v5383_v34, 0  ;;  %v11023_v34 = vld [vmem:[%s13692_s0 + $0x8] ss:$16 sps:$4 sm:$0xff]  }
0x1e9c   :  { %10434 = vmatpush3.bf16.msra.mxu0 %v5388_v27  ;;  %v11025_v27 = vld [vmem:[%s13692_s0 + $0xc] ss:$16 sps:$4 sm:$0xff]  }
0x1e9d   :  { %10445 = vmatprep.subr.bf16.mxu0 %v12030_v54 }
0x1e9f   :  { %10436 = vmatmul.mubr.msk.bf16.vlgmr.msra.gmra.mrb[80].mxu0 %vm1393_vm4, %v5378_v3  ;;  %v11031_v3 = vld [vmem:[%s13692_s0 + $0x2c] ss:$16 sps:$4 sm:$0xff]  }
0x1ea0   :  { %10446 = vmatpush3.bf16.msra.mxu0 %v5486_v7  ;;  %10447 = vmatprep.mubr.msk.bf16.mxu0 %vm12032_vm0, %v12030_v54 }
0x1ea1   :  { %v11375_v31 = vpop.eup %11374  ;;  %10463 = vmatprep.subr.bf16.mxu0 %v11012_v61 }
0x1ea2   :  { %v5376_v62 = vmul.f32 %v11375_v31, %v11369_v60 }
0x1ea4   :  { %v5379_v55 = vpack.c.bf16 %v5376_v62, %v5376_v62 }
0x1ea6   :  { %10442 = vmatmul.mubr.msk.bf16.vlgmr.msra.gmra.mrb[112].mxu1 %vm1393_vm4, %v5379_v55 }
0x1ea7   :  { %10448 = vmatmul.mubr.msk.bf16.vlgmr.msra.gmra.mrb[84].mxu0 %vm1393_vm4, %v5380_v40  ;;  %10452 = vmatpush3.bf16.msra.mxu1 %v11016_v20  ;;  %v11526_v20 = vld [vmem:[%s13685_s28 + $0x10] sm:$0xff] }
0x1ea8   :  { %10464 = vmatpush3.bf16.msra.mxu0 %v11012_v61  ;;  %10471 = vmatprep.mubr.msk.bf16.mxu0 %vm1294_vm1, %v5181_v37  ;;  %v11026_v61 = vld [vmem:[%s13692_s0 + $0x20] ss:$16 sps:$4 sm:$0xff]  }
0x1ea9   :  { %10465 = vmatprep.subr.bf16.mxu0 %v11013_v9  ;;  %10453 = vmatprep.subr.bf16.mxu1 %v11017_v42 }
0x1eab   :  { %10454 = vmatpush3.bf16.msra.mxu1 %v11017_v42 }
0x1eac   :  { %10466 = vmatpush3.bf16.msra.mxu0 %v11013_v9  ;;  %10455 = vmatprep.subr.bf16.mxu1 %v11018_v35 }
0x1ead   :  { %10467 = vmatprep.subr.bf16.mxu0 %v11014_v50 }
0x1eaf   :  { %10456 = vmatpush3.bf16.msra.mxu1 %v11018_v35 }
0x1eb0   :  { %10468 = vmatpush3.bf16.msra.mxu0 %v11014_v50  ;;  %10457 = vmatprep.subr.bf16.mxu1 %v11019_v58 }
0x1eb1   :  { %10469 = vmatprep.subr.bf16.mxu0 %v11015_v0 }
0x1eb3   :  { %10458 = vmatpush3.bf16.msra.mxu1 %v11019_v58  ;;  %v11034_v58 = vld [vmem:[%s13692_s0 + $0x44] ss:$16 sps:$4 sm:$0xff]  }
0x1eb4   :  { %10470 = vmatpush3.bf16.msra.mxu0 %v11015_v0  ;;  %5968 = vmatprep.subr.bf16.mxu1 %v11022_v6  ;;  %v9373_v6 = vld [vmem:[#allocation26] ss:$0 sm:$0xff] }
0x1eb5   :  { %6019 = vmatprep.subr.bf16.mxu0 %v11025_v27 }
0x1eb7   :  { %10472 = vmatmul.mubr.msk.bf16.vlgmr.msra.gmra.mrb[88].mxu0 %vm1294_vm1, %v5182_v4 }
0x1eb8   :  { %6051 = vmatprep.mubr.bf16.mxu0 %v12031_v16  ;;  %6020 = vmatpush1.bf16.msra.mxu0 %v11023_v34 }
0x1eb9   :  { %6021 = vmatprep.subr.bf16.mxu0 %v11031_v3 }
0x1ebc   :  { %6022 = vmatpush1.bf16.msra.mxu0 %v11029_v22 }
0x1f72   :  { %v5424_v37 = vpop.f32.mrb[80].mxu0 }
0x1f73   :  { %v10437_v49 = vpop.f32.mrb[81].mxu0 }
0x1f74   :  { %v5427_v15 = vpop.f32.mrb[82].mxu0  ;;  %v11032_v49 = vld [vmem:[%s13692_s0 + $0x40] ss:$16 sps:$4 sm:$0xff]  }
0x1f75   :  { %v10438_v12 = vpop.f32.mrb[83].mxu0  ;;  %v11035_v15 = vld [vmem:[%s13692_s0 + $0x48] ss:$16 sps:$4 sm:$0xff]  }
0x1f76   :  { %v11040_v12 = vld [vmem:[%s13692_s0 + $0x64] ss:$16 sps:$4 sm:$0xff]  }
0x1f79   :  { %v5473_v52 = vpop.f32.mrb[112].mxu1 }
0x1f7a   :  { %v5528_v53 = vpack.c.bf16 %v5473_v52, %v5424_v37  ;;  %v10443_v56 = vpop.f32.mrb[113].mxu1  ;;  %v5522_v63 = vpop.f32.mrb[84].mxu0  ;;  %v11037_v37 = vld [vmem:[%s13692_s0 + $0x4c] ss:$16 sps:$4 sm:$0xff]  }
0x1f7b   :  { %v5529_v57 = vpack.c.bf16 %v5522_v63, %v5522_v63  ;;  %v5476_v44 = vpop.f32.mrb[114].mxu1  ;;  %v10449_v18 = vpop.f32.mrb[85].mxu0  ;;  %6023 = vmatprep.subr.bf16.mxu0 %v11037_v37  ;;  %v11043_v52 = vld [vmem:[%s13692_s0 + $0x6c] ss:$16 sps:$4 sm:$0xff]   ;;  %v11041_v56 = vld [vmem:[%s13692_s0 + $0x68] ss:$16 sps:$4 sm:$0xff]  }
0x1f7c   :  { %v10444_v19 = vpop.f32.mrb[115].mxu1  ;;  %v5525_v47 = vpop.f32.mrb[86].mxu0  ;;  %10459 = vmatprep.mubr.msk.bf16.mxu1 %vm1294_vm1, %v5528_v53  ;;  %6024 = vmatpush1.bf16.msra.mxu0 %v11035_v15  ;;  %v11038_v53 = vld [vmem:[%s13692_s0 + $0x60] ss:$16 sps:$4 sm:$0xff]   ;;  %v11046_v63 = vld [vmem:[%s13692_s0 + $0x84] ss:$16 sps:$4 sm:$0xff]  }
0x1f7d   :  { %v10450_v1 = vpop.f32.mrb[87].mxu0  ;;  %10460 = vmatmul.mubr.msk.bf16.vlgmr.msra.gmra.mrb[116].mxu1 %vm1294_vm1, %v5529_v57  ;;  %6025 = vmatprep.subr.bf16.mxu0 %v11043_v52  ;;  %v11049_v57 = vld [vmem:[%s13692_s0 + $0x8c] ss:$16 sps:$4 sm:$0xff]   ;;  %v11044_v44 = vld [vmem:[%s13692_s0 + $0x80] ss:$16 sps:$4 sm:$0xff]  }
0x1f7e   :  { %6000 = vmatprep.mubr.bf16.mxu1 %v12031_v16  ;;  %5969 = vmatpush1.bf16.msra.mxu1 %v11020_v39  ;;  %v11047_v18 = vld [vmem:[%s13692_s0 + $0x88] ss:$16 sps:$4 sm:$0xff]   ;;  %v11052_v19 = vld [vmem:[%s13692_s0 + $0xa4] ss:$16 sps:$4 sm:$0xff]   ;;  %v11055_v47 = vld [vmem:[%s13692_s0 + $0xac] ss:$16 sps:$4 sm:$0xff]  }
0x1f7f   :  { %5970 = vmatprep.subr.bf16.mxu1 %v11028_v17  ;;  %v11050_v1 = vld [vmem:[%s13692_s0 + $0xa0] ss:$16 sps:$4 sm:$0xff]   ;;  %v11073_v37 = vld [vmem:[%s13693_s14 + $0xc8] sm:$0xff]  }
0x1f80   :  { %6026 = vmatpush1.bf16.msra.mxu0 %v11041_v56  ;;  %v11075_v15 = vld [vmem:[%s13693_s14 + $0x88] sm:$0xff]   ;;  %v11077_v52 = vld [vmem:[%s13693_s14 + $0xd0] sm:$0xff]  }
0x1f81   :  { %6027 = vmatprep.subr.bf16.mxu0 %v11049_v57  ;;  %v11079_v56 = vld [vmem:[%s13693_s14 + $0x90] sm:$0xff]   ;;  %v11081_v57 = vld [vmem:[%s13693_s14 + $0xd8] sm:$0xff]  }
0x1f82   :  { %5971 = vmatpush1.bf16.msra.mxu1 %v11026_v61  ;;  %v9374_v61 = vld [vmem:[#allocation27] ss:$0 sm:$0xff] }
0x1f83   :  { %5972 = vmatprep.subr.bf16.mxu1 %v11034_v58  ;;  %v11072_v58 = vld [vmem:[%s13693_s14 + $0x48] sm:$0xff]  }
0x1f84   :  { %6028 = vmatpush1.bf16.msra.mxu0 %v11047_v18  ;;  %v11083_v18 = vld [vmem:[%s13693_s14 + $0x98] sm:$0xff]  }
0x1f85   :  { %6029 = vmatprep.subr.bf16.mxu0 %v11055_v47  ;;  %v11085_v47 = vld [vmem:[%s13693_s14 + $0xe0] sm:$0xff]  }
0x1f86   :  { %5973 = vmatpush1.bf16.msra.mxu1 %v11032_v49  ;;  %v11074_v49 = vld [vmem:[%s13693_s14 + $0x8] sm:$0xff]  }
0x1f87   :  { %5974 = vmatprep.subr.bf16.mxu1 %v11040_v12  ;;  %v11076_v12 = vld [vmem:[%s13693_s14 + $0x50] sm:$0xff]  }
0x1f8a   :  { %v10473_v2 = vpop.f32.mrb[88].mxu0  ;;  %5975 = vmatpush1.bf16.msra.mxu1 %v11038_v53  ;;  %v11078_v53 = vld [vmem:[%s13693_s14 + $0x10] sm:$0xff]  }
0x1f8b   :  { %v5672_v8 = vpop.f32.mrb[89].mxu0  ;;  %5976 = vmatprep.subr.bf16.mxu1 %v11046_v63  ;;  %v11080_v63 = vld [vmem:[%s13693_s14 + $0x58] sm:$0xff]  }
0x1f8c   :  { %v10474_v28 = vpop.f32.mrb[90].mxu0 }
0x1f8d   :  { %v5675_v21 = vpop.f32.mrb[91].mxu0  ;;  %v11061_v28 = vld [vmem:[%s13692_s0 + $0xcc] ss:$16 sps:$4 sm:$0xff]  }
0x1f8e   :  { %5977 = vmatpush1.bf16.msra.mxu1 %v11044_v44  ;;  %v11082_v44 = vld [vmem:[%s13693_s14 + $0x18] sm:$0xff]  }
0x1f8f   :  { %5978 = vmatprep.subr.bf16.mxu1 %v11052_v19  ;;  %v11084_v19 = vld [vmem:[%s13693_s14 + $0x60] sm:$0xff]  }
0x1f92   :  { %5979 = vmatpush1.bf16.msra.mxu1 %v11050_v1  ;;  %v11086_v1 = vld [vmem:[%s13693_s14 + $0x20] sm:$0xff]  }
0x2050   :  { %v10461_v48 = vpop.f32.mrb[116].mxu1 }
0x2051   :  { %v5681_v24 = vadd.f32 %v10473_v2, %v10461_v48  ;;  %v5594_v5 = vpop.f32.mrb[117].mxu1  ;;  %v11053_v2 = vld [vmem:[%s13692_s0 + $0xa8] ss:$16 sps:$4 sm:$0xff]  }
0x2052   :  { %v5673_v33 = vadd.f32 %v5672_v8, %v5594_v5  ;;  %v10462_v51 = vpop.f32.mrb[118].mxu1  ;;  %6030 = vmatpush1.bf16.msra.mxu0 %v11053_v2  ;;  %v11058_v8 = vld [vmem:[%s13692_s0 + $0xc4] ss:$16 sps:$4 sm:$0xff]   ;;  %v11059_v48 = vld [vmem:[%s13692_s0 + $0xc8] ss:$16 sps:$4 sm:$0xff]  }
0x2053   :  { %v5597_v23 = vpop.f32.mrb[119].mxu1  ;;  %v5688_v10 = vadd.f32 %v11526_v20, %v5681_v24  ;;  %5980 = vmatprep.subr.bf16.mxu1 %v11058_v8  ;;  %6031 = vmatprep.subr.bf16.mxu0 %v11061_v28  ;;  %v11064_v24 = vld [vmem:[%s13692_s0 + $0xe4] ss:$16 sps:$4 sm:$0xff]   ;;  %v11067_v5 = vld [vmem:[%s13692_s0 + $0xec] ss:$16 sps:$4 sm:$0xff]  }
0x2054   :  { %v5686_v29 = vadd.f32 %v11524_v26, %v5673_v33  ;;  %v5676_v11 = vadd.f32 %v5675_v21, %v5597_v23  ;;  %v11056_v21 = vld [vmem:[%s13692_s0 + $0xc0] ss:$16 sps:$4 sm:$0xff]   ;;  %v11065_v51 = vld [vmem:[%s13692_s0 + $0xe8] ss:$16 sps:$4 sm:$0xff]  }
0x2055   :  { %v13130_v36 = vadd.f32 %v9372_v25, %v5688_v10  ;;  %5981 = vmatpush1.bf16.msra.mxu1 %v11056_v21  ;;  %v11062_v33 = vld [vmem:[%s13692_s0 + $0xe0] ss:$16 sps:$4 sm:$0xff]   ;;  %v11088_v8 = vld [vmem:[%s13693_s14 + $0x68] sm:$0xff]  }
0x2056   :  { %v5687_v60 = vadd.f32 %v11525_v14, %v5676_v11  ;;  %v13123_v30 = vadd.f32 %v9372_v25, %v5686_v29  ;;  %6032 = vmatpush1.bf16.msra.mxu0 %v11059_v48  ;;  %5982 = vmatprep.subr.bf16.mxu1 %v11064_v24  ;;  %v11087_v2 = vld [vmem:[%s13693_s14 + $0xa0] sm:$0xff]   ;;  %v11089_v28 = vld [vmem:[%s13693_s14 + $0xe8] sm:$0xff]   ;;  %v11092_v24 = vld [vmem:[%s13693_s14 + $0x70] sm:$0xff]  }
0x2057   :  { %6033 = vmatprep.subr.bf16.mxu0 %v11067_v5  ;;  %v11090_v21 = vld [vmem:[%s13693_s14 + $0x28] sm:$0xff]   ;;  %v11093_v5 = vld [vmem:[%s13693_s14 + $0xf0] sm:$0xff]  }
0x2058   :  { %5701 = vadd.xlane.f32.xlu1 %v13123_v30  ;;  %v13127_v32 = vadd.f32 %v9372_v25, %v5687_v60  ;;  %v11091_v48 = vld [vmem:[%s13693_s14 + $0xa8] sm:$0xff]  }
0x2059   :  { %5983 = vmatpush1.bf16.msra.mxu1 %v11062_v33  ;;  %v11094_v33 = vld [vmem:[%s13693_s14 + $0x30] sm:$0xff]  }
0x205a   :  { %5703 = vadd.xlane.f32.xlu0 %v13127_v32  ;;  %6034 = vmatpush1.bf16.msra.mxu0 %v11065_v51  ;;  %v11095_v51 = vld [vmem:[%s13693_s14 + $0xb0] sm:$0xff]  }
0x205e   :  { %5705 = vadd.xlane.f32.xlu0 %v13130_v36 }
0x20e5   :  { %v5702_v7 = vpop.xlane.xlu1 %5701 }
0x20e6   :  { %v5707_v31 = vmul.f32 0.0078125, %v5702_v7 }
0x20e7   :  { %v5704_v13 = vpop.xlane.xlu0 %5703 }
0x20e8   :  { %v13142_v62 = vsub.f32 %v13123_v30, %v5707_v31  ;;  %v5708_v55 = vmul.f32 0.0078125, %v5704_v13 }
0x20ea   :  { %v13145_v40 = vsub.f32 %v13127_v32, %v5708_v55  ;;  %v5713_v9 = vmul.f32 %v13142_v62, %v13142_v62 }
0x20eb   :  { %v5706_v42 = vpop.xlane.xlu0 %5705 }
0x20ec   :  { %v5709_v50 = vmul.f32 0.0078125, %v5706_v42  ;;  %5716 = vadd.xlane.f32.xlu0 %v5713_v9  ;;  %v5714_v0 = vmul.f32 %v13145_v40, %v13145_v40 }
0x20ee   :  { %v13152_v4 = vsub.f32 %v13130_v36, %v5709_v50  ;;  %5718 = vadd.xlane.f32.xlu1 %v5714_v0  ;;  %v11068_v50 = vld [vmem:[%s13693_s14 + $0x40] sm:$0xff]  }
0x20ef   :  { %v11069_v0 = vld [vmem:[%s13693_s14 + $0xc0] sm:$0xff]   ;;  %9986 = vmatprep.subr.bf16.mxu1 %v11068_v50 }
0x20f0   :  { %v5715_v35 = vmul.f32 %v13152_v4, %v13152_v4  ;;  %10014 = vmatprep.subr.bf16.mxu0 %v11069_v0 }
0x20f2   :  { %5720 = vadd.xlane.f32.xlu0 %v5715_v35  ;;  %v11071_v35 = vld [vmem:[%s13693_s14 + $0x80] sm:$0xff]  }
0x2179   :  { %v5717_v23 = vpop.xlane.xlu0 %5716 }
0x217a   :  { %v5722_v25 = vmul.f32 0.0078125, %v5717_v23  ;;  %v11096_v23 = vld [vmem:[%s13693_s14 + $0x78] sm:$0xff]  }
0x217b   :  { %v5719_v26 = vpop.xlane.xlu1 %5718 }
0x217c   :  { %v5725_v29 = vadd.f32 1e-05, %v5722_v25  ;;  %v5723_v11 = vmul.f32 0.0078125, %v5719_v26  ;;  %v11097_v25 = vld [vmem:[%s13693_s14 + $0xf8] sm:$0xff]  }
0x217d   :  { %v11098_v26 = vld [vmem:[%s13693_s14 + $0x38] sm:$0xff]  }
0x217e   :  { %11376 = vrsqrt.f32 %v5725_v29  ;;  %v5726_v14 = vadd.f32 1e-05, %v5723_v11  ;;  %v11099_v29 = vld [vmem:[%s13693_s14 + $0xb8] sm:$0xff]   ;;  %v5786_v11 = vld [vmem:[%s13694_s4] sm:$0xf] }
0x217f   :  { %v5721_v60 = vpop.xlane.xlu0 %5720 }
0x2180   :  { %11378 = vrsqrt.f32 %v5726_v14  ;;  %v5724_v20 = vmul.f32 0.0078125, %v5721_v60  ;;  %v5791_v14 = vrot.slane %v5786_v11, %v12419_v45  ;;  %v5799_v60 = vrot.slane %v5786_v11, %v12415_v43 }
0x2182   :  { %v5727_v10 = vadd.f32 1e-05, %v5724_v20  ;;  %v5795_v20 = vrot.slane %v5786_v11, %v12412_v41 }
0x2184   :  { %11380 = vrsqrt.f32 %v5727_v10  ;;  %v5803_v10 = vrot.slane %v5786_v11, %v12609_v59 }
0x2188   :  { %v11377_v39 = vpop.eup %11376 }
0x2189   :  { %v5731_v34 = vmul.f32 %v11377_v39, %v13142_v62 }
0x218a   :  { %v11379_v27 = vpop.eup %11378 }
0x218b   :  { %v5732_v17 = vmul.f32 %v11379_v27, %v13145_v40  ;;  %v5740_v3 = vmul.f32 %v9373_v6, %v5731_v34 }
0x218d   :  { %v5741_v22 = vmul.f32 %v9373_v6, %v5732_v17  ;;  %v5749_v31 = vadd.f32 %v9374_v61, %v5740_v3 }
0x218e   :  { %v11381_v7 = vpop.eup %11380 }
0x218f   :  { %v5750_v13 = vadd.f32 %v9374_v61, %v5741_v22  ;;  %v5733_v55 = vmul.f32 %v11381_v7, %v13152_v4  ;;  %v11070_v4 = vld [vmem:[%s13693_s14] sm:$0xff]  }
0x2191   :  { %v5752_v9 = vpack.c.bf16 %v5750_v13, %v5749_v31  ;;  %v5742_v42 = vmul.f32 %v9373_v6, %v5733_v55 }
0x2193   :  { %6001 = vmatmul.mubr.bf16.vlgmr.msra.gmra.mrb[120].mxu1 %v5752_v9  ;;  %6052 = vmatmul.mubr.bf16.vlgmr.msra.gmra.mrb[92].mxu0 %v5752_v9  ;;  %v5751_v62 = vadd.f32 %v9374_v61, %v5742_v42 }
0x2194   :  { %6010 = vmatprep.mubr.bf16.mxu1 %v12031_v16  ;;  %6061 = vmatprep.mubr.bf16.mxu0 %v12031_v16 }
0x2195   :  { %v5753_v40 = vpack.c.bf16 %v5751_v62, %v5751_v62  ;;  %9987 = vmatpush3.bf16.msra.mxu1 %v11070_v4  ;;  %10015 = vmatpush3.bf16.msra.mxu0 %v11071_v35 }
0x2196   :  { %9988 = vmatprep.subr.bf16.mxu1 %v11072_v58  ;;  %10016 = vmatprep.subr.bf16.mxu0 %v11073_v37 }
0x2199   :  { %9989 = vmatpush3.bf16.msra.mxu1 %v11074_v49  ;;  %10017 = vmatpush3.bf16.msra.mxu0 %v11075_v15 }
0x219a   :  { %9990 = vmatprep.subr.bf16.mxu1 %v11076_v12  ;;  %10018 = vmatprep.subr.bf16.mxu0 %v11077_v52 }
0x219b   :  { %6011 = vmatmul.mubr.bf16.gmra.mrb[124].mxu1 %v5753_v40  ;;  %6062 = vmatmul.mubr.bf16.gmra.mrb[96].mxu0 %v5753_v40 }
0x219d   :  { %9991 = vmatpush3.bf16.msra.mxu1 %v11078_v53  ;;  %10019 = vmatpush3.bf16.msra.mxu0 %v11079_v56 }
0x219e   :  { %9992 = vmatprep.subr.bf16.mxu1 %v11080_v63  ;;  %10020 = vmatprep.subr.bf16.mxu0 %v11081_v57 }
0x21a1   :  { %9993 = vmatpush3.bf16.msra.mxu1 %v11082_v44  ;;  %10021 = vmatpush3.bf16.msra.mxu0 %v11083_v18 }
0x21a2   :  { %9994 = vmatprep.subr.bf16.mxu1 %v11084_v19  ;;  %10022 = vmatprep.subr.bf16.mxu0 %v11085_v47 }
0x21a5   :  { %9995 = vmatpush3.bf16.msra.mxu1 %v11086_v1  ;;  %10023 = vmatpush3.bf16.msra.mxu0 %v11087_v2 }
0x21a6   :  { %9996 = vmatprep.subr.bf16.mxu1 %v11088_v8  ;;  %10024 = vmatprep.subr.bf16.mxu0 %v11089_v28 }
0x21a9   :  { %9997 = vmatpush3.bf16.msra.mxu1 %v11090_v21  ;;  %10025 = vmatpush3.bf16.msra.mxu0 %v11091_v48 }
0x21aa   :  { %9998 = vmatprep.subr.bf16.mxu1 %v11092_v24  ;;  %10026 = vmatprep.subr.bf16.mxu0 %v11093_v5 }
0x21ad   :  { %9999 = vmatpush3.bf16.msra.mxu1 %v11094_v33  ;;  %10027 = vmatpush3.bf16.msra.mxu0 %v11095_v51 }
0x21ae   :  { %10000 = vmatprep.subr.bf16.mxu1 %v11096_v23  ;;  %10028 = vmatprep.subr.bf16.mxu0 %v11097_v25 }
0x21b1   :  { %10001 = vmatpush3.bf16.msra.mxu1 %v11098_v26  ;;  %10029 = vmatpush3.bf16.msra.mxu0 %v11099_v29 }
0x2266   :  { %v6002_v39 = vpop.f32.mrb[120].mxu1  ;;  %v6053_v6 = vpop.f32.mrb[92].mxu0 }
0x2267   :  { %v13222_v34 = vadd.f32 %v6002_v39, %v5791_v14  ;;  %v13224_v27 = vadd.f32 %v6053_v6, %v5799_v60  ;;  %v6004_v17 = vpop.f32.mrb[121].mxu1  ;;  %v6055_v3 = vpop.f32.mrb[93].mxu0 }
0x2268   :  { %v13226_v61 = vadd.f32 %v6004_v17, %v5795_v20  ;;  %v13228_v22 = vadd.f32 %v6055_v3, %v5803_v10  ;;  %v6006_v7 = vpop.f32.mrb[122].mxu1  ;;  %v6057_v31 = vpop.f32.mrb[94].mxu0 }
0x2269   :  { %v9407_v13 = vmul.f32 -1.702, %v13222_v34  ;;  %v9409_v55 = vmul.f32 -1.702, %v13224_v27  ;;  %v13232_v9 = vadd.f32 %v6006_v7, %v5791_v14  ;;  %v13234_v42 = vadd.f32 %v6057_v31, %v5799_v60  ;;  %v6008_v62 = vpop.f32.mrb[123].mxu1  ;;  %v6059_v40 = vpop.f32.mrb[95].mxu0 }
0x226a   :  { %v9408_v50 = vmul.f32 -1.702, %v13226_v61  ;;  %v9410_v0 = vmul.f32 -1.702, %v13228_v22  ;;  %v13238_v4 = vadd.f32 %v6008_v62, %v5795_v20  ;;  %v13240_v35 = vadd.f32 %v6059_v40, %v5803_v10 }
0x226b   :  { %v6094_v58 = vmul.f32 1.442695, %v9407_v13  ;;  %v6098_v37 = vmul.f32 1.442695, %v9409_v55  ;;  %v9411_v49 = vmul.f32 -1.702, %v13232_v9 }
0x226c   :  { %v6096_v15 = vmul.f32 1.442695, %v9408_v50  ;;  %v6100_v12 = vmul.f32 1.442695, %v9410_v0  ;;  %v9413_v52 = vmul.f32 -1.702, %v13234_v42 }
0x226d   :  { %11382 = vpow2.f32 %v6094_v58  ;;  %v6102_v53 = vmul.f32 1.442695, %v9411_v49  ;;  %v9412_v56 = vmul.f32 -1.702, %v13238_v4  ;;  %v9414_v63 = vmul.f32 -1.702, %v13240_v35 }
0x226e   :  { %11384 = vpow2.f32 %v6098_v37  ;;  %v6106_v57 = vmul.f32 1.442695, %v9413_v52  ;;  %v6012_v44 = vpop.f32.mrb[124].mxu1  ;;  %v6063_v18 = vpop.f32.mrb[96].mxu0 }
0x226f   :  { %11386 = vpow2.f32 %v6096_v15  ;;  %v6104_v19 = vmul.f32 1.442695, %v9412_v56  ;;  %v6108_v47 = vmul.f32 1.442695, %v9414_v63  ;;  %v13246_v1 = vadd.f32 %v6012_v44, %v5791_v14  ;;  %v6014_v2 = vpop.f32.mrb[125].mxu1  ;;  %v6065_v8 = vpop.f32.mrb[97].mxu0 }
0x2270   :  { %11388 = vpow2.f32 %v6100_v12  ;;  %v13248_v28 = vadd.f32 %v6063_v18, %v5799_v60  ;;  %v13250_v21 = vadd.f32 %v6014_v2, %v5795_v20  ;;  %v13252_v48 = vadd.f32 %v6065_v8, %v5803_v10  ;;  %v6016_v24 = vpop.f32.mrb[126].mxu1  ;;  %v6067_v5 = vpop.f32.mrb[98].mxu0 }
0x2271   :  { %11390 = vpow2.f32 %v6102_v53  ;;  %v9415_v33 = vmul.f32 -1.702, %v13246_v1  ;;  %v6017_v51 = vpop.f32.mrb[127].mxu1  ;;  %v6068_v23 = vpop.f32.mrb[99].mxu0 }
0x2272   :  { %11392 = vpow2.f32 %v6106_v57  ;;  %v9417_v25 = vmul.f32 -1.702, %v13248_v28  ;;  %v9416_v26 = vmul.f32 -1.702, %v13250_v21  ;;  %v9418_v29 = vmul.f32 -1.702, %v13252_v48 }
0x2273   :  { %11394 = vpow2.f32 %v6104_v19  ;;  %v6110_v11 = vmul.f32 1.442695, %v9415_v33 }
0x2274   :  { %11396 = vpow2.f32 %v6108_v47  ;;  %v6114_v14 = vmul.f32 1.442695, %v9417_v25  ;;  %v6112_v60 = vmul.f32 1.442695, %v9416_v26  ;;  %v6116_v20 = vmul.f32 1.442695, %v9418_v29 }
0x2275   :  { %11398 = vpow2.f32 %v6110_v11 }
0x2276   :  { %11400 = vpow2.f32 %v6114_v14 }
0x2277   :  { %v11383_v10 = vpop.eup %11382  ;;  %11402 = vpow2.f32 %v6112_v60 }
0x2278   :  { %v11385_v39 = vpop.eup %11384  ;;  %v6118_v6 = vadd.f32 1.0, %v11383_v10  ;;  %11404 = vpow2.f32 %v6116_v20 }
0x2279   :  { %v11387_v17 = vpop.eup %11386  ;;  %v6120_v3 = vadd.f32 1.0, %v11385_v39 }
0x227a   :  { %v11389_v7 = vpop.eup %11388  ;;  %11406 = vrcp.f32 %v6118_v6  ;;  %v6119_v31 = vadd.f32 1.0, %v11387_v17 }
0x227b   :  { %v11391_v13 = vpop.eup %11390  ;;  %11408 = vrcp.f32 %v6120_v3  ;;  %v6121_v55 = vadd.f32 1.0, %v11389_v7 }
0x227c   :  { %v11393_v62 = vpop.eup %11392  ;;  %11410 = vrcp.f32 %v6119_v31  ;;  %v6122_v40 = vadd.f32 1.0, %v11391_v13 }
0x227d   :  { %v11395_v50 = vpop.eup %11394  ;;  %11412 = vrcp.f32 %v6121_v55  ;;  %v6124_v0 = vadd.f32 1.0, %v11393_v62 }
0x227e   :  { %v11397_v58 = vpop.eup %11396  ;;  %11414 = vrcp.f32 %v6122_v40  ;;  %v6123_v37 = vadd.f32 1.0, %v11395_v50 }
0x227f   :  { %v11399_v49 = vpop.eup %11398  ;;  %11416 = vrcp.f32 %v6124_v0  ;;  %v6125_v15 = vadd.f32 1.0, %v11397_v58 }
0x2280   :  { %v11401_v12 = vpop.eup %11400  ;;  %11418 = vrcp.f32 %v6123_v37  ;;  %v6126_v52 = vadd.f32 1.0, %v11399_v49 }
0x2281   :  { %v11403_v53 = vpop.eup %11402  ;;  %11420 = vrcp.f32 %v6125_v15  ;;  %v6128_v63 = vadd.f32 1.0, %v11401_v12 }
0x2282   :  { %v11405_v56 = vpop.eup %11404  ;;  %v6127_v57 = vadd.f32 1.0, %v11403_v53  ;;  %11422 = vrcp.f32 %v6126_v52 }
0x2283   :  { %v6129_v44 = vadd.f32 1.0, %v11405_v56 }
0x2284   :  { %v11407_v18 = vpop.eup %11406  ;;  %11424 = vrcp.f32 %v6127_v57 }
0x2285   :  { %v11409_v19 = vpop.eup %11408  ;;  %11426 = vrcp.f32 %v6129_v44  ;;  %v6154_v5 = vmul.f32 %v11407_v18, %v13222_v34 }
0x2286   :  { %v11411_v47 = vpop.eup %11410  ;;  %11428 = vrcp.f32 %v6128_v63  ;;  %v6156_v23 = vmul.f32 %v11409_v19, %v13224_v27 }
0x2287   :  { %v11413_v2 = vpop.eup %11412  ;;  %v6155_v29 = vmul.f32 %v11411_v47, %v13226_v61 }
0x2288   :  { %v11415_v8 = vpop.eup %11414  ;;  %v6157_v60 = vmul.f32 %v11413_v2, %v13228_v22 }
0x2289   :  { %v11417_v24 = vpop.eup %11416  ;;  %v6158_v33 = vmul.f32 %v11415_v8, %v13232_v9 }
0x228a   :  { %v11419_v51 = vpop.eup %11418  ;;  %v6160_v25 = vmul.f32 %v11417_v24, %v13234_v42 }
0x228b   :  { %v11421_v26 = vpop.eup %11420  ;;  %v6166_v11 = vpack.c.bf16 %v6158_v33, %v6154_v5  ;;  %v6159_v14 = vmul.f32 %v11419_v51, %v13238_v4 }
0x228c   :  { %v6168_v20 = vpack.c.bf16 %v6160_v25, %v6156_v23  ;;  %v6161_v10 = vmul.f32 %v11421_v26, %v13240_v35  ;;  %v11423_v39 = vpop.eup %11422  ;;  %v11100_v25 = vld [vmem:[#allocation21 + $0xc0] ss:$12 sps:$4 sm:$0xff]   ;;  %v11102_v26 = vld [vmem:[#allocation21 + $0xc4] ss:$12 sps:$4 sm:$0xff]  }
0x228d   :  { %v6167_v34 = vpack.c.bf16 %v6159_v14, %v6155_v29  ;;  %v6162_v22 = vmul.f32 %v11423_v39, %v13246_v1  ;;  %v11105_v29 = vld [vmem:[#allocation21 + $0xdc] ss:$12 sps:$4 sm:$0xff]   ;;  %6772 = vmatprep.subr.bf16.mxu1 %v11102_v26 }
0x228e   :  { %v11425_v6 = vpop.eup %11424  ;;  %v6169_v9 = vpack.c.bf16 %v6161_v10, %v6157_v60 }
0x228f   :  { %v11427_v17 = vpop.eup %11426  ;;  %v6163_v27 = vmul.f32 %v11425_v6, %v13250_v21  ;;  %6469 = vmatprep.mubr.bf16.mxu1 %v6167_v34  ;;  %v6170_v7 = vpack.c.bf16 %v6162_v22, %v6162_v22  ;;  %v11110_v22 = vld [vmem:[#allocation21 + $0xe0] ss:$12 sps:$4 sm:$0xff]  }
0x2290   :  { %v11429_v42 = vpop.eup %11428  ;;  %v6165_v3 = vmul.f32 %v11427_v17, %v13252_v48  ;;  %6517 = vmatprep.mubr.bf16.mxu0 %v6169_v9  ;;  %6470 = vmatmul.mubr.bf16.vlgmr.msra.gmra.mrb[128].mxu1 %v6166_v11  ;;  %v9419_v48 = vld [vmem:[#allocation29] ss:$0 sm:$0xff]  ;;  %v11106_v11 = vld [vmem:[#allocation21 + $0xc8] ss:$12 sps:$4 sm:$0xff]  }
0x2291   :  { %v6171_v61 = vpack.c.bf16 %v6163_v27, %v6163_v27  ;;  %6518 = vmatmul.mubr.bf16.vlgmr.msra.gmra.mrb[100].mxu0 %v6168_v20  ;;  %v6164_v35 = vmul.f32 %v11429_v42, %v13248_v28  ;;  %6773 = vmatpush1.bf16.msra.mxu1 %v11100_v25 }
0x2292   :  { %v6173_v4 = vpack.c.bf16 %v6165_v3, %v6165_v3  ;;  %10475 = vmatprep.subr.bf16.mxu0 %v11106_v11  ;;  %6774 = vmatprep.subr.bf16.mxu1 %v11105_v29  ;;  %v11109_v3 = vld [vmem:[#allocation21 + $0xf4] ss:$12 sps:$4 sm:$0xff]  }
0x2293   :  { %6477 = vmatprep.mubr.bf16.mxu1 %v6171_v61  ;;  %v6172_v31 = vpack.c.bf16 %v6164_v35, %v6164_v35  ;;  %10476 = vmatpush3.bf16.msra.mxu0 %v11106_v11  ;;  %v11107_v61 = vld [vmem:[#allocation21 + $0xf0] ss:$12 sps:$4 sm:$0xff]   ;;  %v11111_v35 = vld [vmem:[#allocation21 + $0x108] ss:$12 sps:$4 sm:$0xff]  }
0x2294   :  { %6525 = vmatprep.mubr.bf16.mxu0 %v6173_v4  ;;  %10477 = vmatprep.subr.bf16.mxu0 %v11110_v22  ;;  %v11113_v4 = vld [vmem:[#allocation21 + $0x10c] ss:$12 sps:$4 sm:$0xff]  }
0x2297   :  { %10478 = vmatpush3.bf16.msra.mxu0 %v11110_v22 }
0x2298   :  { %6478 = vmatmul.mubr.bf16.gmra.mrb[132].mxu1 %v6170_v7  ;;  %v11114_v7 = vld [vmem:[#allocation21 + $0xf8] ss:$12 sps:$4 sm:$0xff]  }
0x2299   :  { %6526 = vmatmul.mubr.bf16.gmra.mrb[104].mxu0 %v6172_v31  ;;  %6804 = vmatprep.mubr.bf16.mxu1 %v12031_v16  ;;  %v11117_v31 = vld [vmem:[#allocation21 + $0x124] ss:$12 sps:$4 sm:$0xff]  }
0x229a   :  { %10479 = vmatprep.subr.bf16.mxu0 %v11114_v7 }
0x229b   :  { %10480 = vmatpush3.bf16.msra.mxu0 %v11114_v7 }
0x2363   :  { %v10002_v21 = vpop.f32.mrb[128].mxu1 }
0x2364   :  { %v10030_v13 = vpop.f32.mrb[100].mxu0  ;;  %v10003_v55 = vpop.f32.mrb[129].mxu1 }
0x2365   :  { %v10004_v62 = vadd.f32 %v10003_v55, %v10002_v21  ;;  %v10031_v40 = vpop.f32.mrb[101].mxu0  ;;  %v10005_v50 = vpop.f32.mrb[130].mxu1  ;;  %v11115_v21 = vld [vmem:[#allocation21 + $0x120] ss:$12 sps:$4 sm:$0xff]   ;;  %v11119_v55 = vld [vmem:[#allocation21 + $0x138] ss:$12 sps:$4 sm:$0xff]  }
0x2366   :  { %v10032_v0 = vadd.f32 %v10031_v40, %v10030_v13  ;;  %v10033_v1 = vpop.f32.mrb[102].mxu0  ;;  %v10006_v58 = vpop.f32.mrb[131].mxu1  ;;  %v11118_v13 = vld [vmem:[#allocation21 + $0x110] ss:$12 sps:$4 sm:$0xff]   ;;  %v11125_v40 = vld [vmem:[#allocation21 + $0x154] ss:$12 sps:$4 sm:$0xff]  }
0x2367   :  { %v6472_v37 = vadd.f32 %v10004_v62, %v9419_v48  ;;  %v10007_v28 = vadd.f32 %v10006_v58, %v10005_v50  ;;  %v10034_v49 = vpop.f32.mrb[103].mxu0  ;;  %10481 = vmatprep.subr.bf16.mxu0 %v11118_v13  ;;  %v11122_v62 = vld [vmem:[#allocation21 + $0x128] ss:$12 sps:$4 sm:$0xff]   ;;  %v11123_v50 = vld [vmem:[#allocation21 + $0x150] ss:$12 sps:$4 sm:$0xff]  }
0x2368   :  { %v10035_v15 = vadd.f32 %v10034_v49, %v10033_v1  ;;  %10482 = vmatpush3.bf16.msra.mxu0 %v11118_v13  ;;  %v11129_v1 = vld [vmem:[#allocation21 + $0x16c] ss:$12 sps:$4 sm:$0xff]   ;;  %v11127_v58 = vld [vmem:[#allocation21 + $0x168] ss:$12 sps:$4 sm:$0xff]  }
0x2369   :  { %v6520_v12 = vadd.f32 %v10032_v0, %v6472_v37  ;;  %v6475_v52 = vadd.f32 %v10007_v28, %v9419_v48  ;;  %10483 = vmatprep.subr.bf16.mxu0 %v11122_v62  ;;  %v11126_v0 = vld [vmem:[#allocation21 + $0x140] ss:$12 sps:$4 sm:$0xff]   ;;  %v11130_v37 = vld [vmem:[#allocation21 + $0x158] ss:$12 sps:$4 sm:$0xff]   ;;  %v11131_v28 = vld [vmem:[#allocation21 + $0x170] ss:$12 sps:$4 sm:$0xff]  }
0x236b   :  { %v6523_v53 = vadd.f32 %v10035_v15, %v6475_v52  ;;  %v10008_v56 = vpop.f32.mrb[132].mxu1  ;;  %v13272_v63 = vadd.f32 %v6520_v12, %v13123_v30 }
0x236c   :  { %v10036_v57 = vpop.f32.mrb[104].mxu0  ;;  %v10009_v44 = vpop.f32.mrb[133].mxu1  ;;  %10484 = vmatpush3.bf16.msra.mxu0 %v11122_v62 }
0x236d   :  { %v10010_v18 = vadd.f32 %v10009_v44, %v10008_v56  ;;  %v10037_v19 = vpop.f32.mrb[105].mxu0  ;;  %v10011_v47 = vpop.f32.mrb[134].mxu1  ;;  %6540 = vadd.xlane.f32.xlu1 %v13272_v63  ;;  %v13276_v2 = vadd.f32 %v6523_v53, %v13127_v32  ;;  %v11103_v32 = vld [vmem:[#allocation21 + $0xd8] ss:$12 sps:$4 sm:$0xff]   ;;  %10485 = vmatprep.subr.bf16.mxu0 %v11126_v0 }
0x236e   :  { %v10038_v8 = vadd.f32 %v10037_v19, %v10036_v57  ;;  %v10039_v24 = vpop.f32.mrb[106].mxu0  ;;  %v10012_v5 = vpop.f32.mrb[135].mxu1  ;;  %6775 = vmatpush1.bf16.msra.mxu1 %v11103_v32  ;;  %v9453_v47 = vld [vmem:[#allocation20 + $0x1] ss:$0 sm:$0xff] }
0x236f   :  { %v6480_v33 = vadd.f32 %v10010_v18, %v9419_v48  ;;  %v10040_v51 = vpop.f32.mrb[107].mxu0  ;;  %6542 = vadd.xlane.f32.xlu0 %v13276_v2  ;;  %6776 = vmatprep.subr.bf16.mxu1 %v11109_v3  ;;  %v11121_v48 = vld [vmem:[#allocation21 + $0x13c] ss:$12 sps:$4 sm:$0xff]  }
0x2370   :  { %10486 = vmatpush3.bf16.msra.mxu0 %v11126_v0  ;;  %v9454_v51 = vld [vmem:[%s13686_s13 + $0x1] ss:$0 sm:$0xff] }
0x2371   :  { %v6528_v23 = vadd.f32 %v10038_v8, %v6480_v33  ;;  %10487 = vmatprep.subr.bf16.mxu0 %v11130_v37 }
0x2372   :  { %6777 = vmatpush1.bf16.msra.mxu1 %v11107_v61 }
0x2373   :  { %v13280_v30 = vadd.f32 %v6528_v23, %v13130_v36  ;;  %6778 = vmatprep.subr.bf16.mxu1 %v11113_v4 }
0x2374   :  { %10488 = vmatpush3.bf16.msra.mxu0 %v11130_v37 }
0x2375   :  { %6544 = vadd.xlane.f32.xlu1 %v13280_v30  ;;  %10489 = vmatprep.subr.bf16.mxu0 %v11131_v28 }
0x2376   :  { %6779 = vmatpush1.bf16.msra.mxu1 %v11111_v35 }
0x2377   :  { %6780 = vmatprep.subr.bf16.mxu1 %v11117_v31 }
0x2378   :  { %10490 = vmatpush3.bf16.msra.mxu0 %v11131_v28 }
0x2379   :  { %10495 = vmatprep.subr.bf16.mxu0 %v12030_v54 }
0x237a   :  { %6781 = vmatpush1.bf16.msra.mxu1 %v11115_v21 }
0x237b   :  { %6782 = vmatprep.subr.bf16.mxu1 %v11121_v48 }
0x237e   :  { %6783 = vmatpush1.bf16.msra.mxu1 %v11119_v55 }
0x237f   :  { %6784 = vmatprep.subr.bf16.mxu1 %v11125_v40 }
0x2382   :  { %6785 = vmatpush1.bf16.msra.mxu1 %v11123_v50 }
0x2383   :  { %6786 = vmatprep.subr.bf16.mxu1 %v11129_v1 }
0x2386   :  { %6787 = vmatpush1.bf16.msra.mxu1 %v11127_v58 }
0x2387   :  { %10501 = vmatprep.subr.bf16.mxu1 %v12030_v54 }
0x23fa   :  { %v6541_v14 = vpop.xlane.xlu1 %6540 }
0x23fb   :  { %v6546_v60 = vmul.f32 0.0078125, %v6541_v14 }
0x23fc   :  { %v6543_v20 = vpop.xlane.xlu0 %6542 }
0x23fd   :  { %v13284_v10 = vsub.f32 %v13272_v63, %v6546_v60  ;;  %v6547_v36 = vmul.f32 0.0078125, %v6543_v20 }
0x23ff   :  { %v13287_v39 = vsub.f32 %v13276_v2, %v6547_v36  ;;  %v6552_v34 = vmul.f32 %v13284_v10, %v13284_v10 }
0x2401   :  { %6555 = vadd.xlane.f32.xlu0 %v6552_v34  ;;  %v6553_v6 = vmul.f32 %v13287_v39, %v13287_v39 }
0x2402   :  { %v6545_v9 = vpop.xlane.xlu1 %6544 }
0x2403   :  { %v6548_v17 = vmul.f32 0.0078125, %v6545_v9  ;;  %6557 = vadd.xlane.f32.xlu1 %v6553_v6 }
0x2405   :  { %v13294_v27 = vsub.f32 %v13280_v30, %v6548_v17 }
0x2407   :  { %v6554_v42 = vmul.f32 %v13294_v27, %v13294_v27 }
0x2409   :  { %6559 = vadd.xlane.f32.xlu0 %v6554_v42 }
0x248e   :  { %v6556_v49 = vpop.xlane.xlu0 %6555 }
0x248f   :  { %v6561_v15 = vmul.f32 0.0078125, %v6556_v49 }
0x2490   :  { %v6558_v12 = vpop.xlane.xlu1 %6557 }
0x2491   :  { %v6564_v52 = vadd.f32 1e-05, %v6561_v15  ;;  %v6562_v53 = vmul.f32 0.0078125, %v6558_v12 }
0x2493   :  { %11430 = vrsqrt.f32 %v6564_v52  ;;  %v6565_v56 = vadd.f32 1e-05, %v6562_v53 }
0x2495   :  { %11432 = vrsqrt.f32 %v6565_v56 }
0x2496   :  { %v6560_v57 = vpop.xlane.xlu0 %6559 }
0x2497   :  { %v6563_v44 = vmul.f32 0.0078125, %v6560_v57 }
0x2499   :  { %v6566_v18 = vadd.f32 1e-05, %v6563_v44 }
0x249b   :  { %11434 = vrsqrt.f32 %v6566_v18 }
0x249d   :  { %v11431_v19 = vpop.eup %11430 }
0x249e   :  { %v6570_v8 = vmul.f32 %v11431_v19, %v13284_v10  ;;  %v6627_v10 = vld [vmem:[#allocation23 + $0x3] sm:$0x7] }
0x249f   :  { %v11433_v24 = vpop.eup %11432  ;;  %v6636_v36 = vrot.slane %v6627_v10, %v12412_v41  ;;  %v6632_v42 = vrot.slane %v6627_v10, %v12419_v45 }
0x24a0   :  { %v6579_v5 = vmul.f32 %v9453_v47, %v6570_v8  ;;  %v6571_v33 = vmul.f32 %v11433_v24, %v13287_v39 }
0x24a2   :  { %v6580_v23 = vmul.f32 %v9453_v47, %v6571_v33  ;;  %v6588_v25 = vadd.f32 %v9454_v51, %v6579_v5 }
0x24a4   :  { %v6589_v26 = vadd.f32 %v9454_v51, %v6580_v23 }
0x24a5   :  { %v11435_v29 = vpop.eup %11434 }
0x24a6   :  { %v6572_v11 = vmul.f32 %v11435_v29, %v13294_v27  ;;  %v6591_v32 = vpack.c.bf16 %v6589_v26, %v6588_v25  ;;  %v6640_v27 = vrot.slane %v6627_v10, %v12415_v43 }
0x24a8   :  { %6805 = vmatmul.mubr.bf16.vlgmr.msra.gmra.mrb[136].mxu1 %v6591_v32  ;;  %10491 = vmatprep.mubr.bf16.mxu0 %v6591_v32  ;;  %v6581_v14 = vmul.f32 %v9453_v47, %v6572_v11 }
0x24a9   :  { %6814 = vmatprep.mubr.bf16.mxu1 %v12031_v16 }
0x24aa   :  { %v6590_v60 = vadd.f32 %v9454_v51, %v6581_v14 }
0x24ac   :  { %v6592_v20 = vpack.c.bf16 %v6590_v60, %v6590_v60 }
0x24ae   :  { %10492 = vmatmul.mubr.bf16.vlgmr.msra.gmra.mrb[108].mxu0 %v6592_v20 }
0x24af   :  { %10497 = vmatprep.mubr.msk.bf16.mxu0 %vm12032_vm0, %v12030_v54 }
0x24b0   :  { %6815 = vmatmul.mubr.bf16.gmra.mrb[140].mxu1 %v6592_v20 }
0x24b1   :  { %10503 = vmatprep.mubr.msk.bf16.mxu1 %vm12032_vm0, %v12030_v54 }
0x257b   :  { %v6806_v39 = vpop.f32.mrb[136].mxu1 }
0x257c   :  { %v6808_v34 = vpop.f32.mrb[137].mxu1  ;;  %v6807_v21 = vadd.f32 %v6806_v39, %v6632_v42 }
0x257d   :  { %v6809_v6 = vadd.f32 %v6808_v34, %v6636_v36  ;;  %v6810_v9 = vpop.f32.mrb[138].mxu1 }
0x257e   :  { %v6812_v17 = vpop.f32.mrb[139].mxu1  ;;  %v6811_v0 = vadd.f32 %v6810_v9, %v6632_v42  ;;  %v13324_v28 = vpack.c.bf16 %v6807_v21, %v6807_v21 }
0x257f   :  { %v13312_v3 = vpack.c.bf16 %v6809_v6, %v6809_v6  ;;  %v6813_v61 = vadd.f32 %v6812_v17, %v6636_v36 }
0x2580   :  { %v13330_v12 = vpack.c.bf16 %v6811_v0, %v6811_v0 }
0x2581   :  { %v6898_v22 = vsel %vm1294_vm1, %v13312_v3, 0  ;;  %v13316_v4 = vpack.c.bf16 %v6813_v61, %v6813_v61  ;;  %v10493_v35 = vpop.f32.mrb[108].mxu0 }
0x2582   :  { %v13318_v7 = vadd.f32 %v10493_v35, %v6640_v27  ;;  %v6857_v31 = vpop.f32.mrb[109].mxu0  ;;  %10496 = vmatpush3.bf16.xpose.msra.mxu0 %v6898_v22 }
0x2583   :  { %v6944_v13 = vsel %vm1294_vm1, %v13316_v4, 0  ;;  %v6858_v48 = vadd.f32 %v6857_v31, %v6640_v27  ;;  %v6816_v55 = vpop.f32.mrb[140].mxu1  ;;  %v10494_v62 = vpop.f32.mrb[110].mxu0  ;;  %10507 = vmatprep.subr.bf16.mxu0 %v12030_v54 }
0x2584   :  { %v6818_v40 = vpop.f32.mrb[141].mxu1  ;;  %v6860_v50 = vpop.f32.mrb[111].mxu0  ;;  %10502 = vmatpush3.bf16.xpose.msra.mxu1 %v6944_v13  ;;  %v6817_v57 = vadd.f32 %v6816_v55, %v6632_v42 }
0x2585   :  { %v6819_v1 = vadd.f32 %v6818_v40, %v6636_v36  ;;  %v6820_v58 = vpop.f32.mrb[142].mxu1  ;;  %10513 = vmatprep.subr.bf16.mxu1 %v12030_v54  ;;  %v13326_v49 = vpack.c.bf16 %v6858_v48, %v6858_v48  ;;  %v6861_v53 = vadd.f32 %v6860_v50, %v6640_v27 }
0x2586   :  { %v6821_v37 = vpop.f32.mrb[143].mxu1  ;;  %v6890_v18 = vpack.c.bf16 %v6817_v57, %v6817_v57 }
0x2587   :  { %v13328_v15 = vpack.c.bf16 %v6819_v1, %v6819_v1  ;;  %v7081_v56 = vsel %vm1423_vm2, %v13326_v49, 0  ;;  %v13345_v44 = vpack.c.bf16 %v6861_v53, %v6861_v53 }
0x2589   :  { %v6990_v52 = vsel %vm1294_vm1, %v13328_v15, 0  ;;  %10498 = vmatmul.mubr.msk.bf16.vlgmr.msra.gmra.mrb[112].mxu0 %vm1294_vm1, %v13324_v28  ;;  %v7127_v19 = vsel %vm1423_vm2, %v13345_v44, 0 }
0x258a   :  { %10508 = vmatpush3.bf16.xpose.msra.mxu0 %v6990_v52  ;;  %10509 = vmatprep.mubr.msk.bf16.mxu0 %vm12032_vm0, %v12030_v54 }
0x258b   :  { %10504 = vmatmul.mubr.msk.bf16.vlgmr.msra.gmra.mrb[144].mxu1 %vm1294_vm1, %v13330_v12  ;;  %10519 = vmatprep.subr.bf16.mxu0 %v12030_v54 }
0x258c   :  { %10514 = vmatpush3.bf16.msra.mxu1 %v7081_v56  ;;  %10515 = vmatprep.mubr.msk.bf16.mxu1 %vm12032_vm0, %v12030_v54 }
0x258d   :  { %10525 = vmatprep.subr.bf16.mxu1 %v12030_v54 }
0x2591   :  { %10510 = vmatmul.mubr.msk.bf16.vlgmr.msra.gmra.mrb[116].mxu0 %vm1294_vm1, %v6890_v18 }
0x2592   :  { %10520 = vmatpush3.bf16.msra.mxu0 %v7127_v19  ;;  %10521 = vmatprep.mubr.msk.bf16.mxu0 %vm12032_vm0, %v12030_v54 }
0x2593   :  { %10531 = vmatprep.subr.bf16.mxu0 %v12030_v54 }
0x265c   :  { %v6934_v47 = vpop.f32.mrb[112].mxu0 }
0x265d   :  { %v7032_v8 = vmul.f32 0.125, %v6934_v47  ;;  %v10499_v24 = vpop.f32.mrb[113].mxu0 }
0x265e   :  { %v6937_v5 = vpop.f32.mrb[114].mxu0  ;;  %v6980_v33 = vpop.f32.mrb[144].mxu1 }
0x265f   :  { %v7033_v51 = vmul.f32 0.125, %v6980_v33  ;;  %v10500_v23 = vpop.f32.mrb[115].mxu0  ;;  %v10505_v25 = vpop.f32.mrb[145].mxu1  ;;  %v7035_v26 = vsel %vm12974_vm7, %v7032_v8, -1e+09 }
0x2660   :  { %v6983_v29 = vpop.f32.mrb[146].mxu1  ;;  %v7038_v11 = vsel %vm1393_vm4, %v7035_v26, -inf }
0x2661   :  { %v10506_v32 = vpop.f32.mrb[147].mxu1  ;;  %7039 = vmax.xlane.f32.xlu1 %v7038_v11  ;;  %v7036_v14 = vsel %vm12974_vm7, %v7033_v51, -1e+09 }
0x2662   :  { %v7041_v60 = vsel %vm1393_vm4, %v7036_v14, -inf }
0x2663   :  { %7042 = vmax.xlane.f32.xlu0 %v7041_v60 }
0x2664   :  { %v7026_v20 = vpop.f32.mrb[116].mxu0 }
0x2665   :  { %v7034_v10 = vmul.f32 0.125, %v7026_v20  ;;  %v10511_v36 = vpop.f32.mrb[117].mxu0 }
0x2666   :  { %v7029_v39 = vpop.f32.mrb[118].mxu0 }
0x2667   :  { %v10512_v34 = vpop.f32.mrb[119].mxu0  ;;  %v7037_v6 = vsel %vm12974_vm7, %v7034_v10, -1e+09 }
0x2668   :  { %v7044_v9 = vsel %vm1393_vm4, %v7037_v6, -inf }
0x2669   :  { %7045 = vmax.xlane.f32.xlu1 %v7044_v9 }
0x267a   :  { %7221 = vrot.lane.b32.xlu1 %v13312_v3, %s12013_s18 }
0x26ee   :  { %v7040_v17 = vpop.xlane.xlu1 %7039 }
0x26ef   :  { %v7047_v27 = vsub.f32 %v7035_v26, %v7040_v17 }
0x26f0   :  { %v7043_v42 = vpop.xlane.xlu0 %7042 }
0x26f1   :  { %v7050_v61 = vmul.f32 1.442695, %v7047_v27  ;;  %v7048_v22 = vsub.f32 %v7036_v14, %v7043_v42 }
0x26f3   :  { %11436 = vpow2.f32 %v7050_v61  ;;  %v7052_v35 = vmul.f32 1.442695, %v7048_v22 }
0x26f5   :  { %11438 = vpow2.f32 %v7052_v35 }
0x26f6   :  { %v7046_v31 = vpop.xlane.xlu1 %7045 }
0x26f7   :  { %v7049_v21 = vsub.f32 %v7037_v6, %v7046_v31 }
0x26f9   :  { %v7054_v13 = vmul.f32 1.442695, %v7049_v21 }
0x26fa   :  { %v7222_v0 = vpop.permute.xlu1 %7221 }
0x26fb   :  { %11440 = vpow2.f32 %v7054_v13  ;;  %v7227_v19 = vsel %vm1294_vm1, %v7222_v0, 0 }
0x26fd   :  { %v11437_v48 = vpop.eup %11436 }
0x26fe   :  { %v7056_v55 = vsel %vm1393_vm4, %v11437_v48, 0.0 }
0x26ff   :  { %v11439_v62 = vpop.eup %11438  ;;  %7057 = vadd.xlane.f32.xlu0 %v7056_v55 }
0x2700   :  { %v7059_v40 = vsel %vm1393_vm4, %v11439_v62, 0.0 }
0x2701   :  { %7060 = vadd.xlane.f32.xlu1 %v7059_v40 }
0x2705   :  { %v11441_v3 = vpop.eup %11440 }
0x2706   :  { %v7062_v50 = vsel %vm1393_vm4, %v11441_v3, 0.0 }
0x2707   :  { %7063 = vadd.xlane.f32.xlu0 %v7062_v50 }
0x2712   :  { %7218 = vrot.lane.b32.xlu1 %v13324_v28, %s12013_s18  ;;  %v13379_v28 = vpack.c.bf16 %v13318_v7, %v13318_v7 }
0x2716   :  { %7325 = vrot.lane.b32.xlu1 %v13328_v15, %s12013_s18 }
0x271a   :  { %7270 = vrot.lane.b32.xlu1 %v13330_v12, %s12013_s18 }
0x271d   :  { %7273 = vrot.lane.b32.xlu0 %v13316_v4, %s12013_s18  ;;  %v7173_v4 = vsel %vm1423_vm2, %v13379_v28, 0 }
0x2721   :  { %7322 = vrot.lane.b32.xlu0 %v6890_v18, %s12013_s18 }
0x278c   :  { %v7058_v1 = vpop.xlane.xlu0 %7057 }
0x278d   :  { %11442 = vrcp.f32 %v7058_v1 }
0x278e   :  { %v7061_v58 = vpop.xlane.xlu1 %7060 }
0x278f   :  { %11444 = vrcp.f32 %v7061_v58 }
0x2792   :  { %v7219_v18 = vpop.permute.xlu1 %7218 }
0x2794   :  { %v7064_v37 = vpop.xlane.xlu0 %7063 }
0x2795   :  { %11446 = vrcp.f32 %v7064_v37 }
0x2796   :  { %v7326_v5 = vpop.permute.xlu1 %7325 }
0x2797   :  { %v11443_v52 = vpop.eup %11442  ;;  %v7331_v51 = vsel %vm1294_vm1, %v7326_v5, 0 }
0x2798   :  { %v7068_v15 = vmul.f32 %v11443_v52, %v11437_v48  ;;  %v7274_v8 = vpop.permute.xlu0 %7273 }
0x2799   :  { %v11445_v53 = vpop.eup %11444  ;;  %v7279_v33 = vsel %vm1294_vm1, %v7274_v8, 0 }
0x279a   :  { %v7069_v12 = vmul.f32 %v11445_v53, %v11439_v62  ;;  %v7071_v56 = vpack.c.bf16 %v7068_v15, %v7068_v15  ;;  %v7271_v23 = vpop.permute.xlu1 %7270 }
0x279c   :  { %10516 = vmatmul.mubr.msk.bf16.vlgmr.msra.gmra.mrb[148].mxu1 %vm1393_vm4, %v7071_v56  ;;  %v7072_v57 = vpack.c.bf16 %v7069_v12, %v7069_v12  ;;  %v7323_v25 = vpop.permute.xlu0 %7322 }
0x279d   :  { %10526 = vmatpush3.bf16.msra.mxu1 %v7173_v4  ;;  %10527 = vmatprep.mubr.msk.bf16.mxu1 %vm12032_vm0, %v12030_v54 }
0x279e   :  { %10522 = vmatmul.mubr.msk.bf16.vlgmr.msra.gmra.mrb[120].mxu0 %vm1393_vm4, %v7072_v57  ;;  %10537 = vmatprep.subr.bf16.mxu1 %v12030_v54 }
0x279f   :  { %v11447_v7 = vpop.eup %11446  ;;  %10532 = vmatpush3.bf16.xpose.msra.mxu0 %v7227_v19  ;;  %10533 = vmatprep.mubr.msk.bf16.mxu0 %vm12032_vm0, %v12030_v54 }
0x27a0   :  { %v7070_v47 = vmul.f32 %v11447_v7, %v11441_v3  ;;  %10543 = vmatprep.subr.bf16.mxu0 %v12030_v54 }
0x27a2   :  { %v7073_v24 = vpack.c.bf16 %v7070_v47, %v7070_v47 }
0x27a4   :  { %10528 = vmatmul.mubr.msk.bf16.vlgmr.msra.gmra.mrb[152].mxu1 %vm1393_vm4, %v7073_v24 }
0x27a5   :  { %10539 = vmatprep.mubr.msk.bf16.mxu1 %vm12032_vm0, %v12030_v54 }
0x27a6   :  { %10538 = vmatpush3.bf16.xpose.msra.mxu1 %v7279_v33  ;;  %10534 = vmatmul.mubr.msk.bf16.vlgmr.msra.gmra.mrb[124].mxu0 %vm1294_vm1, %v7219_v18 }
0x27a7   :  { %10544 = vmatpush3.bf16.xpose.msra.mxu0 %v7331_v51  ;;  %10545 = vmatprep.mubr.msk.bf16.mxu0 %vm12032_vm0, %v12030_v54 }
0x27a8   :  { %10549 = vmatprep.subr.bf16.mxu1 %v12030_v54  ;;  %10555 = vmatprep.subr.bf16.mxu0 %v12030_v54 }
0x27ad   :  { %10540 = vmatmul.mubr.msk.bf16.vlgmr.msra.gmra.mrb[156].mxu1 %vm1294_vm1, %v7271_v23 }
0x27ae   :  { %10546 = vmatmul.mubr.msk.bf16.vlgmr.msra.gmra.mrb[128].mxu0 %vm1294_vm1, %v7323_v25  ;;  %10551 = vmatprep.mubr.msk.bf16.mxu1 %vm12032_vm0, %v12030_v54 }
0x27af   :  { %10557 = vmatprep.mubr.msk.bf16.mxu0 %vm12032_vm0, %v12030_v54 }
0x286f   :  { %v13408_v26 = vpop.f32.mrb[148].mxu1 }
0x2870   :  { %v10517_v29 = vpop.f32.mrb[149].mxu1 }
0x2871   :  { %v7120_v11 = vpop.f32.mrb[150].mxu1  ;;  %v13410_v32 = vpop.f32.mrb[120].mxu0 }
0x2872   :  { %v7215_v14 = vpack.c.bf16 %v13410_v32, %v13408_v26  ;;  %v10518_v60 = vpop.f32.mrb[151].mxu1  ;;  %v10523_v20 = vpop.f32.mrb[121].mxu0  ;;  %v11138_v26 = vld [vmem:[%s13691_s10 + $0x70] sm:$0xff]   ;;  %v11139_v32 = vld [vmem:[%s13691_s10 + $0x78] sm:$0xff]  }
0x2873   :  { %v7166_v10 = vpop.f32.mrb[122].mxu0 }
0x2874   :  { %v10524_v36 = vpop.f32.mrb[123].mxu0 }
0x2877   :  { %v13414_v39 = vpop.f32.mrb[152].mxu1 }
0x2878   :  { %v10529_v34 = vpop.f32.mrb[153].mxu1 }
0x2879   :  { %v7212_v6 = vpop.f32.mrb[154].mxu1  ;;  %v7263_v9 = vpop.f32.mrb[124].mxu0  ;;  %v11132_v34 = vld [vmem:[%s13691_s10 + $0x40] sm:$0xff]  }
0x287a   :  { %v7373_v17 = vmul.f32 0.125, %v7263_v9  ;;  %v10530_v27 = vpop.f32.mrb[155].mxu1  ;;  %v10535_v42 = vpop.f32.mrb[125].mxu0  ;;  %v11136_v9 = vld [vmem:[%s13691_s10 + $0x60] sm:$0xff]  }
0x287b   :  { %v7266_v61 = vpop.f32.mrb[126].mxu0 }
0x287c   :  { %v7376_v22 = vsel %vm12974_vm7, %v7373_v17, -1e+09  ;;  %v10536_v35 = vpop.f32.mrb[127].mxu0 }
0x287d   :  { %v7379_v31 = vsel %vm1393_vm4, %v7376_v22, -inf }
0x287e   :  { %7380 = vmax.xlane.f32.xlu1 %v7379_v31  ;;  %v11133_v31 = vld [vmem:[%s13691_s10 + $0x48] sm:$0xff]  }
0x2880   :  { %v7315_v21 = vpop.f32.mrb[156].mxu1 }
0x2881   :  { %v7374_v13 = vmul.f32 0.125, %v7315_v21  ;;  %v10541_v48 = vpop.f32.mrb[157].mxu1  ;;  %v7367_v55 = vpop.f32.mrb[128].mxu0  ;;  %v11134_v21 = vld [vmem:[%s13691_s10 + $0x50] sm:$0xff]  }
0x2882   :  { %v7318_v62 = vpop.f32.mrb[158].mxu1  ;;  %v7375_v40 = vmul.f32 0.125, %v7367_v55  ;;  %v10547_v3 = vpop.f32.mrb[129].mxu0  ;;  %v7216_v48 = vpack.c.bf16 %v13414_v39, %v13414_v39  ;;  %v11137_v55 = vld [vmem:[%s13691_s10 + $0x68] sm:$0xff]  }
0x2883   :  { %v7377_v50 = vsel %vm12974_vm7, %v7374_v13, -1e+09  ;;  %v10542_v0 = vpop.f32.mrb[159].mxu1  ;;  %v7370_v1 = vpop.f32.mrb[130].mxu0  ;;  %v11135_v13 = vld [vmem:[%s13691_s10 + $0x58] sm:$0xff]  }
0x2884   :  { %v7382_v58 = vsel %vm1393_vm4, %v7377_v50, -inf  ;;  %v10548_v37 = vpop.f32.mrb[131].mxu0  ;;  %v7378_v52 = vsel %vm12974_vm7, %v7375_v40, -1e+09 }
0x2885   :  { %7383 = vmax.xlane.f32.xlu0 %v7382_v58  ;;  %v7385_v15 = vsel %vm1393_vm4, %v7378_v52, -inf }
0x2889   :  { %7386 = vmax.xlane.f32.xlu0 %v7385_v15 }
0x288f   :  { %7416 = vrot.lane.b32.xlu1 %v13326_v49, %s12013_s18 }
0x290b   :  { %v7381_v53 = vpop.xlane.xlu1 %7380 }
0x290c   :  { %v7388_v12 = vsub.f32 %v7376_v22, %v7381_v53 }
0x290e   :  { %v7391_v56 = vmul.f32 1.442695, %v7388_v12 }
0x290f   :  { %v7417_v4 = vpop.permute.xlu1 %7416 }
0x2910   :  { %11448 = vpow2.f32 %v7391_v56  ;;  %v7422_v57 = vsel %vm1423_vm2, %v7417_v4, 0 }
0x2911   :  { %10550 = vmatpush3.bf16.msra.mxu1 %v7422_v57 }
0x2912   :  { %v7384_v18 = vpop.xlane.xlu0 %7383  ;;  %10561 = vmatprep.subr.bf16.mxu1 %v12030_v54 }
0x2913   :  { %v7389_v38 = vsub.f32 %v7377_v50, %v7384_v18 }
0x2915   :  { %v7393_v19 = vmul.f32 1.442695, %v7389_v38 }
0x2916   :  { %v7387_v7 = vpop.xlane.xlu0 %7386 }
0x2917   :  { %11450 = vpow2.f32 %v7393_v19  ;;  %v7390_v47 = vsub.f32 %v7378_v52, %v7387_v7 }
0x2919   :  { %v7395_v8 = vmul.f32 1.442695, %v7390_v47 }
0x291a   :  { %v11449_v24 = vpop.eup %11448 }
0x291b   :  { %11452 = vpow2.f32 %v7395_v8  ;;  %v7397_v49 = vsel %vm1393_vm4, %v11449_v24, 0.0 }
0x291c   :  { %7398 = vadd.xlane.f32.xlu0 %v7397_v49  ;;  %v9519_v49 = vld [vmem:[#allocation24 + $0x1] ss:$0 sm:$0xff] }
0x2921   :  { %v11451_v5 = vpop.eup %11450 }
0x2922   :  { %v7400_v33 = vsel %vm1393_vm4, %v11451_v5, 0.0 }
0x2923   :  { %7401 = vadd.xlane.f32.xlu1 %v7400_v33 }
0x2925   :  { %v11453_v51 = vpop.eup %11452 }
0x2926   :  { %v7403_v23 = vsel %vm1393_vm4, %v11453_v51, 0.0 }
0x2927   :  { %7404 = vadd.xlane.f32.xlu0 %v7403_v23 }
0x2934   :  { %7514 = vrot.lane.b32.xlu1 %v13379_v28, %s12013_s18 }
0x293d   :  { %7465 = vrot.lane.b32.xlu0 %v13345_v44, %s12013_s18  ;;  %s13695_s18 = sld [smem:[#allocation63_spill]] }
0x29a9   :  { %v7399_v25 = vpop.xlane.xlu0 %7398 }
0x29aa   :  { %11454 = vrcp.f32 %v7399_v25 }
0x29b0   :  { %v7402_v29 = vpop.xlane.xlu1 %7401 }
0x29b1   :  { %11456 = vrcp.f32 %v7402_v29 }
0x29b4   :  { %v11455_v11 = vpop.eup %11454  ;;  %v7405_v60 = vpop.xlane.xlu0 %7404 }
0x29b5   :  { %v7409_v20 = vmul.f32 %v11455_v11, %v11449_v24  ;;  %11458 = vrcp.f32 %v7405_v60  ;;  %v7515_v10 = vpop.permute.xlu1 %7514  ;;  %v11142_v60 = vld [vmem:[%s13692_s0 + $0x104] ss:$16 sps:$4 sm:$0xff]  }
0x29b6   :  { %v7520_v17 = vsel %vm1423_vm2, %v7515_v10, 0  ;;  %v11148_v10 = vld [vmem:[%s13692_s0 + $0x124] ss:$16 sps:$4 sm:$0xff]  }
0x29b7   :  { %v7412_v36 = vpack.c.bf16 %v7409_v20, %v7409_v20  ;;  %v11143_v20 = vld [vmem:[%s13692_s0 + $0x108] ss:$16 sps:$4 sm:$0xff]  }
0x29b8   :  { %v7466_v6 = vpop.permute.xlu0 %7465 }
0x29b9   :  { %v7471_v28 = vsel %vm1423_vm2, %v7466_v6, 0  ;;  %10552 = vmatmul.mubr.msk.bf16.vlgmr.msra.gmra.mrb[160].mxu1 %vm1393_vm4, %v7412_v36  ;;  %v11151_v36 = vld [vmem:[%s13692_s0 + $0x12c] ss:$16 sps:$4 sm:$0xff]  }
0x29ba   :  { %10556 = vmatpush3.bf16.msra.mxu0 %v7471_v28  ;;  %10562 = vmatpush3.bf16.msra.mxu1 %v7520_v17 }
0x29bb   :  { %v11457_v44 = vpop.eup %11456  ;;  %10563 = vmatprep.mubr.msk.bf16.mxu1 %vm12032_vm0, %v12030_v54  ;;  %10579 = vmatprep.subr.bf16.mxu1 %v11132_v34 }
0x29bc   :  { %v7410_v27 = vmul.f32 %v11457_v44, %v11451_v5  ;;  %10567 = vmatprep.subr.bf16.mxu0 %v11136_v9 }
0x29be   :  { %v7413_v42 = vpack.c.bf16 %v7410_v27, %v7410_v27 }
0x29bf   :  { %v11459_v61 = vpop.eup %11458 }
0x29c0   :  { %v7411_v22 = vmul.f32 %v11459_v61, %v11453_v51  ;;  %10558 = vmatmul.mubr.msk.bf16.vlgmr.msra.gmra.mrb[132].mxu0 %vm1393_vm4, %v7413_v42 }
0x29c1   :  { %10568 = vmatpush3.bf16.msra.mxu0 %v11136_v9 }
0x29c2   :  { %v7414_v35 = vpack.c.bf16 %v7411_v22, %v7411_v22  ;;  %10569 = vmatprep.subr.bf16.mxu0 %v11137_v55 }
0x29c4   :  { %10564 = vmatmul.mubr.msk.bf16.vlgmr.msra.gmra.mrb[164].mxu1 %vm1393_vm4, %v7414_v35 }
0x29c5   :  { %10580 = vmatpush3.bf16.msra.mxu1 %v11132_v34  ;;  %10587 = vmatprep.mubr.msk.bf16.mxu1 %vm1294_vm1, %v7215_v14  ;;  %v11149_v34 = vld [vmem:[%s13692_s0 + $0x128] ss:$16 sps:$4 sm:$0xff]  }
0x29c6   :  { %10581 = vmatprep.subr.bf16.mxu1 %v11133_v31  ;;  %10570 = vmatpush3.bf16.msra.mxu0 %v11137_v55  ;;  %v11152_v55 = vld [vmem:[%s13692_s0 + $0x140] ss:$16 sps:$4 sm:$0xff]  }
0x29c7   :  { %10571 = vmatprep.subr.bf16.mxu0 %v11138_v26 }
0x29c9   :  { %10582 = vmatpush3.bf16.msra.mxu1 %v11133_v31 }
0x29ca   :  { %10583 = vmatprep.subr.bf16.mxu1 %v11134_v21  ;;  %10572 = vmatpush3.bf16.msra.mxu0 %v11138_v26  ;;  %v11155_v26 = vld [vmem:[%s13692_s0 + $0x148] ss:$16 sps:$4 sm:$0xff]  }
0x29cb   :  { %10573 = vmatprep.subr.bf16.mxu0 %v11139_v32 }
0x29cd   :  { %10584 = vmatpush3.bf16.msra.mxu1 %v11134_v21 }
0x29ce   :  { %10585 = vmatprep.subr.bf16.mxu1 %v11135_v13  ;;  %10574 = vmatpush3.bf16.msra.mxu0 %v11139_v32  ;;  %v11160_v32 = vld [vmem:[%s13692_s0 + $0x164] ss:$16 sps:$4 sm:$0xff]  }
0x29cf   :  { %8007 = vmatprep.subr.bf16.mxu0 %v11142_v60 }
0x29d1   :  { %10586 = vmatpush3.bf16.msra.mxu1 %v11135_v13  ;;  %v11154_v13 = vld [vmem:[%s13692_s0 + $0x144] ss:$16 sps:$4 sm:$0xff]  }
0x29d4   :  { %10588 = vmatmul.mubr.msk.bf16.vlgmr.msra.gmra.mrb[168].mxu1 %vm1294_vm1, %v7216_v48  ;;  %v11157_v48 = vld [vmem:[%s13692_s0 + $0x14c] ss:$16 sps:$4 sm:$0xff]  }
0x29d5   :  { %8090 = vmatprep.mubr.bf16.mxu1 %v12031_v16 }
0x2a8c   :  { %v7458_v14 = vpop.f32.mrb[160].mxu1 }
0x2a8d   :  { %v10553_v62 = vpop.f32.mrb[161].mxu1 }
0x2a8e   :  { %v7461_v40 = vpop.f32.mrb[162].mxu1  ;;  %v11158_v62 = vld [vmem:[%s13692_s0 + $0x160] ss:$16 sps:$4 sm:$0xff]  }
0x2a8f   :  { %v10554_v3 = vpop.f32.mrb[163].mxu1  ;;  %v11161_v40 = vld [vmem:[%s13692_s0 + $0x168] ss:$16 sps:$4 sm:$0xff]  }
0x2a90   :  { %v11166_v3 = vld [vmem:[%s13692_s0 + $0x184] ss:$16 sps:$4 sm:$0xff]  }
0x2a93   :  { %v7507_v50 = vpop.f32.mrb[132].mxu0 }
0x2a94   :  { %v7562_v0 = vpack.c.bf16 %v7507_v50, %v7458_v14  ;;  %v10559_v39 = vpop.f32.mrb[133].mxu0  ;;  %v11163_v14 = vld [vmem:[%s13692_s0 + $0x16c] ss:$16 sps:$4 sm:$0xff]  }
0x2a95   :  { %v7510_v1 = vpop.f32.mrb[134].mxu0  ;;  %v11169_v50 = vld [vmem:[%s13692_s0 + $0x18c] ss:$16 sps:$4 sm:$0xff]   ;;  %v11167_v39 = vld [vmem:[%s13692_s0 + $0x188] ss:$16 sps:$4 sm:$0xff]  }
0x2a96   :  { %v10560_v58 = vpop.f32.mrb[135].mxu0  ;;  %10575 = vmatprep.mubr.msk.bf16.mxu0 %vm1294_vm1, %v7562_v0  ;;  %v11164_v0 = vld [vmem:[%s13692_s0 + $0x180] ss:$16 sps:$4 sm:$0xff]   ;;  %v11172_v1 = vld [vmem:[%s13692_s0 + $0x1a4] ss:$16 sps:$4 sm:$0xff]  }
0x2a97   :  { %v7556_v37 = vpop.f32.mrb[164].mxu1  ;;  %v11175_v58 = vld [vmem:[%s13692_s0 + $0x1ac] ss:$16 sps:$4 sm:$0xff]  }
0x2a98   :  { %v7563_v52 = vpack.c.bf16 %v7556_v37, %v7556_v37  ;;  %v10565_v15 = vpop.f32.mrb[165].mxu1  ;;  %v11170_v37 = vld [vmem:[%s13692_s0 + $0x1a0] ss:$16 sps:$4 sm:$0xff]  }
0x2a99   :  { %v7559_v53 = vpop.f32.mrb[166].mxu1  ;;  %v11178_v15 = vld [vmem:[%s13692_s0 + $0x1c4] ss:$16 sps:$4 sm:$0xff]  }
0x2a9a   :  { %v10566_v12 = vpop.f32.mrb[167].mxu1  ;;  %10576 = vmatmul.mubr.msk.bf16.vlgmr.msra.gmra.mrb[136].mxu0 %vm1294_vm1, %v7563_v52  ;;  %v11173_v52 = vld [vmem:[%s13692_s0 + $0x1a8] ss:$16 sps:$4 sm:$0xff]   ;;  %v11181_v53 = vld [vmem:[%s13692_s0 + $0x1cc] ss:$16 sps:$4 sm:$0xff]  }
0x2a9b   :  { %8039 = vmatprep.mubr.bf16.mxu0 %v12031_v16  ;;  %v11176_v12 = vld [vmem:[%s13692_s0 + $0x1c0] ss:$16 sps:$4 sm:$0xff]  }
0x2aa7   :  { %v10589_v56 = vpop.f32.mrb[168].mxu1 }
0x2aa8   :  { %v7706_v4 = vpop.f32.mrb[169].mxu1 }
0x2aa9   :  { %v10590_v57 = vpop.f32.mrb[170].mxu1 }
0x2aaa   :  { %v7709_v18 = vpop.f32.mrb[171].mxu1  ;;  %v11187_v57 = vld [vmem:[%s13692_s0 + $0x1ec] ss:$16 sps:$4 sm:$0xff]  }
0x2b6d   :  { %v10577_v38 = vpop.f32.mrb[136].mxu0 }
0x2b6e   :  { %v7715_v19 = vadd.f32 %v10589_v56, %v10577_v38  ;;  %v7628_v7 = vpop.f32.mrb[137].mxu0  ;;  %v11179_v56 = vld [vmem:[%s13692_s0 + $0x1c8] ss:$16 sps:$4 sm:$0xff]  }
0x2b6f   :  { %v7707_v47 = vadd.f32 %v7706_v4, %v7628_v7  ;;  %v10578_v8 = vpop.f32.mrb[138].mxu0  ;;  %v11184_v4 = vld [vmem:[%s13692_s0 + $0x1e4] ss:$16 sps:$4 sm:$0xff]   ;;  %v11185_v38 = vld [vmem:[%s13692_s0 + $0x1e8] ss:$16 sps:$4 sm:$0xff]  }
0x2b70   :  { %v7631_v24 = vpop.f32.mrb[139].mxu0  ;;  %v7722_v25 = vadd.f32 %v7715_v19, %v13280_v30  ;;  %v11146_v30 = vld [vmem:[%s13692_s0 + $0x120] ss:$16 sps:$4 sm:$0xff]  }
0x2b71   :  { %v7720_v5 = vadd.f32 %v7707_v47, %v13272_v63  ;;  %v7710_v33 = vadd.f32 %v7709_v18, %v7631_v24  ;;  %v11140_v63 = vld [vmem:[%s13692_s0 + $0x100] ss:$16 sps:$4 sm:$0xff]  }
0x2b72   :  { %v13471_v11 = vadd.f32 %v9519_v49, %v7722_v25  ;;  %8008 = vmatpush1.bf16.msra.mxu0 %v11140_v63  ;;  %v11182_v18 = vld [vmem:[%s13692_s0 + $0x1e0] ss:$16 sps:$4 sm:$0xff]   ;;  %v9520_v63 = vld [vmem:[#allocation26 + $0x1] ss:$0 sm:$0xff] }
0x2b73   :  { %v7721_v51 = vadd.f32 %v7710_v33, %v13276_v2  ;;  %v13464_v23 = vadd.f32 %v9519_v49, %v7720_v5  ;;  %v11145_v2 = vld [vmem:[%s13692_s0 + $0x10c] ss:$16 sps:$4 sm:$0xff]   ;;  %8009 = vmatprep.subr.bf16.mxu0 %v11148_v10 }
0x2b74   :  { %8058 = vmatprep.subr.bf16.mxu1 %v11145_v2 }
0x2b75   :  { %7738 = vadd.xlane.f32.xlu1 %v13464_v23  ;;  %v13468_v29 = vadd.f32 %v9519_v49, %v7721_v51  ;;  %8059 = vmatpush1.bf16.msra.mxu1 %v11143_v20 }
0x2b76   :  { %8060 = vmatprep.subr.bf16.mxu1 %v11151_v36  ;;  %8010 = vmatpush1.bf16.msra.mxu0 %v11146_v30  ;;  %v9521_v36 = vld [vmem:[#allocation27 + $0x1] ss:$0 sm:$0xff] }
0x2b77   :  { %7740 = vadd.xlane.f32.xlu0 %v13468_v29  ;;  %8011 = vmatprep.subr.bf16.mxu0 %v11154_v13  ;;  %v11194_v13 = vld [vmem:[%s13693_s14 + $0x108] sm:$0xff]  }
0x2b79   :  { %8061 = vmatpush1.bf16.msra.mxu1 %v11149_v34 }
0x2b7a   :  { %8062 = vmatprep.subr.bf16.mxu1 %v11157_v48  ;;  %8012 = vmatpush1.bf16.msra.mxu0 %v11152_v55  ;;  %v11195_v48 = vld [vmem:[%s13693_s14 + $0x188] sm:$0xff]   ;;  %v11196_v55 = vld [vmem:[%s13693_s14 + $0x150] sm:$0xff]  }
0x2b7b   :  { %7742 = vadd.xlane.f32.xlu0 %v13471_v11  ;;  %8013 = vmatprep.subr.bf16.mxu0 %v11160_v32  ;;  %v11198_v32 = vld [vmem:[%s13693_s14 + $0x110] sm:$0xff]  }
0x2b7d   :  { %8063 = vmatpush1.bf16.msra.mxu1 %v11155_v26  ;;  %v11197_v26 = vld [vmem:[%s13693_s14 + $0x1d0] sm:$0xff]  }
0x2b7e   :  { %8064 = vmatprep.subr.bf16.mxu1 %v11163_v14  ;;  %8014 = vmatpush1.bf16.msra.mxu0 %v11158_v62  ;;  %v11199_v14 = vld [vmem:[%s13693_s14 + $0x190] sm:$0xff]   ;;  %v11200_v62 = vld [vmem:[%s13693_s14 + $0x158] sm:$0xff]  }
0x2b7f   :  { %8015 = vmatprep.subr.bf16.mxu0 %v11166_v3  ;;  %v11202_v3 = vld [vmem:[%s13693_s14 + $0x118] sm:$0xff]  }
0x2b81   :  { %8065 = vmatpush1.bf16.msra.mxu1 %v11161_v40  ;;  %v11201_v40 = vld [vmem:[%s13693_s14 + $0x1d8] sm:$0xff]  }
0x2b82   :  { %8066 = vmatprep.subr.bf16.mxu1 %v11169_v50  ;;  %8016 = vmatpush1.bf16.msra.mxu0 %v11164_v0  ;;  %v11203_v50 = vld [vmem:[%s13693_s14 + $0x198] sm:$0xff]   ;;  %v11204_v0 = vld [vmem:[%s13693_s14 + $0x160] sm:$0xff]  }
0x2b83   :  { %8017 = vmatprep.subr.bf16.mxu0 %v11172_v1  ;;  %v11206_v1 = vld [vmem:[%s13693_s14 + $0x120] sm:$0xff]  }
0x2b85   :  { %8067 = vmatpush1.bf16.msra.mxu1 %v11167_v39  ;;  %v11205_v39 = vld [vmem:[%s13693_s14 + $0x1e0] sm:$0xff]  }
0x2b86   :  { %8068 = vmatprep.subr.bf16.mxu1 %v11175_v58  ;;  %8018 = vmatpush1.bf16.msra.mxu0 %v11170_v37  ;;  %v11207_v58 = vld [vmem:[%s13693_s14 + $0x1a0] sm:$0xff]   ;;  %v11208_v37 = vld [vmem:[%s13693_s14 + $0x168] sm:$0xff]  }
0x2b87   :  { %8019 = vmatprep.subr.bf16.mxu0 %v11178_v15  ;;  %v11210_v15 = vld [vmem:[%s13693_s14 + $0x128] sm:$0xff]  }
0x2b89   :  { %8069 = vmatpush1.bf16.msra.mxu1 %v11173_v52  ;;  %v11209_v52 = vld [vmem:[%s13693_s14 + $0x1e8] sm:$0xff]  }
0x2b8a   :  { %8070 = vmatprep.subr.bf16.mxu1 %v11181_v53  ;;  %8020 = vmatpush1.bf16.msra.mxu0 %v11176_v12  ;;  %v11211_v53 = vld [vmem:[%s13693_s14 + $0x1a8] sm:$0xff]   ;;  %v11212_v12 = vld [vmem:[%s13693_s14 + $0x170] sm:$0xff]  }
0x2b8b   :  { %8021 = vmatprep.subr.bf16.mxu0 %v11184_v4  ;;  %v11214_v4 = vld [vmem:[%s13693_s14 + $0x130] sm:$0xff]  }
0x2b8d   :  { %8071 = vmatpush1.bf16.msra.mxu1 %v11179_v56  ;;  %v11213_v56 = vld [vmem:[%s13693_s14 + $0x1f0] sm:$0xff]  }
0x2b8e   :  { %8072 = vmatprep.subr.bf16.mxu1 %v11187_v57  ;;  %8022 = vmatpush1.bf16.msra.mxu0 %v11182_v18  ;;  %v11215_v57 = vld [vmem:[%s13693_s14 + $0x1b0] sm:$0xff]   ;;  %v11216_v18 = vld [vmem:[%s13693_s14 + $0x178] sm:$0xff]  }
0x2b91   :  { %8073 = vmatpush1.bf16.msra.mxu1 %v11185_v38  ;;  %v11217_v38 = vld [vmem:[%s13693_s14 + $0x1f8] sm:$0xff]  }
0x2c02   :  { %v7739_v6 = vpop.xlane.xlu1 %7738 }
0x2c03   :  { %v7744_v9 = vmul.f32 0.0078125, %v7739_v6 }
0x2c04   :  { %v7741_v17 = vpop.xlane.xlu0 %7740 }
0x2c05   :  { %v13483_v28 = vsub.f32 %v13464_v23, %v7744_v9  ;;  %v7745_v44 = vmul.f32 0.0078125, %v7741_v17 }
0x2c07   :  { %v13486_v27 = vsub.f32 %v13468_v29, %v7745_v44  ;;  %v7750_v42 = vmul.f32 %v13483_v28, %v13483_v28 }
0x2c08   :  { %v7743_v61 = vpop.xlane.xlu0 %7742 }
0x2c09   :  { %v7746_v22 = vmul.f32 0.0078125, %v7743_v61  ;;  %7753 = vadd.xlane.f32.xlu1 %v7750_v42  ;;  %v7751_v35 = vmul.f32 %v13486_v27, %v13486_v27  ;;  %v11188_v61 = vld [vmem:[%s13693_s14 + $0x140] sm:$0xff]  }
0x2c0a   :  { %10088 = vmatprep.subr.bf16.mxu0 %v11188_v61 }
0x2c0b   :  { %v13493_v31 = vsub.f32 %v13471_v11, %v7746_v22  ;;  %7755 = vadd.xlane.f32.xlu0 %v7751_v35  ;;  %v11189_v22 = vld [vmem:[%s13693_s14 + $0x1c0] sm:$0xff]  }
0x2c0c   :  { %v11190_v35 = vld [vmem:[%s13693_s14 + $0x100] sm:$0xff]   ;;  %10116 = vmatprep.subr.bf16.mxu1 %v11189_v22 }
0x2c0d   :  { %v7752_v21 = vmul.f32 %v13493_v31, %v13493_v31 }
0x2c0f   :  { %7757 = vadd.xlane.f32.xlu1 %v7752_v21  ;;  %v11192_v21 = vld [vmem:[%s13693_s14 + $0x148] sm:$0xff]  }
0x2c96   :  { %v7754_v19 = vpop.xlane.xlu1 %7753 }
0x2c97   :  { %v7759_v7 = vmul.f32 0.0078125, %v7754_v19  ;;  %v11218_v19 = vld [vmem:[%s13693_s14 + $0x138] sm:$0xff]  }
0x2c98   :  { %v7756_v47 = vpop.xlane.xlu0 %7755 }
0x2c99   :  { %v7762_v8 = vadd.f32 1e-05, %v7759_v7  ;;  %v7760_v24 = vmul.f32 0.0078125, %v7756_v47  ;;  %v11219_v7 = vld [vmem:[%s13693_s14 + $0x1b8] sm:$0xff]   ;;  %v9554_v47 = vld [vmem:[%s13694_s4 + $0x4] sm:$0xf] }
0x2c9b   :  { %11460 = vrsqrt.f32 %v7762_v8  ;;  %v7763_v49 = vadd.f32 1e-05, %v7760_v24  ;;  %v7830_v8 = vrot.slane %v9554_v47, %v12419_v45  ;;  %v7838_v24 = vrot.slane %v9554_v47, %v12415_v43 }
0x2c9c   :  { %v7758_v5 = vpop.xlane.xlu1 %7757 }
0x2c9d   :  { %11462 = vrsqrt.f32 %v7763_v49  ;;  %v7761_v33 = vmul.f32 0.0078125, %v7758_v5  ;;  %v7834_v49 = vrot.slane %v9554_v47, %v12412_v41  ;;  %v7842_v5 = vrot.slane %v9554_v47, %v12609_v59 }
0x2c9f   :  { %v7764_v51 = vadd.f32 1e-05, %v7761_v33 }
0x2ca1   :  { %11464 = vrsqrt.f32 %v7764_v51 }
0x2ca5   :  { %v11461_v25 = vpop.eup %11460 }
0x2ca6   :  { %v7768_v60 = vmul.f32 %v11461_v25, %v13483_v28 }
0x2ca7   :  { %v11463_v20 = vpop.eup %11462 }
0x2ca8   :  { %v7769_v2 = vmul.f32 %v11463_v20, %v13486_v27  ;;  %v7777_v10 = vmul.f32 %v9520_v63, %v7768_v60 }
0x2caa   :  { %v7778_v30 = vmul.f32 %v9520_v63, %v7769_v2  ;;  %v7786_v6 = vadd.f32 %v9521_v36, %v7777_v10 }
0x2cab   :  { %v11465_v34 = vpop.eup %11464 }
0x2cac   :  { %v7787_v9 = vadd.f32 %v9521_v36, %v7778_v30  ;;  %v7770_v17 = vmul.f32 %v11465_v34, %v13493_v31  ;;  %v11191_v31 = vld [vmem:[%s13693_s14 + $0x180] sm:$0xff]  }
0x2cae   :  { %v7789_v44 = vpack.c.bf16 %v7787_v9, %v7786_v6  ;;  %v7779_v42 = vmul.f32 %v9520_v63, %v7770_v17 }
0x2cb0   :  { %8040 = vmatmul.mubr.bf16.vlgmr.msra.gmra.mrb[140].mxu0 %v7789_v44  ;;  %8091 = vmatmul.mubr.bf16.vlgmr.msra.gmra.mrb[172].mxu1 %v7789_v44  ;;  %v7788_v28 = vadd.f32 %v9521_v36, %v7779_v42 }
0x2cb1   :  { %8049 = vmatprep.mubr.bf16.mxu0 %v12031_v16  ;;  %8100 = vmatprep.mubr.bf16.mxu1 %v12031_v16  ;;  %v11193_v16 = vld [vmem:[%s13693_s14 + $0x1c8] sm:$0xff]  }
0x2cb2   :  { %v7790_v27 = vpack.c.bf16 %v7788_v28, %v7788_v28  ;;  %10089 = vmatpush3.bf16.msra.mxu0 %v11190_v35  ;;  %10117 = vmatpush3.bf16.msra.mxu1 %v11191_v31 }
0x2cb3   :  { %10090 = vmatprep.subr.bf16.mxu0 %v11192_v21  ;;  %10118 = vmatprep.subr.bf16.mxu1 %v11193_v16 }
0x2cb6   :  { %10091 = vmatpush3.bf16.msra.mxu0 %v11194_v13  ;;  %10119 = vmatpush3.bf16.msra.mxu1 %v11195_v48 }
0x2cb7   :  { %10092 = vmatprep.subr.bf16.mxu0 %v11196_v55  ;;  %10120 = vmatprep.subr.bf16.mxu1 %v11197_v26 }
0x2cb8   :  { %8050 = vmatmul.mubr.bf16.gmra.mrb[144].mxu0 %v7790_v27  ;;  %8101 = vmatmul.mubr.bf16.gmra.mrb[176].mxu1 %v7790_v27 }
0x2cba   :  { %10093 = vmatpush3.bf16.msra.mxu0 %v11198_v32  ;;  %10121 = vmatpush3.bf16.msra.mxu1 %v11199_v14 }
0x2cbb   :  { %10094 = vmatprep.subr.bf16.mxu0 %v11200_v62  ;;  %10122 = vmatprep.subr.bf16.mxu1 %v11201_v40 }
0x2cbe   :  { %10095 = vmatpush3.bf16.msra.mxu0 %v11202_v3  ;;  %10123 = vmatpush3.bf16.msra.mxu1 %v11203_v50 }
0x2cbf   :  { %10096 = vmatprep.subr.bf16.mxu0 %v11204_v0  ;;  %10124 = vmatprep.subr.bf16.mxu1 %v11205_v39 }
0x2cc2   :  { %10097 = vmatpush3.bf16.msra.mxu0 %v11206_v1  ;;  %10125 = vmatpush3.bf16.msra.mxu1 %v11207_v58 }
0x2cc3   :  { %10098 = vmatprep.subr.bf16.mxu0 %v11208_v37  ;;  %10126 = vmatprep.subr.bf16.mxu1 %v11209_v52 }
0x2cc6   :  { %10099 = vmatpush3.bf16.msra.mxu0 %v11210_v15  ;;  %10127 = vmatpush3.bf16.msra.mxu1 %v11211_v53 }
0x2cc7   :  { %10100 = vmatprep.subr.bf16.mxu0 %v11212_v12  ;;  %10128 = vmatprep.subr.bf16.mxu1 %v11213_v56 }
0x2cca   :  { %10101 = vmatpush3.bf16.msra.mxu0 %v11214_v4  ;;  %10129 = vmatpush3.bf16.msra.mxu1 %v11215_v57 }
0x2ccb   :  { %10102 = vmatprep.subr.bf16.mxu0 %v11216_v18  ;;  %10130 = vmatprep.subr.bf16.mxu1 %v11217_v38 }
0x2cce   :  { %10103 = vmatpush3.bf16.msra.mxu0 %v11218_v19  ;;  %10131 = vmatpush3.bf16.msra.mxu1 %v11219_v7 }
0x2ccf   :  { %10591 = vmatprep.subr.bf16.mxu0 %v12030_v54  ;;  %10611 = vmatprep.subr.mxu1 %v12030_v54 }
0x2d83   :  { %v8041_v33 = vpop.f32.mrb[140].mxu0  ;;  %v8092_v51 = vpop.f32.mrb[172].mxu1 }
0x2d84   :  { %v13565_v25 = vadd.f32 %v8041_v33, %v7830_v8  ;;  %v13567_v63 = vadd.f32 %v8092_v51, %v7838_v24  ;;  %v8043_v60 = vpop.f32.mrb[141].mxu0  ;;  %v8094_v20 = vpop.f32.mrb[173].mxu1 }
0x2d85   :  { %v13569_v2 = vadd.f32 %v8043_v60, %v7834_v49  ;;  %v13571_v10 = vadd.f32 %v8094_v20, %v7842_v5  ;;  %v8045_v36 = vpop.f32.mrb[142].mxu0  ;;  %v8096_v45 = vpop.f32.mrb[174].mxu1 }
0x2d86   :  { %v9587_v43 = vmul.f32 -1.702, %v13565_v25  ;;  %v9589_v41 = vmul.f32 -1.702, %v13567_v63  ;;  %v13575_v30 = vadd.f32 %v8045_v36, %v7830_v8  ;;  %v13577_v59 = vadd.f32 %v8096_v45, %v7838_v24  ;;  %v8047_v34 = vpop.f32.mrb[143].mxu0  ;;  %v8098_v6 = vpop.f32.mrb[175].mxu1 }
0x2d87   :  { %v9588_v9 = vmul.f32 -1.702, %v13569_v2  ;;  %v9590_v17 = vmul.f32 -1.702, %v13571_v10  ;;  %v13581_v44 = vadd.f32 %v8047_v34, %v7834_v49  ;;  %v13583_v42 = vadd.f32 %v8098_v6, %v7842_v5 }
0x2d88   :  { %v8133_v28 = vmul.f32 1.442695, %v9587_v43  ;;  %v8137_v27 = vmul.f32 1.442695, %v9589_v41  ;;  %v9591_v61 = vmul.f32 -1.702, %v13575_v30 }
0x2d89   :  { %v8135_v22 = vmul.f32 1.442695, %v9588_v9  ;;  %v8139_v35 = vmul.f32 1.442695, %v9590_v17  ;;  %v9593_v31 = vmul.f32 -1.702, %v13577_v59 }
0x2d8a   :  { %11466 = vpow2.f32 %v8133_v28  ;;  %v8141_v21 = vmul.f32 1.442695, %v9591_v61  ;;  %v9592_v16 = vmul.f32 -1.702, %v13581_v44  ;;  %v9594_v13 = vmul.f32 -1.702, %v13583_v42 }
0x2d8b   :  { %11468 = vpow2.f32 %v8137_v27  ;;  %v8145_v48 = vmul.f32 1.442695, %v9593_v31  ;;  %v8051_v55 = vpop.f32.mrb[144].mxu0  ;;  %v8102_v26 = vpop.f32.mrb[176].mxu1 }
0x2d8c   :  { %11470 = vpow2.f32 %v8135_v22  ;;  %v8143_v32 = vmul.f32 1.442695, %v9592_v16  ;;  %v8147_v14 = vmul.f32 1.442695, %v9594_v13  ;;  %v13589_v62 = vadd.f32 %v8051_v55, %v7830_v8  ;;  %v8053_v40 = vpop.f32.mrb[145].mxu0  ;;  %v8104_v3 = vpop.f32.mrb[177].mxu1 }
0x2d8d   :  { %11472 = vpow2.f32 %v8139_v35  ;;  %v13591_v50 = vadd.f32 %v8102_v26, %v7838_v24  ;;  %v13593_v0 = vadd.f32 %v8053_v40, %v7834_v49  ;;  %v13595_v39 = vadd.f32 %v8104_v3, %v7842_v5  ;;  %v8055_v1 = vpop.f32.mrb[146].mxu0  ;;  %v8106_v58 = vpop.f32.mrb[178].mxu1 }
0x2d8e   :  { %11474 = vpow2.f32 %v8141_v21  ;;  %v9595_v37 = vmul.f32 -1.702, %v13589_v62  ;;  %v8056_v52 = vpop.f32.mrb[147].mxu0  ;;  %v8107_v15 = vpop.f32.mrb[179].mxu1 }
0x2d8f   :  { %11476 = vpow2.f32 %v8145_v48  ;;  %v9597_v53 = vmul.f32 -1.702, %v13591_v50  ;;  %v9596_v12 = vmul.f32 -1.702, %v13593_v0  ;;  %v9598_v56 = vmul.f32 -1.702, %v13595_v39 }
0x2d90   :  { %11478 = vpow2.f32 %v8143_v32  ;;  %v8149_v4 = vmul.f32 1.442695, %v9595_v37 }
0x2d91   :  { %11480 = vpow2.f32 %v8147_v14  ;;  %v8153_v57 = vmul.f32 1.442695, %v9597_v53  ;;  %v8151_v18 = vmul.f32 1.442695, %v9596_v12  ;;  %v8155_v38 = vmul.f32 1.442695, %v9598_v56 }
0x2d92   :  { %11482 = vpow2.f32 %v8149_v4 }
0x2d93   :  { %11484 = vpow2.f32 %v8153_v57 }
0x2d94   :  { %v11467_v19 = vpop.eup %11466  ;;  %11486 = vpow2.f32 %v8151_v18 }
0x2d95   :  { %v11469_v7 = vpop.eup %11468  ;;  %v8157_v47 = vadd.f32 1.0, %v11467_v19  ;;  %11488 = vpow2.f32 %v8155_v38 }
0x2d96   :  { %v11471_v8 = vpop.eup %11470  ;;  %v8159_v24 = vadd.f32 1.0, %v11469_v7  ;;  %v9663_v7 = vld [vmem:[#allocation29 + $0x1] ss:$0 sm:$0xff] }
0x2d97   :  { %v11473_v49 = vpop.eup %11472  ;;  %11490 = vrcp.f32 %v8157_v47  ;;  %v8158_v5 = vadd.f32 1.0, %v11471_v8 }
0x2d98   :  { %v11475_v33 = vpop.eup %11474  ;;  %11492 = vrcp.f32 %v8159_v24  ;;  %v8160_v51 = vadd.f32 1.0, %v11473_v49 }
0x2d99   :  { %v11477_v60 = vpop.eup %11476  ;;  %11494 = vrcp.f32 %v8158_v5  ;;  %v8161_v20 = vadd.f32 1.0, %v11475_v33 }
0x2d9a   :  { %v11479_v36 = vpop.eup %11478  ;;  %11496 = vrcp.f32 %v8160_v51  ;;  %v8163_v45 = vadd.f32 1.0, %v11477_v60 }
0x2d9b   :  { %v11481_v43 = vpop.eup %11480  ;;  %11498 = vrcp.f32 %v8161_v20  ;;  %v8162_v41 = vadd.f32 1.0, %v11479_v36 }
0x2d9c   :  { %v11483_v34 = vpop.eup %11482  ;;  %11500 = vrcp.f32 %v8163_v45  ;;  %v8164_v6 = vadd.f32 1.0, %v11481_v43 }
0x2d9d   :  { %v11485_v9 = vpop.eup %11484  ;;  %11502 = vrcp.f32 %v8162_v41  ;;  %v8165_v17 = vadd.f32 1.0, %v11483_v34 }
0x2d9e   :  { %v11487_v28 = vpop.eup %11486  ;;  %11504 = vrcp.f32 %v8164_v6  ;;  %v8167_v61 = vadd.f32 1.0, %v11485_v9 }
0x2d9f   :  { %v11489_v27 = vpop.eup %11488  ;;  %v8166_v22 = vadd.f32 1.0, %v11487_v28  ;;  %11506 = vrcp.f32 %v8165_v17 }
0x2da0   :  { %v8168_v35 = vadd.f32 1.0, %v11489_v27 }
0x2da1   :  { %v11491_v31 = vpop.eup %11490  ;;  %11508 = vrcp.f32 %v8166_v22 }
0x2da2   :  { %v11493_v21 = vpop.eup %11492  ;;  %11510 = vrcp.f32 %v8168_v35  ;;  %v8193_v26 = vmul.f32 %v11491_v31, %v13565_v25 }
0x2da3   :  { %v11495_v16 = vpop.eup %11494  ;;  %11512 = vrcp.f32 %v8167_v61  ;;  %v8195_v40 = vmul.f32 %v11493_v21, %v13567_v63 }
0x2da4   :  { %v11497_v13 = vpop.eup %11496  ;;  %v8194_v58 = vmul.f32 %v11495_v16, %v13569_v2 }
0x2da5   :  { %v11499_v48 = vpop.eup %11498  ;;  %v8196_v15 = vmul.f32 %v11497_v13, %v13571_v10 }
0x2da6   :  { %v11501_v55 = vpop.eup %11500  ;;  %v8197_v32 = vmul.f32 %v11499_v48, %v13575_v30 }
0x2da7   :  { %v11503_v14 = vpop.eup %11502  ;;  %v8199_v3 = vmul.f32 %v11501_v55, %v13577_v59 }
0x2da8   :  { %v11505_v1 = vpop.eup %11504  ;;  %v8205_v37 = vpack.c.bf16 %v8197_v32, %v8193_v26  ;;  %v8198_v52 = vmul.f32 %v11503_v14, %v13581_v44 }
0x2da9   :  { %v8207_v53 = vpack.c.bf16 %v8199_v3, %v8195_v40  ;;  %v8200_v12 = vmul.f32 %v11505_v1, %v13583_v42  ;;  %v11507_v56 = vpop.eup %11506 }
0x2daa   :  { %v8206_v25 = vpack.c.bf16 %v8198_v52, %v8194_v58  ;;  %v8201_v10 = vmul.f32 %v11507_v56, %v13589_v62  ;;  %v11222_v56 = vld [vmem:[#allocation30 + $0x10] sm:$0xff]  }
0x2dab   :  { %v11509_v4 = vpop.eup %11508  ;;  %v8208_v30 = vpack.c.bf16 %v8200_v12, %v8196_v15  ;;  %v8751_v15 = vmul.f32 %v13024_v46, %v13024_v46  ;;  %v11221_v12 = vld [vmem:[#allocation30 + $0x8] sm:$0xff]  }
0x2dac   :  { %v11511_v57 = vpop.eup %11510  ;;  %v8202_v63 = vmul.f32 %v11509_v4, %v13593_v0  ;;  %8510 = vmatprep.mubr.bf16.mxu0 %v8206_v25  ;;  %v8209_v38 = vpack.c.bf16 %v8201_v10, %v8201_v10  ;;  %v11223_v25 = vld [vmem:[#allocation30 + $0x18] sm:$0xff]   ;;  %v11224_v4 = vld [vmem:[#allocation30 + $0x20] sm:$0xff]  }
0x2dad   :  { %v11513_v59 = vpop.eup %11512  ;;  %v8204_v18 = vmul.f32 %v11511_v57, %v13595_v39  ;;  %8558 = vmatprep.mubr.bf16.mxu1 %v8208_v30  ;;  %8511 = vmatmul.mubr.bf16.vlgmr.msra.gmra.mrb[148].mxu0 %v8205_v37  ;;  %v11225_v30 = vld [vmem:[#allocation30 + $0x28] sm:$0xff]   ;;  %v11226_v57 = vld [vmem:[#allocation30 + $0x30] sm:$0xff]  }
0x2dae   :  { %v8210_v2 = vpack.c.bf16 %v8202_v63, %v8202_v63  ;;  %8559 = vmatmul.mubr.bf16.vlgmr.msra.gmra.mrb[180].mxu1 %v8207_v53  ;;  %v8203_v42 = vmul.f32 %v11513_v59, %v13591_v50  ;;  %v11220_v53 = vld [vmem:[#allocation30] sm:$0xff]   ;;  %v11227_v63 = vld [vmem:[#allocation30 + $0x38] sm:$0xff]  }
0x2daf   :  { %v8212_v44 = vpack.c.bf16 %v8204_v18, %v8204_v18  ;;  %10592 = vmatpush3.bf16.msra.mxu0 %v11220_v53 }
0x2db0   :  { %8518 = vmatprep.mubr.bf16.mxu0 %v8210_v2  ;;  %v8211_v19 = vpack.c.bf16 %v8203_v42, %v8203_v42  ;;  %10593 = vmatprep.subr.bf16.mxu0 %v12030_v54 }
0x2db1   :  { %8566 = vmatprep.mubr.bf16.mxu1 %v8212_v44 }
0x2db3   :  { %10594 = vmatpush3.bf16.msra.mxu0 %v11221_v12 }
0x2db4   :  { %10595 = vmatprep.subr.bf16.mxu0 %v12030_v54 }
0x2db5   :  { %8519 = vmatmul.mubr.bf16.gmra.mrb[152].mxu0 %v8209_v38 }
0x2db6   :  { %8567 = vmatmul.mubr.bf16.gmra.mrb[184].mxu1 %v8211_v19  ;;  %10607 = vmatprep.mubr.msk.bf16.mxu0 %vm12032_vm0, %v12030_v54 }
0x2db7   :  { %10613 = vmatprep.mubr.msk.f32.mxu1 %vm12032_vm0, %v12030_v54  ;;  %10596 = vmatpush3.bf16.msra.mxu0 %v11222_v56 }
0x2db8   :  { %10597 = vmatprep.subr.bf16.mxu0 %v12030_v54 }
0x2dbb   :  { %10598 = vmatpush3.bf16.msra.mxu0 %v11223_v25 }
0x2dbc   :  { %10599 = vmatprep.subr.bf16.mxu0 %v12030_v54 }
0x2dbf   :  { %10600 = vmatpush3.bf16.msra.mxu0 %v11224_v4 }
0x2dc0   :  { %10601 = vmatprep.subr.bf16.mxu0 %v12030_v54 }
0x2dc3   :  { %10602 = vmatpush3.bf16.msra.mxu0 %v11225_v30 }
0x2dc4   :  { %10603 = vmatprep.subr.bf16.mxu0 %v12030_v54 }
0x2dc7   :  { %10604 = vmatpush3.bf16.msra.mxu0 %v11226_v57 }
0x2dc8   :  { %10605 = vmatprep.subr.bf16.mxu0 %v12030_v54 }
0x2dcb   :  { %10606 = vmatpush3.bf16.msra.mxu0 %v11227_v63 }
0x2e80   :  { %v10104_v0 = vpop.f32.mrb[148].mxu0 }
0x2e81   :  { %v10132_v39 = vpop.f32.mrb[180].mxu1  ;;  %v10105_v47 = vpop.f32.mrb[149].mxu0 }
0x2e82   :  { %v10106_v62 = vadd.f32 %v10105_v47, %v10104_v0  ;;  %v10133_v8 = vpop.f32.mrb[181].mxu1  ;;  %v10107_v24 = vpop.f32.mrb[150].mxu0 }
0x2e83   :  { %v10134_v50 = vadd.f32 %v10133_v8, %v10132_v39  ;;  %v10135_v49 = vpop.f32.mrb[182].mxu1  ;;  %v10108_v5 = vpop.f32.mrb[151].mxu0  ;;  %v9697_v8 = vld [vmem:[%s12212_s5] ss:$0 sm:$0xff]  ;;  %s12033_s5 = smov [#allocation32]  }
0x2e84   :  { %v8513_v33 = vadd.f32 %v10106_v62, %v9663_v7  ;;  %v10109_v51 = vadd.f32 %v10108_v5, %v10107_v24  ;;  %v10136_v60 = vpop.f32.mrb[183].mxu1  ;;  %s8853_s15 = sshll.u32 %s12033_s5, 4  ;;  %s8854_s15 = int_to_ptr.vmem [resolvable:$true] %s8853_s15 }
0x2e85   :  { %v10137_v20 = vadd.f32 %v10136_v60, %v10135_v49  ;;  %s11923_s9 = scalar_lea.vmem %s8854_s15, 32  ;;  %p11928_p5 = scmp.lt.s32.totalorder %s8854_s15, %s8854_s15 }
0x2e86   :  { %v8561_v36 = vadd.f32 %v10134_v50, %v8513_v33  ;;  %v8516_v45 = vadd.f32 %v10109_v51, %v9663_v7  ;;  %p11924_p4 = scmp.ne.s32.totalorder %s8854_s15, %s11923_s9  ;;  %p11929_p6 = scmp.lt.s32.totalorder %s11923_s9, %s11923_s9 }
0x2e88   :  { %v8564_v43 = vadd.f32 %v10137_v20, %v8516_v45  ;;  %v10110_v41 = vpop.f32.mrb[152].mxu0  ;;  %v8574_v34 = vadd.f32 %v8561_v36, %v13464_v23  ;;  %p11930_p7 = por %p11929_p6, %p11928_p5 }
0x2e89   :  { %v10138_v6 = vpop.f32.mrb[184].mxu1  ;;  %v10111_v9 = vpop.f32.mrb[153].mxu0 }
0x2e8a   :  { %v10112_v17 = vadd.f32 %v10111_v9, %v10110_v41  ;;  %v10139_v28 = vpop.f32.mrb[185].mxu1  ;;  %v10113_v27 = vpop.f32.mrb[154].mxu0  ;;  %8579 = vadd.xlane.f32.xlu0 %v8574_v34  ;;  %v8575_v61 = vadd.f32 %v8564_v43, %v13468_v29  ;;  %p11931_p8 = pnand %p11930_p7, %p11924_p4 }
0x2e8b   :  { %v10140_v22 = vadd.f32 %v10139_v28, %v10138_v6  ;;  %v10141_v35 = vpop.f32.mrb[186].mxu1  ;;  %v10114_v31 = vpop.f32.mrb[155].mxu0 }
0x2e8c   :  { %v8521_v21 = vadd.f32 %v10112_v17, %v9663_v7  ;;  %v10142_v16 = vpop.f32.mrb[187].mxu1  ;;  %8581 = vadd.xlane.f32.xlu1 %v8575_v61  ;;  %v9696_v7 = vld [vmem:[%s13695_s18] ss:$0 sm:$0xff] }
0x2e8e   :  { %v8569_v13 = vadd.f32 %v10140_v22, %v8521_v21 }
0x2e90   :  { %v8576_v48 = vadd.f32 %v8569_v13, %v13471_v11  ;;  %v8752_v11 = vsel %vm4339_vm6, %v8751_v15, 0.0 }
0x2e92   :  { %8583 = vadd.xlane.f32.xlu0 %v8576_v48 }
0x2f17   :  { %v8580_v55 = vpop.xlane.xlu0 %8579 }
0x2f18   :  { %v8585_v23 = vmul.f32 0.0078125, %v8580_v55  ;;  %v9706_v55 = vld [vmem:[#allocation2] ss:$0 sm:$0xff] }
0x2f19   :  { %v8582_v26 = vpop.xlane.xlu1 %8581 }
0x2f1a   :  { %v8588_v32 = vsub.f32 %v8574_v34, %v8585_v23  ;;  %v8586_v14 = vmul.f32 0.0078125, %v8582_v26 }
0x2f1c   :  { %v8589_v40 = vsub.f32 %v8575_v61, %v8586_v14  ;;  %v8591_v3 = vmul.f32 %v8588_v32, %v8588_v32 }
0x2f1e   :  { %8594 = vadd.xlane.f32.xlu1 %v8591_v3  ;;  %v8592_v1 = vmul.f32 %v8589_v40, %v8589_v40 }
0x2f1f   :  { %v8584_v29 = vpop.xlane.xlu0 %8583 }
0x2f20   :  { %v8587_v58 = vmul.f32 0.0078125, %v8584_v29  ;;  %8596 = vadd.xlane.f32.xlu0 %v8592_v1 }
0x2f22   :  { %v8590_v37 = vsub.f32 %v8576_v48, %v8587_v58 }
0x2f24   :  { %v8593_v52 = vmul.f32 %v8590_v37, %v8590_v37 }
0x2f26   :  { %8598 = vadd.xlane.f32.xlu1 %v8593_v52 }
0x2f2a   :  { %8753 = vadd.xlane.f32.xlu1 %v8752_v11 }
0x2fab   :  { %v8595_v59 = vpop.xlane.xlu1 %8594 }
0x2fac   :  { %v8600_v18 = vmul.f32 0.0078125, %v8595_v59 }
0x2fad   :  { %v8597_v2 = vpop.xlane.xlu0 %8596 }
0x2fae   :  { %v8603_v10 = vadd.f32 1e-05, %v8600_v18  ;;  %v8601_v44 = vmul.f32 0.0078125, %v8597_v2 }
0x2fb0   :  { %11514 = vrsqrt.f32 %v8603_v10  ;;  %v8604_v42 = vadd.f32 1e-05, %v8601_v44 }
0x2fb2   :  { %11516 = vrsqrt.f32 %v8604_v42 }
0x2fb3   :  { %v8599_v38 = vpop.xlane.xlu1 %8598 }
0x2fb4   :  { %v8602_v19 = vmul.f32 0.0078125, %v8599_v38 }
0x2fb6   :  { %v8605_v0 = vadd.f32 1e-05, %v8602_v19 }
0x2fb7   :  { %v8754_v23 = vpop.xlane.xlu1 %8753 }
0x2fb8   :  { %11518 = vrsqrt.f32 %v8605_v0 }
0x2fba   :  { %v11515_v39 = vpop.eup %11514 }
0x2fbb   :  { %v8609_v47 = vmul.f32 %v11515_v39, %v8588_v32 }
0x2fbc   :  { %v11517_v62 = vpop.eup %11516 }
0x2fbd   :  { %v8618_v54 = vmul.f32 %v9696_v7, %v8609_v47  ;;  %v8610_v24 = vmul.f32 %v11517_v62, %v8589_v40 }
0x2fbf   :  { %v8619_v50 = vmul.f32 %v9696_v7, %v8610_v24  ;;  %v8627_v49 = vadd.f32 %v9697_v8, %v8618_v54 }
0x2fc1   :  { %v8628_v5 = vadd.f32 %v9697_v8, %v8619_v50  ;;  %v8630_v20 = vpack.c.bf16 %v8627_v49, %v8627_v49 }
0x2fc2   :  { %v11519_v33 = vpop.eup %11518 }
0x2fc3   :  { %v8631_v51 = vpack.c.bf16 %v8628_v5, %v8628_v5  ;;  %v8611_v60 = vmul.f32 %v11519_v33, %v8590_v37  ;;  %v8652_v41 = vunpack.c.l.b16 %v8630_v20 }
0x2fc5   :  { %v8620_v36 = vmul.f32 %v9696_v7, %v8611_v60  ;;  %v8653_v45 = vunpack.c.l.b16 %v8631_v51  ;;  %v8655_v17 = vrot.slane %v8652_v41, 7 }
0x2fc7   :  { %v8629_v43 = vadd.f32 %v9697_v8, %v8620_v36  ;;  %v8656_v6 = vrot.slane %v8653_v45, 6 }
0x2fc9   :  { %v8632_v34 = vpack.c.bf16 %v8629_v43, %v8629_v43  ;;  %v8657_v27 = vsel %vm4336_vm5, %v8656_v6, %v8655_v17 }
0x2fcb   :  { %v8654_v9 = vunpack.c.l.b16 %v8632_v34 }
0x2fcd   :  { %v8658_v28 = vrot.slane %v8654_v9, 5 }
0x2fcf   :  { %v8660_v61 = vsel %vm8659_vm8, %v8658_v28, %v8657_v27 }
0x2fd0   :  { %v8661_v22 = vpack.c.b16 %v8660_v61, %v8660_v61 }
0x2fd2   :  { %10608 = vmatmul.mubr.bf16.vlgmr.msra.gmra.mrb[156].mxu0 %v8661_v22 }
0x30a5   :  { %v8745_v35 = vpop.f32.mrb[156].mxu0 }
0x30a6   :  { %v8757_v31 = vmul.f32 %v8745_v35, %v8745_v35  ;;  %v10609_v21 = vpop.f32.mrb[157].mxu0 }
0x30a7   :  { %v8748_v16 = vpop.f32.mrb[158].mxu0 }
0x30a8   :  { %v10610_v13 = vpop.f32.mrb[159].mxu0  ;;  %v8759_v48 = vsel %vm8758_vm9, %v8757_v31, 0.0 }
0x30a9   :  { %8760 = vadd.xlane.f32.xlu0 %v8759_v48 }
0x30bf   :  { %8841 = vperm.xlu0 %10683, %v9706_v55  }
0x3136   :  { %v8761_v26 = vpop.xlane.xlu0 %8760 }
0x3137   :  { %11520 = vrsqrt.f32 %v8761_v26 }
0x3138   :  { %11522 = vrsqrt.f32 %v8754_v23 }
0x313e   :  { %v8842_v1 = vpop.permute.xlu0 %8841 }
0x3141   :  { %v11521_v32 = vpop.eup %11520 }
0x3142   :  { %v11523_v14 = vpop.eup %11522  ;;  %v8763_v40 = vmul.f32 %v11521_v32, %v8745_v35 }
0x3143   :  { %v8756_v3 = vmul.f32 %v11523_v14, %v13024_v46 }
0x3144   :  { %10612 = vmatpush3.xpose.msra.mxu1 %v8763_v40 }
0x3147   :  { %10614 = vmatmul.mubr.f32.vlgmr.msra.gmra.mrb[188].mxu1 %v8756_v3 }
0x321a   :  { %v8830_v29 = vpop.f32.mrb[188].mxu1 }
0x321b   :  { %v8844_v58 = vmul.f32 %v8842_v1, %v8830_v29  ;;  %v10615_v37 = vpop.f32.mrb[189].mxu1 }
0x321d   :  { %8846 = vst.msk [vmem:[#allocation32] sm:$0x3] %vm8845_vm10, %v8844_v58 }
0x321e   :  { %11934 = shalt.err (!%p11931_p8)
}
0x321f   :  { %s11935_s29 = scalar_lea.hbm %s12225_s25, 32 }
0x3220   :  { %p11936_p9 = scmp.ne.s32.totalorder %s12225_s25, %s11935_s29  ;;  %p11939_p10 = scmp.lt.u32.totalorder %s11935_s29, %s12225_s25 }
0x3222   :  { %p11941_p11 = pnand %p11939_p10, %p11936_p9 }
0x3224   :  { %11944 = shalt.err (!%p11941_p11)
}
0x3225   :  { %8856 = dma.vmem_to_hbm [thread:$0]  %s8854_s15, 32, %s12225_s25, [#allocation5]  }
0x3226   :  { %11965 = dma.done.wait [#allocation5], 32  }
0x3227   :  { %11966 = vsyncadd [#allocation5], 4294967264 }
0x3228   :  { %8860 = vsyncpa [#allocation4], 1 }
0x3229   :  { %8861 = vsyncpa [#allocation7], 1 }
0x322a   :  { %8862 = vsyncpa [#allocation10], 1 }
0x322b   :  { %8863 = vsyncpa [#allocation13], 1 }
0x322c   :  { %8864 = vsyncpa [#allocation16], 1 }
0x322d   :  { %8865 = vsyncpa [#allocation19], 1 }
0x322e   :  { %8866 = vsyncpa [#allocation22], 1 }
0x322f   :  { %8867 = vsyncpa [#allocation25], 1 }
0x3230   :  { %8868 = vsyncpa [#allocation28], 1 }
0x3231   :  { %8869 = vsyncpa [#allocation31], 1 }
0x3232   :  { %8870 = vsyncpa [#allocation5], 1 }

</bundles_post_ra>
